<compile_context>
chip_gen: v6e
topology: v6e:2x2x1
jax: 0.10.0
libtpu: 0.0.40
codegen_flags: <defaults>
</compile_context>

<pallas_src>
import math
import functools

import jax
import jax.numpy as jnp
from jax import lax
from jax.experimental import pallas as pl
from jax.experimental.pallas import tpu as pltpu

jax.config.update("jax_default_matmul_precision", "highest")

_LN_EPS = 1e-5
_OUT_PAD = 128   # lane-dense padded width for head outputs


# ----------------------------- in-kernel math helpers -----------------------------

def _erf(x):
    # Abramowitz & Stegun 7.1.26 polynomial (|err| < 1.5e-7, below fp32 noise).
    # TODO(synk): exact lax.erf has no guaranteed Mosaic lowering; polynomial used instead.
    a1, a2, a3, a4, a5 = 0.254829592, -0.284496736, 1.421413741, -1.453152027, 1.061405429
    p = 0.3275911
    sign = jnp.where(x >= 0.0, 1.0, -1.0)
    ax = jnp.abs(x)
    t = 1.0 / (1.0 + p * ax)
    poly = ((((a5 * t + a4) * t + a3) * t + a2) * t + a1) * t
    return sign * (1.0 - poly * jnp.exp(-ax * ax))


def _gelu(x):
    # matches torch.nn.GELU() (exact, erf-based) up to ~1e-7
    return 0.5 * x * (1.0 + _erf(x * (1.0 / math.sqrt(2.0))))


def _layernorm(x, w, b):
    mu = jnp.mean(x, axis=-1, keepdims=True)
    var = jnp.mean(jnp.square(x - mu), axis=-1, keepdims=True)
    return (x - mu) * lax.rsqrt(var + _LN_EPS) * w + b


# ----------------------------- fused forward kernel -----------------------------

def _fused_kernel(n_heads, n_blocks, B, T,
                  states_ref, actions_ref, te_ref,
                  ws_ref, bs_ref, wa_ref, ba_ref, elnw_ref, elnb_ref,
                  wqkv_ref, bqkv_ref, wp_ref, bp_ref, ln1w_ref, ln1b_ref,
                  w1_ref, b1_ref, w2_ref, b2_ref, ln2w_ref, ln2b_ref,
                  wps_ref, bps_ref, wpa_ref, bpa_ref,
                  sp_ref, ap_ref,
                  att_ref):
    S = 2 * T
    H = ws_ref.shape[1]
    D = H // n_heads
    scale = 1.0 / math.sqrt(D)

    # ---- embeddings on the full (B*T, .) slabs: one fat matmul each ----
    te = te_ref[...]                                                     # (B*T, H)
    se = jnp.dot(states_ref[...], ws_ref[...],
                 preferred_element_type=jnp.float32) + bs_ref[...] + te  # (B*T, H)
    ae = jnp.dot(actions_ref[...], wa_ref[...],
                 preferred_element_type=jnp.float32) + ba_ref[...] + te  # (B*T, H)

    # ---- assemble hidden state in per-batch "block order" [s_0..s_{T-1}, a_0..a_{T-1}] ----
    # (row permutation of the interleaved sequence; attention semantics restored via the mask)
    pieces = []
    for b in range(B):
        pieces.append(se[b * T:(b + 1) * T])
        pieces.append(ae[b * T:(b + 1) * T])
    h = jnp.concatenate(pieces, axis=0)                                  # (B*S, H)
    h = _layernorm(h, elnw_ref[...], elnb_ref[...])

    # ---- causal mask over interleaved positions, built once (shape-static) ----
    ri = lax.broadcasted_iota(jnp.int32, (S, S), 0)
    ci = lax.broadcasted_iota(jnp.int32, (S, S), 1)
    pos_r = jnp.where(ri < T, 2 * ri, 2 * (ri - T) + 1)   # state slot t -> 2t, action slot t -> 2t+1
    pos_c = jnp.where(ci < T, 2 * ci, 2 * (ci - T) + 1)
    causal = pos_r >= pos_c

    # ---- transformer blocks (static loop, h stays resident in VMEM/vregs) ----
    for l in range(n_blocks):
        # fused QKV projection on the batch-packed slab
        qkv = jnp.dot(h, wqkv_ref[l], preferred_element_type=jnp.float32) + bqkv_ref[l]  # (B*S, 3H)
        q = qkv[:, 0:H]
        k = qkv[:, H:2 * H]
        v = qkv[:, 2 * H:3 * H]

        # masked causal attention: scores/softmax per (batch, head), head outputs
        # written into a VMEM scratch so the output projection is a single fat matmul
        for b in range(B):
            rb = slice(b * S, (b + 1) * S)
            qb, kb, vb = q[rb], k[rb], v[rb]
            for hd in range(n_heads):
                cs = slice(hd * D, (hd + 1) * D)
                s = lax.dot_general(qb[:, cs], kb[:, cs], (((1,), (1,)), ((), ())),
                                    preferred_element_type=jnp.float32) * scale   # (S, S)
                s = jnp.where(causal, s, -jnp.inf)
                s = s - jnp.max(s, axis=-1, keepdims=True)
                e = jnp.exp(s)
                p = e * pl.reciprocal(jnp.sum(e, axis=-1, keepdims=True), approx=True)
                oh = jnp.dot(p, vb[:, cs], preferred_element_type=jnp.float32)     # (S, D)
                att_ref[pl.ds(b * S, S), pl.ds(hd * D, D)] = oh

        attn_out = jnp.dot(att_ref[...], wp_ref[l],
                           preferred_element_type=jnp.float32) + bp_ref[l]          # (B*S, H)

        h = _layernorm(h + attn_out, ln1w_ref[l], ln1b_ref[l])
        m1 = _gelu(jnp.dot(h, w1_ref[l], preferred_element_type=jnp.float32) + b1_ref[l])
        m2 = jnp.dot(m1, w2_ref[l], preferred_element_type=jnp.float32) + b2_ref[l]
        h = _layernorm(h + m2, ln2w_ref[l], ln2b_ref[l])

    # ---- prediction heads (lane-dense padded outputs) ----
    # state preds from action-slot hiddens, action preds from state-slot hiddens
    h_act = jnp.concatenate([h[b * S + T:(b + 1) * S] for b in range(B)], axis=0)    # (B*T, H)
    h_state = jnp.concatenate([h[b * S:b * S + T] for b in range(B)], axis=0)        # (B*T, H)
    sp_ref[...] = jnp.dot(h_act, wps_ref[...], preferred_element_type=jnp.float32) + bps_ref[...]
    ap_ref[...] = jnp.dot(h_state, wpa_ref[...], preferred_element_type=jnp.float32) + bpa_ref[...]


# ----------------------------- wrappers -----------------------------

def prepare_params(params, state_dim, act_dim, h_dim):
    """One-time weight prep: stack per-block weights, fuse QKV, pad head weights lane-dense."""
    blocks = params["blocks"]

    def stack(key):
        return jnp.stack([blk[key] for blk in blocks], axis=0)

    wps = jnp.zeros((h_dim, _OUT_PAD), jnp.float32).at[:, :state_dim].set(params["wps"])
    bps = jnp.zeros((1, _OUT_PAD), jnp.float32).at[:, :state_dim].set(params["bps"])
    wpa = jnp.zeros((h_dim, _OUT_PAD), jnp.float32).at[:, :act_dim].set(params["wpa"])
    bpa = jnp.zeros((1, _OUT_PAD), jnp.float32).at[:, :act_dim].set(params["bpa"])

    return {
        "embed_timestep": params["embed_timestep"],
        "ws": params["ws"], "bs": params["bs"],
        "wa": params["wa"], "ba": params["ba"],
        "eln_w": params["eln_w"], "eln_b": params["eln_b"],
        "wqkv": jnp.stack([jnp.concatenate([b["wq"], b["wk"], b["wv"]], axis=1) for b in blocks]),
        "bqkv": jnp.stack([jnp.concatenate([b["bq"], b["bk"], b["bv"]], axis=1) for b in blocks]),
        "wp": stack("wp"), "bp": stack("bp"),
        "ln1w": stack("ln1w"), "ln1b": stack("ln1b"),
        "w1": stack("w1"), "b1": stack("b1"),
        "w2": stack("w2"), "b2": stack("b2"),
        "ln2w": stack("ln2w"), "ln2b": stack("ln2b"),
        "wps": wps, "bps": bps, "wpa": wpa, "bpa": bpa,
    }


def pallas_forward(prep, timesteps, states, actions, n_heads, state_dim, act_dim):
    B, T, _ = states.shape
    H = prep["ws"].shape[1]
    assert H % n_heads == 0
    S = 2 * T
    L = prep["wqkv"].shape[0]
    OUT = prep["wps"].shape[1]

    # glue: embedding gather (data-dependent gather kept in XLA; tiny)
    te = jnp.take(prep["embed_timestep"], timesteps, axis=0).reshape(B * T, H)
    states2 = states.reshape(B * T, -1)
    actions2 = actions.reshape(B * T, -1)

    kernel = functools.partial(_fused_kernel, n_heads, L, B, T)
    sp_pad, ap_pad = pl.pallas_call(
        kernel,
        out_shape=[jax.ShapeDtypeStruct((B * T, OUT), jnp.float32),
                   jax.ShapeDtypeStruct((B * T, OUT), jnp.float32)],
        scratch_shapes=[pltpu.VMEM((B * S, H), jnp.float32)],
    )(states2, actions2, te,
      prep["ws"], prep["bs"], prep["wa"], prep["ba"], prep["eln_w"], prep["eln_b"],
      prep["wqkv"], prep["bqkv"], prep["wp"], prep["bp"], prep["ln1w"], prep["ln1b"],
      prep["w1"], prep["b1"], prep["w2"], prep["b2"], prep["ln2w"], prep["ln2b"],
      prep["wps"], prep["bps"], prep["wpa"], prep["bpa"])

    sp = sp_pad[:, :state_dim].reshape(B, T, state_dim)
    ap = ap_pad[:, :act_dim].reshape(B, T, act_dim)
    return sp, ap


# ----------------------------- pure-JAX reference -----------------------------

def reference_forward(params, timesteps, states, actions, n_heads):
    te = params["embed_timestep"][timesteps]
    se = states @ params["ws"] + params["bs"] + te
    ae = actions @ params["wa"] + params["ba"] + te
    B, T, H = se.shape
    S = 2 * T
    D = H // n_heads
    h = jnp.stack([se, ae], axis=2).reshape(B, S, H)
    h = _layernorm(h, params["eln_w"], params["eln_b"])
    mask = jnp.tril(jnp.ones((S, S), bool))
    for blk in params["blocks"]:
        def split(x):
            return x.reshape(B, S, n_heads, D).transpose(0, 2, 1, 3)
        q = split(h @ blk["wq"] + blk["bq"])
        k = split(h @ blk["wk"] + blk["bk"])
        v = split(h @ blk["wv"] + blk["bv"])
        w = jnp.einsum("bnsd,bntd->bnst", q, k) / math.sqrt(D)
        w = jnp.where(mask, w, -jnp.inf)
        p = jax.nn.softmax(w, axis=-1)
        att = jnp.einsum("bnst,bntd->bnsd", p, v).transpose(0, 2, 1, 3).reshape(B, S, H)
        h = h + att @ blk["wp"] + blk["bp"]
        h = _layernorm(h, blk["ln1w"], blk["ln1b"])
        mlp = jax.nn.gelu(h @ blk["w1"] + blk["b1"], approximate=False) @ blk["w2"] + blk["b2"]
        h = _layernorm(h + mlp, blk["ln2w"], blk["ln2b"])
    h4 = h.reshape(B, T, 2, H)
    sp = h4[:, :, 1, :] @ params["wps"] + params["bps"]
    ap = h4[:, :, 0, :] @ params["wpa"] + params["bpa"]
    return sp, ap


# ----------------------------- main -----------------------------

if __name__ == "__main__":
    B, T = 2, 8                  # context_len = 8 -> transformer seq = 16
    state_dim, act_dim = 12, 4
    h_dim, n_heads, n_blocks = 32, 2, 2
    max_timestep = 64

    keys = iter(jax.random.split(jax.random.PRNGKey(0), 64))

    def mk(shape, scale=0.05):
        return scale * jax.random.normal(next(keys), shape, jnp.float32)

    params = {
        "embed_timestep": mk((max_timestep, h_dim), 0.1),
        "ws": mk((state_dim, h_dim)), "bs": mk((1, h_dim), 0.01),
        "wa": mk((act_dim, h_dim)), "ba": mk((1, h_dim), 0.01),
        "eln_w": 1.0 + mk((1, h_dim), 0.1), "eln_b": mk((1, h_dim), 0.05),
        "wps": mk((h_dim, state_dim)), "bps": mk((1, state_dim), 0.01),
        "wpa": mk((h_dim, act_dim)), "bpa": mk((1, act_dim), 0.01),
        "blocks": [],
    }
    for _ in range(n_blocks):
        params["blocks"].append({
            "wq": mk((h_dim, h_dim)), "bq": mk((1, h_dim), 0.01),
            "wk": mk((h_dim, h_dim)), "bk": mk((1, h_dim), 0.01),
            "wv": mk((h_dim, h_dim)), "bv": mk((1, h_dim), 0.01),
            "wp": mk((h_dim, h_dim)), "bp": mk((1, h_dim), 0.01),
            "ln1w": 1.0 + mk((1, h_dim), 0.1), "ln1b": mk((1, h_dim), 0.05),
            "w1": mk((h_dim, 4 * h_dim)), "b1": mk((1, 4 * h_dim), 0.01),
            "w2": mk((4 * h_dim, h_dim)), "b2": mk((1, h_dim), 0.01),
            "ln2w": 1.0 + mk((1, h_dim), 0.1), "ln2b": mk((1, h_dim), 0.05),
        })

    dk1, dk2, dk3 = jax.random.split(jax.random.PRNGKey(1), 3)
    timesteps = jax.random.randint(dk1, (B, T), 0, max_timestep, dtype=jnp.int32)
    states = jax.random.normal(dk2, (B, T, state_dim), jnp.float32)
    actions = jax.random.normal(dk3, (B, T, act_dim), jnp.float32)

    prep = prepare_params(params, state_dim, act_dim, h_dim)
    fwd = jax.jit(functools.partial(pallas_forward, n_heads=n_heads,
                                    state_dim=state_dim, act_dim=act_dim))

    sp, ap = fwd(prep, timesteps, states, actions)
    sp, ap = jax.block_until_ready((sp, ap))

    sp_ref, ap_ref = reference_forward(params, timesteps, states, actions, n_heads)
    assert sp.shape == (B, T, state_dim) and ap.shape == (B, T, act_dim)
    err = max(float(jnp.max(jnp.abs(sp - sp_ref))), float(jnp.max(jnp.abs(ap - ap_ref))))
    assert err < 5e-3, f"mismatch vs reference: {err}"

    print("KERNEL_OK")
</pallas_src>

<mosaic_0001>
module attributes {stable_mosaic.version = 11 : i64} {
  func.func @_fused_kernel(%arg0: memref<16x12xf32, #tpu.memory_space<vmem>>, %arg1: memref<16x4xf32, #tpu.memory_space<vmem>>, %arg2: memref<16x32xf32, #tpu.memory_space<vmem>>, %arg3: memref<12x32xf32, #tpu.memory_space<vmem>>, %arg4: memref<1x32xf32, #tpu.memory_space<vmem>>, %arg5: memref<4x32xf32, #tpu.memory_space<vmem>>, %arg6: memref<1x32xf32, #tpu.memory_space<vmem>>, %arg7: memref<1x32xf32, #tpu.memory_space<vmem>>, %arg8: memref<1x32xf32, #tpu.memory_space<vmem>>, %arg9: memref<2x32x96xf32, #tpu.memory_space<vmem>>, %arg10: memref<2x1x96xf32, #tpu.memory_space<vmem>>, %arg11: memref<2x32x32xf32, #tpu.memory_space<vmem>>, %arg12: memref<2x1x32xf32, #tpu.memory_space<vmem>>, %arg13: memref<2x1x32xf32, #tpu.memory_space<vmem>>, %arg14: memref<2x1x32xf32, #tpu.memory_space<vmem>>, %arg15: memref<2x32x128xf32, #tpu.memory_space<vmem>>, %arg16: memref<2x1x128xf32, #tpu.memory_space<vmem>>, %arg17: memref<2x128x32xf32, #tpu.memory_space<vmem>>, %arg18: memref<2x1x32xf32, #tpu.memory_space<vmem>>, %arg19: memref<2x1x32xf32, #tpu.memory_space<vmem>>, %arg20: memref<2x1x32xf32, #tpu.memory_space<vmem>>, %arg21: memref<32x128xf32, #tpu.memory_space<vmem>>, %arg22: memref<1x128xf32, #tpu.memory_space<vmem>>, %arg23: memref<32x128xf32, #tpu.memory_space<vmem>>, %arg24: memref<1x128xf32, #tpu.memory_space<vmem>>, %arg25: memref<16x128xf32, #tpu.memory_space<vmem>>, %arg26: memref<16x128xf32, #tpu.memory_space<vmem>>, %arg27: memref<32x32xf32, #tpu.memory_space<vmem>>) attributes {dimension_semantics = [], scalar_prefetch = 0 : i64, scratch_operands = 1 : i64, tpu.core_type = #tpu.core_type<tc>} {
    %c0 = arith.constant 0 : index
    %c0_0 = arith.constant 0 : index
    %0 = vector.load %arg2[%c0, %c0_0] : memref<16x32xf32, #tpu.memory_space<vmem>>, vector<16x32xf32>
    %c0_1 = arith.constant 0 : index
    %c0_2 = arith.constant 0 : index
    %1 = vector.load %arg0[%c0_1, %c0_2] : memref<16x12xf32, #tpu.memory_space<vmem>>, vector<16x12xf32>
    %c0_3 = arith.constant 0 : index
    %c0_4 = arith.constant 0 : index
    %2 = vector.load %arg3[%c0_3, %c0_4] : memref<12x32xf32, #tpu.memory_space<vmem>>, vector<12x32xf32>
    %cst = arith.constant dense<0.000000e+00> : vector<16x32xf32>
    %3 = tpu.matmul %1, %2, %cst {dimension_numbers = #tpu.dot_dimension_numbers<[1], [0], [0], [1], [0, 0, 1, 1], [], []>, precision = #tpu.contract_precision<fp32>} : vector<16x12xf32>, vector<12x32xf32>, vector<16x32xf32> -> vector<16x32xf32>
    %c0_5 = arith.constant 0 : index
    %c0_6 = arith.constant 0 : index
    %4 = vector.load %arg4[%c0_5, %c0_6] : memref<1x32xf32, #tpu.memory_space<vmem>>, vector<1x32xf32>
    %5 = vector.broadcast %4 : vector<1x32xf32> to vector<16x32xf32>
    %6 = arith.addf %3, %5 : vector<16x32xf32>
    %7 = arith.addf %6, %0 : vector<16x32xf32>
    %c0_7 = arith.constant 0 : index
    %c0_8 = arith.constant 0 : index
    %8 = vector.load %arg1[%c0_7, %c0_8] : memref<16x4xf32, #tpu.memory_space<vmem>>, vector<16x4xf32>
    %c0_9 = arith.constant 0 : index
    %c0_10 = arith.constant 0 : index
    %9 = vector.load %arg5[%c0_9, %c0_10] : memref<4x32xf32, #tpu.memory_space<vmem>>, vector<4x32xf32>
    %cst_11 = arith.constant dense<0.000000e+00> : vector<16x32xf32>
    %10 = tpu.matmul %8, %9, %cst_11 {dimension_numbers = #tpu.dot_dimension_numbers<[1], [0], [0], [1], [0, 0, 1, 1], [], []>, precision = #tpu.contract_precision<fp32>} : vector<16x4xf32>, vector<4x32xf32>, vector<16x32xf32> -> vector<16x32xf32>
    %c0_12 = arith.constant 0 : index
    %c0_13 = arith.constant 0 : index
    %11 = vector.load %arg6[%c0_12, %c0_13] : memref<1x32xf32, #tpu.memory_space<vmem>>, vector<1x32xf32>
    %12 = vector.broadcast %11 : vector<1x32xf32> to vector<16x32xf32>
    %13 = arith.addf %10, %12 : vector<16x32xf32>
    %14 = arith.addf %13, %0 : vector<16x32xf32>
    %15 = vector.extract_strided_slice %7 {offsets = [0, 0], sizes = [8, 32], strides = [1, 1]} : vector<16x32xf32> to vector<8x32xf32>
    %16 = vector.extract_strided_slice %14 {offsets = [0, 0], sizes = [8, 32], strides = [1, 1]} : vector<16x32xf32> to vector<8x32xf32>
    %17 = vector.extract_strided_slice %7 {offsets = [8, 0], sizes = [8, 32], strides = [1, 1]} : vector<16x32xf32> to vector<8x32xf32>
    %18 = vector.extract_strided_slice %14 {offsets = [8, 0], sizes = [8, 32], strides = [1, 1]} : vector<16x32xf32> to vector<8x32xf32>
    %19 = tpu.concatenate %15, %16, %17, %18 in 0 : vector<8x32xf32>, vector<8x32xf32>, vector<8x32xf32>, vector<8x32xf32> -> vector<32x32xf32>
    %c0_14 = arith.constant 0 : index
    %c0_15 = arith.constant 0 : index
    %20 = vector.load %arg7[%c0_14, %c0_15] : memref<1x32xf32, #tpu.memory_space<vmem>>, vector<1x32xf32>
    %c0_16 = arith.constant 0 : index
    %c0_17 = arith.constant 0 : index
    %21 = vector.load %arg8[%c0_16, %c0_17] : memref<1x32xf32, #tpu.memory_space<vmem>>, vector<1x32xf32>
    %cst_18 = arith.constant dense<0.000000e+00> : vector<32xf32>
    %22 = vector.multi_reduction <add>, %19, %cst_18 [1] : vector<32x32xf32> to vector<32xf32>
    %23 = vector.shape_cast %22 : vector<32xf32> to vector<32x1xf32>
    %cst_19 = arith.constant 3.200000e+01 : f32
    %24 = vector.broadcast %cst_19 : f32 to vector<32x1xf32>
    %25 = arith.divf %23, %24 : vector<32x1xf32>
    %26 = vector.broadcast %25 : vector<32x1xf32> to vector<32x32xf32>
    %27 = arith.subf %19, %26 : vector<32x32xf32>
    %28 = arith.mulf %27, %27 : vector<32x32xf32>
    %cst_20 = arith.constant dense<0.000000e+00> : vector<32xf32>
    %29 = vector.multi_reduction <add>, %28, %cst_20 [1] : vector<32x32xf32> to vector<32xf32>
    %30 = vector.shape_cast %29 : vector<32xf32> to vector<32x1xf32>
    %cst_21 = arith.constant 3.200000e+01 : f32
    %31 = vector.broadcast %cst_21 : f32 to vector<32x1xf32>
    %32 = arith.divf %30, %31 : vector<32x1xf32>
    %33 = vector.broadcast %25 : vector<32x1xf32> to vector<32x32xf32>
    %34 = arith.subf %19, %33 : vector<32x32xf32>
    %cst_22 = arith.constant 9.99999974E-6 : f32
    %35 = vector.broadcast %cst_22 : f32 to vector<32x1xf32>
    %36 = arith.addf %32, %35 : vector<32x1xf32>
    %37 = math.rsqrt %36 : vector<32x1xf32>
    %38 = vector.broadcast %37 : vector<32x1xf32> to vector<32x32xf32>
    %39 = arith.mulf %34, %38 : vector<32x32xf32>
    %40 = vector.broadcast %20 : vector<1x32xf32> to vector<32x32xf32>
    %41 = arith.mulf %39, %40 : vector<32x32xf32>
    %42 = vector.broadcast %21 : vector<1x32xf32> to vector<32x32xf32>
    %43 = arith.addf %41, %42 : vector<32x32xf32>
    %44 = tpu.iota {dimensions = array<i32: 0>} : vector<16x16xi32>
    %45 = tpu.iota {dimensions = array<i32: 1>} : vector<16x16xi32>
    %c8_i32 = arith.constant 8 : i32
    %46 = vector.broadcast %c8_i32 : i32 to vector<16x16xi32>
    %47 = arith.cmpi slt, %44, %46 : vector<16x16xi32>
    %c2_i32 = arith.constant 2 : i32
    %48 = vector.broadcast %c2_i32 : i32 to vector<16x16xi32>
    %49 = arith.muli %48, %44 : vector<16x16xi32>
    %c8_i32_23 = arith.constant 8 : i32
    %50 = vector.broadcast %c8_i32_23 : i32 to vector<16x16xi32>
    %51 = arith.subi %44, %50 : vector<16x16xi32>
    %c2_i32_24 = arith.constant 2 : i32
    %52 = vector.broadcast %c2_i32_24 : i32 to vector<16x16xi32>
    %53 = arith.muli %52, %51 : vector<16x16xi32>
    %c1_i32 = arith.constant 1 : i32
    %54 = vector.broadcast %c1_i32 : i32 to vector<16x16xi32>
    %55 = arith.addi %53, %54 : vector<16x16xi32>
    %56 = arith.select %47, %49, %55 : vector<16x16xi1>, vector<16x16xi32>
    %c8_i32_25 = arith.constant 8 : i32
    %57 = vector.broadcast %c8_i32_25 : i32 to vector<16x16xi32>
    %58 = arith.cmpi slt, %45, %57 : vector<16x16xi32>
    %c2_i32_26 = arith.constant 2 : i32
    %59 = vector.broadcast %c2_i32_26 : i32 to vector<16x16xi32>
    %60 = arith.muli %59, %45 : vector<16x16xi32>
    %c8_i32_27 = arith.constant 8 : i32
    %61 = vector.broadcast %c8_i32_27 : i32 to vector<16x16xi32>
    %62 = arith.subi %45, %61 : vector<16x16xi32>
    %c2_i32_28 = arith.constant 2 : i32
    %63 = vector.broadcast %c2_i32_28 : i32 to vector<16x16xi32>
    %64 = arith.muli %63, %62 : vector<16x16xi32>
    %c1_i32_29 = arith.constant 1 : i32
    %65 = vector.broadcast %c1_i32_29 : i32 to vector<16x16xi32>
    %66 = arith.addi %64, %65 : vector<16x16xi32>
    %67 = arith.select %58, %60, %66 : vector<16x16xi1>, vector<16x16xi32>
    %68 = arith.cmpi sge, %56, %67 : vector<16x16xi32>
    %c0_30 = arith.constant 0 : index
    %c0_31 = arith.constant 0 : index
    %c0_32 = arith.constant 0 : index
    %69 = vector.load %arg9[%c0_30, %c0_31, %c0_32] : memref<2x32x96xf32, #tpu.memory_space<vmem>>, vector<1x32x96xf32>
    %70 = vector.shape_cast %69 : vector<1x32x96xf32> to vector<32x96xf32>
    %cst_33 = arith.constant dense<0.000000e+00> : vector<32x96xf32>
    %71 = tpu.matmul %43, %70, %cst_33 {dimension_numbers = #tpu.dot_dimension_numbers<[1], [0], [0], [1], [0, 0, 1, 1], [], []>, precision = #tpu.contract_precision<fp32>} : vector<32x32xf32>, vector<32x96xf32>, vector<32x96xf32> -> vector<32x96xf32>
    %c0_34 = arith.constant 0 : index
    %c0_35 = arith.constant 0 : index
    %c0_36 = arith.constant 0 : index
    %72 = vector.load %arg10[%c0_34, %c0_35, %c0_36] : memref<2x1x96xf32, #tpu.memory_space<vmem>>, vector<1x1x96xf32>
    %73 = vector.shape_cast %72 : vector<1x1x96xf32> to vector<1x96xf32>
    %74 = vector.broadcast %73 : vector<1x96xf32> to vector<32x96xf32>
    %75 = arith.addf %71, %74 : vector<32x96xf32>
    %76 = vector.extract_strided_slice %75 {offsets = [0, 0], sizes = [32, 32], strides = [1, 1]} : vector<32x96xf32> to vector<32x32xf32>
    %77 = vector.extract_strided_slice %75 {offsets = [0, 32], sizes = [32, 32], strides = [1, 1]} : vector<32x96xf32> to vector<32x32xf32>
    %78 = vector.extract_strided_slice %75 {offsets = [0, 64], sizes = [32, 32], strides = [1, 1]} : vector<32x96xf32> to vector<32x32xf32>
    %79 = vector.extract_strided_slice %76 {offsets = [0, 0], sizes = [16, 32], strides = [1, 1]} : vector<32x32xf32> to vector<16x32xf32>
    %80 = vector.extract_strided_slice %77 {offsets = [0, 0], sizes = [16, 32], strides = [1, 1]} : vector<32x32xf32> to vector<16x32xf32>
    %81 = vector.extract_strided_slice %78 {offsets = [0, 0], sizes = [16, 32], strides = [1, 1]} : vector<32x32xf32> to vector<16x32xf32>
    %82 = vector.extract_strided_slice %79 {offsets = [0, 0], sizes = [16, 16], strides = [1, 1]} : vector<16x32xf32> to vector<16x16xf32>
    %83 = vector.extract_strided_slice %80 {offsets = [0, 0], sizes = [16, 16], strides = [1, 1]} : vector<16x32xf32> to vector<16x16xf32>
    %cst_37 = arith.constant dense<0.000000e+00> : vector<16x16xf32>
    %84 = tpu.matmul %82, %83, %cst_37 {dimension_numbers = #tpu.dot_dimension_numbers<[1], [1], [0], [0], [0, 0, 1, 0], [], []>, precision = #tpu.contract_precision<fp32>} : vector<16x16xf32>, vector<16x16xf32>, vector<16x16xf32> -> vector<16x16xf32>
    %cst_38 = arith.constant 2.500000e-01 : f32
    %85 = vector.broadcast %cst_38 : f32 to vector<16x16xf32>
    %86 = arith.mulf %84, %85 : vector<16x16xf32>
    %cst_39 = arith.constant 0xFF800000 : f32
    %87 = vector.broadcast %cst_39 : f32 to vector<16x16xf32>
    %88 = arith.select %68, %86, %87 : vector<16x16xi1>, vector<16x16xf32>
    %cst_40 = arith.constant dense<0xFF800000> : vector<16xf32>
    %89 = vector.multi_reduction <maximumf>, %88, %cst_40 [1] : vector<16x16xf32> to vector<16xf32>
    %90 = vector.shape_cast %89 : vector<16xf32> to vector<16x1xf32>
    %91 = vector.broadcast %90 : vector<16x1xf32> to vector<16x16xf32>
    %92 = arith.subf %88, %91 : vector<16x16xf32>
    %93 = math.exp %92 : vector<16x16xf32>
    %cst_41 = arith.constant dense<0.000000e+00> : vector<16xf32>
    %94 = vector.multi_reduction <add>, %93, %cst_41 [1] : vector<16x16xf32> to vector<16xf32>
    %95 = vector.shape_cast %94 : vector<16xf32> to vector<16x1xf32>
    %96 = tpu.reciprocal %95 {approx = true} : vector<16x1xf32> -> vector<16x1xf32>
    %97 = vector.broadcast %96 : vector<16x1xf32> to vector<16x16xf32>
    %98 = arith.mulf %93, %97 : vector<16x16xf32>
    %99 = vector.extract_strided_slice %81 {offsets = [0, 0], sizes = [16, 16], strides = [1, 1]} : vector<16x32xf32> to vector<16x16xf32>
    %cst_42 = arith.constant dense<0.000000e+00> : vector<16x16xf32>
    %100 = tpu.matmul %98, %99, %cst_42 {dimension_numbers = #tpu.dot_dimension_numbers<[1], [0], [0], [1], [0, 0, 1, 1], [], []>, precision = #tpu.contract_precision<fp32>} : vector<16x16xf32>, vector<16x16xf32>, vector<16x16xf32> -> vector<16x16xf32>
    %c0_43 = arith.constant 0 : index
    %c0_44 = arith.constant 0 : index
    %101 = vector.load %arg27[%c0_43, %c0_44] : memref<32x32xf32, #tpu.memory_space<vmem>>, vector<16x16xf32>
    tpu.vector_store %arg27[%c0_43, %c0_44], %100 {strides = array<i32>} : memref<32x32xf32, #tpu.memory_space<vmem>>, vector<16x16xf32>,
    %102 = vector.extract_strided_slice %79 {offsets = [0, 16], sizes = [16, 16], strides = [1, 1]} : vector<16x32xf32> to vector<16x16xf32>
    %103 = vector.extract_strided_slice %80 {offsets = [0, 16], sizes = [16, 16], strides = [1, 1]} : vector<16x32xf32> to vector<16x16xf32>
    %cst_45 = arith.constant dense<0.000000e+00> : vector<16x16xf32>
    %104 = tpu.matmul %102, %103, %cst_45 {dimension_numbers = #tpu.dot_dimension_numbers<[1], [1], [0], [0], [0, 0, 1, 0], [], []>, precision = #tpu.contract_precision<fp32>} : vector<16x16xf32>, vector<16x16xf32>, vector<16x16xf32> -> vector<16x16xf32>
    %cst_46 = arith.constant 2.500000e-01 : f32
    %105 = vector.broadcast %cst_46 : f32 to vector<16x16xf32>
    %106 = arith.mulf %104, %105 : vector<16x16xf32>
    %cst_47 = arith.constant 0xFF800000 : f32
    %107 = vector.broadcast %cst_47 : f32 to vector<16x16xf32>
    %108 = arith.select %68, %106, %107 : vector<16x16xi1>, vector<16x16xf32>
    %cst_48 = arith.constant dense<0xFF800000> : vector<16xf32>
    %109 = vector.multi_reduction <maximumf>, %108, %cst_48 [1] : vector<16x16xf32> to vector<16xf32>
    %110 = vector.shape_cast %109 : vector<16xf32> to vector<16x1xf32>
    %111 = vector.broadcast %110 : vector<16x1xf32> to vector<16x16xf32>
    %112 = arith.subf %108, %111 : vector<16x16xf32>
    %113 = math.exp %112 : vector<16x16xf32>
    %cst_49 = arith.constant dense<0.000000e+00> : vector<16xf32>
    %114 = vector.multi_reduction <add>, %113, %cst_49 [1] : vector<16x16xf32> to vector<16xf32>
    %115 = vector.shape_cast %114 : vector<16xf32> to vector<16x1xf32>
    %116 = tpu.reciprocal %115 {approx = true} : vector<16x1xf32> -> vector<16x1xf32>
    %117 = vector.broadcast %116 : vector<16x1xf32> to vector<16x16xf32>
    %118 = arith.mulf %113, %117 : vector<16x16xf32>
    %119 = vector.extract_strided_slice %81 {offsets = [0, 16], sizes = [16, 16], strides = [1, 1]} : vector<16x32xf32> to vector<16x16xf32>
    %cst_50 = arith.constant dense<0.000000e+00> : vector<16x16xf32>
    %120 = tpu.matmul %118, %119, %cst_50 {dimension_numbers = #tpu.dot_dimension_numbers<[1], [0], [0], [1], [0, 0, 1, 1], [], []>, precision = #tpu.contract_precision<fp32>} : vector<16x16xf32>, vector<16x16xf32>, vector<16x16xf32> -> vector<16x16xf32>
    %c0_51 = arith.constant 0 : index
    %c16 = arith.constant 16 : index
    %121 = vector.load %arg27[%c0_51, %c16] : memref<32x32xf32, #tpu.memory_space<vmem>>, vector<16x16xf32>
    tpu.vector_store %arg27[%c0_51, %c16], %120 {strides = array<i32>} : memref<32x32xf32, #tpu.memory_space<vmem>>, vector<16x16xf32>,
    %122 = vector.extract_strided_slice %76 {offsets = [16, 0], sizes = [16, 32], strides = [1, 1]} : vector<32x32xf32> to vector<16x32xf32>
    %123 = vector.extract_strided_slice %77 {offsets = [16, 0], sizes = [16, 32], strides = [1, 1]} : vector<32x32xf32> to vector<16x32xf32>
    %124 = vector.extract_strided_slice %78 {offsets = [16, 0], sizes = [16, 32], strides = [1, 1]} : vector<32x32xf32> to vector<16x32xf32>
    %125 = vector.extract_strided_slice %122 {offsets = [0, 0], sizes = [16, 16], strides = [1, 1]} : vector<16x32xf32> to vector<16x16xf32>
    %126 = vector.extract_strided_slice %123 {offsets = [0, 0], sizes = [16, 16], strides = [1, 1]} : vector<16x32xf32> to vector<16x16xf32>
    %cst_52 = arith.constant dense<0.000000e+00> : vector<16x16xf32>
    %127 = tpu.matmul %125, %126, %cst_52 {dimension_numbers = #tpu.dot_dimension_numbers<[1], [1], [0], [0], [0, 0, 1, 0], [], []>, precision = #tpu.contract_precision<fp32>} : vector<16x16xf32>, vector<16x16xf32>, vector<16x16xf32> -> vector<16x16xf32>
    %cst_53 = arith.constant 2.500000e-01 : f32
    %128 = vector.broadcast %cst_53 : f32 to vector<16x16xf32>
    %129 = arith.mulf %127, %128 : vector<16x16xf32>
    %cst_54 = arith.constant 0xFF800000 : f32
    %130 = vector.broadcast %cst_54 : f32 to vector<16x16xf32>
    %131 = arith.select %68, %129, %130 : vector<16x16xi1>, vector<16x16xf32>
    %cst_55 = arith.constant dense<0xFF800000> : vector<16xf32>
    %132 = vector.multi_reduction <maximumf>, %131, %cst_55 [1] : vector<16x16xf32> to vector<16xf32>
    %133 = vector.shape_cast %132 : vector<16xf32> to vector<16x1xf32>
    %134 = vector.broadcast %133 : vector<16x1xf32> to vector<16x16xf32>
    %135 = arith.subf %131, %134 : vector<16x16xf32>
    %136 = math.exp %135 : vector<16x16xf32>
    %cst_56 = arith.constant dense<0.000000e+00> : vector<16xf32>
    %137 = vector.multi_reduction <add>, %136, %cst_56 [1] : vector<16x16xf32> to vector<16xf32>
    %138 = vector.shape_cast %137 : vector<16xf32> to vector<16x1xf32>
    %139 = tpu.reciprocal %138 {approx = true} : vector<16x1xf32> -> vector<16x1xf32>
    %140 = vector.broadcast %139 : vector<16x1xf32> to vector<16x16xf32>
    %141 = arith.mulf %136, %140 : vector<16x16xf32>
    %142 = vector.extract_strided_slice %124 {offsets = [0, 0], sizes = [16, 16], strides = [1, 1]} : vector<16x32xf32> to vector<16x16xf32>
    %cst_57 = arith.constant dense<0.000000e+00> : vector<16x16xf32>
    %143 = tpu.matmul %141, %142, %cst_57 {dimension_numbers = #tpu.dot_dimension_numbers<[1], [0], [0], [1], [0, 0, 1, 1], [], []>, precision = #tpu.contract_precision<fp32>} : vector<16x16xf32>, vector<16x16xf32>, vector<16x16xf32> -> vector<16x16xf32>
    %c16_58 = arith.constant 16 : index
    %c0_59 = arith.constant 0 : index
    %144 = vector.load %arg27[%c16_58, %c0_59] : memref<32x32xf32, #tpu.memory_space<vmem>>, vector<16x16xf32>
    tpu.vector_store %arg27[%c16_58, %c0_59], %143 {strides = array<i32>} : memref<32x32xf32, #tpu.memory_space<vmem>>, vector<16x16xf32>,
    %145 = vector.extract_strided_slice %122 {offsets = [0, 16], sizes = [16, 16], strides = [1, 1]} : vector<16x32xf32> to vector<16x16xf32>
    %146 = vector.extract_strided_slice %123 {offsets = [0, 16], sizes = [16, 16], strides = [1, 1]} : vector<16x32xf32> to vector<16x16xf32>
    %cst_60 = arith.constant dense<0.000000e+00> : vector<16x16xf32>
    %147 = tpu.matmul %145, %146, %cst_60 {dimension_numbers = #tpu.dot_dimension_numbers<[1], [1], [0], [0], [0, 0, 1, 0], [], []>, precision = #tpu.contract_precision<fp32>} : vector<16x16xf32>, vector<16x16xf32>, vector<16x16xf32> -> vector<16x16xf32>
    %cst_61 = arith.constant 2.500000e-01 : f32
    %148 = vector.broadcast %cst_61 : f32 to vector<16x16xf32>
    %149 = arith.mulf %147, %148 : vector<16x16xf32>
    %cst_62 = arith.constant 0xFF800000 : f32
    %150 = vector.broadcast %cst_62 : f32 to vector<16x16xf32>
    %151 = arith.select %68, %149, %150 : vector<16x16xi1>, vector<16x16xf32>
    %cst_63 = arith.constant dense<0xFF800000> : vector<16xf32>
    %152 = vector.multi_reduction <maximumf>, %151, %cst_63 [1] : vector<16x16xf32> to vector<16xf32>
    %153 = vector.shape_cast %152 : vector<16xf32> to vector<16x1xf32>
    %154 = vector.broadcast %153 : vector<16x1xf32> to vector<16x16xf32>
    %155 = arith.subf %151, %154 : vector<16x16xf32>
    %156 = math.exp %155 : vector<16x16xf32>
    %cst_64 = arith.constant dense<0.000000e+00> : vector<16xf32>
    %157 = vector.multi_reduction <add>, %156, %cst_64 [1] : vector<16x16xf32> to vector<16xf32>
    %158 = vector.shape_cast %157 : vector<16xf32> to vector<16x1xf32>
    %159 = tpu.reciprocal %158 {approx = true} : vector<16x1xf32> -> vector<16x1xf32>
    %160 = vector.broadcast %159 : vector<16x1xf32> to vector<16x16xf32>
    %161 = arith.mulf %156, %160 : vector<16x16xf32>
    %162 = vector.extract_strided_slice %124 {offsets = [0, 16], sizes = [16, 16], strides = [1, 1]} : vector<16x32xf32> to vector<16x16xf32>
    %cst_65 = arith.constant dense<0.000000e+00> : vector<16x16xf32>
    %163 = tpu.matmul %161, %162, %cst_65 {dimension_numbers = #tpu.dot_dimension_numbers<[1], [0], [0], [1], [0, 0, 1, 1], [], []>, precision = #tpu.contract_precision<fp32>} : vector<16x16xf32>, vector<16x16xf32>, vector<16x16xf32> -> vector<16x16xf32>
    %c16_66 = arith.constant 16 : index
    %c16_67 = arith.constant 16 : index
    %164 = vector.load %arg27[%c16_66, %c16_67] : memref<32x32xf32, #tpu.memory_space<vmem>>, vector<16x16xf32>
    tpu.vector_store %arg27[%c16_66, %c16_67], %163 {strides = array<i32>} : memref<32x32xf32, #tpu.memory_space<vmem>>, vector<16x16xf32>,
    %c0_68 = arith.constant 0 : index
    %c0_69 = arith.constant 0 : index
    %165 = vector.load %arg27[%c0_68, %c0_69] : memref<32x32xf32, #tpu.memory_space<vmem>>, vector<32x32xf32>
    %c0_70 = arith.constant 0 : index
    %c0_71 = arith.constant 0 : index
    %c0_72 = arith.constant 0 : index
    %166 = vector.load %arg11[%c0_70, %c0_71, %c0_72] : memref<2x32x32xf32, #tpu.memory_space<vmem>>, vector<1x32x32xf32>
    %167 = vector.shape_cast %166 : vector<1x32x32xf32> to vector<32x32xf32>
    %cst_73 = arith.constant dense<0.000000e+00> : vector<32x32xf32>
    %168 = tpu.matmul %165, %167, %cst_73 {dimension_numbers = #tpu.dot_dimension_numbers<[1], [0], [0], [1], [0, 0, 1, 1], [], []>, precision = #tpu.contract_precision<fp32>} : vector<32x32xf32>, vector<32x32xf32>, vector<32x32xf32> -> vector<32x32xf32>
    %c0_74 = arith.constant 0 : index
    %c0_75 = arith.constant 0 : index
    %c0_76 = arith.constant 0 : index
    %169 = vector.load %arg12[%c0_74, %c0_75, %c0_76] : memref<2x1x32xf32, #tpu.memory_space<vmem>>, vector<1x1x32xf32>
    %170 = vector.shape_cast %169 : vector<1x1x32xf32> to vector<1x32xf32>
    %171 = vector.broadcast %170 : vector<1x32xf32> to vector<32x32xf32>
    %172 = arith.addf %168, %171 : vector<32x32xf32>
    %173 = arith.addf %43, %172 : vector<32x32xf32>
    %c0_77 = arith.constant 0 : index
    %c0_78 = arith.constant 0 : index
    %c0_79 = arith.constant 0 : index
    %174 = vector.load %arg13[%c0_77, %c0_78, %c0_79] : memref<2x1x32xf32, #tpu.memory_space<vmem>>, vector<1x1x32xf32>
    %175 = vector.shape_cast %174 : vector<1x1x32xf32> to vector<1x32xf32>
    %c0_80 = arith.constant 0 : index
    %c0_81 = arith.constant 0 : index
    %c0_82 = arith.constant 0 : index
    %176 = vector.load %arg14[%c0_80, %c0_81, %c0_82] : memref<2x1x32xf32, #tpu.memory_space<vmem>>, vector<1x1x32xf32>
    %177 = vector.shape_cast %176 : vector<1x1x32xf32> to vector<1x32xf32>
    %cst_83 = arith.constant dense<0.000000e+00> : vector<32xf32>
    %178 = vector.multi_reduction <add>, %173, %cst_83 [1] : vector<32x32xf32> to vector<32xf32>
    %179 = vector.shape_cast %178 : vector<32xf32> to vector<32x1xf32>
    %cst_84 = arith.constant 3.200000e+01 : f32
    %180 = vector.broadcast %cst_84 : f32 to vector<32x1xf32>
    %181 = arith.divf %179, %180 : vector<32x1xf32>
    %182 = vector.broadcast %181 : vector<32x1xf32> to vector<32x32xf32>
    %183 = arith.subf %173, %182 : vector<32x32xf32>
    %184 = arith.mulf %183, %183 : vector<32x32xf32>
    %cst_85 = arith.constant dense<0.000000e+00> : vector<32xf32>
    %185 = vector.multi_reduction <add>, %184, %cst_85 [1] : vector<32x32xf32> to vector<32xf32>
    %186 = vector.shape_cast %185 : vector<32xf32> to vector<32x1xf32>
    %cst_86 = arith.constant 3.200000e+01 : f32
    %187 = vector.broadcast %cst_86 : f32 to vector<32x1xf32>
    %188 = arith.divf %186, %187 : vector<32x1xf32>
    %189 = vector.broadcast %181 : vector<32x1xf32> to vector<32x32xf32>
    %190 = arith.subf %173, %189 : vector<32x32xf32>
    %cst_87 = arith.constant 9.99999974E-6 : f32
    %191 = vector.broadcast %cst_87 : f32 to vector<32x1xf32>
    %192 = arith.addf %188, %191 : vector<32x1xf32>
    %193 = math.rsqrt %192 : vector<32x1xf32>
    %194 = vector.broadcast %193 : vector<32x1xf32> to vector<32x32xf32>
    %195 = arith.mulf %190, %194 : vector<32x32xf32>
    %196 = vector.broadcast %175 : vector<1x32xf32> to vector<32x32xf32>
    %197 = arith.mulf %195, %196 : vector<32x32xf32>
    %198 = vector.broadcast %177 : vector<1x32xf32> to vector<32x32xf32>
    %199 = arith.addf %197, %198 : vector<32x32xf32>
    %c0_88 = arith.constant 0 : index
    %c0_89 = arith.constant 0 : index
    %c0_90 = arith.constant 0 : index
    %200 = vector.load %arg15[%c0_88, %c0_89, %c0_90] : memref<2x32x128xf32, #tpu.memory_space<vmem>>, vector<1x32x128xf32>
    %201 = vector.shape_cast %200 : vector<1x32x128xf32> to vector<32x128xf32>
    %cst_91 = arith.constant dense<0.000000e+00> : vector<32x128xf32>
    %202 = tpu.matmul %199, %201, %cst_91 {dimension_numbers = #tpu.dot_dimension_numbers<[1], [0], [0], [1], [0, 0, 1, 1], [], []>, precision = #tpu.contract_precision<fp32>} : vector<32x32xf32>, vector<32x128xf32>, vector<32x128xf32> -> vector<32x128xf32>
    %c0_92 = arith.constant 0 : index
    %c0_93 = arith.constant 0 : index
    %c0_94 = arith.constant 0 : index
    %203 = vector.load %arg16[%c0_92, %c0_93, %c0_94] : memref<2x1x128xf32, #tpu.memory_space<vmem>>, vector<1x1x128xf32>
    %204 = vector.shape_cast %203 : vector<1x1x128xf32> to vector<1x128xf32>
    %205 = vector.broadcast %204 : vector<1x128xf32> to vector<32x128xf32>
    %206 = arith.addf %202, %205 : vector<32x128xf32>
    %cst_95 = arith.constant 5.000000e-01 : f32
    %207 = vector.broadcast %cst_95 : f32 to vector<32x128xf32>
    %208 = arith.mulf %207, %206 : vector<32x128xf32>
    %cst_96 = arith.constant 0.707106769 : f32
    %209 = vector.broadcast %cst_96 : f32 to vector<32x128xf32>
    %210 = arith.mulf %206, %209 : vector<32x128xf32>
    %cst_97 = arith.constant 0.000000e+00 : f32
    %211 = vector.broadcast %cst_97 : f32 to vector<32x128xf32>
    %212 = arith.cmpf oge, %210, %211 : vector<32x128xf32>
    %cst_98 = arith.constant 1.000000e+00 : f32
    %cst_99 = arith.constant -1.000000e+00 : f32
    %213 = vector.broadcast %cst_98 : f32 to vector<32x128xf32>
    %214 = vector.broadcast %cst_99 : f32 to vector<32x128xf32>
    %215 = arith.select %212, %213, %214 : vector<32x128xi1>, vector<32x128xf32>
    %216 = math.absf %210 : vector<32x128xf32>
    %cst_100 = arith.constant 0.327591091 : f32
    %217 = vector.broadcast %cst_100 : f32 to vector<32x128xf32>
    %218 = arith.mulf %217, %216 : vector<32x128xf32>
    %cst_101 = arith.constant 1.000000e+00 : f32
    %219 = vector.broadcast %cst_101 : f32 to vector<32x128xf32>
    %220 = arith.addf %219, %218 : vector<32x128xf32>
    %cst_102 = arith.constant 1.000000e+00 : f32
    %221 = vector.broadcast %cst_102 : f32 to vector<32x128xf32>
    %222 = arith.divf %221, %220 : vector<32x128xf32>
    %cst_103 = arith.constant 1.06140542 : f32
    %223 = vector.broadcast %cst_103 : f32 to vector<32x128xf32>
    %224 = arith.mulf %223, %222 : vector<32x128xf32>
    %cst_104 = arith.constant -1.45315206 : f32
    %225 = vector.broadcast %cst_104 : f32 to vector<32x128xf32>
    %226 = arith.addf %224, %225 : vector<32x128xf32>
    %227 = arith.mulf %226, %222 : vector<32x128xf32>
    %cst_105 = arith.constant 1.42141378 : f32
    %228 = vector.broadcast %cst_105 : f32 to vector<32x128xf32>
    %229 = arith.addf %227, %228 : vector<32x128xf32>
    %230 = arith.mulf %229, %222 : vector<32x128xf32>
    %cst_106 = arith.constant -0.284496725 : f32
    %231 = vector.broadcast %cst_106 : f32 to vector<32x128xf32>
    %232 = arith.addf %230, %231 : vector<32x128xf32>
    %233 = arith.mulf %232, %222 : vector<32x128xf32>
    %cst_107 = arith.constant 0.254829586 : f32
    %234 = vector.broadcast %cst_107 : f32 to vector<32x128xf32>
    %235 = arith.addf %233, %234 : vector<32x128xf32>
    %236 = arith.mulf %235, %222 : vector<32x128xf32>
    %cst_108 = arith.constant 0.000000e+00 : f32
    %237 = vector.broadcast %cst_108 : f32 to vector<32x128xf32>
    %238 = arith.subf %237, %216 : vector<32x128xf32>
    %239 = arith.mulf %238, %216 : vector<32x128xf32>
    %240 = math.exp %239 : vector<32x128xf32>
    %241 = arith.mulf %236, %240 : vector<32x128xf32>
    %cst_109 = arith.constant 1.000000e+00 : f32
    %242 = vector.broadcast %cst_109 : f32 to vector<32x128xf32>
    %243 = arith.subf %242, %241 : vector<32x128xf32>
    %244 = arith.mulf %215, %243 : vector<32x128xf32>
    %cst_110 = arith.constant 1.000000e+00 : f32
    %245 = vector.broadcast %cst_110 : f32 to vector<32x128xf32>
    %246 = arith.addf %245, %244 : vector<32x128xf32>
    %247 = arith.mulf %208, %246 : vector<32x128xf32>
    %c0_111 = arith.constant 0 : index
    %c0_112 = arith.constant 0 : index
    %c0_113 = arith.constant 0 : index
    %248 = vector.load %arg17[%c0_111, %c0_112, %c0_113] : memref<2x128x32xf32, #tpu.memory_space<vmem>>, vector<1x128x32xf32>
    %249 = vector.shape_cast %248 : vector<1x128x32xf32> to vector<128x32xf32>
    %cst_114 = arith.constant dense<0.000000e+00> : vector<32x32xf32>
    %250 = tpu.matmul %247, %249, %cst_114 {dimension_numbers = #tpu.dot_dimension_numbers<[1], [0], [0], [1], [0, 0, 1, 1], [], []>, precision = #tpu.contract_precision<fp32>} : vector<32x128xf32>, vector<128x32xf32>, vector<32x32xf32> -> vector<32x32xf32>
    %c0_115 = arith.constant 0 : index
    %c0_116 = arith.constant 0 : index
    %c0_117 = arith.constant 0 : index
    %251 = vector.load %arg18[%c0_115, %c0_116, %c0_117] : memref<2x1x32xf32, #tpu.memory_space<vmem>>, vector<1x1x32xf32>
    %252 = vector.shape_cast %251 : vector<1x1x32xf32> to vector<1x32xf32>
    %253 = vector.broadcast %252 : vector<1x32xf32> to vector<32x32xf32>
    %254 = arith.addf %250, %253 : vector<32x32xf32>
    %255 = arith.addf %199, %254 : vector<32x32xf32>
    %c0_118 = arith.constant 0 : index
    %c0_119 = arith.constant 0 : index
    %c0_120 = arith.constant 0 : index
    %256 = vector.load %arg19[%c0_118, %c0_119, %c0_120] : memref<2x1x32xf32, #tpu.memory_space<vmem>>, vector<1x1x32xf32>
    %257 = vector.shape_cast %256 : vector<1x1x32xf32> to vector<1x32xf32>
    %c0_121 = arith.constant 0 : index
    %c0_122 = arith.constant 0 : index
    %c0_123 = arith.constant 0 : index
    %258 = vector.load %arg20[%c0_121, %c0_122, %c0_123] : memref<2x1x32xf32, #tpu.memory_space<vmem>>, vector<1x1x32xf32>
    %259 = vector.shape_cast %258 : vector<1x1x32xf32> to vector<1x32xf32>
    %cst_124 = arith.constant dense<0.000000e+00> : vector<32xf32>
    %260 = vector.multi_reduction <add>, %255, %cst_124 [1] : vector<32x32xf32> to vector<32xf32>
    %261 = vector.shape_cast %260 : vector<32xf32> to vector<32x1xf32>
    %cst_125 = arith.constant 3.200000e+01 : f32
    %262 = vector.broadcast %cst_125 : f32 to vector<32x1xf32>
    %263 = arith.divf %261, %262 : vector<32x1xf32>
    %264 = vector.broadcast %263 : vector<32x1xf32> to vector<32x32xf32>
    %265 = arith.subf %255, %264 : vector<32x32xf32>
    %266 = arith.mulf %265, %265 : vector<32x32xf32>
    %cst_126 = arith.constant dense<0.000000e+00> : vector<32xf32>
    %267 = vector.multi_reduction <add>, %266, %cst_126 [1] : vector<32x32xf32> to vector<32xf32>
    %268 = vector.shape_cast %267 : vector<32xf32> to vector<32x1xf32>
    %cst_127 = arith.constant 3.200000e+01 : f32
    %269 = vector.broadcast %cst_127 : f32 to vector<32x1xf32>
    %270 = arith.divf %268, %269 : vector<32x1xf32>
    %271 = vector.broadcast %263 : vector<32x1xf32> to vector<32x32xf32>
    %272 = arith.subf %255, %271 : vector<32x32xf32>
    %cst_128 = arith.constant 9.99999974E-6 : f32
    %273 = vector.broadcast %cst_128 : f32 to vector<32x1xf32>
    %274 = arith.addf %270, %273 : vector<32x1xf32>
    %275 = math.rsqrt %274 : vector<32x1xf32>
    %276 = vector.broadcast %275 : vector<32x1xf32> to vector<32x32xf32>
    %277 = arith.mulf %272, %276 : vector<32x32xf32>
    %278 = vector.broadcast %257 : vector<1x32xf32> to vector<32x32xf32>
    %279 = arith.mulf %277, %278 : vector<32x32xf32>
    %280 = vector.broadcast %259 : vector<1x32xf32> to vector<32x32xf32>
    %281 = arith.addf %279, %280 : vector<32x32xf32>
    %c1 = arith.constant 1 : index
    %c0_129 = arith.constant 0 : index
    %c0_130 = arith.constant 0 : index
    %282 = vector.load %arg9[%c1, %c0_129, %c0_130] : memref<2x32x96xf32, #tpu.memory_space<vmem>>, vector<1x32x96xf32>
    %283 = vector.shape_cast %282 : vector<1x32x96xf32> to vector<32x96xf32>
    %cst_131 = arith.constant dense<0.000000e+00> : vector<32x96xf32>
    %284 = tpu.matmul %281, %283, %cst_131 {dimension_numbers = #tpu.dot_dimension_numbers<[1], [0], [0], [1], [0, 0, 1, 1], [], []>, precision = #tpu.contract_precision<fp32>} : vector<32x32xf32>, vector<32x96xf32>, vector<32x96xf32> -> vector<32x96xf32>
    %c1_132 = arith.constant 1 : index
    %c0_133 = arith.constant 0 : index
    %c0_134 = arith.constant 0 : index
    %285 = vector.load %arg10[%c1_132, %c0_133, %c0_134] : memref<2x1x96xf32, #tpu.memory_space<vmem>>, vector<1x1x96xf32>
    %286 = vector.shape_cast %285 : vector<1x1x96xf32> to vector<1x96xf32>
    %287 = vector.broadcast %286 : vector<1x96xf32> to vector<32x96xf32>
    %288 = arith.addf %284, %287 : vector<32x96xf32>
    %289 = vector.extract_strided_slice %288 {offsets = [0, 0], sizes = [32, 32], strides = [1, 1]} : vector<32x96xf32> to vector<32x32xf32>
    %290 = vector.extract_strided_slice %288 {offsets = [0, 32], sizes = [32, 32], strides = [1, 1]} : vector<32x96xf32> to vector<32x32xf32>
    %291 = vector.extract_strided_slice %288 {offsets = [0, 64], sizes = [32, 32], strides = [1, 1]} : vector<32x96xf32> to vector<32x32xf32>
    %292 = vector.extract_strided_slice %289 {offsets = [0, 0], sizes = [16, 32], strides = [1, 1]} : vector<32x32xf32> to vector<16x32xf32>
    %293 = vector.extract_strided_slice %290 {offsets = [0, 0], sizes = [16, 32], strides = [1, 1]} : vector<32x32xf32> to vector<16x32xf32>
    %294 = vector.extract_strided_slice %291 {offsets = [0, 0], sizes = [16, 32], strides = [1, 1]} : vector<32x32xf32> to vector<16x32xf32>
    %295 = vector.extract_strided_slice %292 {offsets = [0, 0], sizes = [16, 16], strides = [1, 1]} : vector<16x32xf32> to vector<16x16xf32>
    %296 = vector.extract_strided_slice %293 {offsets = [0, 0], sizes = [16, 16], strides = [1, 1]} : vector<16x32xf32> to vector<16x16xf32>
    %cst_135 = arith.constant dense<0.000000e+00> : vector<16x16xf32>
    %297 = tpu.matmul %295, %296, %cst_135 {dimension_numbers = #tpu.dot_dimension_numbers<[1], [1], [0], [0], [0, 0, 1, 0], [], []>, precision = #tpu.contract_precision<fp32>} : vector<16x16xf32>, vector<16x16xf32>, vector<16x16xf32> -> vector<16x16xf32>
    %cst_136 = arith.constant 2.500000e-01 : f32
    %298 = vector.broadcast %cst_136 : f32 to vector<16x16xf32>
    %299 = arith.mulf %297, %298 : vector<16x16xf32>
    %cst_137 = arith.constant 0xFF800000 : f32
    %300 = vector.broadcast %cst_137 : f32 to vector<16x16xf32>
    %301 = arith.select %68, %299, %300 : vector<16x16xi1>, vector<16x16xf32>
    %cst_138 = arith.constant dense<0xFF800000> : vector<16xf32>
    %302 = vector.multi_reduction <maximumf>, %301, %cst_138 [1] : vector<16x16xf32> to vector<16xf32>
    %303 = vector.shape_cast %302 : vector<16xf32> to vector<16x1xf32>
    %304 = vector.broadcast %303 : vector<16x1xf32> to vector<16x16xf32>
    %305 = arith.subf %301, %304 : vector<16x16xf32>
    %306 = math.exp %305 : vector<16x16xf32>
    %cst_139 = arith.constant dense<0.000000e+00> : vector<16xf32>
    %307 = vector.multi_reduction <add>, %306, %cst_139 [1] : vector<16x16xf32> to vector<16xf32>
    %308 = vector.shape_cast %307 : vector<16xf32> to vector<16x1xf32>
    %309 = tpu.reciprocal %308 {approx = true} : vector<16x1xf32> -> vector<16x1xf32>
    %310 = vector.broadcast %309 : vector<16x1xf32> to vector<16x16xf32>
    %311 = arith.mulf %306, %310 : vector<16x16xf32>
    %312 = vector.extract_strided_slice %294 {offsets = [0, 0], sizes = [16, 16], strides = [1, 1]} : vector<16x32xf32> to vector<16x16xf32>
    %cst_140 = arith.constant dense<0.000000e+00> : vector<16x16xf32>
    %313 = tpu.matmul %311, %312, %cst_140 {dimension_numbers = #tpu.dot_dimension_numbers<[1], [0], [0], [1], [0, 0, 1, 1], [], []>, precision = #tpu.contract_precision<fp32>} : vector<16x16xf32>, vector<16x16xf32>, vector<16x16xf32> -> vector<16x16xf32>
    %c0_141 = arith.constant 0 : index
    %c0_142 = arith.constant 0 : index
    %314 = vector.load %arg27[%c0_141, %c0_142] : memref<32x32xf32, #tpu.memory_space<vmem>>, vector<16x16xf32>
    tpu.vector_store %arg27[%c0_141, %c0_142], %313 {strides = array<i32>} : memref<32x32xf32, #tpu.memory_space<vmem>>, vector<16x16xf32>,
    %315 = vector.extract_strided_slice %292 {offsets = [0, 16], sizes = [16, 16], strides = [1, 1]} : vector<16x32xf32> to vector<16x16xf32>
    %316 = vector.extract_strided_slice %293 {offsets = [0, 16], sizes = [16, 16], strides = [1, 1]} : vector<16x32xf32> to vector<16x16xf32>
    %cst_143 = arith.constant dense<0.000000e+00> : vector<16x16xf32>
    %317 = tpu.matmul %315, %316, %cst_143 {dimension_numbers = #tpu.dot_dimension_numbers<[1], [1], [0], [0], [0, 0, 1, 0], [], []>, precision = #tpu.contract_precision<fp32>} : vector<16x16xf32>, vector<16x16xf32>, vector<16x16xf32> -> vector<16x16xf32>
    %cst_144 = arith.constant 2.500000e-01 : f32
    %318 = vector.broadcast %cst_144 : f32 to vector<16x16xf32>
    %319 = arith.mulf %317, %318 : vector<16x16xf32>
    %cst_145 = arith.constant 0xFF800000 : f32
    %320 = vector.broadcast %cst_145 : f32 to vector<16x16xf32>
    %321 = arith.select %68, %319, %320 : vector<16x16xi1>, vector<16x16xf32>
    %cst_146 = arith.constant dense<0xFF800000> : vector<16xf32>
    %322 = vector.multi_reduction <maximumf>, %321, %cst_146 [1] : vector<16x16xf32> to vector<16xf32>
    %323 = vector.shape_cast %322 : vector<16xf32> to vector<16x1xf32>
    %324 = vector.broadcast %323 : vector<16x1xf32> to vector<16x16xf32>
    %325 = arith.subf %321, %324 : vector<16x16xf32>
    %326 = math.exp %325 : vector<16x16xf32>
    %cst_147 = arith.constant dense<0.000000e+00> : vector<16xf32>
    %327 = vector.multi_reduction <add>, %326, %cst_147 [1] : vector<16x16xf32> to vector<16xf32>
    %328 = vector.shape_cast %327 : vector<16xf32> to vector<16x1xf32>
    %329 = tpu.reciprocal %328 {approx = true} : vector<16x1xf32> -> vector<16x1xf32>
    %330 = vector.broadcast %329 : vector<16x1xf32> to vector<16x16xf32>
    %331 = arith.mulf %326, %330 : vector<16x16xf32>
    %332 = vector.extract_strided_slice %294 {offsets = [0, 16], sizes = [16, 16], strides = [1, 1]} : vector<16x32xf32> to vector<16x16xf32>
    %cst_148 = arith.constant dense<0.000000e+00> : vector<16x16xf32>
    %333 = tpu.matmul %331, %332, %cst_148 {dimension_numbers = #tpu.dot_dimension_numbers<[1], [0], [0], [1], [0, 0, 1, 1], [], []>, precision = #tpu.contract_precision<fp32>} : vector<16x16xf32>, vector<16x16xf32>, vector<16x16xf32> -> vector<16x16xf32>
    %c0_149 = arith.constant 0 : index
    %c16_150 = arith.constant 16 : index
    %334 = vector.load %arg27[%c0_149, %c16_150] : memref<32x32xf32, #tpu.memory_space<vmem>>, vector<16x16xf32>
    tpu.vector_store %arg27[%c0_149, %c16_150], %333 {strides = array<i32>} : memref<32x32xf32, #tpu.memory_space<vmem>>, vector<16x16xf32>,
    %335 = vector.extract_strided_slice %289 {offsets = [16, 0], sizes = [16, 32], strides = [1, 1]} : vector<32x32xf32> to vector<16x32xf32>
    %336 = vector.extract_strided_slice %290 {offsets = [16, 0], sizes = [16, 32], strides = [1, 1]} : vector<32x32xf32> to vector<16x32xf32>
    %337 = vector.extract_strided_slice %291 {offsets = [16, 0], sizes = [16, 32], strides = [1, 1]} : vector<32x32xf32> to vector<16x32xf32>
    %338 = vector.extract_strided_slice %335 {offsets = [0, 0], sizes = [16, 16], strides = [1, 1]} : vector<16x32xf32> to vector<16x16xf32>
    %339 = vector.extract_strided_slice %336 {offsets = [0, 0], sizes = [16, 16], strides = [1, 1]} : vector<16x32xf32> to vector<16x16xf32>
    %cst_151 = arith.constant dense<0.000000e+00> : vector<16x16xf32>
    %340 = tpu.matmul %338, %339, %cst_151 {dimension_numbers = #tpu.dot_dimension_numbers<[1], [1], [0], [0], [0, 0, 1, 0], [], []>, precision = #tpu.contract_precision<fp32>} : vector<16x16xf32>, vector<16x16xf32>, vector<16x16xf32> -> vector<16x16xf32>
    %cst_152 = arith.constant 2.500000e-01 : f32
    %341 = vector.broadcast %cst_152 : f32 to vector<16x16xf32>
    %342 = arith.mulf %340, %341 : vector<16x16xf32>
    %cst_153 = arith.constant 0xFF800000 : f32
    %343 = vector.broadcast %cst_153 : f32 to vector<16x16xf32>
    %344 = arith.select %68, %342, %343 : vector<16x16xi1>, vector<16x16xf32>
    %cst_154 = arith.constant dense<0xFF800000> : vector<16xf32>
    %345 = vector.multi_reduction <maximumf>, %344, %cst_154 [1] : vector<16x16xf32> to vector<16xf32>
    %346 = vector.shape_cast %345 : vector<16xf32> to vector<16x1xf32>
    %347 = vector.broadcast %346 : vector<16x1xf32> to vector<16x16xf32>
    %348 = arith.subf %344, %347 : vector<16x16xf32>
    %349 = math.exp %348 : vector<16x16xf32>
    %cst_155 = arith.constant dense<0.000000e+00> : vector<16xf32>
    %350 = vector.multi_reduction <add>, %349, %cst_155 [1] : vector<16x16xf32> to vector<16xf32>
    %351 = vector.shape_cast %350 : vector<16xf32> to vector<16x1xf32>
    %352 = tpu.reciprocal %351 {approx = true} : vector<16x1xf32> -> vector<16x1xf32>
    %353 = vector.broadcast %352 : vector<16x1xf32> to vector<16x16xf32>
    %354 = arith.mulf %349, %353 : vector<16x16xf32>
    %355 = vector.extract_strided_slice %337 {offsets = [0, 0], sizes = [16, 16], strides = [1, 1]} : vector<16x32xf32> to vector<16x16xf32>
    %cst_156 = arith.constant dense<0.000000e+00> : vector<16x16xf32>
    %356 = tpu.matmul %354, %355, %cst_156 {dimension_numbers = #tpu.dot_dimension_numbers<[1], [0], [0], [1], [0, 0, 1, 1], [], []>, precision = #tpu.contract_precision<fp32>} : vector<16x16xf32>, vector<16x16xf32>, vector<16x16xf32> -> vector<16x16xf32>
    %c16_157 = arith.constant 16 : index
    %c0_158 = arith.constant 0 : index
    %357 = vector.load %arg27[%c16_157, %c0_158] : memref<32x32xf32, #tpu.memory_space<vmem>>, vector<16x16xf32>
    tpu.vector_store %arg27[%c16_157, %c0_158], %356 {strides = array<i32>} : memref<32x32xf32, #tpu.memory_space<vmem>>, vector<16x16xf32>,
    %358 = vector.extract_strided_slice %335 {offsets = [0, 16], sizes = [16, 16], strides = [1, 1]} : vector<16x32xf32> to vector<16x16xf32>
    %359 = vector.extract_strided_slice %336 {offsets = [0, 16], sizes = [16, 16], strides = [1, 1]} : vector<16x32xf32> to vector<16x16xf32>
    %cst_159 = arith.constant dense<0.000000e+00> : vector<16x16xf32>
    %360 = tpu.matmul %358, %359, %cst_159 {dimension_numbers = #tpu.dot_dimension_numbers<[1], [1], [0], [0], [0, 0, 1, 0], [], []>, precision = #tpu.contract_precision<fp32>} : vector<16x16xf32>, vector<16x16xf32>, vector<16x16xf32> -> vector<16x16xf32>
    %cst_160 = arith.constant 2.500000e-01 : f32
    %361 = vector.broadcast %cst_160 : f32 to vector<16x16xf32>
    %362 = arith.mulf %360, %361 : vector<16x16xf32>
    %cst_161 = arith.constant 0xFF800000 : f32
    %363 = vector.broadcast %cst_161 : f32 to vector<16x16xf32>
    %364 = arith.select %68, %362, %363 : vector<16x16xi1>, vector<16x16xf32>
    %cst_162 = arith.constant dense<0xFF800000> : vector<16xf32>
    %365 = vector.multi_reduction <maximumf>, %364, %cst_162 [1] : vector<16x16xf32> to vector<16xf32>
    %366 = vector.shape_cast %365 : vector<16xf32> to vector<16x1xf32>
    %367 = vector.broadcast %366 : vector<16x1xf32> to vector<16x16xf32>
    %368 = arith.subf %364, %367 : vector<16x16xf32>
    %369 = math.exp %368 : vector<16x16xf32>
    %cst_163 = arith.constant dense<0.000000e+00> : vector<16xf32>
    %370 = vector.multi_reduction <add>, %369, %cst_163 [1] : vector<16x16xf32> to vector<16xf32>
    %371 = vector.shape_cast %370 : vector<16xf32> to vector<16x1xf32>
    %372 = tpu.reciprocal %371 {approx = true} : vector<16x1xf32> -> vector<16x1xf32>
    %373 = vector.broadcast %372 : vector<16x1xf32> to vector<16x16xf32>
    %374 = arith.mulf %369, %373 : vector<16x16xf32>
    %375 = vector.extract_strided_slice %337 {offsets = [0, 16], sizes = [16, 16], strides = [1, 1]} : vector<16x32xf32> to vector<16x16xf32>
    %cst_164 = arith.constant dense<0.000000e+00> : vector<16x16xf32>
    %376 = tpu.matmul %374, %375, %cst_164 {dimension_numbers = #tpu.dot_dimension_numbers<[1], [0], [0], [1], [0, 0, 1, 1], [], []>, precision = #tpu.contract_precision<fp32>} : vector<16x16xf32>, vector<16x16xf32>, vector<16x16xf32> -> vector<16x16xf32>
    %c16_165 = arith.constant 16 : index
    %c16_166 = arith.constant 16 : index
    %377 = vector.load %arg27[%c16_165, %c16_166] : memref<32x32xf32, #tpu.memory_space<vmem>>, vector<16x16xf32>
    tpu.vector_store %arg27[%c16_165, %c16_166], %376 {strides = array<i32>} : memref<32x32xf32, #tpu.memory_space<vmem>>, vector<16x16xf32>,
    %c0_167 = arith.constant 0 : index
    %c0_168 = arith.constant 0 : index
    %378 = vector.load %arg27[%c0_167, %c0_168] : memref<32x32xf32, #tpu.memory_space<vmem>>, vector<32x32xf32>
    %c1_169 = arith.constant 1 : index
    %c0_170 = arith.constant 0 : index
    %c0_171 = arith.constant 0 : index
    %379 = vector.load %arg11[%c1_169, %c0_170, %c0_171] : memref<2x32x32xf32, #tpu.memory_space<vmem>>, vector<1x32x32xf32>
    %380 = vector.shape_cast %379 : vector<1x32x32xf32> to vector<32x32xf32>
    %cst_172 = arith.constant dense<0.000000e+00> : vector<32x32xf32>
    %381 = tpu.matmul %378, %380, %cst_172 {dimension_numbers = #tpu.dot_dimension_numbers<[1], [0], [0], [1], [0, 0, 1, 1], [], []>, precision = #tpu.contract_precision<fp32>} : vector<32x32xf32>, vector<32x32xf32>, vector<32x32xf32> -> vector<32x32xf32>
    %c1_173 = arith.constant 1 : index
    %c0_174 = arith.constant 0 : index
    %c0_175 = arith.constant 0 : index
    %382 = vector.load %arg12[%c1_173, %c0_174, %c0_175] : memref<2x1x32xf32, #tpu.memory_space<vmem>>, vector<1x1x32xf32>
    %383 = vector.shape_cast %382 : vector<1x1x32xf32> to vector<1x32xf32>
    %384 = vector.broadcast %383 : vector<1x32xf32> to vector<32x32xf32>
    %385 = arith.addf %381, %384 : vector<32x32xf32>
    %386 = arith.addf %281, %385 : vector<32x32xf32>
    %c1_176 = arith.constant 1 : index
    %c0_177 = arith.constant 0 : index
    %c0_178 = arith.constant 0 : index
    %387 = vector.load %arg13[%c1_176, %c0_177, %c0_178] : memref<2x1x32xf32, #tpu.memory_space<vmem>>, vector<1x1x32xf32>
    %388 = vector.shape_cast %387 : vector<1x1x32xf32> to vector<1x32xf32>
    %c1_179 = arith.constant 1 : index
    %c0_180 = arith.constant 0 : index
    %c0_181 = arith.constant 0 : index
    %389 = vector.load %arg14[%c1_179, %c0_180, %c0_181] : memref<2x1x32xf32, #tpu.memory_space<vmem>>, vector<1x1x32xf32>
    %390 = vector.shape_cast %389 : vector<1x1x32xf32> to vector<1x32xf32>
    %cst_182 = arith.constant dense<0.000000e+00> : vector<32xf32>
    %391 = vector.multi_reduction <add>, %386, %cst_182 [1] : vector<32x32xf32> to vector<32xf32>
    %392 = vector.shape_cast %391 : vector<32xf32> to vector<32x1xf32>
    %cst_183 = arith.constant 3.200000e+01 : f32
    %393 = vector.broadcast %cst_183 : f32 to vector<32x1xf32>
    %394 = arith.divf %392, %393 : vector<32x1xf32>
    %395 = vector.broadcast %394 : vector<32x1xf32> to vector<32x32xf32>
    %396 = arith.subf %386, %395 : vector<32x32xf32>
    %397 = arith.mulf %396, %396 : vector<32x32xf32>
    %cst_184 = arith.constant dense<0.000000e+00> : vector<32xf32>
    %398 = vector.multi_reduction <add>, %397, %cst_184 [1] : vector<32x32xf32> to vector<32xf32>
    %399 = vector.shape_cast %398 : vector<32xf32> to vector<32x1xf32>
    %cst_185 = arith.constant 3.200000e+01 : f32
    %400 = vector.broadcast %cst_185 : f32 to vector<32x1xf32>
    %401 = arith.divf %399, %400 : vector<32x1xf32>
    %402 = vector.broadcast %394 : vector<32x1xf32> to vector<32x32xf32>
    %403 = arith.subf %386, %402 : vector<32x32xf32>
    %cst_186 = arith.constant 9.99999974E-6 : f32
    %404 = vector.broadcast %cst_186 : f32 to vector<32x1xf32>
    %405 = arith.addf %401, %404 : vector<32x1xf32>
    %406 = math.rsqrt %405 : vector<32x1xf32>
    %407 = vector.broadcast %406 : vector<32x1xf32> to vector<32x32xf32>
    %408 = arith.mulf %403, %407 : vector<32x32xf32>
    %409 = vector.broadcast %388 : vector<1x32xf32> to vector<32x32xf32>
    %410 = arith.mulf %408, %409 : vector<32x32xf32>
    %411 = vector.broadcast %390 : vector<1x32xf32> to vector<32x32xf32>
    %412 = arith.addf %410, %411 : vector<32x32xf32>
    %c1_187 = arith.constant 1 : index
    %c0_188 = arith.constant 0 : index
    %c0_189 = arith.constant 0 : index
    %413 = vector.load %arg15[%c1_187, %c0_188, %c0_189] : memref<2x32x128xf32, #tpu.memory_space<vmem>>, vector<1x32x128xf32>
    %414 = vector.shape_cast %413 : vector<1x32x128xf32> to vector<32x128xf32>
    %cst_190 = arith.constant dense<0.000000e+00> : vector<32x128xf32>
    %415 = tpu.matmul %412, %414, %cst_190 {dimension_numbers = #tpu.dot_dimension_numbers<[1], [0], [0], [1], [0, 0, 1, 1], [], []>, precision = #tpu.contract_precision<fp32>} : vector<32x32xf32>, vector<32x128xf32>, vector<32x128xf32> -> vector<32x128xf32>
    %c1_191 = arith.constant 1 : index
    %c0_192 = arith.constant 0 : index
    %c0_193 = arith.constant 0 : index
    %416 = vector.load %arg16[%c1_191, %c0_192, %c0_193] : memref<2x1x128xf32, #tpu.memory_space<vmem>>, vector<1x1x128xf32>
    %417 = vector.shape_cast %416 : vector<1x1x128xf32> to vector<1x128xf32>
    %418 = vector.broadcast %417 : vector<1x128xf32> to vector<32x128xf32>
    %419 = arith.addf %415, %418 : vector<32x128xf32>
    %cst_194 = arith.constant 5.000000e-01 : f32
    %420 = vector.broadcast %cst_194 : f32 to vector<32x128xf32>
    %421 = arith.mulf %420, %419 : vector<32x128xf32>
    %cst_195 = arith.constant 0.707106769 : f32
    %422 = vector.broadcast %cst_195 : f32 to vector<32x128xf32>
    %423 = arith.mulf %419, %422 : vector<32x128xf32>
    %cst_196 = arith.constant 0.000000e+00 : f32
    %424 = vector.broadcast %cst_196 : f32 to vector<32x128xf32>
    %425 = arith.cmpf oge, %423, %424 : vector<32x128xf32>
    %cst_197 = arith.constant 1.000000e+00 : f32
    %cst_198 = arith.constant -1.000000e+00 : f32
    %426 = vector.broadcast %cst_197 : f32 to vector<32x128xf32>
    %427 = vector.broadcast %cst_198 : f32 to vector<32x128xf32>
    %428 = arith.select %425, %426, %427 : vector<32x128xi1>, vector<32x128xf32>
    %429 = math.absf %423 : vector<32x128xf32>
    %cst_199 = arith.constant 0.327591091 : f32
    %430 = vector.broadcast %cst_199 : f32 to vector<32x128xf32>
    %431 = arith.mulf %430, %429 : vector<32x128xf32>
    %cst_200 = arith.constant 1.000000e+00 : f32
    %432 = vector.broadcast %cst_200 : f32 to vector<32x128xf32>
    %433 = arith.addf %432, %431 : vector<32x128xf32>
    %cst_201 = arith.constant 1.000000e+00 : f32
    %434 = vector.broadcast %cst_201 : f32 to vector<32x128xf32>
    %435 = arith.divf %434, %433 : vector<32x128xf32>
    %cst_202 = arith.constant 1.06140542 : f32
    %436 = vector.broadcast %cst_202 : f32 to vector<32x128xf32>
    %437 = arith.mulf %436, %435 : vector<32x128xf32>
    %cst_203 = arith.constant -1.45315206 : f32
    %438 = vector.broadcast %cst_203 : f32 to vector<32x128xf32>
    %439 = arith.addf %437, %438 : vector<32x128xf32>
    %440 = arith.mulf %439, %435 : vector<32x128xf32>
    %cst_204 = arith.constant 1.42141378 : f32
    %441 = vector.broadcast %cst_204 : f32 to vector<32x128xf32>
    %442 = arith.addf %440, %441 : vector<32x128xf32>
    %443 = arith.mulf %442, %435 : vector<32x128xf32>
    %cst_205 = arith.constant -0.284496725 : f32
    %444 = vector.broadcast %cst_205 : f32 to vector<32x128xf32>
    %445 = arith.addf %443, %444 : vector<32x128xf32>
    %446 = arith.mulf %445, %435 : vector<32x128xf32>
    %cst_206 = arith.constant 0.254829586 : f32
    %447 = vector.broadcast %cst_206 : f32 to vector<32x128xf32>
    %448 = arith.addf %446, %447 : vector<32x128xf32>
    %449 = arith.mulf %448, %435 : vector<32x128xf32>
    %cst_207 = arith.constant 0.000000e+00 : f32
    %450 = vector.broadcast %cst_207 : f32 to vector<32x128xf32>
    %451 = arith.subf %450, %429 : vector<32x128xf32>
    %452 = arith.mulf %451, %429 : vector<32x128xf32>
    %453 = math.exp %452 : vector<32x128xf32>
    %454 = arith.mulf %449, %453 : vector<32x128xf32>
    %cst_208 = arith.constant 1.000000e+00 : f32
    %455 = vector.broadcast %cst_208 : f32 to vector<32x128xf32>
    %456 = arith.subf %455, %454 : vector<32x128xf32>
    %457 = arith.mulf %428, %456 : vector<32x128xf32>
    %cst_209 = arith.constant 1.000000e+00 : f32
    %458 = vector.broadcast %cst_209 : f32 to vector<32x128xf32>
    %459 = arith.addf %458, %457 : vector<32x128xf32>
    %460 = arith.mulf %421, %459 : vector<32x128xf32>
    %c1_210 = arith.constant 1 : index
    %c0_211 = arith.constant 0 : index
    %c0_212 = arith.constant 0 : index
    %461 = vector.load %arg17[%c1_210, %c0_211, %c0_212] : memref<2x128x32xf32, #tpu.memory_space<vmem>>, vector<1x128x32xf32>
    %462 = vector.shape_cast %461 : vector<1x128x32xf32> to vector<128x32xf32>
    %cst_213 = arith.constant dense<0.000000e+00> : vector<32x32xf32>
    %463 = tpu.matmul %460, %462, %cst_213 {dimension_numbers = #tpu.dot_dimension_numbers<[1], [0], [0], [1], [0, 0, 1, 1], [], []>, precision = #tpu.contract_precision<fp32>} : vector<32x128xf32>, vector<128x32xf32>, vector<32x32xf32> -> vector<32x32xf32>
    %c1_214 = arith.constant 1 : index
    %c0_215 = arith.constant 0 : index
    %c0_216 = arith.constant 0 : index
    %464 = vector.load %arg18[%c1_214, %c0_215, %c0_216] : memref<2x1x32xf32, #tpu.memory_space<vmem>>, vector<1x1x32xf32>
    %465 = vector.shape_cast %464 : vector<1x1x32xf32> to vector<1x32xf32>
    %466 = vector.broadcast %465 : vector<1x32xf32> to vector<32x32xf32>
    %467 = arith.addf %463, %466 : vector<32x32xf32>
    %468 = arith.addf %412, %467 : vector<32x32xf32>
    %c1_217 = arith.constant 1 : index
    %c0_218 = arith.constant 0 : index
    %c0_219 = arith.constant 0 : index
    %469 = vector.load %arg19[%c1_217, %c0_218, %c0_219] : memref<2x1x32xf32, #tpu.memory_space<vmem>>, vector<1x1x32xf32>
    %470 = vector.shape_cast %469 : vector<1x1x32xf32> to vector<1x32xf32>
    %c1_220 = arith.constant 1 : index
    %c0_221 = arith.constant 0 : index
    %c0_222 = arith.constant 0 : index
    %471 = vector.load %arg20[%c1_220, %c0_221, %c0_222] : memref<2x1x32xf32, #tpu.memory_space<vmem>>, vector<1x1x32xf32>
    %472 = vector.shape_cast %471 : vector<1x1x32xf32> to vector<1x32xf32>
    %cst_223 = arith.constant dense<0.000000e+00> : vector<32xf32>
    %473 = vector.multi_reduction <add>, %468, %cst_223 [1] : vector<32x32xf32> to vector<32xf32>
    %474 = vector.shape_cast %473 : vector<32xf32> to vector<32x1xf32>
    %cst_224 = arith.constant 3.200000e+01 : f32
    %475 = vector.broadcast %cst_224 : f32 to vector<32x1xf32>
    %476 = arith.divf %474, %475 : vector<32x1xf32>
    %477 = vector.broadcast %476 : vector<32x1xf32> to vector<32x32xf32>
    %478 = arith.subf %468, %477 : vector<32x32xf32>
    %479 = arith.mulf %478, %478 : vector<32x32xf32>
    %cst_225 = arith.constant dense<0.000000e+00> : vector<32xf32>
    %480 = vector.multi_reduction <add>, %479, %cst_225 [1] : vector<32x32xf32> to vector<32xf32>
    %481 = vector.shape_cast %480 : vector<32xf32> to vector<32x1xf32>
    %cst_226 = arith.constant 3.200000e+01 : f32
    %482 = vector.broadcast %cst_226 : f32 to vector<32x1xf32>
    %483 = arith.divf %481, %482 : vector<32x1xf32>
    %484 = vector.broadcast %476 : vector<32x1xf32> to vector<32x32xf32>
    %485 = arith.subf %468, %484 : vector<32x32xf32>
    %cst_227 = arith.constant 9.99999974E-6 : f32
    %486 = vector.broadcast %cst_227 : f32 to vector<32x1xf32>
    %487 = arith.addf %483, %486 : vector<32x1xf32>
    %488 = math.rsqrt %487 : vector<32x1xf32>
    %489 = vector.broadcast %488 : vector<32x1xf32> to vector<32x32xf32>
    %490 = arith.mulf %485, %489 : vector<32x32xf32>
    %491 = vector.broadcast %470 : vector<1x32xf32> to vector<32x32xf32>
    %492 = arith.mulf %490, %491 : vector<32x32xf32>
    %493 = vector.broadcast %472 : vector<1x32xf32> to vector<32x32xf32>
    %494 = arith.addf %492, %493 : vector<32x32xf32>
    %495 = vector.extract_strided_slice %494 {offsets = [8, 0], sizes = [8, 32], strides = [1, 1]} : vector<32x32xf32> to vector<8x32xf32>
    %496 = vector.extract_strided_slice %494 {offsets = [24, 0], sizes = [8, 32], strides = [1, 1]} : vector<32x32xf32> to vector<8x32xf32>
    %497 = tpu.concatenate %495, %496 in 0 : vector<8x32xf32>, vector<8x32xf32> -> vector<16x32xf32>
    %498 = vector.extract_strided_slice %494 {offsets = [0, 0], sizes = [8, 32], strides = [1, 1]} : vector<32x32xf32> to vector<8x32xf32>
    %499 = vector.extract_strided_slice %494 {offsets = [16, 0], sizes = [8, 32], strides = [1, 1]} : vector<32x32xf32> to vector<8x32xf32>
    %500 = tpu.concatenate %498, %499 in 0 : vector<8x32xf32>, vector<8x32xf32> -> vector<16x32xf32>
    %c0_228 = arith.constant 0 : index
    %c0_229 = arith.constant 0 : index
    %501 = vector.load %arg21[%c0_228, %c0_229] : memref<32x128xf32, #tpu.memory_space<vmem>>, vector<32x128xf32>
    %cst_230 = arith.constant dense<0.000000e+00> : vector<16x128xf32>
    %502 = tpu.matmul %497, %501, %cst_230 {dimension_numbers = #tpu.dot_dimension_numbers<[1], [0], [0], [1], [0, 0, 1, 1], [], []>, precision = #tpu.contract_precision<fp32>} : vector<16x32xf32>, vector<32x128xf32>, vector<16x128xf32> -> vector<16x128xf32>
    %c0_231 = arith.constant 0 : index
    %c0_232 = arith.constant 0 : index
    %503 = vector.load %arg22[%c0_231, %c0_232] : memref<1x128xf32, #tpu.memory_space<vmem>>, vector<1x128xf32>
    %504 = vector.broadcast %503 : vector<1x128xf32> to vector<16x128xf32>
    %505 = arith.addf %502, %504 : vector<16x128xf32>
    %c0_233 = arith.constant 0 : index
    %c0_234 = arith.constant 0 : index
    %506 = vector.load %arg25[%c0_233, %c0_234] : memref<16x128xf32, #tpu.memory_space<vmem>>, vector<16x128xf32>
    tpu.vector_store %arg25[%c0_233, %c0_234], %505 {strides = array<i32>} : memref<16x128xf32, #tpu.memory_space<vmem>>, vector<16x128xf32>,
    %c0_235 = arith.constant 0 : index
    %c0_236 = arith.constant 0 : index
    %507 = vector.load %arg23[%c0_235, %c0_236] : memref<32x128xf32, #tpu.memory_space<vmem>>, vector<32x128xf32>
    %cst_237 = arith.constant dense<0.000000e+00> : vector<16x128xf32>
    %508 = tpu.matmul %500, %507, %cst_237 {dimension_numbers = #tpu.dot_dimension_numbers<[1], [0], [0], [1], [0, 0, 1, 1], [], []>, precision = #tpu.contract_precision<fp32>} : vector<16x32xf32>, vector<32x128xf32>, vector<16x128xf32> -> vector<16x128xf32>
    %c0_238 = arith.constant 0 : index
    %c0_239 = arith.constant 0 : index
    %509 = vector.load %arg24[%c0_238, %c0_239] : memref<1x128xf32, #tpu.memory_space<vmem>>, vector<1x128xf32>
    %510 = vector.broadcast %509 : vector<1x128xf32> to vector<16x128xf32>
    %511 = arith.addf %508, %510 : vector<16x128xf32>
    %c0_240 = arith.constant 0 : index
    %c0_241 = arith.constant 0 : index
    %512 = vector.load %arg26[%c0_240, %c0_241] : memref<16x128xf32, #tpu.memory_space<vmem>>, vector<16x128xf32>
    tpu.vector_store %arg26[%c0_240, %c0_241], %511 {strides = array<i32>} : memref<16x128xf32, #tpu.memory_space<vmem>>, vector<16x128xf32>,
    return
  }
}

</mosaic_0001>

<bundles_post_ra>
// kernel: pallas_forward.1
= control target key start
LH: loop header
LB: loop body
LE: loop exit
PB: predicated region body
PF: predicated region fallthrough
CT: control target
= control target key end

     0   :  { %vm102_vm0 = vcmask 1043456   ;;  %vm95_vm1 = vcmask 97280   ;;  %vm620_vm2 = vcmask 31744   ;;  %vm1123_vm3 = vcmask 261120   ;;  %s19849_s28 = smov 96   ;;  %s19852_s29 = smov 112   ;;  %s23073_s3 = inlined_call_operand.vmem [shape: f32[12,32], index: 3, kind: input, shape index: {}]   ;;  %s23074_s0 = inlined_call_operand.vmem [shape: f32[16,12], index: 0, kind: input, shape index: {}]   ;;  %s23075_s5 = inlined_call_operand.vmem [shape: f32[4,32], index: 5, kind: input, shape index: {}]   ;;  %s23076_s1 = inlined_call_operand.vmem [shape: f32[16,4], index: 1, kind: input, shape index: {}]   ;;  %s23077_s4 = inlined_call_operand.vmem [shape: f32[1,32], index: 4, kind: input, shape index: {}]   ;;  %s23078_s6 = inlined_call_operand.vmem [shape: f32[1,32], index: 6, kind: input, shape index: {}]   ;;  %s23079_s2 = inlined_call_operand.vmem [shape: f32[16,32], index: 2, kind: input, shape index: {}]   ;;  %s23080_s9 = inlined_call_operand.vmem [shape: f32[2,32,96], index: 9, kind: input, shape index: {}]   ;;  %s23081_s7 = inlined_call_operand.vmem [shape: f32[1,32], index: 7, kind: input, shape index: {}]   ;;  %s23082_s8 = inlined_call_operand.vmem [shape: f32[1,32], index: 8, kind: input, shape index: {}]   ;;  %s23083_s10 = inlined_call_operand.vmem [shape: f32[2,1,96], index: 10, kind: input, shape index: {}]   ;;  %s23084_s11 = inlined_call_operand.vmem [shape: f32[2,32,32], index: 11, kind: input, shape index: {}]   ;;  %s23085_s12 = inlined_call_operand.vmem [shape: f32[2,1,32], index: 12, kind: input, shape index: {}]   ;;  %s23086_s15 = inlined_call_operand.vmem [shape: f32[2,32,128], index: 15, kind: input, shape index: {}]   ;;  %s23087_s13 = inlined_call_operand.vmem [shape: f32[2,1,32], index: 13, kind: input, shape index: {}]   ;;  %s23088_s14 = inlined_call_operand.vmem [shape: f32[2,1,32], index: 14, kind: input, shape index: {}]   ;;  %s23089_s17 = inlined_call_operand.vmem [shape: f32[2,128,32], index: 17, kind: input, shape index: {}]   ;;  %s23090_s16 = inlined_call_operand.vmem [shape: f32[2,1,128], index: 16, kind: input, shape index: {}]   ;;  %s23091_s18 = inlined_call_operand.vmem [shape: f32[2,1,32], index: 18, kind: input, shape index: {}]   ;;  %s23092_s19 = inlined_call_operand.vmem [shape: f32[2,1,32], index: 19, kind: input, shape index: {}]   ;;  %s23093_s20 = inlined_call_operand.vmem [shape: f32[2,1,32], index: 20, kind: input, shape index: {}]   ;;  %s23094_s21 = inlined_call_operand.vmem [shape: f32[32,128], index: 21, kind: input, shape index: {}]   ;;  %s23095_s23 = inlined_call_operand.vmem [shape: f32[32,128], index: 23, kind: input, shape index: {}]   ;;  %s23096_s22 = inlined_call_operand.vmem [shape: f32[1,128], index: 22, kind: input, shape index: {}]   ;;  %s23097_s25 = inlined_call_operand.vmem [shape: f32[16,128], index: 25, kind: output, shape index: {0}]   ;;  %s23098_s24 = inlined_call_operand.vmem [shape: f32[1,128], index: 24, kind: input, shape index: {}]   ;;  %s23099_s26 = inlined_call_operand.vmem [shape: f32[16,128], index: 26, kind: output, shape index: {1}]  }
   0x1   :  { %23200 = sst [smem:[#allocation29_spill]] %s23073_s3  ;;  %vm1863_vm4 = vcmask 130048   ;;  %vm3982_vm8 = vcmask 261248  }
   0x2   :  { %23201 = sst [smem:[#allocation30_spill]] %s23074_s0 }
   0x3   :  { %23202 = sst [smem:[#allocation31_spill]] %s23075_s5 }
   0x4   :  { %23203 = sst [smem:[#allocation32_spill]] %s23076_s1 }
   0x5   :  { %23204 = sst [smem:[#allocation33_spill]] %s23077_s4 }
   0x6   :  { %23205 = sst [smem:[#allocation34_spill]] %s23078_s6 }
   0x7   :  { %23206 = sst [smem:[#allocation35_spill]] %s23079_s2 }
   0x8   :  { %23207 = sst [smem:[#allocation36_spill]] %s23080_s9 }
   0x9   :  { %23208 = sst [smem:[#allocation37_spill]] %s23081_s7  ;;  %s19850_s7 = smov 64  }
   0xa   :  { %23209 = sst [smem:[#allocation38_spill]] %s23082_s8 }
   0xb   :  { %23210 = sst [smem:[#allocation39_spill]] %s23083_s10 }
   0xc   :  { %s23211_s9 = sld [smem:[#allocation29_spill]] }
   0xd   :  { %s23212_s3 = sld [smem:[#allocation30_spill]] }
   0xe   :  { %s23213_s10 = sld [smem:[#allocation31_spill]] }
   0xf   :  { %s23214_s27 = sld [smem:[#allocation32_spill]] }
  0x10   :  { %s23215_s4 = sld [smem:[#allocation33_spill]] }
  0x11   :  { %s23216_s8 = sld [smem:[#allocation34_spill]] }
  0x12   :  { %v87_v0 = vld [vmem:[%s23211_s9 + $0x8] sm:$0xf]  ;;  %v86_v1 = vld [vmem:[%s23211_s9] sm:$0xff]  ;;  %s23217_s6 = sld [smem:[#allocation35_spill]] }
  0x13   :  { %v84_v2 = vld [vmem:[%s23212_s3] sm:$0xff]  ;;  %v104_v3 = vsel %vm102_vm0, %v87_v0, 0  ;;  %v20001_v4 = vand.u32 4294901760, %v86_v1  ;;  %v85_v5 = vld [vmem:[%s23212_s3 + $0x8] sm:$0xff]  ;;  %s23218_s1 = sld [smem:[#allocation36_spill]]  ;;  %s19853_s3 = smov 48  }
  0x14   :  { %v97_v6 = vsel %vm95_vm1, %v84_v2, 0  ;;  %v20006_v7 = vand.u32 4294901760, %v104_v3  ;;  %v100_v8 = vsel %vm95_vm1, %v85_v5, 0  ;;  %v612_v10 = vld [vmem:[%s23213_s10] sm:$0xf]  ;;  %s23219_s5 = sld [smem:[#allocation37_spill]] }
  0x15   :  { %v20008_v9 = vand.u32 4294901760, %v97_v6  ;;  %v610_v11 = vld [vmem:[%s23214_s27] sm:$0xff]  ;;  %v20016_v12 = vand.u32 4294901760, %v100_v8  ;;  %v230_v13 = vsub.f32 %v86_v1, %v20001_v4  ;;  %v611_v14 = vld [vmem:[%s23214_s27 + $0x8] sm:$0xff]  ;;  %v628_v19 = vsel %vm102_vm0, %v612_v10, 0  ;;  %s23220_s2 = sld [smem:[#allocation38_spill]] }
  0x16   :  { %17870 = vmatprep.subr.mxu0 %v20006_v7  ;;  %v223_v16 = vsub.f32 %v104_v3, %v20006_v7  ;;  %v622_v20 = vsel %vm620_vm2, %v610_v11, 0  ;;  %v625_v23 = vsel %vm620_vm2, %v611_v14, 0  ;;  %v20033_v28 = vand.u32 4294901760, %v628_v19  ;;  %v16784_v48 = vld [vmem:[%s23215_s4] ss:$0 sm:$0xff]  ;;  %s23221_s9 = sld [smem:[#allocation39_spill]] }
  0x17   :  { %v174_v15 = vsub.f32 %v97_v6, %v20008_v9  ;;  %17881 = vmatprep.mubr.f32.mxu1 %v20008_v9  ;;  %17871 = vmatpush3.msra.mxu0 %v20006_v7  ;;  %v184_v17 = vsub.f32 %v100_v8, %v20016_v12  ;;  %v231_v18 = vand.u32 4294901760, %v230_v13  ;;  %v20035_v29 = vand.u32 4294901760, %v622_v20  ;;  %v16785_v6 = vld [vmem:[%s23216_s8] ss:$0 sm:$0xff]  ;;  %s19851_s4 = smov 80   ;;  %s19854_s8 = smov 16  }
  0x18   :  { %17872 = vmatprep.subr.mxu0 %v20001_v4  ;;  %v224_v22 = vand.u32 4294901760, %v223_v16  ;;  %v20037_v31 = vand.u32 4294901760, %v625_v23  ;;  %v748_v37 = vsub.f32 %v628_v19, %v20033_v28  ;;  %v82_v11 = vld [vmem:[%s23217_s6] sm:$0xff] }
  0x19   :  { %v175_v21 = vand.u32 4294901760, %v174_v15  ;;  %17873 = vmatpush3.msra.mxu0 %v20001_v4  ;;  %v185_v24 = vand.u32 4294901760, %v184_v17  ;;  %v232_v25 = vsub.f32 %v230_v13, %v231_v18  ;;  %v697_v36 = vsub.f32 %v622_v20, %v20035_v29 }
  0x1a   :  { %v225_v27 = vsub.f32 %v223_v16, %v224_v22  ;;  %17884 = vmatprep.subr.mxu0 %v223_v16  ;;  %v707_v38 = vsub.f32 %v625_v23, %v20037_v31  ;;  %v749_v40 = vand.u32 4294901760, %v748_v37 }
  0x1b   :  { %v176_v26 = vsub.f32 %v174_v15, %v175_v21  ;;  %v186_v30 = vsub.f32 %v184_v17, %v185_v24  ;;  %v233_v34 = vand.u32 4294901760, %v232_v25  ;;  %v698_v39 = vand.u32 4294901760, %v697_v36 }
  0x1c   :  { %v226_v33 = vand.u32 4294901760, %v225_v27  ;;  %v708_v41 = vand.u32 4294901760, %v707_v38  ;;  %v750_v43 = vsub.f32 %v748_v37, %v749_v40 }
  0x1d   :  { %v177_v32 = vand.u32 4294901760, %v176_v26  ;;  %v187_v35 = vand.u32 4294901760, %v186_v30  ;;  %v699_v42 = vsub.f32 %v697_v36, %v698_v39 }
  0x1e   :  { %17877 = vmatprep.subr.mxu1 %v226_v33  ;;  %v709_v44 = vsub.f32 %v707_v38, %v708_v41  ;;  %v751_v46 = vand.u32 4294901760, %v750_v43 }
  0x1f   :  { %17874 = vmatprep.mubr.f32.mxu0 %v177_v32  ;;  %17878 = vmatpush3.msra.mxu1 %v226_v33  ;;  %v700_v45 = vand.u32 4294901760, %v699_v42 }
  0x20   :  { %17875 = vmatmul.mubr.f32.vlgmr.msra.gmra.mxu0 %v187_v35  ;;  %17879 = vmatprep.subr.mxu1 %v233_v34  ;;  %v710_v47 = vand.u32 4294901760, %v709_v44 }
  0x21   :  { %17885 = vmatpush3.msra.mxu0 %v223_v16  ;;  %17880 = vmatpush3.msra.mxu1 %v233_v34 }
  0x22   :  { %17886 = vmatprep.subr.mxu0 %v230_v13  ;;  %17882 = vmatmul.mubr.f32.vlgmr.msra.gmra.mxu1 %v20016_v12 }
  0x23   :  { %17887 = vmatpush3.msra.mxu0 %v230_v13  ;;  %17888 = vmatprep.mubr.f32.mxu0 %v174_v15 }
  0x24   :  { %17891 = vmatprep.subr.mxu1 %v20006_v7  ;;  %17889 = vmatmul.mubr.f32.vlgmr.msra.gmra.mxu0 %v184_v17 }
  0x25   :  { %17892 = vmatpush3.msra.mxu1 %v20006_v7  ;;  %17898 = vmatprep.subr.mxu0 %v224_v22 }
  0x26   :  { %17893 = vmatprep.subr.mxu1 %v20001_v4  ;;  %17899 = vmatpush3.msra.mxu0 %v224_v22 }
  0x27   :  { %17894 = vmatpush3.msra.mxu1 %v20001_v4  ;;  %17895 = vmatprep.mubr.f32.mxu1 %v175_v21 }
  0x28   :  { %17900 = vmatprep.subr.mxu0 %v231_v18  ;;  %17896 = vmatmul.mubr.f32.vlgmr.msra.gmra.mxu1 %v185_v24 }
  0x29   :  { %17901 = vmatpush3.msra.mxu0 %v231_v18  ;;  %17902 = vmatprep.mubr.f32.mxu0 %v20008_v9 }
  0x2a   :  { %17905 = vmatprep.subr.mxu1 %v20006_v7  ;;  %17903 = vmatmul.mubr.f32.vlgmr.msra.gmra.mxu0 %v20016_v12 }
  0x2b   :  { %17906 = vmatpush3.msra.mxu1 %v20006_v7  ;;  %17912 = vmatprep.subr.mxu0 %v20033_v28  ;;  %v83_v7 = vld [vmem:[%s23217_s6 + $0x8] sm:$0xff] }
  0x2c   :  { %17907 = vmatprep.subr.mxu1 %v20001_v4  ;;  %17909 = vmatprep.mubr.f32.mxu1 %v20008_v9 }
  0x2d   :  { %17908 = vmatpush3.msra.mxu1 %v20001_v4  ;;  %17913 = vmatpush3.msra.mxu0 %v20033_v28 }
  0x2e   :  { %17910 = vmatmul.mubr.f32.vlgmr.msra.gmra.mxu1 %v20016_v12  ;;  %17914 = vmatprep.mubr.f32.mxu0 %v700_v45 }
  0x2f   :  { %17917 = vmatprep.subr.mxu1 %v751_v46  ;;  %17915 = vmatmul.mubr.f32.vlgmr.msra.gmra.mxu0 %v710_v47 }
  0x30   :  { %17918 = vmatpush3.msra.mxu1 %v751_v46  ;;  %17922 = vmatprep.subr.mxu0 %v748_v37 }
  0x31   :  { %17919 = vmatprep.mubr.f32.mxu1 %v20035_v29  ;;  %17923 = vmatpush3.msra.mxu0 %v748_v37 }
  0x32   :  { %17920 = vmatmul.mubr.f32.vlgmr.msra.gmra.mxu1 %v20037_v31  ;;  %17924 = vmatprep.mubr.f32.mxu0 %v697_v36 }
  0x33   :  { %17927 = vmatprep.subr.mxu1 %v20033_v28  ;;  %17925 = vmatmul.mubr.f32.vlgmr.msra.gmra.mxu0 %v707_v38 }
  0x34   :  { %17928 = vmatpush3.msra.mxu1 %v20033_v28  ;;  %17932 = vmatprep.subr.mxu0 %v749_v40 }
  0x35   :  { %17929 = vmatprep.mubr.f32.mxu1 %v698_v39  ;;  %17933 = vmatpush3.msra.mxu0 %v749_v40 }
  0x36   :  { %17930 = vmatmul.mubr.f32.vlgmr.msra.gmra.mxu1 %v708_v41  ;;  %17934 = vmatprep.mubr.f32.mxu0 %v20035_v29 }
  0x37   :  { %17937 = vmatprep.subr.mxu1 %v20033_v28  ;;  %17935 = vmatmul.mubr.f32.vlgmr.msra.gmra.mxu0 %v20037_v31 }
  0x38   :  { %17938 = vmatpush3.msra.mxu1 %v20033_v28  ;;  %17939 = vmatprep.mubr.f32.mxu1 %v20035_v29 }
  0x3a   :  { %17940 = vmatmul.mubr.f32.vlgmr.msra.gmra.mxu1 %v20037_v31 }
  0xe0   :  { %v17876_v49 = vpop.f32.mrf.mxu0 }
  0xe1   :  { %v190_v50 = vadd.f32 %v17876_v49, %v16784_v48 }
  0xe2   :  { %v179_v51 = vpop.f32.mrf.mxu0  ;;  %v17883_v53 = vpop.f32.mrf.mxu1 }
  0xe3   :  { %v180_v52 = vadd.f32 %v16784_v48, %v179_v51  ;;  %v277_v54 = vadd.f32 %v17883_v53, %v190_v50 }
  0xe4   :  { %v17890_v55 = vpop.f32.mrf.mxu0  ;;  %v270_v56 = vpop.f32.mrf.mxu1 }
  0xe5   :  { %v360_v57 = vadd.f32 %v17890_v55, %v277_v54  ;;  %v271_v58 = vadd.f32 %v270_v56, %v180_v52 }
  0xe6   :  { %v352_v59 = vpop.f32.mrf.mxu0 }
  0xe7   :  { %v353_v60 = vadd.f32 %v352_v59, %v271_v58 }
  0xe8   :  { %v17897_v61 = vpop.f32.mrf.mxu1 }
  0xe9   :  { %v443_v62 = vadd.f32 %v17897_v61, %v360_v57 }
  0xea   :  { %v17904_v63 = vpop.f32.mrf.mxu0  ;;  %v434_v0 = vpop.f32.mrf.mxu1 }
  0xeb   :  { %v526_v1 = vadd.f32 %v17904_v63, %v443_v62  ;;  %v435_v2 = vadd.f32 %v434_v0, %v353_v60  ;;  %v1223_v0 = vld [vmem:[%s23218_s1 + $0x18] sm:$0xff] }
  0xec   :  { %v519_v3 = vpop.f32.mrf.mxu0 }
  0xed   :  { %v520_v4 = vadd.f32 %v519_v3, %v435_v2  ;;  %v1222_v2 = vld [vmem:[%s23218_s1 + $0x10] sm:$0xff] }
  0xee   :  { %v17911_v5 = vpop.f32.mrf.mxu1 }
  0xef   :  { %v605_v8 = vadd.f32 %v17911_v5, %v526_v1  ;;  %v17916_v9 = vpop.f32.mrf.mxu0  ;;  %v20106_v1 = vand.u32 4294901760, %v1223_v0  ;;  %v1221_v5 = vld [vmem:[%s23218_s1 + $0x8] sm:$0xff] }
  0xf0   :  { %v598_v10 = vpop.f32.mrf.mxu1  ;;  %v713_v12 = vadd.f32 %v17916_v9, %v16785_v6  ;;  %v1220_v9 = vld [vmem:[%s23218_s1] sm:$0xff] }
  0xf1   :  { %v599_v13 = vadd.f32 %v598_v10, %v520_v4  ;;  %v609_v14 = vadd.f32 %v605_v8, %v83_v7  ;;  %v702_v15 = vpop.f32.mrf.mxu0  ;;  %v20112_v3 = vsub.f32 %v1223_v0, %v20106_v1  ;;  %v20114_v4 = vand.u32 4294901760, %v1222_v2  ;;  %17942 = vmatprep.subr.mxu0 %v20106_v1 }
  0xf2   :  { %v17921_v16 = vpop.f32.mrf.mxu1  ;;  %v703_v17 = vadd.f32 %v16785_v6, %v702_v15  ;;  %17943 = vmatpush3.msra.mxu0 %v20106_v1  ;;  %v20127_v8 = vand.u32 4294901760, %v1221_v5 }
  0xf3   :  { %v795_v18 = vadd.f32 %v17921_v16, %v713_v12  ;;  %v1130_v19 = vsel %vm1123_vm3, %v609_v14, 0.0  ;;  %v608_v20 = vadd.f32 %v599_v13, %v82_v11  ;;  %v17926_v21 = vpop.f32.mrf.mxu0  ;;  %v20122_v6 = vand.u32 4294901760, %v20112_v3  ;;  %17944 = vmatprep.subr.mxu0 %v20114_v4 }
  0xf4   :  { %v788_v22 = vpop.f32.mrf.mxu1  ;;  %1131 = vadd.xlane.f32.xlu1 %v1130_v19  ;;  %17945 = vmatpush3.msra.mxu0 %v20114_v4  ;;  %v20140_v12 = vsub.f32 %v1221_v5, %v20127_v8  ;;  %v20142_v13 = vand.u32 4294901760, %v1220_v9 }
  0xf5   :  { %v876_v23 = vadd.f32 %v17926_v21, %v795_v18  ;;  %v789_v24 = vadd.f32 %v788_v22, %v703_v17  ;;  %v1124_v25 = vsel %vm1123_vm3, %v608_v20, 0.0  ;;  %v868_v26 = vpop.f32.mrf.mxu0  ;;  %v1380_v10 = vsub.f32 %v20112_v3, %v20122_v6  ;;  %17946 = vmatprep.subr.mxu0 %v20127_v8 }
  0xf6   :  { %v17931_v27 = vpop.f32.mrf.mxu1  ;;  %1125 = vadd.xlane.f32.xlu0 %v1124_v25  ;;  %17947 = vmatpush3.msra.mxu0 %v20127_v8  ;;  %v20149_v16 = vand.u32 4294901760, %v20140_v12  ;;  %v20152_v17 = vsub.f32 %v1220_v9, %v20142_v13 }
  0xf7   :  { %v869_v28 = vadd.f32 %v868_v26, %v789_v24  ;;  %v958_v29 = vadd.f32 %v17931_v27, %v876_v23  ;;  %v17936_v30 = vpop.f32.mrf.mxu0  ;;  %17948 = vmatprep.subr.mxu0 %v20142_v13 }
  0xf8   :  { %v949_v31 = vpop.f32.mrf.mxu1  ;;  %17949 = vmatpush3.msra.mxu0 %v20142_v13  ;;  %v1394_v19 = vsub.f32 %v20140_v12, %v20149_v16 }
  0xf9   :  { %v1038_v32 = vadd.f32 %v17936_v30, %v958_v29  ;;  %v950_v33 = vadd.f32 %v949_v31, %v869_v28  ;;  %v1031_v34 = vpop.f32.mrf.mxu0  ;;  %17970 = vmatprep.subr.mxu0 %v20112_v3 }
  0xfa   :  { %v17941_v35 = vpop.f32.mrf.mxu1  ;;  %v1395_v21 = vand.u32 4294901760, %v1394_v19 }
  0xfb   :  { %v1032_v36 = vadd.f32 %v1031_v34, %v950_v33  ;;  %v1116_v37 = vadd.f32 %v17941_v35, %v1038_v32 }
  0xfc   :  { %v1109_v38 = vpop.f32.mrf.mxu1 }
  0xfd   :  { %v1110_v39 = vadd.f32 %v1109_v38, %v1032_v36  ;;  %v1120_v40 = vadd.f32 %v1116_v37, %v83_v7  ;;  %v20125_v7 = vsub.f32 %v1222_v2, %v20114_v4  ;;  %v16786_v36 = vld [vmem:[%s23219_s5] ss:$0 sm:$0xff] }
  0xff   :  { %v1133_v41 = vsel %vm1123_vm3, %v1120_v40, 0.0  ;;  %v1119_v42 = vadd.f32 %v1110_v39, %v82_v11  ;;  %v20137_v11 = vand.u32 4294901760, %v20125_v7  ;;  %v16787_v39 = vld [vmem:[%s23220_s2] ss:$0 sm:$0xff] }
 0x100   :  { %1134 = vadd.xlane.f32.xlu1 %v1133_v41 }
 0x101   :  { %v1127_v43 = vsel %vm1123_vm3, %v1119_v42, 0.0  ;;  %v1387_v15 = vsub.f32 %v20125_v7, %v20137_v11 }
 0x102   :  { %1128 = vadd.xlane.f32.xlu0 %v1127_v43 }
 0x103   :  { %v1388_v18 = vand.u32 4294901760, %v1387_v15 }
 0x17d   :  { %v1132_v44 = vpop.xlane.xlu1 %1131 }
 0x17e   :  { %v1139_v45 = vmul.f32 0.03125, %v1132_v44 }
 0x17f   :  { %v1126_v46 = vpop.xlane.xlu0 %1125 }
 0x180   :  { %v1137_v47 = vmul.f32 0.03125, %v1126_v46  ;;  %v20083_v48 = vsub.f32 %v609_v14, %v1139_v45  ;;  %v1381_v14 = vand.u32 4294901760, %v1380_v10 }
 0x182   :  { %v20085_v49 = vsub.f32 %v608_v20, %v1137_v47  ;;  %v1147_v52 = vmul.f32 %v20083_v48, %v20083_v48  ;;  %17956 = vmatprep.subr.mxu1 %v1381_v14  ;;  %v20159_v20 = vand.u32 4294901760, %v20152_v17 }
 0x183   :  { %17957 = vmatpush3.msra.mxu1 %v1381_v14 }
 0x184   :  { %v1145_v50 = vmul.f32 %v20085_v49, %v20085_v49  ;;  %v1155_v55 = vsel %vm1123_vm3, %v1147_v52, 0.0  ;;  %17958 = vmatprep.subr.mxu1 %v1388_v18  ;;  %v1401_v22 = vsub.f32 %v20152_v17, %v20159_v20 }
 0x185   :  { %17959 = vmatpush3.msra.mxu1 %v1388_v18 }
 0x186   :  { %v1149_v51 = vsel %vm1123_vm3, %v1145_v50, 0.0  ;;  %17960 = vmatprep.subr.mxu1 %v1395_v21  ;;  %v1402_v23 = vand.u32 4294901760, %v1401_v22 }
 0x187   :  { %1150 = vadd.xlane.f32.xlu0 %v1149_v51  ;;  %17961 = vmatpush3.msra.mxu1 %v1395_v21 }
 0x188   :  { %17962 = vmatprep.subr.mxu1 %v1402_v23 }
 0x189   :  { %v1135_v53 = vpop.xlane.xlu1 %1134  ;;  %17963 = vmatpush3.msra.mxu1 %v1402_v23 }
 0x18a   :  { %v1140_v54 = vmul.f32 0.03125, %v1135_v53  ;;  %17984 = vmatprep.subr.mxu1 %v20106_v1 }
 0x18b   :  { %1156 = vadd.xlane.f32.xlu0 %v1155_v55  ;;  %v1129_v56 = vpop.xlane.xlu0 %1128 }
 0x18c   :  { %v1138_v57 = vmul.f32 0.03125, %v1129_v56  ;;  %v20093_v58 = vsub.f32 %v1120_v40, %v1140_v54 }
 0x18e   :  { %v20095_v59 = vsub.f32 %v1119_v42, %v1138_v57  ;;  %v1148_v62 = vmul.f32 %v20093_v58, %v20093_v58 }
 0x190   :  { %v1146_v60 = vmul.f32 %v20095_v59, %v20095_v59  ;;  %v1158_v63 = vsel %vm1123_vm3, %v1148_v62, 0.0 }
 0x192   :  { %v1152_v61 = vsel %vm1123_vm3, %v1146_v60, 0.0 }
 0x193   :  { %1153 = vadd.xlane.f32.xlu1 %v1152_v61 }
 0x197   :  { %1159 = vadd.xlane.f32.xlu1 %v1158_v63 }
 0x210   :  { %v1151_v24 = vpop.xlane.xlu0 %1150 }
 0x211   :  { %v1161_v25 = vmul.f32 0.03125, %v1151_v24 }
 0x213   :  { %v1165_v26 = vadd.f32 1e-05, %v1161_v25 }
 0x214   :  { %v1157_v27 = vpop.xlane.xlu0 %1156 }
 0x215   :  { %19713 = vrsqrt.f32 %v1165_v26  ;;  %v1163_v28 = vmul.f32 0.03125, %v1157_v27 }
 0x217   :  { %v1167_v29 = vadd.f32 1e-05, %v1163_v28 }
 0x219   :  { %19715 = vrsqrt.f32 %v1167_v29 }
 0x21c   :  { %v1154_v30 = vpop.xlane.xlu1 %1153 }
 0x21d   :  { %v1162_v31 = vmul.f32 0.03125, %v1154_v30 }
 0x21f   :  { %v1166_v32 = vadd.f32 1e-05, %v1162_v31 }
 0x220   :  { %v1160_v33 = vpop.xlane.xlu1 %1159 }
 0x221   :  { %19717 = vrsqrt.f32 %v1166_v32  ;;  %v1164_v34 = vmul.f32 0.03125, %v1160_v33 }
 0x222   :  { %v19714_v35 = vpop.eup %19713 }
 0x223   :  { %v1168_v37 = vadd.f32 1e-05, %v1164_v34  ;;  %v1173_v38 = vmul.f32 %v19714_v35, %v20085_v49 }
 0x225   :  { %19719 = vrsqrt.f32 %v1168_v37  ;;  %v1183_v40 = vmul.f32 %v16786_v36, %v1173_v38 }
 0x226   :  { %v19716_v41 = vpop.eup %19715 }
 0x227   :  { %v20172_v42 = vadd.f32 %v16787_v39, %v1183_v40  ;;  %v1175_v43 = vmul.f32 %v19716_v41, %v20083_v48 }
 0x229   :  { %v1232_v44 = vsel %vm1123_vm3, %v20172_v42, 0  ;;  %v1185_v45 = vmul.f32 %v16786_v36, %v1175_v43 }
 0x22a   :  { %v20177_v46 = vand.u32 4294901760, %v1232_v44 }
 0x22b   :  { %v20179_v47 = vadd.f32 %v16787_v39, %v1185_v45 }
 0x22c   :  { %17964 = vmatprep.mubr.f32.mxu1 %v20177_v46  ;;  %v1313_v49 = vsub.f32 %v1232_v44, %v20177_v46 }
 0x22d   :  { %v1238_v50 = vsel %vm1123_vm3, %v20179_v47, 0 }
 0x22e   :  { %v19718_v51 = vpop.eup %19717  ;;  %v1314_v52 = vand.u32 4294901760, %v1313_v49  ;;  %v20186_v48 = vand.u32 4294901760, %v1238_v50 }
 0x22f   :  { %v1174_v53 = vmul.f32 %v19718_v51, %v20095_v59 }
 0x230   :  { %v1315_v54 = vsub.f32 %v1313_v49, %v1314_v52  ;;  %v1333_v62 = vsub.f32 %v1238_v50, %v20186_v48 }
 0x231   :  { %v1184_v55 = vmul.f32 %v16786_v36, %v1174_v53 }
 0x232   :  { %v19720_v56 = vpop.eup %19719  ;;  %v1316_v57 = vand.u32 4294901760, %v1315_v54  ;;  %v1334_v5 = vand.u32 4294901760, %v1333_v62 }
 0x233   :  { %v20188_v60 = vadd.f32 %v16787_v39, %v1184_v55  ;;  %v1176_v61 = vmul.f32 %v19720_v56, %v20093_v58 }
 0x234   :  { %17950 = vmatprep.mubr.f32.mxu0 %v1316_v57  ;;  %v1335_v15 = vsub.f32 %v1333_v62, %v1334_v5 }
 0x235   :  { %v1235_v63 = vsel %vm1123_vm3, %v20188_v60, 0  ;;  %v1186_v0 = vmul.f32 %v16786_v36, %v1176_v61 }
 0x236   :  { %v20194_v2 = vand.u32 4294901760, %v1235_v63  ;;  %v1336_v23 = vand.u32 4294901760, %v1335_v15 }
 0x237   :  { %v20196_v59 = vadd.f32 %v16787_v39, %v1186_v0 }
 0x238   :  { %v1323_v9 = vsub.f32 %v1235_v63, %v20194_v2  ;;  %17965 = vmatmul.mubr.f32.vlgmr.msra.gmra.mxu1 %v20194_v2 }
 0x239   :  { %17967 = vmatprep.mubr.f32.mxu1 %v20186_v48  ;;  %17985 = vmatpush3.msra.mxu1 %v20106_v1  ;;  %v1241_v58 = vsel %vm1123_vm3, %v20196_v59, 0 }
 0x23a   :  { %17986 = vmatprep.subr.mxu1 %v20114_v4  ;;  %v1342_v10 = vand.u32 4294901760, %v1241_v58  ;;  %v1324_v14 = vand.u32 4294901760, %v1323_v9 }
 0x23b   :  { %17987 = vmatpush3.msra.mxu1 %v20114_v4 }
 0x23c   :  { %17968 = vmatmul.mubr.f32.gmra.mxu1 %v1342_v10  ;;  %17988 = vmatprep.subr.mxu1 %v20127_v8  ;;  %v1325_v18 = vsub.f32 %v1323_v9, %v1324_v14  ;;  %v1343_v19 = vsub.f32 %v1241_v58, %v1342_v10 }
 0x23d   :  { %17989 = vmatpush3.msra.mxu1 %v20127_v8  ;;  %17992 = vmatprep.mubr.f32.mxu1 %v1314_v52 }
 0x23e   :  { %17990 = vmatprep.subr.mxu1 %v20142_v13  ;;  %v1326_v21 = vand.u32 4294901760, %v1325_v18  ;;  %v1344_v22 = vand.u32 4294901760, %v1343_v19 }
 0x23f   :  { %17991 = vmatpush3.msra.mxu1 %v20142_v13 }
 0x240   :  { %17951 = vmatmul.mubr.f32.vlgmr.msra.gmra.mxu0 %v1326_v21  ;;  %17993 = vmatmul.mubr.f32.vlgmr.msra.gmra.mxu1 %v1324_v14  ;;  %v1345_v24 = vsub.f32 %v1343_v19, %v1344_v22 }
 0x241   :  { %18012 = vmatprep.subr.mxu1 %v20106_v1  ;;  %17953 = vmatprep.mubr.f32.mxu0 %v1336_v23 }
 0x242   :  { %17971 = vmatpush3.msra.mxu0 %v20112_v3  ;;  %17995 = vmatprep.mubr.f32.mxu1 %v1334_v5  ;;  %v1346_v25 = vand.u32 4294901760, %v1345_v24 }
 0x243   :  { %18013 = vmatpush3.msra.mxu1 %v20106_v1  ;;  %17972 = vmatprep.subr.mxu0 %v20125_v7 }
 0x244   :  { %18014 = vmatprep.subr.mxu1 %v20114_v4  ;;  %17973 = vmatpush3.msra.mxu0 %v20125_v7 }
 0x245   :  { %18015 = vmatpush3.msra.mxu1 %v20114_v4  ;;  %17954 = vmatmul.mubr.f32.gmra.mxu0 %v1346_v25 }
 0x246   :  { %17974 = vmatprep.subr.mxu0 %v20140_v12  ;;  %17996 = vmatmul.mubr.f32.gmra.mxu1 %v1344_v22 }
 0x247   :  { %18016 = vmatprep.subr.mxu1 %v20127_v8  ;;  %17975 = vmatpush3.msra.mxu0 %v20140_v12  ;;  %v20244_v12 = vld [vmem:[%s23221_s9] ss:$0 sm:$0xff] }
 0x248   :  { %17978 = vmatprep.mubr.f32.mxu0 %v1313_v49  ;;  %18017 = vmatpush3.msra.mxu1 %v20127_v8 }
 0x249   :  { %18020 = vmatprep.mubr.f32.mxu1 %v20177_v46  ;;  %17976 = vmatprep.subr.mxu0 %v20152_v17 }
 0x24a   :  { %18018 = vmatprep.subr.mxu1 %v20142_v13  ;;  %17977 = vmatpush3.msra.mxu0 %v20152_v17 }
 0x24b   :  { %18019 = vmatpush3.msra.mxu1 %v20142_v13  ;;  %17979 = vmatmul.mubr.f32.vlgmr.msra.gmra.mxu0 %v1323_v9 }
 0x24c   :  { %17998 = vmatprep.subr.mxu0 %v20122_v6  ;;  %18021 = vmatmul.mubr.f32.vlgmr.msra.gmra.mxu1 %v20194_v2 }
 0x24d   :  { %17981 = vmatprep.mubr.f32.mxu0 %v1333_v62  ;;  %17999 = vmatpush3.msra.mxu0 %v20122_v6 }
 0x24e   :  { %18023 = vmatprep.mubr.f32.mxu1 %v20186_v48  ;;  %18000 = vmatprep.subr.mxu0 %v20137_v11 }
 0x24f   :  { %18001 = vmatpush3.msra.mxu0 %v20137_v11 }
 0x250   :  { %17982 = vmatmul.mubr.f32.gmra.mxu0 %v1343_v19  ;;  %18002 = vmatprep.subr.mxu0 %v20149_v16 }
 0x251   :  { %18024 = vmatmul.mubr.f32.gmra.mxu1 %v1342_v10  ;;  %18003 = vmatpush3.msra.mxu0 %v20149_v16 }
 0x252   :  { %18006 = vmatprep.mubr.f32.mxu0 %v20177_v46  ;;  %18004 = vmatprep.subr.mxu0 %v20159_v20 }
 0x253   :  { %18005 = vmatpush3.msra.mxu0 %v20159_v20 }
 0x254   :  { %18007 = vmatmul.mubr.f32.vlgmr.msra.gmra.mxu0 %v20194_v2 }
 0x255   :  { %18009 = vmatprep.mubr.f32.mxu0 %v20186_v48 }
 0x258   :  { %18010 = vmatmul.mubr.f32.gmra.mxu0 %v1342_v10 }
 0x2f8   :  { %v17966_v1 = vpop.f32.mrf.mxu1 }
 0x2fa   :  { %v1439_v3 = vpop.f32.mrf.mxu1 }
 0x2fc   :  { %v17969_v4 = vpop.f32.mrf.mxu1 }
 0x2fe   :  { %v20239_v6 = vpop.f32.mrf.mxu1 }
 0x300   :  { %v17952_v7 = vpop.f32.mrf.mxu0  ;;  %v17994_v8 = vpop.f32.mrf.mxu1 }
 0x301   :  { %v1329_v27 = vadd.f32 %v17952_v7, %v20244_v12 }
 0x302   :  { %v1318_v11 = vpop.f32.mrf.mxu0  ;;  %v1635_v16 = vpop.f32.mrf.mxu1 }
 0x303   :  { %v1319_v29 = vadd.f32 %v20244_v12, %v1318_v11  ;;  %v1446_v31 = vadd.f32 %v17966_v1, %v1329_v27 }
 0x305   :  { %v17955_v13 = vpop.f32.mrf.mxu0  ;;  %v1440_v35 = vadd.f32 %v1439_v3, %v1319_v29 }
 0x306   :  { %v1349_v17 = vadd.f32 %v17955_v13, %v20244_v12  ;;  %v17997_v28 = vpop.f32.mrf.mxu1 }
 0x307   :  { %v20247_v20 = vpop.f32.mrf.mxu0 }
 0x308   :  { %v1458_v26 = vadd.f32 %v17969_v4, %v1349_v17  ;;  %v20251_v33 = vpop.f32.mrf.mxu1 }
 0x30b   :  { %v17980_v30 = vpop.f32.mrf.mxu0 }
 0x30c   :  { %v1545_v34 = vadd.f32 %v17980_v30, %v1446_v31  ;;  %v18022_v39 = vpop.f32.mrf.mxu1 }
 0x30d   :  { %v1537_v32 = vpop.f32.mrf.mxu0 }
 0x30e   :  { %v1538_v37 = vadd.f32 %v1537_v32, %v1440_v35  ;;  %v1644_v41 = vadd.f32 %v17994_v8, %v1545_v34  ;;  %v1835_v49 = vpop.f32.mrf.mxu1 }
 0x310   :  { %v17983_v36 = vpop.f32.mrf.mxu0  ;;  %v1636_v46 = vadd.f32 %v1635_v16, %v1538_v37  ;;  %v1197_v16 = vlaneseq }
 0x311   :  { %v1559_v38 = vadd.f32 %v17983_v36, %v1458_v26  ;;  %v18025_v55 = vpop.f32.mrf.mxu1 }
 0x312   :  { %v20253_v40 = vpop.f32.mrf.mxu0  ;;  %v1201_v27 = vand.u32 127, %v1197_v16  ;;  %v1198_v36 = vshrl.u32 %v1197_v16, 7 }
 0x313   :  { %v1660_v43 = vadd.f32 %v17997_v28, %v1559_v38  ;;  %v20271_v17 = vpop.f32.mrf.mxu1 }
 0x314   :  { %v18008_v44 = vpop.f32.mrf.mxu0  ;;  %v16789_v30 = vadd.s32 4294967288, %v1201_v27  ;;  %vm1212_vm5 = vcmp.lt.s32.totalorder %v1201_v27, 8 }
 0x315   :  { %v1749_v45 = vadd.f32 %v18008_v44, %v1644_v41 }
 0x316   :  { %v1742_v50 = vpop.f32.mrf.mxu0  ;;  %v1215_v38 = vmul.u32 2, %v16789_v30 }
 0x317   :  { %v20255_v51 = vadd.f32 %v18022_v39, %v1749_v45  ;;  %v1743_v52 = vadd.f32 %v1742_v50, %v1636_v46  ;;  %v1204_v45 = vmul.u32 2, %v1198_v36  ;;  %v1213_v50 = vmul.u32 2, %v1201_v27 }
 0x318   :  { %v18011_v53 = vpop.f32.mrf.mxu0 }
 0x319   :  { %v20257_v48 = vadd.f32 %v1835_v49, %v1743_v52  ;;  %v1761_v54 = vadd.f32 %v18011_v53, %v1660_v43  ;;  %1861 = vrot.lane.b32.xlu0 %v20255_v51, %s19849_s28  ;;  %v1866_v5 = vsel %vm1863_vm4, %v20255_v51, 0  ;;  %v1216_v52 = vadd.s32 1, %v1215_v38 }
 0x31a   :  { %v1949_v9 = vand.u32 4294901760, %v1866_v5  ;;  %v20273_v26 = vpop.f32.mrf.mxu0 }
 0x31b   :  { %v20261_v56 = vadd.f32 %v18025_v55, %v1761_v54  ;;  %1859 = vrot.lane.b32.xlu1 %v20257_v48, %s19849_s28  ;;  %v1864_v57 = vsel %vm1863_vm4, %v20257_v48, 0  ;;  %v1209_v55 = vadd.s32 1, %v1204_v45 }
 0x31c   :  { %v1939_v61 = vand.u32 4294901760, %v1864_v57  ;;  %v1950_v58 = vsub.f32 %v1866_v5, %v1949_v9 }
 0x31e   :  { %18037 = vmatprep.mubr.f32.mxu1 %v1939_v61  ;;  %v1940_v62 = vsub.f32 %v1864_v57, %v1939_v61  ;;  %v1951_v19 = vand.u32 4294901760, %v1950_v58 }
 0x320   :  { %v1941_v63 = vand.u32 4294901760, %v1940_v62  ;;  %v1952_v25 = vsub.f32 %v1950_v58, %v1951_v19 }
 0x322   :  { %v1942_v0 = vsub.f32 %v1940_v62, %v1941_v63  ;;  %v1953_v7 = vand.u32 4294901760, %v1952_v25 }
 0x324   :  { %v1943_v2 = vand.u32 4294901760, %v1942_v0 }
 0x326   :  { %18030 = vmatprep.mubr.f32.mxu0 %v1943_v2 }
 0x38b   :  { %v1862_v10 = vpop.permute.xlu0 %1861 }
 0x38c   :  { %v1870_v14 = vsel %vm1863_vm4, %v1862_v10, 0 }
 0x38d   :  { %v1901_v15 = vand.u32 4294901760, %v1870_v14  ;;  %v1860_v18 = vpop.permute.xlu1 %1859 }
 0x38e   :  { %v1868_v21 = vsel %vm1863_vm4, %v1860_v18, 0 }
 0x38f   :  { %v1989_v22 = vsub.f32 %v1870_v14, %v1901_v15  ;;  %v1904_v23 = vand.u32 4294901760, %v1868_v21  ;;  %18026 = vmatprep.subr.mxu0 %v1901_v15  ;;  %v23225_v14 = vmov 0 }
 0x390   :  { %18027 = vmatpush3.xpose.msra.mxu0 %v1901_v15 }
 0x391   :  { %v1996_v24 = vsub.f32 %v1868_v21, %v1904_v23  ;;  %18028 = vmatprep.subr.mxu0 %v1904_v23  ;;  %v1990_v1 = vand.u32 4294901760, %v1989_v22 }
 0x393   :  { %v1991_v3 = vsub.f32 %v1989_v22, %v1990_v1  ;;  %v1997_v4 = vand.u32 4294901760, %v1996_v24 }
 0x394   :  { %18029 = vmatpush3.xpose.msra.mxu0 %v1904_v23 }
 0x395   :  { %18040 = vmatprep.subr.mxu0 %v1989_v22  ;;  %v1992_v8 = vand.u32 4294901760, %v1991_v3  ;;  %v1998_v11 = vsub.f32 %v1996_v24, %v1997_v4 }
 0x397   :  { %18031 = vmatmul.mubr.f32.vlgmr.msra.gmra.mxu0 %v1953_v7  ;;  %18033 = vmatprep.subr.mxu1 %v1992_v8  ;;  %v1999_v13 = vand.u32 4294901760, %v1998_v11 }
 0x398   :  { %18034 = vmatpush3.xpose.msra.mxu1 %v1992_v8  ;;  %18041 = vmatpush3.xpose.msra.mxu0 %v1989_v22 }
 0x399   :  { %18044 = vmatprep.mubr.f32.mxu0 %v1940_v62  ;;  %18035 = vmatprep.subr.mxu1 %v1999_v13 }
 0x39a   :  { %18042 = vmatprep.subr.mxu0 %v1996_v24 }
 0x39c   :  { %18036 = vmatpush3.xpose.msra.mxu1 %v1999_v13  ;;  %18043 = vmatpush3.xpose.msra.mxu0 %v1996_v24 }
 0x39d   :  { %18047 = vmatprep.subr.mxu1 %v1901_v15  ;;  %18054 = vmatprep.subr.mxu0 %v1990_v1 }
 0x39f   :  { %18038 = vmatmul.mubr.f32.vlgmr.msra.gmra.mxu1 %v1949_v9  ;;  %18045 = vmatmul.mubr.f32.vlgmr.msra.gmra.mxu0 %v1950_v58 }
 0x3a0   :  { %18048 = vmatpush3.xpose.msra.mxu1 %v1901_v15  ;;  %18051 = vmatprep.mubr.f32.mxu1 %v1941_v63 }
 0x3a1   :  { %18055 = vmatpush3.xpose.msra.mxu0 %v1990_v1  ;;  %18058 = vmatprep.mubr.f32.mxu0 %v1939_v61 }
 0x3a2   :  { %18049 = vmatprep.subr.mxu1 %v1904_v23  ;;  %18056 = vmatprep.subr.mxu0 %v1997_v4 }
 0x3a4   :  { %18050 = vmatpush3.xpose.msra.mxu1 %v1904_v23 }
 0x3a5   :  { %18057 = vmatpush3.xpose.msra.mxu0 %v1997_v4  ;;  %18061 = vmatprep.subr.mxu1 %v1901_v15 }
 0x3a7   :  { %18052 = vmatmul.mubr.f32.vlgmr.msra.gmra.mxu1 %v1951_v19 }
 0x3a8   :  { %18059 = vmatmul.mubr.f32.vlgmr.msra.gmra.mxu0 %v1949_v9  ;;  %18062 = vmatpush3.xpose.msra.mxu1 %v1901_v15 }
 0x3a9   :  { %18065 = vmatprep.mubr.f32.mxu1 %v1939_v61  ;;  %18063 = vmatprep.subr.mxu1 %v1904_v23  ;;  %v1217_v61 = vsel %vm1212_vm5, %v1213_v50, %v1216_v52 }
 0x3aa   :  { %vm20275_vm6 = vcmp.ge.s32.totalorder %v1209_v55, %v1217_v61  ;;  %vm20279_vm7 = vcmp.ge.s32.totalorder %v1204_v45, %v1217_v61 }
 0x3ab   :  { %v23226_v14 = vsel %vm20279_vm7, 4294967295, %v23225_v14 }
 0x3ac   :  { %18064 = vmatpush3.xpose.msra.mxu1 %v1904_v23  ;;  %23227 = vst [vmem:[#allocation4_spill] sm:$0xff] %v23226_v14 }
 0x3af   :  { %18066 = vmatmul.mubr.f32.vlgmr.msra.gmra.mxu1 %v1949_v9  ;;  %v23222_v9 = vmov 0 }
 0x3b0   :  { %v23223_v9 = vsel %vm20275_vm6, 4294967295, %v23222_v9 }
 0x3b1   :  { %23224 = vst [vmem:[#allocation3_spill] sm:$0xff] %v23223_v9 }
 0x457   :  { %v18032_v28 = vpop.f32.mrf.mxu0 }
 0x459   :  { %v1945_v31 = vpop.f32.mrf.mxu0 }
 0x45f   :  { %v18039_v29 = vpop.f32.mrf.mxu1  ;;  %v18046_v35 = vpop.f32.mrf.mxu0 }
 0x460   :  { %v2043_v34 = vadd.f32 %v18039_v29, %v18032_v28 }
 0x461   :  { %v2036_v32 = vpop.f32.mrf.mxu1  ;;  %v2118_v43 = vpop.f32.mrf.mxu0 }
 0x462   :  { %v2037_v37 = vadd.f32 %v2036_v32, %v1945_v31  ;;  %v2126_v41 = vadd.f32 %v18046_v35, %v2043_v34 }
 0x464   :  { %v2119_v46 = vadd.f32 %v2118_v43, %v2037_v37 }
 0x467   :  { %v18053_v39 = vpop.f32.mrf.mxu1 }
 0x468   :  { %v2209_v49 = vadd.f32 %v18053_v39, %v2126_v41  ;;  %v18060_v53 = vpop.f32.mrf.mxu0 }
 0x469   :  { %v2200_v44 = vpop.f32.mrf.mxu1 }
 0x46a   :  { %v2201_v54 = vadd.f32 %v2200_v44, %v2119_v46  ;;  %v2292_v57 = vadd.f32 %v18060_v53, %v2209_v49  ;;  %v2285_v62 = vpop.f32.mrf.mxu0 }
 0x46c   :  { %v2286_v0 = vadd.f32 %v2285_v62, %v2201_v54 }
 0x46f   :  { %v18067_v63 = vpop.f32.mrf.mxu1 }
 0x470   :  { %v2371_v2 = vadd.f32 %v18067_v63, %v2292_v57 }
 0x471   :  { %v2364_v5 = vpop.f32.mrf.mxu1 }
 0x472   :  { %v2375_v58 = vmul.f32 0.25, %v2371_v2  ;;  %v2365_v10 = vadd.f32 %v2364_v5, %v2286_v0 }
 0x474   :  { %v2374_v15 = vmul.f32 0.25, %v2365_v10  ;;  %v2377_v18 = vsel %vm20275_vm6, %v2375_v58, -inf }
 0x475   :  { %v2381_v19 = vsel %vm1863_vm4, %v2377_v18, -inf }
 0x476   :  { %2382 = vmax.xlane.f32.xlu0 %v2381_v19  ;;  %v2376_v21 = vsel %vm20279_vm7, %v2374_v15, -inf }
 0x477   :  { %v2378_v22 = vsel %vm1863_vm4, %v2376_v21, -inf }
 0x478   :  { %2379 = vmax.xlane.f32.xlu1 %v2378_v22 }
 0x4ff   :  { %v2383_v23 = vpop.xlane.xlu0 %2382 }
 0x500   :  { %v2385_v24 = vsub.f32 %v2377_v18, %v2383_v23 }
 0x501   :  { %v2380_v25 = vpop.xlane.xlu1 %2379 }
 0x502   :  { %v2388_v1 = vmul.f32 1.442695, %v2385_v24  ;;  %v2384_v3 = vsub.f32 %v2376_v21, %v2380_v25 }
 0x504   :  { %19721 = vpow2.f32 %v2388_v1  ;;  %v2386_v4 = vmul.f32 1.442695, %v2384_v3 }
 0x506   :  { %19723 = vpow2.f32 %v2386_v4 }
 0x511   :  { %v19722_v7 = vpop.eup %19721 }
 0x512   :  { %v2393_v8 = vsel %vm1863_vm4, %v19722_v7, 0.0 }
 0x513   :  { %v19724_v11 = vpop.eup %19723  ;;  %2394 = vadd.xlane.f32.xlu1 %v2393_v8 }
 0x514   :  { %v2390_v13 = vsel %vm1863_vm4, %v19724_v11, 0.0 }
 0x515   :  { %2391 = vadd.xlane.f32.xlu0 %v2390_v13 }
 0x524   :  { %2400 = vrot.lane.b32.xlu1 %v20257_v48, %s19850_s7 }
 0x528   :  { %2922 = vrot.lane.b32.xlu1 %v20255_v51, %s19851_s4 }
 0x52b   :  { %2402 = vrot.lane.b32.xlu0 %v20255_v51, %s19850_s7 }
 0x52c   :  { %2920 = vrot.lane.b32.xlu1 %v20257_v48, %s19851_s4 }
 0x52f   :  { %2916 = vrot.lane.b32.xlu0 %v20257_v48, %s19852_s29 }
 0x530   :  { %2918 = vrot.lane.b32.xlu1 %v20255_v51, %s19852_s29 }
 0x59c   :  { %v2395_v16 = vpop.xlane.xlu1 %2394 }
 0x59d   :  { %19725 = vrcp.f32 %v2395_v16 }
 0x59e   :  { %v2392_v27 = vpop.xlane.xlu0 %2391 }
 0x59f   :  { %19727 = vrcp.f32 %v2392_v27 }
 0x5a0   :  { %v2401_v28 = vpop.permute.xlu1 %2400 }
 0x5a1   :  { %v20303_v29 = vand.u32 4294901760, %v2401_v28 }
 0x5a2   :  { %v2403_v30 = vpop.permute.xlu0 %2402 }
 0x5a3   :  { %v20306_v31 = vsub.f32 %v2401_v28, %v20303_v29  ;;  %v2441_v32 = vand.u32 4294901760, %v2403_v30 }
 0x5a4   :  { %v2923_v34 = vpop.permute.xlu1 %2922 }
 0x5a5   :  { %v20308_v35 = vsub.f32 %v2403_v30, %v2441_v32  ;;  %18068 = vmatprep.subr.mxu0 %v2441_v32  ;;  %v20311_v36 = vand.u32 4294901760, %v20306_v31  ;;  %v2930_v37 = vsel %vm1863_vm4, %v2923_v34, 0 }
 0x5a6   :  { %18069 = vmatpush3.msra.mxu0 %v2441_v32  ;;  %v20319_v41 = vand.u32 4294901760, %v2930_v37  ;;  %v2917_v63 = vpop.permute.xlu0 %2916 }
 0x5a7   :  { %18070 = vmatprep.subr.mxu0 %v20303_v29  ;;  %v20316_v38 = vand.u32 4294901760, %v20308_v35  ;;  %v2538_v45 = vsub.f32 %v20306_v31, %v20311_v36  ;;  %v2924_v15 = vsel %vm1863_vm4, %v2917_v63, 0 }
 0x5a8   :  { %18071 = vmatpush3.msra.mxu0 %v20303_v29  ;;  %v2921_v39 = vpop.permute.xlu1 %2920  ;;  %v20330_v54 = vsub.f32 %v2930_v37, %v20319_v41  ;;  %v20348_v23 = vand.u32 4294901760, %v2924_v15 }
 0x5a9   :  { %v2928_v43 = vsel %vm1863_vm4, %v2921_v39, 0  ;;  %18082 = vmatprep.subr.mxu0 %v20308_v35  ;;  %v2531_v44 = vsub.f32 %v20308_v35, %v20316_v38  ;;  %v2539_v55 = vand.u32 4294901760, %v2538_v45 }
 0x5aa   :  { %v19726_v46 = vpop.eup %19725  ;;  %v20327_v53 = vand.u32 4294901760, %v2928_v43  ;;  %v20341_v10 = vand.u32 4294901760, %v20330_v54 }
 0x5ab   :  { %v2532_v49 = vand.u32 4294901760, %v2531_v44  ;;  %v2399_v50 = vmul.f32 %v19726_v46, %v19722_v7 }
 0x5ac   :  { %v19728_v52 = vpop.eup %19727  ;;  %v20337_v2 = vsub.f32 %v2928_v43, %v20327_v53  ;;  %v2919_v24 = vpop.permute.xlu1 %2918  ;;  %v3051_v25 = vsub.f32 %v20330_v54, %v20341_v10 }
 0x5ad   :  { %18075 = vmatprep.subr.mxu1 %v2532_v49  ;;  %v2398_v57 = vmul.f32 %v19728_v52, %v19724_v11  ;;  %v2410_v61 = vsel %vm1863_vm4, %v2399_v50, 0  ;;  %v2926_v4 = vsel %vm1863_vm4, %v2919_v24, 0  ;;  %v3000_v11 = vsub.f32 %v2924_v15, %v20348_v23 }
 0x5ae   :  { %18076 = vmatpush3.msra.mxu1 %v2532_v49  ;;  %v20333_v62 = vand.u32 4294901760, %v2410_v61  ;;  %v20346_v22 = vand.u32 4294901760, %v20337_v2  ;;  %v3052_v13 = vand.u32 4294901760, %v3051_v25  ;;  %v3009_v27 = vand.u32 4294901760, %v2926_v4 }
 0x5af   :  { %18077 = vmatprep.subr.mxu1 %v2539_v55  ;;  %v2407_v0 = vsel %vm1863_vm4, %v2398_v57, 0  ;;  %v3001_v30 = vand.u32 4294901760, %v3000_v11 }
 0x5b0   :  { %18078 = vmatpush3.msra.mxu1 %v2539_v55  ;;  %v2479_v5 = vand.u32 4294901760, %v2407_v0  ;;  %v2490_v58 = vsub.f32 %v2410_v61, %v20333_v62  ;;  %v3058_v8 = vsub.f32 %v20337_v2, %v20346_v22 }
 0x5b1   :  { %18089 = vmatprep.subr.mxu1 %v2441_v32 }
 0x5b2   :  { %18079 = vmatprep.mubr.f32.mxu1 %v2479_v5  ;;  %v2480_v18 = vsub.f32 %v2407_v0, %v2479_v5  ;;  %v2491_v19 = vand.u32 4294901760, %v2490_v58  ;;  %v3059_v28 = vand.u32 4294901760, %v3058_v8 }
 0x5b3   :  { %18080 = vmatmul.mubr.f32.vlgmr.msra.gmra.mxu1 %v20333_v62 }
 0x5b4   :  { %18090 = vmatpush3.msra.mxu1 %v2441_v32  ;;  %v2481_v21 = vand.u32 4294901760, %v2480_v18  ;;  %v2492_v1 = vsub.f32 %v2490_v58, %v2491_v19 }
 0x5b5   :  { %18091 = vmatprep.subr.mxu1 %v20303_v29 }
 0x5b6   :  { %18092 = vmatpush3.msra.mxu1 %v20303_v29  ;;  %18093 = vmatprep.mubr.f32.mxu1 %v2481_v21  ;;  %v2482_v3 = vsub.f32 %v2480_v18, %v2481_v21  ;;  %v2493_v16 = vand.u32 4294901760, %v2492_v1 }
 0x5b7   :  { %18103 = vmatprep.subr.mxu1 %v2441_v32  ;;  %18094 = vmatmul.mubr.f32.vlgmr.msra.gmra.mxu1 %v2491_v19 }
 0x5b8   :  { %18104 = vmatpush3.msra.mxu1 %v2441_v32  ;;  %18107 = vmatprep.mubr.f32.mxu1 %v2479_v5  ;;  %v2483_v7 = vand.u32 4294901760, %v2482_v3  ;;  %v3010_v32 = vsub.f32 %v2926_v4, %v3009_v27 }
 0x5b9   :  { %18105 = vmatprep.subr.mxu1 %v20303_v29 }
 0x5ba   :  { %18106 = vmatpush3.msra.mxu1 %v20303_v29  ;;  %18072 = vmatprep.mubr.f32.mxu0 %v2483_v7  ;;  %v3002_v29 = vsub.f32 %v3000_v11, %v3001_v30  ;;  %v3011_v34 = vand.u32 4294901760, %v3010_v32 }
 0x5bb   :  { %18117 = vmatprep.subr.mxu1 %v3052_v13  ;;  %18073 = vmatmul.mubr.f32.vlgmr.msra.gmra.mxu0 %v2493_v16 }
 0x5bc   :  { %18083 = vmatpush3.msra.mxu0 %v20308_v35  ;;  %18108 = vmatmul.mubr.f32.vlgmr.msra.gmra.mxu1 %v20333_v62  ;;  %v3012_v35 = vsub.f32 %v3010_v32, %v3011_v34 }
 0x5bd   :  { %18118 = vmatpush3.xpose.msra.mxu1 %v3052_v13  ;;  %18084 = vmatprep.subr.mxu0 %v20306_v31 }
 0x5be   :  { %18086 = vmatprep.mubr.f32.mxu0 %v2480_v18  ;;  %18119 = vmatprep.subr.mxu1 %v3059_v28 }
 0x5bf   :  { %18121 = vmatprep.mubr.f32.mxu1 %v20348_v23  ;;  %18085 = vmatpush3.msra.mxu0 %v20306_v31  ;;  %v3003_v31 = vand.u32 4294901760, %v3002_v29 }
 0x5c0   :  { %18096 = vmatprep.subr.mxu0 %v20316_v38  ;;  %18087 = vmatmul.mubr.f32.vlgmr.msra.gmra.mxu0 %v2490_v58 }
 0x5c1   :  { %18097 = vmatpush3.msra.mxu0 %v20316_v38  ;;  %18120 = vmatpush3.xpose.msra.mxu1 %v3059_v28 }
 0x5c2   :  { %18098 = vmatprep.subr.mxu0 %v20311_v36  ;;  %18100 = vmatprep.mubr.f32.mxu0 %v2479_v5 }
 0x5c3   :  { %18131 = vmatprep.subr.mxu1 %v20319_v41  ;;  %18099 = vmatpush3.msra.mxu0 %v20311_v36  ;;  %v3013_v36 = vand.u32 4294901760, %v3012_v35 }
 0x5c4   :  { %18110 = vmatprep.subr.mxu0 %v20319_v41  ;;  %18122 = vmatmul.mubr.f32.vlgmr.msra.gmra.mxu1 %v3009_v27 }
 0x5c5   :  { %18101 = vmatmul.mubr.f32.vlgmr.msra.gmra.mxu0 %v20333_v62  ;;  %18132 = vmatpush3.xpose.msra.mxu1 %v20319_v41 }
 0x5c6   :  { %18111 = vmatpush3.xpose.msra.mxu0 %v20319_v41  ;;  %18135 = vmatprep.mubr.f32.mxu1 %v3001_v30 }
 0x5c7   :  { %18112 = vmatprep.subr.mxu0 %v20327_v53  ;;  %18114 = vmatprep.mubr.f32.mxu0 %v3003_v31 }
 0x5c8   :  { %18133 = vmatprep.subr.mxu1 %v20327_v53 }
 0x5c9   :  { %18134 = vmatpush3.xpose.msra.mxu1 %v20327_v53 }
 0x5ca   :  { %18113 = vmatpush3.xpose.msra.mxu0 %v20327_v53  ;;  %18145 = vmatprep.subr.mxu1 %v20319_v41 }
 0x5cb   :  { %18124 = vmatprep.subr.mxu0 %v20330_v54 }
 0x5cc   :  { %18136 = vmatmul.mubr.f32.vlgmr.msra.gmra.mxu1 %v3011_v34 }
 0x5cd   :  { %18115 = vmatmul.mubr.f32.vlgmr.msra.gmra.mxu0 %v3013_v36  ;;  %18146 = vmatpush3.xpose.msra.mxu1 %v20319_v41 }
 0x5ce   :  { %18125 = vmatpush3.xpose.msra.mxu0 %v20330_v54  ;;  %18128 = vmatprep.mubr.f32.mxu0 %v3000_v11 }
 0x5cf   :  { %18149 = vmatprep.mubr.f32.mxu1 %v20348_v23  ;;  %18126 = vmatprep.subr.mxu0 %v20337_v2 }
 0x5d0   :  { %18147 = vmatprep.subr.mxu1 %v20327_v53 }
 0x5d1   :  { %18148 = vmatpush3.xpose.msra.mxu1 %v20327_v53 }
 0x5d2   :  { %18127 = vmatpush3.xpose.msra.mxu0 %v20337_v2 }
 0x5d3   :  { %18138 = vmatprep.subr.mxu0 %v20341_v10 }
 0x5d4   :  { %18150 = vmatmul.mubr.f32.vlgmr.msra.gmra.mxu1 %v3009_v27 }
 0x5d5   :  { %18129 = vmatmul.mubr.f32.vlgmr.msra.gmra.mxu0 %v3010_v32 }
 0x5d6   :  { %18139 = vmatpush3.xpose.msra.mxu0 %v20341_v10  ;;  %18142 = vmatprep.mubr.f32.mxu0 %v20348_v23 }
 0x5d7   :  { %18140 = vmatprep.subr.mxu0 %v20346_v22 }
 0x5da   :  { %18141 = vmatpush3.xpose.msra.mxu0 %v20346_v22 }
 0x5dd   :  { %18143 = vmatmul.mubr.f32.vlgmr.msra.gmra.mxu0 %v3009_v27 }
 0x673   :  { %v18081_v37 = vpop.f32.mrf.mxu1 }
 0x675   :  { %v2576_v38 = vpop.f32.mrf.mxu1 }
 0x677   :  { %v18095_v41 = vpop.f32.mrf.mxu1 }
 0x679   :  { %v2740_v46 = vpop.f32.mrf.mxu1 }
 0x67b   :  { %v18074_v39 = vpop.f32.mrf.mxu0 }
 0x67c   :  { %v2583_v44 = vadd.f32 %v18081_v37, %v18074_v39  ;;  %v18109_v55 = vpop.f32.mrf.mxu1  ;;  %v1339_v39 = vadd.f32 %v20244_v12, %v20247_v20 }
 0x67d   :  { %v2485_v43 = vpop.f32.mrf.mxu0 }
 0x67e   :  { %v2577_v49 = vadd.f32 %v2576_v38, %v2485_v43  ;;  %v2904_v5 = vpop.f32.mrf.mxu1 }
 0x680   :  { %v18088_v45 = vpop.f32.mrf.mxu0 }
 0x681   :  { %v2666_v50 = vadd.f32 %v18088_v45, %v2583_v44 }
 0x682   :  { %v2658_v52 = vpop.f32.mrf.mxu0 }
 0x683   :  { %v2659_v53 = vadd.f32 %v2658_v52, %v2577_v49  ;;  %v2749_v54 = vadd.f32 %v18095_v41, %v2666_v50  ;;  %v1452_v41 = vadd.f32 %v20239_v6, %v1339_v39 }
 0x684   :  { %v18123_v15 = vpop.f32.mrf.mxu1 }
 0x685   :  { %v18102_v57 = vpop.f32.mrf.mxu0  ;;  %v2741_v61 = vadd.f32 %v2740_v46, %v2659_v53  ;;  %v1552_v43 = vadd.f32 %v20253_v40, %v1452_v41 }
 0x686   :  { %v2832_v62 = vadd.f32 %v18102_v57, %v2749_v54  ;;  %v3096_v19 = vpop.f32.mrf.mxu1 }
 0x687   :  { %v2825_v63 = vpop.f32.mrf.mxu0  ;;  %v1652_v44 = vadd.f32 %v20251_v33, %v1552_v43  ;;  %v3993_v43 = vsel %vm1863_vm4, %v20261_v56, 0 }
 0x688   :  { %v2911_v0 = vadd.f32 %v18109_v55, %v2832_v62  ;;  %v2826_v2 = vadd.f32 %v2825_v63, %v2741_v61 }
 0x689   :  { %v1755_v45 = vadd.f32 %v20273_v26, %v1652_v44 }
 0x68a   :  { %2915 = vst.msk [vmem:[#allocation2 + $0x8] sm:$0xff] %vm1863_vm4, %v2911_v0  ;;  %v2905_v58 = vadd.f32 %v2904_v5, %v2826_v2 }
 0x68b   :  { %v20411_v46 = vadd.f32 %v20271_v17, %v1755_v45 }
 0x68c   :  { %2914 = vst.msk [vmem:[#allocation2] sm:$0xff] %vm1863_vm4, %v2905_v58  ;;  %v18137_v23 = vpop.f32.mrf.mxu1 }
 0x68d   :  { %v18116_v10 = vpop.f32.mrf.mxu0 }
 0x68e   :  { %v3103_v22 = vadd.f32 %v18123_v15, %v18116_v10  ;;  %v3260_v4 = vpop.f32.mrf.mxu1 }
 0x68f   :  { %v3005_v18 = vpop.f32.mrf.mxu0 }
 0x690   :  { %v3097_v25 = vadd.f32 %v3096_v19, %v3005_v18 }
 0x694   :  { %v18151_v8 = vpop.f32.mrf.mxu1 }
 0x695   :  { %v18130_v21 = vpop.f32.mrf.mxu0 }
 0x696   :  { %v3186_v1 = vadd.f32 %v18130_v21, %v3103_v22  ;;  %v3424_v32 = vpop.f32.mrf.mxu1 }
 0x697   :  { %v3178_v24 = vpop.f32.mrf.mxu0 }
 0x698   :  { %v3179_v3 = vadd.f32 %v3178_v24, %v3097_v25  ;;  %v3269_v7 = vadd.f32 %v18137_v23, %v3186_v1 }
 0x69a   :  { %v3261_v16 = vadd.f32 %v3260_v4, %v3179_v3 }
 0x69d   :  { %v18144_v11 = vpop.f32.mrf.mxu0 }
 0x69e   :  { %v3352_v13 = vadd.f32 %v18144_v11, %v3269_v7 }
 0x69f   :  { %v3345_v27 = vpop.f32.mrf.mxu0 }
 0x6a0   :  { %v3431_v28 = vadd.f32 %v18151_v8, %v3352_v13  ;;  %v3346_v30 = vadd.f32 %v3345_v27, %v3261_v16 }
 0x6a2   :  { %v3435_v29 = vmul.f32 0.25, %v3431_v28  ;;  %v3425_v34 = vadd.f32 %v3424_v32, %v3346_v30 }
 0x6a4   :  { %v3437_v31 = vsel %vm20275_vm6, %v3435_v29, -inf  ;;  %v3434_v35 = vmul.f32 0.25, %v3425_v34  ;;  %v3991_v29 = vsel %vm1863_vm4, %v20411_v46, 0 }
 0x6a5   :  { %v3441_v36 = vsel %vm1863_vm4, %v3437_v31, -inf }
 0x6a6   :  { %3442 = vmax.xlane.f32.xlu1 %v3441_v36  ;;  %v3436_v37 = vsel %vm20279_vm7, %v3434_v35, -inf }
 0x6a7   :  { %v3438_v38 = vsel %vm1863_vm4, %v3436_v37, -inf }
 0x6a8   :  { %3439 = vmax.xlane.f32.xlu0 %v3438_v38 }
 0x6b7   :  { %3460 = vrot.lane.b32.xlu1 %v20257_v48, %s19853_s3 }
 0x6bb   :  { %3989 = vrot.lane.b32.xlu1 %v20261_v56, %s19849_s28 }
 0x6bf   :  { %3987 = vrot.lane.b32.xlu1 %v20411_v46, %s19849_s28 }
 0x72f   :  { %v3443_v6 = vpop.xlane.xlu1 %3442 }
 0x730   :  { %v3445_v12 = vsub.f32 %v3437_v31, %v3443_v6 }
 0x731   :  { %v3440_v20 = vpop.xlane.xlu0 %3439 }
 0x732   :  { %v3448_v40 = vmul.f32 1.442695, %v3445_v12  ;;  %v3444_v33 = vsub.f32 %v3436_v37, %v3440_v20  ;;  %v20468_v37 = vand.u32 4294901760, %v3991_v29  ;;  %v4076_v12 = vand.u32 4294901760, %v3993_v43 }
 0x733   :  { %v3461_v17 = vpop.permute.xlu1 %3460 }
 0x734   :  { %19729 = vpow2.f32 %v3448_v40  ;;  %v3446_v49 = vmul.f32 1.442695, %v3444_v33  ;;  %v20419_v54 = vand.u32 4294901760, %v3461_v17  ;;  %v4067_v6 = vsub.f32 %v3991_v29, %v20468_v37 }
 0x735   :  { %v4077_v33 = vsub.f32 %v3993_v43, %v4076_v12 }
 0x736   :  { %19731 = vpow2.f32 %v3446_v49  ;;  %v20422_v61 = vsub.f32 %v3461_v17, %v20419_v54  ;;  %v4068_v40 = vand.u32 4294901760, %v4067_v6 }
 0x737   :  { %v3990_v57 = vpop.permute.xlu1 %3989 }
 0x738   :  { %v3997_v0 = vsel %vm1863_vm4, %v3990_v57, 0  ;;  %v4069_v49 = vsub.f32 %v4067_v6, %v4068_v40 }
 0x739   :  { %v20434_v15 = vand.u32 4294901760, %v3997_v0 }
 0x73b   :  { %v3988_v5 = vpop.permute.xlu1 %3987  ;;  %v20449_v4 = vsub.f32 %v3997_v0, %v20434_v15 }
 0x73c   :  { %v3995_v18 = vsel %vm1863_vm4, %v3988_v5, 0 }
 0x73d   :  { %v20444_v1 = vand.u32 4294901760, %v3995_v18  ;;  %v20457_v30 = vand.u32 4294901760, %v20449_v4 }
 0x73f   :  { %v20454_v16 = vsub.f32 %v3995_v18, %v20444_v1  ;;  %v4118_v35 = vsub.f32 %v20449_v4, %v20457_v30 }
 0x741   :  { %v19730_v48 = vpop.eup %19729  ;;  %v20463_v31 = vand.u32 4294901760, %v20454_v16  ;;  %v4119_v44 = vand.u32 4294901760, %v4118_v35 }
 0x742   :  { %v3453_v26 = vsel %vm1863_vm4, %v19730_v48, 0.0 }
 0x743   :  { %v19732_v50 = vpop.eup %19731  ;;  %3454 = vadd.xlane.f32.xlu0 %v3453_v26  ;;  %v4125_v41 = vsub.f32 %v20454_v16, %v20463_v31  ;;  %v4070_v26 = vand.u32 4294901760, %v4069_v49 }
 0x744   :  { %v3450_v52 = vsel %vm1863_vm4, %v19732_v50, 0.0 }
 0x745   :  { %v4126_v20 = vand.u32 4294901760, %v4125_v41 }
 0x747   :  { %3451 = vadd.xlane.f32.xlu0 %v3450_v52 }
 0x75d   :  { %3462 = vrot.lane.b32.xlu0 %v20255_v51, %s19853_s3  ;;  %v20428_v51 = vand.u32 4294901760, %v20422_v61 }
 0x75f   :  { %v3598_v21 = vsub.f32 %v20422_v61, %v20428_v51 }
 0x761   :  { %v3599_v7 = vand.u32 4294901760, %v3598_v21 }
 0x7cc   :  { %v3455_v53 = vpop.xlane.xlu0 %3454 }
 0x7cd   :  { %19733 = vrcp.f32 %v3455_v53 }
 0x7d0   :  { %v3452_v55 = vpop.xlane.xlu0 %3451 }
 0x7d1   :  { %19735 = vrcp.f32 %v3452_v55 }
 0x7d4   :  { %v3463_v62 = vpop.permute.xlu0 %3462 }
 0x7d5   :  { %v3501_v63 = vand.u32 4294901760, %v3463_v62 }
 0x7d7   :  { %v20425_v2 = vsub.f32 %v3463_v62, %v3501_v63  ;;  %18152 = vmatprep.subr.mxu0 %v3501_v63 }
 0x7d8   :  { %18153 = vmatpush3.msra.mxu0 %v3501_v63 }
 0x7d9   :  { %18154 = vmatprep.subr.mxu0 %v20419_v54  ;;  %v20432_v58 = vand.u32 4294901760, %v20425_v2 }
 0x7da   :  { %v19734_v10 = vpop.eup %19733  ;;  %18155 = vmatpush3.msra.mxu0 %v20419_v54 }
 0x7db   :  { %18166 = vmatprep.subr.mxu0 %v20425_v2  ;;  %v3591_v19 = vsub.f32 %v20425_v2, %v20432_v58  ;;  %v3459_v22 = vmul.f32 %v19734_v10, %v19730_v48  ;;  %v4078_v48 = vand.u32 4294901760, %v4077_v33 }
 0x7dd   :  { %v3592_v23 = vand.u32 4294901760, %v3591_v19  ;;  %v3470_v24 = vsel %vm1863_vm4, %v3459_v22, 0 }
 0x7de   :  { %v19736_v25 = vpop.eup %19735  ;;  %v20446_v3 = vand.u32 4294901760, %v3470_v24 }
 0x7df   :  { %18159 = vmatprep.subr.mxu1 %v3592_v23  ;;  %v3458_v8 = vmul.f32 %v19736_v25, %v19732_v50  ;;  %v4079_v50 = vsub.f32 %v4077_v33, %v4078_v48 }
 0x7e0   :  { %18160 = vmatpush3.msra.mxu1 %v3592_v23  ;;  %v3550_v11 = vsub.f32 %v3470_v24, %v20446_v3 }
 0x7e1   :  { %18161 = vmatprep.subr.mxu1 %v3599_v7  ;;  %v3467_v13 = vsel %vm1863_vm4, %v3458_v8, 0  ;;  %v4080_v52 = vand.u32 4294901760, %v4079_v50 }
 0x7e2   :  { %18162 = vmatpush3.msra.mxu1 %v3599_v7  ;;  %v3539_v27 = vand.u32 4294901760, %v3467_v13  ;;  %v3551_v28 = vand.u32 4294901760, %v3550_v11 }
 0x7e3   :  { %18173 = vmatprep.subr.mxu1 %v3501_v63 }
 0x7e4   :  { %18163 = vmatprep.mubr.f32.mxu1 %v3539_v27  ;;  %v3540_v32 = vsub.f32 %v3467_v13, %v3539_v27  ;;  %v3552_v36 = vsub.f32 %v3550_v11, %v3551_v28 }
 0x7e5   :  { %18164 = vmatmul.mubr.f32.vlgmr.msra.gmra.mxu1 %v20446_v3 }
 0x7e6   :  { %18174 = vmatpush3.msra.mxu1 %v3501_v63  ;;  %v3541_v34 = vand.u32 4294901760, %v3540_v32  ;;  %v3553_v45 = vand.u32 4294901760, %v3552_v36 }
 0x7e7   :  { %18175 = vmatprep.subr.mxu1 %v20419_v54 }
 0x7e8   :  { %18176 = vmatpush3.msra.mxu1 %v20419_v54  ;;  %18177 = vmatprep.mubr.f32.mxu1 %v3541_v34  ;;  %v3542_v38 = vsub.f32 %v3540_v32, %v3541_v34 }
 0x7e9   :  { %18187 = vmatprep.subr.mxu1 %v3501_v63  ;;  %18178 = vmatmul.mubr.f32.vlgmr.msra.gmra.mxu1 %v3551_v28 }
 0x7ea   :  { %18188 = vmatpush3.msra.mxu1 %v3501_v63  ;;  %18191 = vmatprep.mubr.f32.mxu1 %v3539_v27  ;;  %v3543_v39 = vand.u32 4294901760, %v3542_v38 }
 0x7eb   :  { %18189 = vmatprep.subr.mxu1 %v20419_v54 }
 0x7ec   :  { %18190 = vmatpush3.msra.mxu1 %v20419_v54  ;;  %18156 = vmatprep.mubr.f32.mxu0 %v3543_v39 }
 0x7ed   :  { %18201 = vmatprep.subr.mxu1 %v4119_v44  ;;  %18157 = vmatmul.mubr.f32.vlgmr.msra.gmra.mxu0 %v3553_v45 }
 0x7ee   :  { %18167 = vmatpush3.msra.mxu0 %v20425_v2  ;;  %18192 = vmatmul.mubr.f32.vlgmr.msra.gmra.mxu1 %v20446_v3 }
 0x7ef   :  { %18202 = vmatpush3.xpose.msra.mxu1 %v4119_v44  ;;  %18168 = vmatprep.subr.mxu0 %v20422_v61 }
 0x7f0   :  { %18170 = vmatprep.mubr.f32.mxu0 %v3540_v32  ;;  %18203 = vmatprep.subr.mxu1 %v4126_v20 }
 0x7f1   :  { %18205 = vmatprep.mubr.f32.mxu1 %v20468_v37  ;;  %18169 = vmatpush3.msra.mxu0 %v20422_v61 }
 0x7f2   :  { %18180 = vmatprep.subr.mxu0 %v20432_v58  ;;  %18171 = vmatmul.mubr.f32.vlgmr.msra.gmra.mxu0 %v3550_v11 }
 0x7f3   :  { %18181 = vmatpush3.msra.mxu0 %v20432_v58  ;;  %18204 = vmatpush3.xpose.msra.mxu1 %v4126_v20 }
 0x7f4   :  { %18182 = vmatprep.subr.mxu0 %v20428_v51  ;;  %18184 = vmatprep.mubr.f32.mxu0 %v3539_v27 }
 0x7f5   :  { %18215 = vmatprep.subr.mxu1 %v20434_v15  ;;  %18183 = vmatpush3.msra.mxu0 %v20428_v51 }
 0x7f6   :  { %18194 = vmatprep.subr.mxu0 %v20434_v15  ;;  %18206 = vmatmul.mubr.f32.vlgmr.msra.gmra.mxu1 %v4076_v12 }
 0x7f7   :  { %18185 = vmatmul.mubr.f32.vlgmr.msra.gmra.mxu0 %v20446_v3  ;;  %18216 = vmatpush3.xpose.msra.mxu1 %v20434_v15 }
 0x7f8   :  { %18195 = vmatpush3.xpose.msra.mxu0 %v20434_v15  ;;  %18219 = vmatprep.mubr.f32.mxu1 %v4068_v40 }
 0x7f9   :  { %18196 = vmatprep.subr.mxu0 %v20444_v1  ;;  %18198 = vmatprep.mubr.f32.mxu0 %v4070_v26 }
 0x7fa   :  { %18217 = vmatprep.subr.mxu1 %v20444_v1 }
 0x7fb   :  { %18218 = vmatpush3.xpose.msra.mxu1 %v20444_v1 }
 0x7fc   :  { %18197 = vmatpush3.xpose.msra.mxu0 %v20444_v1  ;;  %18229 = vmatprep.subr.mxu1 %v20434_v15 }
 0x7fd   :  { %18208 = vmatprep.subr.mxu0 %v20449_v4 }
 0x7fe   :  { %18220 = vmatmul.mubr.f32.vlgmr.msra.gmra.mxu1 %v4078_v48 }
 0x7ff   :  { %18199 = vmatmul.mubr.f32.vlgmr.msra.gmra.mxu0 %v4080_v52  ;;  %18230 = vmatpush3.xpose.msra.mxu1 %v20434_v15 }
 0x800   :  { %18209 = vmatpush3.xpose.msra.mxu0 %v20449_v4  ;;  %18212 = vmatprep.mubr.f32.mxu0 %v4067_v6 }
 0x801   :  { %18233 = vmatprep.mubr.f32.mxu1 %v20468_v37  ;;  %18210 = vmatprep.subr.mxu0 %v20454_v16 }
 0x802   :  { %18231 = vmatprep.subr.mxu1 %v20444_v1 }
 0x803   :  { %18232 = vmatpush3.xpose.msra.mxu1 %v20444_v1 }
 0x804   :  { %18211 = vmatpush3.xpose.msra.mxu0 %v20454_v16 }
 0x805   :  { %18222 = vmatprep.subr.mxu0 %v20457_v30 }
 0x806   :  { %18234 = vmatmul.mubr.f32.vlgmr.msra.gmra.mxu1 %v4076_v12 }
 0x807   :  { %18213 = vmatmul.mubr.f32.vlgmr.msra.gmra.mxu0 %v4077_v33 }
 0x808   :  { %18223 = vmatpush3.xpose.msra.mxu0 %v20457_v30  ;;  %18226 = vmatprep.mubr.f32.mxu0 %v20468_v37 }
 0x809   :  { %18224 = vmatprep.subr.mxu0 %v20463_v31 }
 0x80c   :  { %18225 = vmatpush3.xpose.msra.mxu0 %v20463_v31 }
 0x80f   :  { %18227 = vmatmul.mubr.f32.vlgmr.msra.gmra.mxu0 %v4076_v12 }
 0x8a5   :  { %v18165_v17 = vpop.f32.mrf.mxu1 }
 0x8a7   :  { %v20510_v53 = vpop.f32.mrf.mxu1 }
 0x8a9   :  { %v18179_v61 = vpop.f32.mrf.mxu1 }
 0x8ab   :  { %v20516_v2 = vpop.f32.mrf.mxu1 }
 0x8ad   :  { %v18158_v54 = vpop.f32.mrf.mxu0 }
 0x8ae   :  { %v3643_v55 = vadd.f32 %v18165_v17, %v18158_v54  ;;  %v18193_v10 = vpop.f32.mrf.mxu1 }
 0x8af   :  { %v20512_v57 = vpop.f32.mrf.mxu0 }
 0x8b0   :  { %v20522_v19 = vpop.f32.mrf.mxu1 }
 0x8b2   :  { %v18172_v62 = vpop.f32.mrf.mxu0 }
 0x8b3   :  { %v3726_v63 = vadd.f32 %v18172_v62, %v3643_v55 }
 0x8b4   :  { %v20514_v0 = vpop.f32.mrf.mxu0 }
 0x8b5   :  { %v3809_v51 = vadd.f32 %v18179_v61, %v3726_v63 }
 0x8b6   :  { %v18207_v22 = vpop.f32.mrf.mxu1 }
 0x8b7   :  { %v18186_v5 = vpop.f32.mrf.mxu0 }
 0x8b8   :  { %v3892_v58 = vadd.f32 %v18186_v5, %v3809_v51  ;;  %v4163_v24 = vpop.f32.mrf.mxu1 }
 0x8b9   :  { %v20520_v18 = vpop.f32.mrf.mxu0 }
 0x8ba   :  { %v20518_v15 = vadd.f32 %v18193_v10, %v3892_v58 }
 0x8be   :  { %v18221_v3 = vpop.f32.mrf.mxu1 }
 0x8bf   :  { %v18200_v21 = vpop.f32.mrf.mxu0 }
 0x8c0   :  { %v4170_v1 = vadd.f32 %v18207_v22, %v18200_v21  ;;  %v4327_v13 = vpop.f32.mrf.mxu1 }
 0x8c1   :  { %v4072_v23 = vpop.f32.mrf.mxu0 }
 0x8c2   :  { %v4164_v7 = vadd.f32 %v4163_v24, %v4072_v23 }
 0x8c6   :  { %v18235_v27 = vpop.f32.mrf.mxu1 }
 0x8c7   :  { %v18214_v25 = vpop.f32.mrf.mxu0 }
 0x8c8   :  { %v4253_v8 = vadd.f32 %v18214_v25, %v4170_v1  ;;  %v4491_v35 = vpop.f32.mrf.mxu1 }
 0x8c9   :  { %v4245_v4 = vpop.f32.mrf.mxu0 }
 0x8ca   :  { %v4246_v11 = vadd.f32 %v4245_v4, %v4164_v7  ;;  %v4336_v16 = vadd.f32 %v18221_v3, %v4253_v8 }
 0x8cc   :  { %v4328_v32 = vadd.f32 %v4327_v13, %v4246_v11 }
 0x8cf   :  { %v18228_v28 = vpop.f32.mrf.mxu0 }
 0x8d0   :  { %v4419_v30 = vadd.f32 %v18228_v28, %v4336_v16 }
 0x8d1   :  { %v4412_v29 = vpop.f32.mrf.mxu0 }
 0x8d2   :  { %v4498_v34 = vadd.f32 %v18235_v27, %v4419_v30  ;;  %v4413_v31 = vadd.f32 %v4412_v29, %v4328_v32 }
 0x8d4   :  { %v4502_v36 = vmul.f32 0.25, %v4498_v34  ;;  %v4492_v37 = vadd.f32 %v4491_v35, %v4413_v31 }
 0x8d6   :  { %v4504_v38 = vsel %vm20275_vm6, %v4502_v36, -inf  ;;  %v4501_v39 = vmul.f32 0.25, %v4492_v37 }
 0x8d7   :  { %v4508_v41 = vsel %vm1863_vm4, %v4504_v38, -inf }
 0x8d8   :  { %4509 = vmax.xlane.f32.xlu1 %v4508_v41  ;;  %v4503_v43 = vsel %vm20279_vm7, %v4501_v39, -inf }
 0x8d9   :  { %v4505_v44 = vsel %vm1863_vm4, %v4503_v43, -inf }
 0x8da   :  { %4506 = vmax.xlane.f32.xlu0 %v4505_v44 }
 0x8e9   :  { %4527 = vrot.lane.b32.xlu1 %v20411_v46, %s19850_s7 }
 0x8ed   :  { %5049 = vrot.lane.b32.xlu1 %v20261_v56, %s19851_s4 }
 0x8f1   :  { %5047 = vrot.lane.b32.xlu1 %v20411_v46, %s19851_s4 }
 0x8f5   :  { %5045 = vrot.lane.b32.xlu1 %v20261_v56, %s19852_s29 }
 0x961   :  { %v4510_v45 = vpop.xlane.xlu1 %4509 }
 0x962   :  { %v4512_v6 = vsub.f32 %v4504_v38, %v4510_v45 }
 0x963   :  { %v4507_v12 = vpop.xlane.xlu0 %4506 }
 0x964   :  { %v4515_v20 = vmul.f32 1.442695, %v4512_v6  ;;  %v4511_v40 = vsub.f32 %v4503_v43, %v4507_v12 }
 0x965   :  { %v4528_v52 = vpop.permute.xlu1 %4527 }
 0x966   :  { %19737 = vpow2.f32 %v4515_v20  ;;  %v4513_v33 = vmul.f32 1.442695, %v4511_v40  ;;  %v20544_v54 = vand.u32 4294901760, %v4528_v52 }
 0x968   :  { %19739 = vpow2.f32 %v4513_v33  ;;  %v20547_v62 = vsub.f32 %v4528_v52, %v20544_v54 }
 0x969   :  { %v5050_v61 = vpop.permute.xlu1 %5049 }
 0x96a   :  { %v5057_v5 = vsel %vm1863_vm4, %v5050_v61, 0  ;;  %v20553_v10 = vand.u32 4294901760, %v20547_v62 }
 0x96b   :  { %v20559_v24 = vand.u32 4294901760, %v5057_v5 }
 0x96c   :  { %v4665_v3 = vsub.f32 %v20547_v62, %v20553_v10 }
 0x96d   :  { %v5048_v21 = vpop.permute.xlu1 %5047  ;;  %v20574_v27 = vsub.f32 %v5057_v5, %v20559_v24 }
 0x96e   :  { %v5055_v25 = vsel %vm1863_vm4, %v5048_v21, 0  ;;  %v4666_v28 = vand.u32 4294901760, %v4665_v3 }
 0x96f   :  { %v20569_v13 = vand.u32 4294901760, %v5055_v25  ;;  %v20582_v37 = vand.u32 4294901760, %v20574_v27 }
 0x971   :  { %v20579_v31 = vsub.f32 %v5055_v25, %v20569_v13  ;;  %v5046_v44 = vpop.permute.xlu1 %5045  ;;  %v5178_v6 = vsub.f32 %v20574_v27, %v20582_v37 }
 0x972   :  { %v5053_v40 = vsel %vm1863_vm4, %v5046_v44, 0 }
 0x973   :  { %v19738_v49 = vpop.eup %19737  ;;  %v20587_v43 = vand.u32 4294901760, %v20579_v31  ;;  %v5136_v52 = vand.u32 4294901760, %v5053_v40 }
 0x974   :  { %v4520_v48 = vsel %vm1863_vm4, %v19738_v49, 0.0 }
 0x975   :  { %v19740_v26 = vpop.eup %19739  ;;  %4521 = vadd.xlane.f32.xlu0 %v4520_v48  ;;  %v5137_v61 = vsub.f32 %v5053_v40, %v5136_v52 }
 0x976   :  { %v4517_v50 = vsel %vm1863_vm4, %v19740_v26, 0.0 }
 0x979   :  { %4518 = vadd.xlane.f32.xlu0 %v4517_v50 }
 0x98f   :  { %4529 = vrot.lane.b32.xlu0 %v20261_v56, %s19850_s7 }
 0x993   :  { %5043 = vrot.lane.b32.xlu0 %v20411_v46, %s19852_s29 }
 0x9fe   :  { %v4522_v17 = vpop.xlane.xlu0 %4521 }
 0x9ff   :  { %19741 = vrcp.f32 %v4522_v17 }
 0xa02   :  { %v4519_v55 = vpop.xlane.xlu0 %4518 }
 0xa03   :  { %19743 = vrcp.f32 %v4519_v55 }
 0xa06   :  { %v4530_v63 = vpop.permute.xlu0 %4529 }
 0xa07   :  { %v4568_v51 = vand.u32 4294901760, %v4530_v63 }
 0xa09   :  { %v20550_v58 = vsub.f32 %v4530_v63, %v4568_v51  ;;  %18236 = vmatprep.subr.mxu0 %v4568_v51  ;;  %v5138_v63 = vand.u32 4294901760, %v5137_v61 }
 0xa0a   :  { %18237 = vmatpush3.msra.mxu0 %v4568_v51  ;;  %v5044_v29 = vpop.permute.xlu0 %5043 }
 0xa0b   :  { %18238 = vmatprep.subr.mxu0 %v20544_v54  ;;  %v20557_v22 = vand.u32 4294901760, %v20550_v58  ;;  %v5051_v38 = vsel %vm1863_vm4, %v5044_v29, 0 }
 0xa0c   :  { %v19742_v23 = vpop.eup %19741  ;;  %18239 = vmatpush3.msra.mxu0 %v20544_v54  ;;  %v20589_v45 = vand.u32 4294901760, %v5051_v38 }
 0xa0d   :  { %18250 = vmatprep.subr.mxu0 %v20550_v58  ;;  %v4658_v1 = vsub.f32 %v20550_v58, %v20557_v22  ;;  %v4526_v4 = vmul.f32 %v19742_v23, %v19738_v49  ;;  %v5185_v49 = vsub.f32 %v20579_v31, %v20587_v43 }
 0xa0e   :  { %v5127_v48 = vsub.f32 %v5051_v38, %v20589_v45 }
 0xa0f   :  { %v4659_v7 = vand.u32 4294901760, %v4658_v1  ;;  %v4537_v8 = vsel %vm1863_vm4, %v4526_v4, 0  ;;  %v5186_v17 = vand.u32 4294901760, %v5185_v49 }
 0xa10   :  { %v19744_v11 = vpop.eup %19743  ;;  %v20571_v16 = vand.u32 4294901760, %v4537_v8  ;;  %v5128_v55 = vand.u32 4294901760, %v5127_v48 }
 0xa11   :  { %18243 = vmatprep.subr.mxu1 %v4659_v7  ;;  %v4525_v30 = vmul.f32 %v19744_v11, %v19740_v26  ;;  %v5179_v26 = vand.u32 4294901760, %v5178_v6 }
 0xa12   :  { %18244 = vmatpush3.msra.mxu1 %v4659_v7  ;;  %v4617_v32 = vsub.f32 %v4537_v8, %v20571_v16 }
 0xa13   :  { %18245 = vmatprep.subr.mxu1 %v4666_v28  ;;  %v4534_v34 = vsel %vm1863_vm4, %v4525_v30, 0 }
 0xa14   :  { %18246 = vmatpush3.msra.mxu1 %v4666_v28  ;;  %v4606_v35 = vand.u32 4294901760, %v4534_v34  ;;  %v4618_v36 = vand.u32 4294901760, %v4617_v32 }
 0xa15   :  { %18257 = vmatprep.subr.mxu1 %v4568_v51 }
 0xa16   :  { %18247 = vmatprep.mubr.f32.mxu1 %v4606_v35  ;;  %v4607_v39 = vsub.f32 %v4534_v34, %v4606_v35  ;;  %v4619_v12 = vsub.f32 %v4617_v32, %v4618_v36 }
 0xa17   :  { %18248 = vmatmul.mubr.f32.vlgmr.msra.gmra.mxu1 %v20571_v16 }
 0xa18   :  { %18258 = vmatpush3.msra.mxu1 %v4568_v51  ;;  %v4608_v41 = vand.u32 4294901760, %v4607_v39  ;;  %v4620_v50 = vand.u32 4294901760, %v4619_v12 }
 0xa19   :  { %18259 = vmatprep.subr.mxu1 %v20544_v54 }
 0xa1a   :  { %18260 = vmatpush3.msra.mxu1 %v20544_v54  ;;  %18261 = vmatprep.mubr.f32.mxu1 %v4608_v41  ;;  %v4609_v20 = vsub.f32 %v4607_v39, %v4608_v41 }
 0xa1b   :  { %18271 = vmatprep.subr.mxu1 %v4568_v51  ;;  %18262 = vmatmul.mubr.f32.vlgmr.msra.gmra.mxu1 %v4618_v36 }
 0xa1c   :  { %18272 = vmatpush3.msra.mxu1 %v4568_v51  ;;  %18275 = vmatprep.mubr.f32.mxu1 %v4606_v35  ;;  %v4610_v33 = vand.u32 4294901760, %v4609_v20  ;;  %v5139_v51 = vsub.f32 %v5137_v61, %v5138_v63 }
 0xa1d   :  { %18273 = vmatprep.subr.mxu1 %v20544_v54 }
 0xa1e   :  { %18274 = vmatpush3.msra.mxu1 %v20544_v54  ;;  %18240 = vmatprep.mubr.f32.mxu0 %v4610_v33  ;;  %v5129_v54 = vsub.f32 %v5127_v48, %v5128_v55  ;;  %v5140_v5 = vand.u32 4294901760, %v5139_v51 }
 0xa1f   :  { %18285 = vmatprep.subr.mxu1 %v5179_v26  ;;  %18241 = vmatmul.mubr.f32.vlgmr.msra.gmra.mxu0 %v4620_v50 }
 0xa20   :  { %18251 = vmatpush3.msra.mxu0 %v20550_v58  ;;  %18276 = vmatmul.mubr.f32.vlgmr.msra.gmra.mxu1 %v20571_v16 }
 0xa21   :  { %18286 = vmatpush3.xpose.msra.mxu1 %v5179_v26  ;;  %18252 = vmatprep.subr.mxu0 %v20547_v62 }
 0xa22   :  { %18254 = vmatprep.mubr.f32.mxu0 %v4607_v39  ;;  %18287 = vmatprep.subr.mxu1 %v5186_v17 }
 0xa23   :  { %18289 = vmatprep.mubr.f32.mxu1 %v20589_v45  ;;  %18253 = vmatpush3.msra.mxu0 %v20547_v62  ;;  %v5130_v62 = vand.u32 4294901760, %v5129_v54 }
 0xa24   :  { %18264 = vmatprep.subr.mxu0 %v20557_v22  ;;  %18255 = vmatmul.mubr.f32.vlgmr.msra.gmra.mxu0 %v4617_v32 }
 0xa25   :  { %18265 = vmatpush3.msra.mxu0 %v20557_v22  ;;  %18288 = vmatpush3.xpose.msra.mxu1 %v5186_v17 }
 0xa26   :  { %18266 = vmatprep.subr.mxu0 %v20553_v10  ;;  %18268 = vmatprep.mubr.f32.mxu0 %v4606_v35 }
 0xa27   :  { %18299 = vmatprep.subr.mxu1 %v20559_v24  ;;  %18267 = vmatpush3.msra.mxu0 %v20553_v10 }
 0xa28   :  { %18278 = vmatprep.subr.mxu0 %v20559_v24  ;;  %18290 = vmatmul.mubr.f32.vlgmr.msra.gmra.mxu1 %v5136_v52 }
 0xa29   :  { %18269 = vmatmul.mubr.f32.vlgmr.msra.gmra.mxu0 %v20571_v16  ;;  %18300 = vmatpush3.xpose.msra.mxu1 %v20559_v24 }
 0xa2a   :  { %18279 = vmatpush3.xpose.msra.mxu0 %v20559_v24  ;;  %18303 = vmatprep.mubr.f32.mxu1 %v5128_v55 }
 0xa2b   :  { %18280 = vmatprep.subr.mxu0 %v20569_v13  ;;  %18282 = vmatprep.mubr.f32.mxu0 %v5130_v62 }
 0xa2c   :  { %18301 = vmatprep.subr.mxu1 %v20569_v13 }
 0xa2d   :  { %18302 = vmatpush3.xpose.msra.mxu1 %v20569_v13 }
 0xa2e   :  { %18281 = vmatpush3.xpose.msra.mxu0 %v20569_v13  ;;  %18313 = vmatprep.subr.mxu1 %v20559_v24 }
 0xa2f   :  { %18292 = vmatprep.subr.mxu0 %v20574_v27 }
 0xa30   :  { %18304 = vmatmul.mubr.f32.vlgmr.msra.gmra.mxu1 %v5138_v63 }
 0xa31   :  { %18283 = vmatmul.mubr.f32.vlgmr.msra.gmra.mxu0 %v5140_v5  ;;  %18314 = vmatpush3.xpose.msra.mxu1 %v20559_v24 }
 0xa32   :  { %18293 = vmatpush3.xpose.msra.mxu0 %v20574_v27  ;;  %18296 = vmatprep.mubr.f32.mxu0 %v5127_v48 }
 0xa33   :  { %18317 = vmatprep.mubr.f32.mxu1 %v20589_v45  ;;  %18294 = vmatprep.subr.mxu0 %v20579_v31 }
 0xa34   :  { %18315 = vmatprep.subr.mxu1 %v20569_v13 }
 0xa35   :  { %18316 = vmatpush3.xpose.msra.mxu1 %v20569_v13 }
 0xa36   :  { %18295 = vmatpush3.xpose.msra.mxu0 %v20579_v31 }
 0xa37   :  { %18306 = vmatprep.subr.mxu0 %v20582_v37 }
 0xa38   :  { %18318 = vmatmul.mubr.f32.vlgmr.msra.gmra.mxu1 %v5136_v52 }
 0xa39   :  { %18297 = vmatmul.mubr.f32.vlgmr.msra.gmra.mxu0 %v5137_v61 }
 0xa3a   :  { %18307 = vmatpush3.xpose.msra.mxu0 %v20582_v37  ;;  %18310 = vmatprep.mubr.f32.mxu0 %v20589_v45 }
 0xa3b   :  { %18308 = vmatprep.subr.mxu0 %v20587_v43 }
 0xa3e   :  { %18309 = vmatpush3.xpose.msra.mxu0 %v20587_v43 }
 0xa41   :  { %18311 = vmatmul.mubr.f32.vlgmr.msra.gmra.mxu0 %v5136_v52 }
 0xad7   :  { %v18249_v58 = vpop.f32.mrf.mxu1 }
 0xad9   :  { %v4703_v10 = vpop.f32.mrf.mxu1 }
 0xadb   :  { %v18263_v22 = vpop.f32.mrf.mxu1 }
 0xadd   :  { %v4867_v1 = vpop.f32.mrf.mxu1 }
 0xadf   :  { %v18242_v21 = vpop.f32.mrf.mxu0 }
 0xae0   :  { %v4710_v24 = vadd.f32 %v18249_v58, %v18242_v21  ;;  %v18277_v13 = vpop.f32.mrf.mxu1 }
 0xae1   :  { %v4612_v23 = vpop.f32.mrf.mxu0 }
 0xae2   :  { %v4704_v3 = vadd.f32 %v4703_v10, %v4612_v23  ;;  %v5031_v34 = vpop.f32.mrf.mxu1  ;;  %v3637_v10 = vadd.f32 %v20510_v53, %v20512_v57 }
 0xae4   :  { %v18256_v25 = vpop.f32.mrf.mxu0  ;;  %v3719_v21 = vadd.f32 %v20514_v0, %v3637_v10 }
 0xae5   :  { %v4793_v4 = vadd.f32 %v18256_v25, %v4710_v24 }
 0xae6   :  { %v4785_v7 = vpop.f32.mrf.mxu0 }
 0xae7   :  { %v4786_v8 = vadd.f32 %v4785_v7, %v4704_v3  ;;  %v4876_v11 = vadd.f32 %v18263_v22, %v4793_v4  ;;  %v3801_v22 = vadd.f32 %v20516_v2, %v3719_v21 }
 0xae8   :  { %v18291_v36 = vpop.f32.mrf.mxu1 }
 0xae9   :  { %v18270_v16 = vpop.f32.mrf.mxu0  ;;  %v4868_v27 = vadd.f32 %v4867_v1, %v4786_v8  ;;  %v3886_v23 = vadd.f32 %v20520_v18, %v3801_v22 }
 0xaea   :  { %v4959_v28 = vadd.f32 %v18270_v16, %v4876_v11  ;;  %v5223_v38 = vpop.f32.mrf.mxu1 }
 0xaeb   :  { %v4952_v30 = vpop.f32.mrf.mxu0  ;;  %v3965_v24 = vadd.f32 %v20522_v19, %v3886_v23 }
 0xaec   :  { %v5038_v32 = vadd.f32 %v18277_v13, %v4959_v28  ;;  %v4953_v29 = vadd.f32 %v4952_v30, %v4868_v27  ;;  %v6118_v30 = vld [vmem:[%s23084_s11 + $0x18] sm:$0xff] }
 0xaee   :  { %5042 = vst.msk [vmem:[#allocation2 + $0x18] sm:$0xff] %vm1863_vm4, %v5038_v32  ;;  %v5032_v31 = vadd.f32 %v5031_v34, %v4953_v29  ;;  %v20675_v34 = vand.u32 4294901760, %v6118_v30 }
 0xaf0   :  { %5041 = vst.msk [vmem:[#allocation2 + $0x10] sm:$0xff] %vm1863_vm4, %v5032_v31  ;;  %v18305_v43 = vpop.f32.mrf.mxu1  ;;  %v6117_v31 = vld [vmem:[%s23084_s11 + $0x10] sm:$0xff] }
 0xaf1   :  { %v18284_v35 = vpop.f32.mrf.mxu0 }
 0xaf2   :  { %v5230_v41 = vadd.f32 %v18291_v36, %v18284_v35  ;;  %v5387_v20 = vpop.f32.mrf.mxu1 }
 0xaf3   :  { %v5132_v37 = vpop.f32.mrf.mxu0 }
 0xaf4   :  { %v5224_v45 = vadd.f32 %v5223_v38, %v5132_v37 }
 0xaf8   :  { %v18319_v33 = vpop.f32.mrf.mxu1 }
 0xaf9   :  { %v18298_v39 = vpop.f32.mrf.mxu0 }
 0xafa   :  { %v5313_v6 = vadd.f32 %v18298_v39, %v5230_v41  ;;  %v5551_v55 = vpop.f32.mrf.mxu1  ;;  %v20686_v39 = vand.u32 4294901760, %v6117_v31  ;;  %v6116_v41 = vld [vmem:[%s23084_s11 + $0x8] sm:$0xff] }
 0xafb   :  { %v5305_v44 = vpop.f32.mrf.mxu0 }
 0xafc   :  { %v5306_v12 = vadd.f32 %v5305_v44, %v5224_v45  ;;  %v5396_v40 = vadd.f32 %v18305_v43, %v5313_v6  ;;  %v20693_v45 = vsub.f32 %v6118_v30, %v20675_v34 }
 0xafe   :  { %v5388_v26 = vadd.f32 %v5387_v20, %v5306_v12 }
 0xb01   :  { %v18312_v49 = vpop.f32.mrf.mxu0 }
 0xb02   :  { %v5479_v48 = vadd.f32 %v18312_v49, %v5396_v40  ;;  %v6115_v49 = vld [vmem:[%s23084_s11] sm:$0xff] }
 0xb03   :  { %v5472_v50 = vpop.f32.mrf.mxu0 }
 0xb04   :  { %v5558_v52 = vadd.f32 %v18319_v33, %v5479_v48  ;;  %v5473_v17 = vadd.f32 %v5472_v50, %v5388_v26  ;;  %v20697_v33 = vand.u32 4294901760, %v6116_v41  ;;  %v20706_v26 = vsub.f32 %v6117_v31, %v20686_v39 }
 0xb06   :  { %v5562_v61 = vmul.f32 0.25, %v5558_v52  ;;  %v5552_v54 = vadd.f32 %v5551_v55, %v5473_v17  ;;  %v20710_v52 = vand.u32 4294901760, %v20693_v45 }
 0xb08   :  { %v5564_v63 = vsel %vm20275_vm6, %v5562_v61, -inf  ;;  %v5561_v62 = vmul.f32 0.25, %v5552_v54  ;;  %v20712_v61 = vand.u32 4294901760, %v6115_v49 }
 0xb09   :  { %v5568_v51 = vsel %vm1863_vm4, %v5564_v63, -inf }
 0xb0a   :  { %5569 = vmax.xlane.f32.xlu1 %v5568_v51  ;;  %v5563_v5 = vsel %vm20279_vm7, %v5561_v62, -inf  ;;  %v20719_v51 = vand.u32 4294901760, %v20706_v26  ;;  %v20726_v21 = vsub.f32 %v6115_v49, %v20712_v61 }
 0xb0b   :  { %v5565_v58 = vsel %vm1863_vm4, %v5563_v5, -inf }
 0xb0c   :  { %5566 = vmax.xlane.f32.xlu0 %v5565_v58  ;;  %v6275_v58 = vsub.f32 %v20693_v45, %v20710_v52 }
 0xb1b   :  { %5587 = vrot.lane.b32.xlu1 %v20411_v46, %s19853_s3 }
 0xb1f   :  { %3976 = vrot.lane.b32.xlu1 %v3965_v24, %s19854_s8 }
 0xb23   :  { %3978 = vrot.lane.b32.xlu1 %v20518_v15, %s19854_s8 }
 0xb93   :  { %v5570_v25 = vpop.xlane.xlu1 %5569 }
 0xb94   :  { %v5572_v1 = vsub.f32 %v5564_v63, %v5570_v25  ;;  %v20716_v63 = vsub.f32 %v6116_v41, %v20697_v33 }
 0xb95   :  { %v5567_v53 = vpop.xlane.xlu0 %5566 }
 0xb96   :  { %v5575_v57 = vmul.f32 1.442695, %v5572_v1  ;;  %v5571_v0 = vsub.f32 %v5563_v5, %v5567_v53  ;;  %v20733_v24 = vand.u32 4294901760, %v20716_v63  ;;  %v6282_v1 = vsub.f32 %v20706_v26, %v20719_v51 }
 0xb97   :  { %v5588_v3 = vpop.permute.xlu1 %5587 }
 0xb98   :  { %19745 = vpow2.f32 %v5575_v57  ;;  %v5573_v2 = vmul.f32 1.442695, %v5571_v0  ;;  %v20658_v11 = vand.u32 4294901760, %v5588_v3  ;;  %v6276_v57 = vand.u32 4294901760, %v6275_v58 }
 0xb9a   :  { %19747 = vpow2.f32 %v5573_v2  ;;  %v20661_v16 = vsub.f32 %v5588_v3, %v20658_v11  ;;  %v20739_v3 = vand.u32 4294901760, %v20726_v21 }
 0xb9b   :  { %v3977_v18 = vpop.permute.xlu1 %3976 }
 0xb9c   :  { %3983 = vst.msk [vmem:[#allocation2] sm:$0xff] %vm3982_vm8, %v3977_v18  ;;  %v6289_v18 = vsub.f32 %v20716_v63, %v20733_v24 }
 0xb9f   :  { %v3979_v46 = vpop.permute.xlu1 %3978 }
 0xba0   :  { %3984 = vst.msk [vmem:[#allocation2 + $0x8] sm:$0xff] %vm3982_vm8, %v3979_v46 }
 0xba3   :  { %v6111_v17 = vld [vmem:[#allocation2] sm:$0xff] }
 0xba4   :  { %v6127_v5 = vsel %vm1123_vm3, %v6111_v17, 0 }
 0xba5   :  { %v19746_v19 = vpop.eup %19745  ;;  %v20730_v23 = vand.u32 4294901760, %v6127_v5 }
 0xba6   :  { %v5580_v4 = vsel %vm1863_vm4, %v19746_v19, 0.0 }
 0xba7   :  { %v19748_v15 = vpop.eup %19747  ;;  %5581 = vadd.xlane.f32.xlu0 %v5580_v4  ;;  %v6112_v53 = vld [vmem:[#allocation2 + $0x8] sm:$0xff]  ;;  %v6283_v4 = vand.u32 4294901760, %v6282_v1 }
 0xba8   :  { %v5577_v7 = vsel %vm1863_vm4, %v19748_v15, 0.0  ;;  %v6130_v46 = vsel %vm1123_vm3, %v6112_v53, 0 }
 0xbab   :  { %5578 = vadd.xlane.f32.xlu0 %v5577_v7  ;;  %v20753_v7 = vand.u32 4294901760, %v6130_v46 }
 0xbc1   :  { %5589 = vrot.lane.b32.xlu0 %v20261_v56, %s19853_s3  ;;  %v20669_v56 = vand.u32 4294901760, %v20661_v16 }
 0xbc3   :  { %v5725_v37 = vsub.f32 %v20661_v16, %v20669_v56 }
 0xbc5   :  { %v5726_v20 = vand.u32 4294901760, %v5725_v37 }
 0xc30   :  { %v5582_v8 = vpop.xlane.xlu0 %5581 }
 0xc31   :  { %19749 = vrcp.f32 %v5582_v8  ;;  %v6290_v8 = vand.u32 4294901760, %v6289_v18 }
 0xc34   :  { %v5579_v13 = vpop.xlane.xlu0 %5578 }
 0xc35   :  { %19751 = vrcp.f32 %v5579_v13 }
 0xc38   :  { %v5590_v27 = vpop.permute.xlu0 %5589 }
 0xc39   :  { %v5628_v28 = vand.u32 4294901760, %v5590_v27 }
 0xc3b   :  { %v20666_v32 = vsub.f32 %v5590_v27, %v5628_v28  ;;  %18320 = vmatprep.subr.mxu0 %v5628_v28  ;;  %v20761_v27 = vsub.f32 %v6130_v46, %v20753_v7 }
 0xc3c   :  { %18321 = vmatpush3.msra.mxu0 %v5628_v28 }
 0xc3d   :  { %18322 = vmatprep.subr.mxu0 %v20658_v11  ;;  %v20673_v29 = vand.u32 4294901760, %v20666_v32 }
 0xc3e   :  { %v19750_v35 = vpop.eup %19749  ;;  %18323 = vmatpush3.msra.mxu0 %v20658_v11 }
 0xc3f   :  { %18334 = vmatprep.subr.mxu0 %v20666_v32  ;;  %v5718_v36 = vsub.f32 %v20666_v32, %v20673_v29  ;;  %v5586_v38 = vmul.f32 %v19750_v35, %v19746_v19  ;;  %v20746_v19 = vsub.f32 %v6127_v5, %v20730_v23 }
 0xc41   :  { %v5719_v43 = vand.u32 4294901760, %v5718_v36  ;;  %v5597_v44 = vsel %vm1863_vm4, %v5586_v38, 0  ;;  %v6209_v13 = vand.u32 4294901760, %v20746_v19 }
 0xc42   :  { %v19752_v6 = vpop.eup %19751  ;;  %v20695_v12 = vand.u32 4294901760, %v5597_v44 }
 0xc43   :  { %18327 = vmatprep.subr.mxu1 %v5719_v43  ;;  %v5585_v40 = vmul.f32 %v19752_v6, %v19748_v15  ;;  %v6296_v15 = vsub.f32 %v20726_v21, %v20739_v3 }
 0xc44   :  { %18328 = vmatpush3.msra.mxu1 %v5719_v43  ;;  %v20703_v48 = vsub.f32 %v5597_v44, %v20695_v12 }
 0xc45   :  { %18329 = vmatprep.subr.mxu1 %v5726_v20  ;;  %v5594_v50 = vsel %vm1863_vm4, %v5585_v40, 0 }
 0xc46   :  { %18330 = vmatpush3.msra.mxu1 %v5726_v20  ;;  %v5666_v55 = vand.u32 4294901760, %v5594_v50  ;;  %v5678_v54 = vand.u32 4294901760, %v20703_v48 }
 0xc47   :  { %18341 = vmatprep.subr.mxu1 %v5628_v28 }
 0xc48   :  { %18331 = vmatprep.mubr.f32.mxu1 %v5666_v55  ;;  %v5667_v62 = vsub.f32 %v5594_v50, %v5666_v55  ;;  %v5679_v22 = vsub.f32 %v20703_v48, %v5678_v54 }
 0xc49   :  { %18332 = vmatmul.mubr.f32.vlgmr.msra.gmra.mxu1 %v20695_v12 }
 0xc4a   :  { %18342 = vmatpush3.msra.mxu1 %v5628_v28  ;;  %v5668_v10 = vand.u32 4294901760, %v5667_v62  ;;  %v5680_v2 = vand.u32 4294901760, %v5679_v22 }
 0xc4b   :  { %18343 = vmatprep.subr.mxu1 %v20658_v11 }
 0xc4c   :  { %18344 = vmatpush3.msra.mxu1 %v20658_v11  ;;  %18345 = vmatprep.mubr.f32.mxu1 %v5668_v10  ;;  %v5669_v25 = vsub.f32 %v5667_v62, %v5668_v10 }
 0xc4d   :  { %18355 = vmatprep.subr.mxu1 %v5628_v28  ;;  %18346 = vmatmul.mubr.f32.vlgmr.msra.gmra.mxu1 %v5678_v54 }
 0xc4e   :  { %18356 = vmatpush3.msra.mxu1 %v5628_v28  ;;  %18359 = vmatprep.mubr.f32.mxu1 %v5666_v55  ;;  %v5670_v0 = vand.u32 4294901760, %v5669_v25  ;;  %v6210_v28 = vsub.f32 %v20746_v19, %v6209_v13 }
 0xc4f   :  { %18357 = vmatprep.subr.mxu1 %v20658_v11 }
 0xc50   :  { %18358 = vmatpush3.msra.mxu1 %v20658_v11  ;;  %18324 = vmatprep.mubr.f32.mxu0 %v5670_v0  ;;  %v6297_v11 = vand.u32 4294901760, %v6296_v15  ;;  %v6211_v30 = vand.u32 4294901760, %v6210_v28 }
 0xc51   :  { %18376 = vmatprep.subr.mxu1 %v6276_v57  ;;  %18325 = vmatmul.mubr.f32.vlgmr.msra.gmra.mxu0 %v5680_v2 }
 0xc52   :  { %18335 = vmatpush3.msra.mxu0 %v20666_v32  ;;  %18360 = vmatmul.mubr.f32.vlgmr.msra.gmra.mxu1 %v20695_v12 }
 0xc53   :  { %18377 = vmatpush3.msra.mxu1 %v6276_v57  ;;  %18336 = vmatprep.subr.mxu0 %v20661_v16 }
 0xc54   :  { %18338 = vmatprep.mubr.f32.mxu0 %v5667_v62  ;;  %18378 = vmatprep.subr.mxu1 %v6283_v4 }
 0xc55   :  { %18384 = vmatprep.mubr.f32.mxu1 %v20730_v23  ;;  %18337 = vmatpush3.msra.mxu0 %v20661_v16  ;;  %v6219_v16 = vand.u32 4294901760, %v20761_v27 }
 0xc56   :  { %18379 = vmatpush3.msra.mxu1 %v6283_v4  ;;  %18348 = vmatprep.subr.mxu0 %v20673_v29 }
 0xc57   :  { %18380 = vmatprep.subr.mxu1 %v6290_v8  ;;  %18339 = vmatmul.mubr.f32.vlgmr.msra.gmra.mxu0 %v20703_v48  ;;  %v6220_v32 = vsub.f32 %v20761_v27, %v6219_v16 }
 0xc58   :  { %18349 = vmatpush3.msra.mxu0 %v20673_v29  ;;  %18381 = vmatpush3.msra.mxu1 %v6290_v8 }
 0xc59   :  { %18350 = vmatprep.subr.mxu0 %v20669_v56  ;;  %18352 = vmatprep.mubr.f32.mxu0 %v5666_v55 }
 0xc5a   :  { %18382 = vmatprep.subr.mxu1 %v6297_v11  ;;  %18351 = vmatpush3.msra.mxu0 %v20669_v56  ;;  %v6221_v56 = vand.u32 4294901760, %v6220_v32 }
 0xc5b   :  { %18383 = vmatpush3.msra.mxu1 %v6297_v11  ;;  %18362 = vmatprep.subr.mxu0 %v20675_v34 }
 0xc5c   :  { %18385 = vmatmul.mubr.f32.vlgmr.msra.gmra.mxu1 %v20753_v7  ;;  %18353 = vmatmul.mubr.f32.vlgmr.msra.gmra.mxu0 %v20695_v12 }
 0xc5d   :  { %18363 = vmatpush3.msra.mxu0 %v20675_v34  ;;  %18370 = vmatprep.mubr.f32.mxu0 %v6211_v30 }
 0xc5e   :  { %18364 = vmatprep.subr.mxu0 %v20686_v39  ;;  %18404 = vmatprep.subr.mxu1 %v20675_v34 }
 0xc5f   :  { %18365 = vmatpush3.msra.mxu0 %v20686_v39  ;;  %18405 = vmatpush3.msra.mxu1 %v20675_v34 }
 0xc60   :  { %18366 = vmatprep.subr.mxu0 %v20697_v33  ;;  %18406 = vmatprep.subr.mxu1 %v20686_v39 }
 0xc61   :  { %18367 = vmatpush3.msra.mxu0 %v20697_v33  ;;  %18407 = vmatpush3.msra.mxu1 %v20686_v39 }
 0xc62   :  { %18368 = vmatprep.subr.mxu0 %v20712_v61  ;;  %18408 = vmatprep.subr.mxu1 %v20697_v33 }
 0xc63   :  { %18369 = vmatpush3.msra.mxu0 %v20712_v61  ;;  %18409 = vmatpush3.msra.mxu1 %v20697_v33 }
 0xc64   :  { %18371 = vmatmul.mubr.f32.vlgmr.msra.gmra.mxu0 %v6221_v56  ;;  %18410 = vmatprep.subr.mxu1 %v20712_v61 }
 0xc65   :  { %18411 = vmatpush3.msra.mxu1 %v20712_v61  ;;  %18390 = vmatprep.subr.mxu0 %v20693_v45 }
 0xc66   :  { %18432 = vmatprep.subr.mxu1 %v20675_v34  ;;  %18391 = vmatpush3.msra.mxu0 %v20693_v45 }
 0xc67   :  { %18392 = vmatprep.subr.mxu0 %v20706_v26 }
 0xc68   :  { %18393 = vmatpush3.msra.mxu0 %v20706_v26 }
 0xc69   :  { %18394 = vmatprep.subr.mxu0 %v20716_v63 }
 0xc6a   :  { %18395 = vmatpush3.msra.mxu0 %v20716_v63 }
 0xc6b   :  { %18396 = vmatprep.subr.mxu0 %v20726_v21 }
 0xc6c   :  { %18397 = vmatpush3.msra.mxu0 %v20726_v21 }
 0xc6d   :  { %18418 = vmatprep.subr.mxu0 %v20710_v52 }
 0xd09   :  { %v18333_v29 = vpop.f32.mrf.mxu1 }
 0xd0b   :  { %v5763_v31 = vpop.f32.mrf.mxu1 }
 0xd0d   :  { %v18347_v37 = vpop.f32.mrf.mxu1 }
 0xd0f   :  { %v5927_v43 = vpop.f32.mrf.mxu1 }
 0xd11   :  { %v18326_v35 = vpop.f32.mrf.mxu0 }
 0xd12   :  { %v5770_v38 = vadd.f32 %v18333_v29, %v18326_v35  ;;  %v18361_v40 = vpop.f32.mrf.mxu1 }
 0xd13   :  { %v5672_v36 = vpop.f32.mrf.mxu0 }
 0xd14   :  { %v5764_v44 = vadd.f32 %v5763_v31, %v5672_v36  ;;  %v6091_v54 = vpop.f32.mrf.mxu1 }
 0xd17   :  { %v18340_v41 = vpop.f32.mrf.mxu0 }
 0xd18   :  { %v5853_v45 = vadd.f32 %v18340_v41, %v5770_v38 }
 0xd19   :  { %v5845_v6 = vpop.f32.mrf.mxu0 }
 0xd1a   :  { %v5846_v12 = vadd.f32 %v5845_v6, %v5764_v44  ;;  %v5936_v20 = vadd.f32 %v18347_v37, %v5853_v45 }
 0xd1c   :  { %v18354_v49 = vpop.f32.mrf.mxu0  ;;  %v5928_v48 = vadd.f32 %v5927_v43, %v5846_v12 }
 0xd1d   :  { %v6019_v26 = vadd.f32 %v18354_v49, %v5936_v20 }
 0xd1e   :  { %v6012_v50 = vpop.f32.mrf.mxu0 }
 0xd1f   :  { %v6098_v17 = vadd.f32 %v18361_v40, %v6019_v26  ;;  %v6013_v55 = vadd.f32 %v6012_v50, %v5928_v48 }
 0xd21   :  { %v6092_v63 = vadd.f32 %v6091_v54, %v6013_v55  ;;  %6105 = vrot.lane.b32.xlu1 %v6098_v17, %s19854_s8 }
 0xd23   :  { %6103 = vrot.lane.b32.xlu0 %v6092_v63, %s19854_s8 }
 0xd93   :  { %v6106_v62 = vpop.permute.xlu1 %6105 }
 0xd94   :  { %6110 = vst.msk [vmem:[#allocation2 + $0x18] sm:$0xff] %vm3982_vm8, %v6106_v62 }
 0xd95   :  { %v6104_v5 = vpop.permute.xlu0 %6103 }
 0xd96   :  { %6109 = vst.msk [vmem:[#allocation2 + $0x10] sm:$0xff] %vm3982_vm8, %v6104_v5 }
 0xd9b   :  { %v6114_v58 = vld [vmem:[#allocation2 + $0x18] sm:$0xff] }
 0xd9c   :  { %v6136_v10 = vsel %vm1123_vm3, %v6114_v58, 0 }
 0xd9d   :  { %v6113_v21 = vld [vmem:[#allocation2 + $0x10] sm:$0xff]  ;;  %v6237_v22 = vand.u32 4294901760, %v6136_v10 }
 0xd9e   :  { %v6133_v25 = vsel %vm1123_vm3, %v6113_v21, 0 }
 0xd9f   :  { %v6227_v1 = vand.u32 4294901760, %v6133_v25  ;;  %v6238_v53 = vsub.f32 %v6136_v10, %v6237_v22 }
 0xda1   :  { %18387 = vmatprep.mubr.f32.mxu1 %v6227_v1  ;;  %v6228_v57 = vsub.f32 %v6133_v25, %v6227_v1  ;;  %v6239_v0 = vand.u32 4294901760, %v6238_v53 }
 0xda2   :  { %18388 = vmatmul.mubr.f32.gmra.mxu1 %v6237_v22 }
 0xda3   :  { %18412 = vmatprep.mubr.f32.mxu1 %v6209_v13  ;;  %v6229_v2 = vand.u32 4294901760, %v6228_v57  ;;  %v6240_v18 = vsub.f32 %v6238_v53, %v6239_v0 }
 0xda5   :  { %v6230_v46 = vsub.f32 %v6228_v57, %v6229_v2  ;;  %v6241_v15 = vand.u32 4294901760, %v6240_v18 }
 0xda6   :  { %18413 = vmatmul.mubr.f32.vlgmr.msra.gmra.mxu1 %v6219_v16 }
 0xda7   :  { %18415 = vmatprep.mubr.f32.mxu1 %v6229_v2  ;;  %18433 = vmatpush3.msra.mxu1 %v20675_v34  ;;  %v6231_v4 = vand.u32 4294901760, %v6230_v46  ;;  %v18386_v34 = vpop.f32.mrf.mxu1 }
 0xda8   :  { %18434 = vmatprep.subr.mxu1 %v20686_v39 }
 0xda9   :  { %18373 = vmatprep.mubr.f32.mxu0 %v6231_v4  ;;  %18435 = vmatpush3.msra.mxu1 %v20686_v39  ;;  %v6334_v39 = vpop.f32.mrf.mxu1 }
 0xdaa   :  { %18374 = vmatmul.mubr.f32.gmra.mxu0 %v6241_v15  ;;  %18416 = vmatmul.mubr.f32.gmra.mxu1 %v6239_v0 }
 0xdab   :  { %18436 = vmatprep.subr.mxu1 %v20697_v33  ;;  %18398 = vmatprep.mubr.f32.mxu0 %v20746_v19 }
 0xdac   :  { %18437 = vmatpush3.msra.mxu1 %v20697_v33  ;;  %18440 = vmatprep.mubr.f32.mxu1 %v20730_v23 }
 0xdad   :  { %18438 = vmatprep.subr.mxu1 %v20712_v61 }
 0xdae   :  { %18439 = vmatpush3.msra.mxu1 %v20712_v61  ;;  %18399 = vmatmul.mubr.f32.vlgmr.msra.gmra.mxu0 %v20761_v27 }
 0xdaf   :  { %18441 = vmatmul.mubr.f32.vlgmr.msra.gmra.mxu1 %v20753_v7  ;;  %18401 = vmatprep.mubr.f32.mxu0 %v6228_v57 }
 0xdb0   :  { %18419 = vmatpush3.msra.mxu0 %v20710_v52  ;;  %18443 = vmatprep.mubr.f32.mxu1 %v6227_v1  ;;  %v18372_v52 = vpop.f32.mrf.mxu0 }
 0xdb1   :  { %18420 = vmatprep.subr.mxu0 %v20719_v51 }
 0xdb2   :  { %18421 = vmatpush3.msra.mxu0 %v20719_v51  ;;  %v6213_v19 = vpop.f32.mrf.mxu0 }
 0xdb3   :  { %18402 = vmatmul.mubr.f32.gmra.mxu0 %v6238_v53  ;;  %18422 = vmatprep.subr.mxu0 %v20733_v24 }
 0xdb4   :  { %18444 = vmatmul.mubr.f32.gmra.mxu1 %v6237_v22  ;;  %18423 = vmatpush3.msra.mxu0 %v20733_v24 }
 0xdb5   :  { %18426 = vmatprep.mubr.f32.mxu0 %v20730_v23  ;;  %18424 = vmatprep.subr.mxu0 %v20739_v3  ;;  %v16791_v23 = vld [vmem:[%s23085_s12] ss:$0 sm:$0xff] }
 0xdb6   :  { %18425 = vmatpush3.msra.mxu0 %v20739_v3  ;;  %v6224_v11 = vadd.f32 %v18372_v52, %v16791_v23  ;;  %v6214_v27 = vadd.f32 %v16791_v23, %v6213_v19 }
 0xdb7   :  { %18427 = vmatmul.mubr.f32.vlgmr.msra.gmra.mxu0 %v20753_v7 }
 0xdb8   :  { %18429 = vmatprep.mubr.f32.mxu0 %v6227_v1  ;;  %v6341_v30 = vadd.f32 %v18386_v34, %v6224_v11  ;;  %v6335_v31 = vadd.f32 %v6334_v39, %v6214_v27 }
 0xdbb   :  { %18430 = vmatmul.mubr.f32.gmra.mxu0 %v6237_v22 }
 0xe62   :  { %v18389_v33 = vpop.f32.mrf.mxu1 }
 0xe64   :  { %v6346_v61 = vpop.f32.mrf.mxu1 }
 0xe66   :  { %v18414_v51 = vpop.f32.mrf.mxu1 }
 0xe68   :  { %v6530_v8 = vpop.f32.mrf.mxu1 }
 0xe6a   :  { %v18375_v24 = vpop.f32.mrf.mxu0  ;;  %v18417_v13 = vpop.f32.mrf.mxu1 }
 0xe6b   :  { %v6244_v16 = vadd.f32 %v18375_v24, %v16791_v23 }
 0xe6c   :  { %v6233_v3 = vpop.f32.mrf.mxu0  ;;  %v6546_v28 = vpop.f32.mrf.mxu1 }
 0xe6d   :  { %v6234_v56 = vadd.f32 %v16791_v23, %v6233_v3  ;;  %v6353_v38 = vadd.f32 %v18389_v33, %v6244_v16 }
 0xe6e   :  { %v18400_v7 = vpop.f32.mrf.mxu0 }
 0xe6f   :  { %v6440_v29 = vadd.f32 %v18400_v7, %v6341_v30  ;;  %v18442_v35 = vpop.f32.mrf.mxu1  ;;  %v6347_v44 = vadd.f32 %v6346_v61, %v6234_v56  ;;  %v6832_v30 = vld [vmem:[%s23086_s15 + $0x10] sm:$0xff] }
 0xe70   :  { %v6432_v32 = vpop.f32.mrf.mxu0  ;;  %v20874_v56 = vand.u32 4294901760, %v6832_v30 }
 0xe71   :  { %v6433_v37 = vadd.f32 %v6432_v32, %v6335_v31  ;;  %v6539_v45 = vadd.f32 %v18414_v51, %v6440_v29  ;;  %v6730_v6 = vpop.f32.mrf.mxu1  ;;  %v6831_v29 = vld [vmem:[%s23086_s15 + $0x8] sm:$0xff] }
 0xe73   :  { %v18403_v36 = vpop.f32.mrf.mxu0  ;;  %v6531_v49 = vadd.f32 %v6530_v8, %v6433_v37  ;;  %v6830_v37 = vld [vmem:[%s23086_s15] sm:$0xff] }
 0xe74   :  { %v6454_v43 = vadd.f32 %v18403_v36, %v6353_v38  ;;  %v18445_v55 = vpop.f32.mrf.mxu1  ;;  %v20887_v36 = vand.u32 4294901760, %v6831_v29 }
 0xe75   :  { %v6446_v41 = vpop.f32.mrf.mxu0 }
 0xe76   :  { %v6447_v20 = vadd.f32 %v6446_v41, %v6347_v44  ;;  %v6555_v17 = vadd.f32 %v18417_v13, %v6454_v43  ;;  %v6742_v1 = vpop.f32.mrf.mxu1  ;;  %v20900_v43 = vsub.f32 %v6831_v29, %v20887_v36  ;;  %v20902_v44 = vand.u32 4294901760, %v6830_v37 }
 0xe77   :  { %v18428_v12 = vpop.f32.mrf.mxu0 }
 0xe78   :  { %v6644_v40 = vadd.f32 %v18428_v12, %v6539_v45  ;;  %v6547_v5 = vadd.f32 %v6546_v28, %v6447_v20  ;;  %v6833_v28 = vld [vmem:[%s23086_s15 + $0x18] sm:$0xff]  ;;  %v20909_v12 = vand.u32 4294901760, %v20900_v43  ;;  %v20912_v20 = vsub.f32 %v6830_v37, %v20902_v44 }
 0xe79   :  { %v6637_v48 = vpop.f32.mrf.mxu0  ;;  %v20866_v16 = vand.u32 4294901760, %v6833_v28 }
 0xe7a   :  { %v6737_v26 = vadd.f32 %v18442_v35, %v6644_v40  ;;  %v6638_v50 = vadd.f32 %v6637_v48, %v6531_v49  ;;  %v20885_v35 = vsub.f32 %v6832_v30, %v20874_v56  ;;  %v7004_v49 = vsub.f32 %v20900_v43, %v20909_v12 }
 0xe7b   :  { %v18431_v54 = vpop.f32.mrf.mxu0  ;;  %v20872_v32 = vsub.f32 %v6833_v28, %v20866_v16  ;;  %18446 = vmatprep.subr.mxu0 %v20866_v16  ;;  %v20919_v48 = vand.u32 4294901760, %v20912_v20 }
 0xe7c   :  { %v6731_v63 = vadd.f32 %v6730_v6, %v6638_v50  ;;  %v6656_v62 = vadd.f32 %v18431_v54, %v6555_v17  ;;  %v6753_v58 = vadd.f32 %v6737_v26, %v20188_v60  ;;  %18447 = vmatpush3.msra.mxu0 %v20866_v16  ;;  %v20897_v41 = vand.u32 4294901760, %v20885_v35 }
 0xe7d   :  { %v6649_v10 = vpop.f32.mrf.mxu0  ;;  %v20882_v31 = vand.u32 4294901760, %v20872_v32  ;;  %18448 = vmatprep.subr.mxu0 %v20874_v56  ;;  %v7005_v26 = vand.u32 4294901760, %v7004_v49  ;;  %v7011_v50 = vsub.f32 %v20912_v20, %v20919_v48 }
 0xe7e   :  { %v6650_v21 = vadd.f32 %v6649_v10, %v6547_v5  ;;  %v6761_v22 = vsel %vm1123_vm3, %v6753_v58, 0.0  ;;  %v6752_v25 = vadd.f32 %v6731_v63, %v20172_v42  ;;  %v6749_v53 = vadd.f32 %v18445_v55, %v6656_v62  ;;  %18449 = vmatpush3.msra.mxu0 %v20874_v56 }
 0xe7f   :  { %6762 = vadd.xlane.f32.xlu1 %v6761_v22  ;;  %v6990_v38 = vsub.f32 %v20872_v32, %v20882_v31  ;;  %18450 = vmatprep.subr.mxu0 %v20887_v36  ;;  %v6997_v6 = vsub.f32 %v20885_v35, %v20897_v41  ;;  %v7012_v17 = vand.u32 4294901760, %v7011_v50 }
 0xe80   :  { %v6743_v57 = vadd.f32 %v6742_v1, %v6650_v21  ;;  %v6758_v0 = vsel %vm1123_vm3, %v6752_v25, 0.0  ;;  %v6755_v46 = vadd.f32 %v6749_v53, %v20196_v59  ;;  %18451 = vmatpush3.msra.mxu0 %v20887_v36 }
 0xe81   :  { %6759 = vadd.xlane.f32.xlu0 %v6758_v0  ;;  %v6991_v45 = vand.u32 4294901760, %v6990_v38  ;;  %18452 = vmatprep.subr.mxu0 %v20902_v44  ;;  %v6998_v40 = vand.u32 4294901760, %v6997_v6  ;;  %v16792_v0 = vld [vmem:[%s23087_s13] ss:$0 sm:$0xff] }
 0xe82   :  { %v6754_v2 = vadd.f32 %v6743_v57, %v20179_v47  ;;  %v6767_v60 = vsel %vm1123_vm3, %v6755_v46, 0.0  ;;  %18453 = vmatpush3.msra.mxu0 %v20902_v44 }
 0xe83   :  { %18460 = vmatprep.subr.mxu1 %v6991_v45  ;;  %18474 = vmatprep.subr.mxu0 %v20872_v32 }
 0xe84   :  { %v6764_v18 = vsel %vm1123_vm3, %v6754_v2, 0.0  ;;  %18461 = vmatpush3.msra.mxu1 %v6991_v45 }
 0xe85   :  { %6765 = vadd.xlane.f32.xlu0 %v6764_v18  ;;  %18462 = vmatprep.subr.mxu1 %v6998_v40 }
 0xe86   :  { %18463 = vmatpush3.msra.mxu1 %v6998_v40 }
 0xe87   :  { %18464 = vmatprep.subr.mxu1 %v7005_v26 }
 0xe88   :  { %18465 = vmatpush3.msra.mxu1 %v7005_v26 }
 0xe89   :  { %6768 = vadd.xlane.f32.xlu0 %v6767_v60  ;;  %18466 = vmatprep.subr.mxu1 %v7012_v17 }
 0xe8a   :  { %18467 = vmatpush3.msra.mxu1 %v7012_v17 }
 0xe8b   :  { %18488 = vmatprep.subr.mxu1 %v20866_v16 }
 0xf08   :  { %v6763_v4 = vpop.xlane.xlu1 %6762 }
 0xf09   :  { %v6771_v15 = vmul.f32 0.03125, %v6763_v4 }
 0xf0a   :  { %v6760_v42 = vpop.xlane.xlu0 %6759 }
 0xf0b   :  { %v20843_v34 = vsub.f32 %v6753_v58, %v6771_v15  ;;  %v6770_v39 = vmul.f32 0.03125, %v6760_v42 }
 0xf0d   :  { %v20845_v33 = vsub.f32 %v6752_v25, %v6770_v39  ;;  %v6779_v52 = vmul.f32 %v20843_v34, %v20843_v34 }
 0xf0e   :  { %v6766_v47 = vpop.xlane.xlu0 %6765 }
 0xf0f   :  { %v6772_v61 = vmul.f32 0.03125, %v6766_v47  ;;  %v6785_v51 = vsel %vm1123_vm3, %v6779_v52, 0.0  ;;  %v6778_v59 = vmul.f32 %v20845_v33, %v20845_v33 }
 0xf10   :  { %6786 = vadd.xlane.f32.xlu1 %v6785_v51 }
 0xf11   :  { %v20852_v19 = vsub.f32 %v6754_v2, %v6772_v61  ;;  %v6782_v8 = vsel %vm1123_vm3, %v6778_v59, 0.0 }
 0xf12   :  { %6783 = vadd.xlane.f32.xlu0 %v6782_v8  ;;  %v6769_v23 = vpop.xlane.xlu0 %6768 }
 0xf13   :  { %v6773_v24 = vmul.f32 0.03125, %v6769_v23  ;;  %v6780_v13 = vmul.f32 %v20852_v19, %v20852_v19 }
 0xf15   :  { %v20857_v11 = vsub.f32 %v6755_v46, %v6773_v24  ;;  %v6788_v3 = vsel %vm1123_vm3, %v6780_v13, 0.0  ;;  %v16793_v46 = vld [vmem:[%s23088_s14] ss:$0 sm:$0xff] }
 0xf16   :  { %6789 = vadd.xlane.f32.xlu0 %v6788_v3 }
 0xf17   :  { %v6781_v27 = vmul.f32 %v20857_v11, %v20857_v11 }
 0xf19   :  { %v6791_v7 = vsel %vm1123_vm3, %v6781_v27, 0.0 }
 0xf1a   :  { %6792 = vadd.xlane.f32.xlu1 %v6791_v7 }
 0xf99   :  { %v6787_v55 = vpop.xlane.xlu1 %6786 }
 0xf9a   :  { %v6795_v54 = vmul.f32 0.03125, %v6787_v55 }
 0xf9b   :  { %v6784_v63 = vpop.xlane.xlu0 %6783 }
 0xf9c   :  { %v6799_v62 = vadd.f32 1e-05, %v6795_v54  ;;  %v6794_v5 = vmul.f32 0.03125, %v6784_v63 }
 0xf9e   :  { %19753 = vrsqrt.f32 %v6799_v62  ;;  %v6798_v58 = vadd.f32 1e-05, %v6794_v5 }
 0xf9f   :  { %v6790_v10 = vpop.xlane.xlu0 %6789 }
 0xfa0   :  { %19755 = vrsqrt.f32 %v6798_v58  ;;  %v6796_v21 = vmul.f32 0.03125, %v6790_v10  ;;  %v7586_v10 = vld [vmem:[%s23089_s17 + $0x58] sm:$0xff] }
 0xfa2   :  { %v6800_v22 = vadd.f32 1e-05, %v6796_v21 }
 0xfa3   :  { %v6793_v25 = vpop.xlane.xlu1 %6792 }
 0xfa4   :  { %19757 = vrsqrt.f32 %v6800_v22  ;;  %v6797_v1 = vmul.f32 0.03125, %v6793_v25 }
 0xfa6   :  { %v6801_v53 = vadd.f32 1e-05, %v6797_v1 }
 0xfa8   :  { %19759 = vrsqrt.f32 %v6801_v53  ;;  %v21054_v53 = vand.u32 4294901760, %v7586_v10 }
 0xfab   :  { %v19754_v57 = vpop.eup %19753 }
 0xfac   :  { %v6807_v2 = vmul.f32 %v19754_v57, %v20843_v34  ;;  %v7585_v57 = vld [vmem:[%s23089_s17 + $0x50] sm:$0xff] }
 0xfad   :  { %v19756_v18 = vpop.eup %19755 }
 0xfae   :  { %v6806_v60 = vmul.f32 %v19756_v18, %v20845_v33  ;;  %v6817_v4 = vmul.f32 %v16792_v0, %v6807_v2 }
 0xfb0   :  { %v6816_v15 = vmul.f32 %v16792_v0, %v6806_v60  ;;  %v20933_v42 = vadd.f32 %v16793_v46, %v6817_v4  ;;  %v21068_v60 = vsub.f32 %v7586_v10, %v21054_v53  ;;  %v7584_v4 = vld [vmem:[%s23089_s17 + $0x48] sm:$0xff] }
 0xfb1   :  { %v19758_v39 = vpop.eup %19757 }
 0xfb2   :  { %23228 = vst [vmem:[#allocation5_spill] sm:$0xff] %v20933_v42  ;;  %v20935_v52 = vadd.f32 %v16793_v46, %v6816_v15  ;;  %v6845_v47 = vsel %vm1123_vm3, %v20933_v42, 0  ;;  %v6808_v61 = vmul.f32 %v19758_v39, %v20852_v19 }
 0xfb3   :  { %v20940_v34 = vand.u32 4294901760, %v6845_v47 }
 0xfb4   :  { %23229 = vst [vmem:[#allocation6_spill] sm:$0xff] %v20935_v52  ;;  %v6842_v51 = vsel %vm1123_vm3, %v20935_v52, 0  ;;  %v6818_v59 = vmul.f32 %v16792_v0, %v6808_v61  ;;  %v21079_v61 = vand.u32 4294901760, %v7584_v4 }
 0xfb5   :  { %v19760_v8 = vpop.eup %19759  ;;  %v20944_v33 = vand.u32 4294901760, %v6842_v51  ;;  %v6933_v23 = vsub.f32 %v6845_v47, %v20940_v34 }
 0xfb6   :  { %v20947_v24 = vadd.f32 %v16793_v46, %v6818_v59  ;;  %v6809_v13 = vmul.f32 %v19760_v8, %v20857_v11 }
 0xfb7   :  { %18468 = vmatprep.mubr.f32.mxu1 %v20944_v33  ;;  %v6923_v3 = vsub.f32 %v6842_v51, %v20944_v33  ;;  %v6934_v19 = vand.u32 4294901760, %v6933_v23  ;;  %v7583_v51 = vld [vmem:[%s23089_s17 + $0x40] sm:$0xff] }
 0xfb8   :  { %23230 = vst [vmem:[#allocation7_spill] sm:$0xff] %v20947_v24  ;;  %18469 = vmatmul.mubr.f32.vlgmr.msra.gmra.mxu1 %v20940_v34  ;;  %v6848_v27 = vsel %vm1123_vm3, %v20947_v24, 0  ;;  %v6819_v7 = vmul.f32 %v16792_v0, %v6809_v13 }
 0xfb9   :  { %v20955_v28 = vand.u32 4294901760, %v6848_v27  ;;  %18489 = vmatpush3.msra.mxu1 %v20866_v16  ;;  %v6924_v30 = vand.u32 4294901760, %v6923_v3  ;;  %v6935_v11 = vsub.f32 %v6933_v23, %v6934_v19 }
 0xfba   :  { %18490 = vmatprep.subr.mxu1 %v20874_v56  ;;  %v20959_v29 = vadd.f32 %v16793_v46, %v6819_v7  ;;  %v21065_v46 = vand.u32 4294901760, %v7585_v57 }
 0xfbb   :  { %18471 = vmatprep.mubr.f32.mxu1 %v20955_v28  ;;  %18491 = vmatpush3.msra.mxu1 %v20874_v56  ;;  %v6925_v37 = vsub.f32 %v6923_v3, %v6924_v30  ;;  %v6943_v38 = vsub.f32 %v6848_v27, %v20955_v28  ;;  %v6936_v26 = vand.u32 4294901760, %v6935_v11  ;;  %v7581_v11 = vld [vmem:[%s23089_s17 + $0x30] sm:$0xff] }
 0xfbc   :  { %23231 = vst [vmem:[#allocation8_spill] sm:$0xff] %v20959_v29  ;;  %v6851_v45 = vsel %vm1123_vm3, %v20959_v29, 0  ;;  %18492 = vmatprep.subr.mxu1 %v20887_v36  ;;  %v21077_v47 = vsub.f32 %v7585_v57, %v21065_v46 }
 0xfbd   :  { %v6926_v6 = vand.u32 4294901760, %v6925_v37  ;;  %v6952_v40 = vand.u32 4294901760, %v6851_v45  ;;  %18493 = vmatpush3.msra.mxu1 %v20887_v36  ;;  %v6944_v49 = vand.u32 4294901760, %v6943_v38 }
 0xfbe   :  { %18494 = vmatprep.subr.mxu1 %v20902_v44  ;;  %v21090_v8 = vand.u32 4294901760, %v21077_v47 }
 0xfbf   :  { %18454 = vmatprep.mubr.f32.mxu0 %v6926_v6  ;;  %18472 = vmatmul.mubr.f32.gmra.mxu1 %v6952_v40  ;;  %v6945_v50 = vsub.f32 %v6943_v38, %v6944_v49  ;;  %v6953_v17 = vsub.f32 %v6851_v45, %v6952_v40 }
 0xfc0   :  { %18455 = vmatmul.mubr.f32.vlgmr.msra.gmra.mxu0 %v6936_v26  ;;  %18496 = vmatprep.mubr.f32.mxu1 %v6924_v30  ;;  %23237 = vst [vmem:[#allocation14_spill] sm:$0xff] %v21090_v8 }
 0xfc1   :  { %18495 = vmatpush3.msra.mxu1 %v20902_v44  ;;  %v6946_v55 = vand.u32 4294901760, %v6945_v50  ;;  %18475 = vmatpush3.msra.mxu0 %v20872_v32  ;;  %v6954_v54 = vand.u32 4294901760, %v6953_v17 }
 0xfc2   :  { %18516 = vmatprep.subr.mxu1 %v20866_v16  ;;  %18476 = vmatprep.subr.mxu0 %v20885_v35 }
 0xfc3   :  { %18457 = vmatprep.mubr.f32.mxu0 %v6946_v55  ;;  %18497 = vmatmul.mubr.f32.vlgmr.msra.gmra.mxu1 %v6934_v19  ;;  %v6955_v63 = vsub.f32 %v6953_v17, %v6954_v54  ;;  %v7758_v19 = vsub.f32 %v21077_v47, %v21090_v8 }
 0xfc4   :  { %18499 = vmatprep.mubr.f32.mxu1 %v6944_v49  ;;  %18517 = vmatpush3.msra.mxu1 %v20866_v16  ;;  %v7590_v16 = vld [vmem:[%s23089_s17 + $0x78] sm:$0xff]  ;;  %v7580_v49 = vld [vmem:[%s23089_s17 + $0x28] sm:$0xff] }
 0xfc5   :  { %18518 = vmatprep.subr.mxu1 %v20874_v56  ;;  %18477 = vmatpush3.msra.mxu0 %v20885_v35  ;;  %v6956_v62 = vand.u32 4294901760, %v6955_v63  ;;  %v21002_v32 = vand.u32 4294901760, %v7590_v16  ;;  %v7759_v37 = vand.u32 4294901760, %v7758_v19  ;;  %v21139_v55 = vand.u32 4294901760, %v7580_v49  ;;  %v7579_v63 = vld [vmem:[%s23089_s17 + $0x20] sm:$0xff] }
 0xfc6   :  { %18519 = vmatpush3.msra.mxu1 %v20874_v56  ;;  %18478 = vmatprep.subr.mxu0 %v20900_v43  ;;  %v7589_v56 = vld [vmem:[%s23089_s17 + $0x70] sm:$0xff] }
 0xfc7   :  { %18458 = vmatmul.mubr.f32.gmra.mxu0 %v6956_v62  ;;  %18500 = vmatmul.mubr.f32.gmra.mxu1 %v6954_v54  ;;  %v21010_v35 = vand.u32 4294901760, %v7589_v56 }
 0xfc8   :  { %18520 = vmatprep.subr.mxu1 %v20887_v36  ;;  %18479 = vmatpush3.msra.mxu0 %v20900_v43 }
 0xfc9   :  { %18482 = vmatprep.mubr.f32.mxu0 %v6923_v3  ;;  %18521 = vmatpush3.msra.mxu1 %v20887_v36  ;;  %v7588_v36 = vld [vmem:[%s23089_s17 + $0x68] sm:$0xff]  ;;  %v21021_v43 = vsub.f32 %v7589_v56, %v21010_v35  ;;  %v7582_v3 = vld [vmem:[%s23089_s17 + $0x38] sm:$0xff]  ;;  %v21152_v56 = vsub.f32 %v7580_v49, %v21139_v55 }
 0xfca   :  { %18524 = vmatprep.mubr.f32.mxu1 %v20944_v33  ;;  %18480 = vmatprep.subr.mxu0 %v20912_v20 }
 0xfcb   :  { %18522 = vmatprep.subr.mxu1 %v20902_v44  ;;  %18481 = vmatpush3.msra.mxu0 %v20912_v20 }
 0xfcc   :  { %18523 = vmatpush3.msra.mxu1 %v20902_v44  ;;  %18483 = vmatmul.mubr.f32.vlgmr.msra.gmra.mxu0 %v6933_v23  ;;  %v21023_v44 = vand.u32 4294901760, %v7588_v36  ;;  %v21095_v23 = vand.u32 4294901760, %v7583_v51 }
 0xfcd   :  { %18502 = vmatprep.subr.mxu0 %v20882_v31  ;;  %18525 = vmatmul.mubr.f32.vlgmr.msra.gmra.mxu1 %v20940_v34 }
 0xfce   :  { %18485 = vmatprep.mubr.f32.mxu0 %v6943_v38  ;;  %18503 = vmatpush3.msra.mxu0 %v20882_v31  ;;  %v21008_v31 = vsub.f32 %v7590_v16, %v21002_v32  ;;  %v21036_v5 = vsub.f32 %v7588_v36, %v21023_v44  ;;  %v21110_v7 = vsub.f32 %v7583_v51, %v21095_v23  ;;  %v21154_v36 = vand.u32 4294901760, %v7579_v63 }
 0xfcf   :  { %18527 = vmatprep.mubr.f32.mxu1 %v20955_v28  ;;  %18504 = vmatprep.subr.mxu0 %v20897_v41 }
 0xfd0   :  { %18505 = vmatpush3.msra.mxu0 %v20897_v41  ;;  %v21018_v41 = vand.u32 4294901760, %v21008_v31  ;;  %v21048_v25 = vand.u32 4294901760, %v21036_v5  ;;  %v21122_v45 = vand.u32 4294901760, %v21110_v7 }
 0xfd1   :  { %18486 = vmatmul.mubr.f32.gmra.mxu0 %v6953_v17  ;;  %18506 = vmatprep.subr.mxu0 %v20909_v12 }
 0xfd2   :  { %18528 = vmatmul.mubr.f32.gmra.mxu1 %v6952_v40  ;;  %18507 = vmatpush3.msra.mxu0 %v20909_v12  ;;  %23232 = vst [vmem:[#allocation9_spill] sm:$0xff] %v21018_v41  ;;  %v7587_v12 = vld [vmem:[%s23089_s17 + $0x60] sm:$0xff]  ;;  %v7723_v20 = vsub.f32 %v21008_v31, %v21018_v41  ;;  %23234 = vst [vmem:[#allocation11_spill] sm:$0xff] %v21048_v25  ;;  %v7737_v2 = vsub.f32 %v21036_v5, %v21048_v25 }
 0xfd3   :  { %18510 = vmatprep.mubr.f32.mxu0 %v20944_v33  ;;  %18508 = vmatprep.subr.mxu0 %v20919_v48  ;;  %v21038_v58 = vand.u32 4294901760, %v7587_v12  ;;  %v21093_v33 = vsub.f32 %v7584_v4, %v21079_v61  ;;  %23239 = vst [vmem:[#allocation16_spill] sm:$0xff] %v21122_v45  ;;  %v7772_v50 = vsub.f32 %v21110_v7, %v21122_v45 }
 0xfd4   :  { %18509 = vmatpush3.msra.mxu0 %v20919_v48  ;;  %v21033_v48 = vand.u32 4294901760, %v21021_v43  ;;  %v7724_v21 = vand.u32 4294901760, %v7723_v20  ;;  %v7738_v15 = vand.u32 4294901760, %v7737_v2  ;;  %v7578_v20 = vld [vmem:[%s23089_s17 + $0x18] sm:$0xff]  ;;  %v7577_v2 = vld [vmem:[%s23089_s17 + $0x10] sm:$0xff] }
 0xfd5   :  { %18511 = vmatmul.mubr.f32.vlgmr.msra.gmra.mxu0 %v20940_v34  ;;  %18530 = vmatprep.subr.mxu0 %v21002_v32  ;;  %v21051_v1 = vsub.f32 %v7587_v12, %v21038_v58  ;;  %v21083_v34 = vand.u32 4294901760, %v21068_v60  ;;  %v21107_v27 = vand.u32 4294901760, %v21093_v33  ;;  %v7773_v62 = vand.u32 4294901760, %v7772_v50 }
 0xfd6   :  { %18513 = vmatprep.mubr.f32.mxu0 %v20955_v28  ;;  %18531 = vmatpush3.msra.mxu0 %v21002_v32  ;;  %23233 = vst [vmem:[#allocation10_spill] sm:$0xff] %v21033_v48  ;;  %v7730_v22 = vsub.f32 %v21021_v43, %v21033_v48  ;;  %v21112_v28 = vand.u32 4294901760, %v7582_v3  ;;  %v21170_v57 = vand.u32 4294901760, %v7578_v20  ;;  %v21187_v51 = vand.u32 4294901760, %v7577_v2 }
 0xfd7   :  { %18532 = vmatprep.subr.mxu0 %v21010_v35  ;;  %18568 = vmatprep.subr.mxu1 %v7724_v21  ;;  %v21063_v18 = vand.u32 4294901760, %v21051_v1  ;;  %23236 = vst [vmem:[#allocation13_spill] sm:$0xff] %v21083_v34  ;;  %v7751_v13 = vsub.f32 %v21068_v60, %v21083_v34  ;;  %23238 = vst [vmem:[#allocation15_spill] sm:$0xff] %v21107_v27  ;;  %v7765_v38 = vsub.f32 %v21093_v33, %v21107_v27 }
 0xfd8   :  { %18533 = vmatpush3.msra.mxu0 %v21010_v35  ;;  %v7731_v0 = vand.u32 4294901760, %v7730_v22  ;;  %18569 = vmatpush3.msra.mxu1 %v7724_v21  ;;  %v21125_v6 = vsub.f32 %v7582_v3, %v21112_v28  ;;  %v21165_v21 = vand.u32 4294901760, %v21152_v56  ;;  %v21168_v22 = vsub.f32 %v7579_v63, %v21154_v36 }
 0xfd9   :  { %18514 = vmatmul.mubr.f32.gmra.mxu0 %v6952_v40  ;;  %18534 = vmatprep.subr.mxu0 %v21023_v44  ;;  %23235 = vst [vmem:[#allocation12_spill] sm:$0xff] %v21063_v18  ;;  %v7744_v39 = vsub.f32 %v21051_v1, %v21063_v18  ;;  %v7752_v30 = vand.u32 4294901760, %v7751_v13  ;;  %v21128_v40 = vand.u32 4294901760, %v7581_v11  ;;  %v7766_v26 = vand.u32 4294901760, %v7765_v38  ;;  %v7576_v13 = vld [vmem:[%s23089_s17 + $0x8] sm:$0xff]  ;;  %v7575_v38 = vld [vmem:[%s23089_s17] sm:$0xff] }
 0xfda   :  { %18535 = vmatpush3.msra.mxu0 %v21023_v44  ;;  %18570 = vmatprep.subr.mxu1 %v7731_v0  ;;  %v21137_v17 = vand.u32 4294901760, %v21125_v6  ;;  %23242 = vst [vmem:[#allocation19_spill] sm:$0xff] %v21165_v21  ;;  %v7793_v4 = vsub.f32 %v21152_v56, %v21165_v21  ;;  %v21214_v63 = vand.u32 4294901760, %v7575_v38 }
 0xfdb   :  { %18536 = vmatprep.subr.mxu0 %v21038_v58  ;;  %18571 = vmatpush3.msra.mxu1 %v7731_v0  ;;  %v7745_v59 = vand.u32 4294901760, %v7744_v39  ;;  %v21143_v54 = vsub.f32 %v7581_v11, %v21128_v40  ;;  %v21185_v39 = vsub.f32 %v7578_v20, %v21170_v57  ;;  %v21200_v11 = vsub.f32 %v7577_v2, %v21187_v51 }
 0xfdc   :  { %18537 = vmatpush3.msra.mxu0 %v21038_v58  ;;  %18572 = vmatprep.subr.mxu1 %v7738_v15  ;;  %23240 = vst [vmem:[#allocation17_spill] sm:$0xff] %v21137_v17  ;;  %v7779_v16 = vsub.f32 %v21125_v6, %v21137_v17  ;;  %v7794_v3 = vand.u32 4294901760, %v7793_v4 }
 0xfdd   :  { %18538 = vmatprep.subr.mxu0 %v21054_v53  ;;  %18573 = vmatpush3.msra.mxu1 %v7738_v15  ;;  %v21158_v12 = vand.u32 4294901760, %v21143_v54  ;;  %v21182_v15 = vand.u32 4294901760, %v21168_v22  ;;  %23244 = vst [vmem:[#allocation21_spill] sm:$0xff] %v21185_v39  ;;  %23246 = vst [vmem:[#allocation23_spill] sm:$0xff] %v21200_v11  ;;  %v21212_v50 = vand.u32 4294901760, %v21200_v11 }
 0xfde   :  { %18539 = vmatpush3.msra.mxu0 %v21054_v53  ;;  %18574 = vmatprep.subr.mxu1 %v7745_v59  ;;  %v7780_v10 = vand.u32 4294901760, %v7779_v16 }
 0xfdf   :  { %18540 = vmatprep.subr.mxu0 %v21065_v46  ;;  %18575 = vmatpush3.msra.mxu1 %v7745_v59  ;;  %23241 = vst [vmem:[#allocation18_spill] sm:$0xff] %v21158_v12  ;;  %v7786_v0 = vsub.f32 %v21143_v54, %v21158_v12  ;;  %23243 = vst [vmem:[#allocation20_spill] sm:$0xff] %v21182_v15  ;;  %v7800_v19 = vsub.f32 %v21168_v22, %v21182_v15 }
 0xfe0   :  { %18541 = vmatpush3.msra.mxu0 %v21065_v46  ;;  %18576 = vmatprep.subr.mxu1 %v7752_v30  ;;  %23247 = vst [vmem:[#allocation24_spill] sm:$0xff] %v21212_v50  ;;  %v7814_v20 = vsub.f32 %v21200_v11, %v21212_v50 }
 0xfe1   :  { %18542 = vmatprep.subr.mxu0 %v21079_v61  ;;  %18577 = vmatpush3.msra.mxu1 %v7752_v30  ;;  %v7787_v59 = vand.u32 4294901760, %v7786_v0  ;;  %v21197_v30 = vand.u32 4294901760, %v21185_v39  ;;  %v7801_v49 = vand.u32 4294901760, %v7800_v19 }
 0xfe2   :  { %18543 = vmatpush3.msra.mxu0 %v21079_v61  ;;  %18578 = vmatprep.subr.mxu1 %v7759_v37  ;;  %v7815_v2 = vand.u32 4294901760, %v7814_v20 }
 0xfe3   :  { %18544 = vmatprep.subr.mxu0 %v21095_v23  ;;  %18579 = vmatpush3.msra.mxu1 %v7759_v37  ;;  %23245 = vst [vmem:[#allocation22_spill] sm:$0xff] %v21197_v30  ;;  %v21203_v37 = vand.u32 4294901760, %v7576_v13 }
 0xfe4   :  { %18545 = vmatpush3.msra.mxu0 %v21095_v23  ;;  %18580 = vmatprep.subr.mxu1 %v7766_v26 }
 0xfe5   :  { %18546 = vmatprep.subr.mxu0 %v21112_v28  ;;  %18581 = vmatpush3.msra.mxu1 %v7766_v26  ;;  %v7807_v26 = vsub.f32 %v21185_v39, %v21197_v30 }
 0xfe6   :  { %18547 = vmatpush3.msra.mxu0 %v21112_v28  ;;  %18582 = vmatprep.subr.mxu1 %v7773_v62 }
 0xfe7   :  { %18548 = vmatprep.subr.mxu0 %v21128_v40  ;;  %18583 = vmatpush3.msra.mxu1 %v7773_v62  ;;  %v21218_v62 = vsub.f32 %v7576_v13, %v21203_v37  ;;  %v7808_v16 = vand.u32 4294901760, %v7807_v26 }
 0xfe8   :  { %18549 = vmatpush3.msra.mxu0 %v21128_v40  ;;  %18584 = vmatprep.subr.mxu1 %v7780_v10 }
 0xfe9   :  { %18550 = vmatprep.subr.mxu0 %v21139_v55  ;;  %18585 = vmatpush3.msra.mxu1 %v7780_v10  ;;  %23248 = vst [vmem:[#allocation25_spill] sm:$0xff] %v21218_v62  ;;  %v21224_v10 = vsub.f32 %v7575_v38, %v21214_v63  ;;  %v21228_v0 = vand.u32 4294901760, %v21218_v62 }
 0xfea   :  { %18551 = vmatpush3.msra.mxu0 %v21139_v55  ;;  %18586 = vmatprep.subr.mxu1 %v7787_v59 }
 0xfeb   :  { %18552 = vmatprep.subr.mxu0 %v21154_v36  ;;  %18587 = vmatpush3.msra.mxu1 %v7787_v59  ;;  %23249 = vst [vmem:[#allocation26_spill] sm:$0xff] %v21224_v10  ;;  %23250 = vst [vmem:[#allocation27_spill] sm:$0xff] %v21228_v0  ;;  %v21232_v4 = vand.u32 4294901760, %v21224_v10  ;;  %v7821_v59 = vsub.f32 %v21218_v62, %v21228_v0 }
 0xfec   :  { %18553 = vmatpush3.msra.mxu0 %v21154_v36  ;;  %18588 = vmatprep.subr.mxu1 %v7794_v3 }
 0xfed   :  { %18554 = vmatprep.subr.mxu0 %v21170_v57  ;;  %18589 = vmatpush3.msra.mxu1 %v7794_v3  ;;  %23251 = vst [vmem:[#allocation28_spill] sm:$0xff] %v21232_v4  ;;  %v7828_v13 = vsub.f32 %v21224_v10, %v21232_v4  ;;  %v7822_v3 = vand.u32 4294901760, %v7821_v59  ;;  %v16794_v59 = vld [vmem:[%s23090_s16] ss:$0 sm:$0xff] }
 0xfee   :  { %18555 = vmatpush3.msra.mxu0 %v21170_v57  ;;  %18590 = vmatprep.subr.mxu1 %v7801_v49 }
 0xfef   :  { %18556 = vmatprep.subr.mxu0 %v21187_v51  ;;  %18591 = vmatpush3.msra.mxu1 %v7801_v49  ;;  %v7829_v19 = vand.u32 4294901760, %v7828_v13 }
 0xff0   :  { %18557 = vmatpush3.msra.mxu0 %v21187_v51  ;;  %18592 = vmatprep.subr.mxu1 %v7808_v16 }
 0xff1   :  { %18558 = vmatprep.subr.mxu0 %v21203_v37  ;;  %18593 = vmatpush3.msra.mxu1 %v7808_v16 }
 0xff2   :  { %18559 = vmatpush3.msra.mxu0 %v21203_v37  ;;  %18594 = vmatprep.subr.mxu1 %v7815_v2 }
 0xff3   :  { %18560 = vmatprep.subr.mxu0 %v21214_v63  ;;  %18595 = vmatpush3.msra.mxu1 %v7815_v2 }
 0xff4   :  { %18561 = vmatpush3.msra.mxu0 %v21214_v63  ;;  %18596 = vmatprep.subr.mxu1 %v7822_v3 }
 0xff5   :  { %18606 = vmatprep.subr.mxu0 %v21008_v31  ;;  %18597 = vmatpush3.msra.mxu1 %v7822_v3 }
 0xff6   :  { %18598 = vmatprep.subr.mxu1 %v7829_v19 }
 0xff7   :  { %18599 = vmatpush3.msra.mxu1 %v7829_v19 }
 0xff8   :  { %18644 = vmatprep.subr.mxu1 %v21002_v32 }
0x1078   :  { %v18470_v38 = vpop.f32.mrf.mxu1 }
0x107a   :  { %v7049_v49 = vpop.f32.mrf.mxu1 }
0x107f   :  { %v18473_v26 = vpop.f32.mrf.mxu1 }
0x1080   :  { %v18456_v20 = vpop.f32.mrf.mxu0 }
0x1081   :  { %v7061_v14 = vpop.f32.mrf.mxu1  ;;  %v6939_v29 = vadd.f32 %v18456_v20, %v16794_v59 }
0x1082   :  { %v6928_v16 = vpop.f32.mrf.mxu0 }
0x1083   :  { %v18498_v9 = vpop.f32.mrf.mxu1  ;;  %v6929_v52 = vadd.f32 %v16794_v59, %v6928_v16  ;;  %v7056_v0 = vadd.f32 %v18470_v38, %v6939_v29 }
0x1085   :  { %v7245_v24 = vpop.f32.mrf.mxu1  ;;  %v7050_v15 = vadd.f32 %v7049_v49, %v6929_v52 }
0x1087   :  { %v18459_v2 = vpop.f32.mrf.mxu0  ;;  %v18501_v3 = vpop.f32.mrf.mxu1 }
0x1088   :  { %v6959_v42 = vadd.f32 %v18459_v2, %v16794_v59 }
0x1089   :  { %v6948_v13 = vpop.f32.mrf.mxu0  ;;  %v7261_v4 = vpop.f32.mrf.mxu1 }
0x108a   :  { %v6949_v21 = vadd.f32 %v16794_v59, %v6948_v13  ;;  %v7068_v27 = vadd.f32 %v18473_v26, %v6959_v42 }
0x108c   :  { %v18484_v19 = vpop.f32.mrf.mxu0  ;;  %v7062_v25 = vadd.f32 %v7061_v14, %v6949_v21 }
0x108d   :  { %v7155_v30 = vadd.f32 %v18484_v19, %v7056_v0  ;;  %v18526_v17 = vpop.f32.mrf.mxu1 }
0x108e   :  { %v7147_v50 = vpop.f32.mrf.mxu0 }
0x108f   :  { %v7148_v45 = vadd.f32 %v7147_v50, %v7050_v15  ;;  %v7254_v18 = vadd.f32 %v18498_v9, %v7155_v30  ;;  %v7445_v20 = vpop.f32.mrf.mxu1 }
0x1091   :  { %v18487_v12 = vpop.f32.mrf.mxu0  ;;  %v7246_v16 = vadd.f32 %v7245_v24, %v7148_v45 }
0x1092   :  { %v7169_v34 = vadd.f32 %v18487_v12, %v7068_v27  ;;  %v18529_v38 = vpop.f32.mrf.mxu1 }
0x1093   :  { %v7161_v8 = vpop.f32.mrf.mxu0 }
0x1094   :  { %v7162_v10 = vadd.f32 %v7161_v8, %v7062_v25  ;;  %v7270_v0 = vadd.f32 %v18501_v3, %v7169_v34  ;;  %v7457_v25 = vpop.f32.mrf.mxu1 }
0x1095   :  { %v18512_v48 = vpop.f32.mrf.mxu0 }
0x1096   :  { %v7359_v41 = vadd.f32 %v18512_v48, %v7254_v18  ;;  %v7262_v9 = vadd.f32 %v7261_v4, %v7162_v10 }
0x1097   :  { %v7352_v2 = vpop.f32.mrf.mxu0 }
0x1098   :  { %v21244_v62 = vadd.f32 %v18526_v17, %v7359_v41  ;;  %v7353_v29 = vadd.f32 %v7352_v2, %v7246_v16 }
0x1099   :  { %v18515_v52 = vpop.f32.mrf.mxu0 }
0x109a   :  { %v21247_v49 = vmul.f32 0.70710677, %v21244_v62  ;;  %v21249_v42 = vadd.f32 %v7445_v20, %v7353_v29  ;;  %v7371_v27 = vadd.f32 %v18515_v52, %v7270_v0 }
0x109b   :  { %v7364_v14 = vpop.f32.mrf.mxu0 }
0x109c   :  { %v7484_v12 = vand.u32 2147483647, %v21247_v49  ;;  %v21253_v24 = vmul.f32 0.70710677, %v21249_v42  ;;  %v21255_v48 = vadd.f32 %v18529_v38, %v7371_v27  ;;  %v7365_v41 = vadd.f32 %v7364_v14, %v7262_v9 }
0x109d   :  { %vm7476_vm9 = vcmp.ge.f32.partialorder %v21247_v49, 0.0  ;;  %v7468_v49 = vmul.f32 0.5, %v21244_v62 }
0x109e   :  { %v7488_v18 = vmul.f32 0.3275911, %v7484_v12  ;;  %v7483_v34 = vand.u32 2147483647, %v21253_v24  ;;  %v21259_v8 = vmul.f32 0.70710677, %v21255_v48  ;;  %v21261_v45 = vadd.f32 %v7457_v25, %v7365_v41 }
0x109f   :  { %v7540_v13 = vsub.f32 0.0, %v7484_v12  ;;  %vm7475_vm10 = vcmp.ge.f32.partialorder %v21253_v24, 0.0 }
0x10a0   :  { %v7492_v17 = vadd.f32 1.0, %v7488_v18  ;;  %v7487_v21 = vmul.f32 0.3275911, %v7483_v34  ;;  %v7486_v15 = vand.u32 2147483647, %v21259_v8  ;;  %v7539_v19 = vsub.f32 0.0, %v7483_v34 }
0x10a1   :  { %v21265_v30 = vmul.f32 0.70710677, %v21261_v45  ;;  %v7544_v20 = vmul.f32 %v7540_v13, %v7484_v12  ;;  %vm7478_vm11 = vcmp.ge.f32.partialorder %v21259_v8, 0.0 }
0x10a2   :  { %19761 = vrcp.f32 %v7492_v17  ;;  %v7491_v50 = vadd.f32 1.0, %v7487_v21  ;;  %v7490_v10 = vmul.f32 0.3275911, %v7486_v15  ;;  %v7542_v16 = vsub.f32 0.0, %v7486_v15 }
0x10a3   :  { %v7485_v4 = vand.u32 2147483647, %v21265_v30  ;;  %v7543_v29 = vmul.f32 %v7539_v19, %v7483_v34  ;;  %v7549_v52 = vmul.f32 1.442695, %v7544_v20  ;;  %vm7477_vm12 = vcmp.ge.f32.partialorder %v21265_v30, 0.0 }
0x10a4   :  { %19763 = vrcp.f32 %v7491_v50  ;;  %v7494_v26 = vadd.f32 1.0, %v7490_v10  ;;  %v7546_v27 = vmul.f32 %v7542_v16, %v7486_v15 }
0x10a5   :  { %v7489_v59 = vmul.f32 0.3275911, %v7485_v4  ;;  %v7541_v38 = vsub.f32 0.0, %v7485_v4  ;;  %v7547_v25 = vmul.f32 1.442695, %v7543_v29 }
0x10a6   :  { %19765 = vrcp.f32 %v7494_v26  ;;  %v7553_v26 = vmul.f32 1.442695, %v7546_v27 }
0x10a7   :  { %v7493_v3 = vadd.f32 1.0, %v7489_v59  ;;  %v7545_v21 = vmul.f32 %v7541_v38, %v7485_v4 }
0x10a9   :  { %19767 = vrcp.f32 %v7493_v3  ;;  %v7551_v20 = vmul.f32 1.442695, %v7545_v21 }
0x10aa   :  { %19769 = vpow2.f32 %v7549_v52 }
0x10ab   :  { %19771 = vpow2.f32 %v7547_v25 }
0x10ac   :  { %19773 = vpow2.f32 %v7553_v26 }
0x10ad   :  { %19775 = vpow2.f32 %v7551_v20 }
0x10af   :  { %v19762_v2 = vpop.eup %19761 }
0x10b0   :  { %v7504_v0 = vmul.f32 1.0614054, %v19762_v2 }
0x10b1   :  { %v19764_v9 = vpop.eup %19763 }
0x10b2   :  { %v7508_v14 = vadd.f32 -1.4531521, %v7504_v0  ;;  %v7503_v41 = vmul.f32 1.0614054, %v19764_v9 }
0x10b3   :  { %v19766_v18 = vpop.eup %19765 }
0x10b4   :  { %v7512_v17 = vmul.f32 %v19762_v2, %v7508_v14  ;;  %v7507_v50 = vadd.f32 -1.4531521, %v7503_v41  ;;  %v7506_v10 = vmul.f32 1.0614054, %v19766_v18 }
0x10b6   :  { %v7516_v59 = vadd.f32 1.4214138, %v7512_v17  ;;  %v19768_v12 = vpop.eup %19767  ;;  %v7511_v13 = vmul.f32 %v19764_v9, %v7507_v50  ;;  %v7510_v34 = vadd.f32 -1.4531521, %v7506_v10 }
0x10b7   :  { %v7505_v19 = vmul.f32 1.0614054, %v19768_v12  ;;  %v19770_v39 = vpop.eup %19769 }
0x10b8   :  { %v7520_v3 = vmul.f32 %v19762_v2, %v7516_v59  ;;  %v7515_v15 = vadd.f32 1.4214138, %v7511_v13  ;;  %v7514_v16 = vmul.f32 %v19766_v18, %v7510_v34 }
0x10b9   :  { %v7509_v29 = vadd.f32 -1.4531521, %v7505_v19 }
0x10ba   :  { %v7524_v0 = vadd.f32 -0.28449672, %v7520_v3  ;;  %v7519_v11 = vmul.f32 %v19764_v9, %v7515_v15  ;;  %v7518_v14 = vadd.f32 1.4214138, %v7514_v16  ;;  %v19772_v15 = vpop.eup %19771 }
0x10bb   :  { %v7513_v4 = vmul.f32 %v19768_v12, %v7509_v29 }
0x10bc   :  { %v7528_v52 = vmul.f32 %v19762_v2, %v7524_v0  ;;  %v7523_v38 = vadd.f32 -0.28449672, %v7519_v11  ;;  %v7522_v27 = vmul.f32 %v19766_v18, %v7518_v14  ;;  %v23154_v11 = vmov -1.0   ;;  %v19774_v14 = vpop.eup %19773 }
0x10bd   :  { %v7517_v17 = vadd.f32 1.4214138, %v7513_v4  ;;  %v7480_v0 = vsel %vm7476_vm9, 1.0, %v23154_v11  ;;  %v7482_v24 = vsel %vm7478_vm11, 1.0, %v23154_v11 }
0x10be   :  { %v7532_v41 = vadd.f32 0.2548296, %v7528_v52  ;;  %v7527_v50 = vmul.f32 %v19764_v9, %v7523_v38  ;;  %v7526_v25 = vadd.f32 -0.28449672, %v7522_v27  ;;  %v7479_v27 = vsel %vm7475_vm10, 1.0, %v23154_v11 }
0x10bf   :  { %v7521_v59 = vmul.f32 %v19768_v12, %v7517_v17  ;;  %v19776_v17 = vpop.eup %19775 }
0x10c0   :  { %v7536_v10 = vmul.f32 %v19762_v2, %v7532_v41  ;;  %v7531_v21 = vadd.f32 0.2548296, %v7527_v50  ;;  %v7530_v13 = vmul.f32 %v19766_v18, %v7526_v25 }
0x10c1   :  { %v7525_v34 = vadd.f32 -0.28449672, %v7521_v59  ;;  %v7467_v59 = vmul.f32 0.5, %v21249_v42 }
0x10c2   :  { %v7556_v26 = vmul.f32 %v19770_v39, %v7536_v10  ;;  %v7535_v3 = vmul.f32 %v19764_v9, %v7531_v21  ;;  %v7534_v19 = vadd.f32 0.2548296, %v7530_v13 }
0x10c3   :  { %v7529_v20 = vmul.f32 %v19768_v12, %v7525_v34  ;;  %v7470_v34 = vmul.f32 0.5, %v21255_v48 }
0x10c4   :  { %v7560_v16 = vsub.f32 1.0, %v7556_v26  ;;  %v7555_v29 = vmul.f32 %v19772_v15, %v7535_v3  ;;  %v7538_v2 = vmul.f32 %v19766_v18, %v7534_v19  ;;  %v7481_v3 = vsel %vm7477_vm12, 1.0, %v23154_v11 }
0x10c5   :  { %v7533_v4 = vadd.f32 0.2548296, %v7529_v20  ;;  %v7469_v20 = vmul.f32 0.5, %v21261_v45 }
0x10c6   :  { %v7564_v52 = vmul.f32 %v7560_v16, %v7480_v0  ;;  %v7559_v38 = vsub.f32 1.0, %v7555_v29  ;;  %v7558_v39 = vmul.f32 %v19774_v14, %v7538_v2 }
0x10c7   :  { %v7537_v41 = vmul.f32 %v19768_v12, %v7533_v4 }
0x10c8   :  { %v7568_v9 = vadd.f32 1.0, %v7564_v52  ;;  %v7563_v50 = vmul.f32 %v7559_v38, %v7479_v27  ;;  %v7562_v25 = vsub.f32 1.0, %v7558_v39 }
0x10c9   :  { %v7557_v18 = vmul.f32 %v19776_v17, %v7537_v41 }
0x10ca   :  { %v7572_v10 = vmul.f32 %v7568_v9, %v7468_v49  ;;  %v7567_v21 = vadd.f32 1.0, %v7563_v50  ;;  %v7566_v8 = vmul.f32 %v7562_v25, %v7482_v24 }
0x10cb   :  { %v7561_v62 = vsub.f32 1.0, %v7557_v18  ;;  %v16795_v18 = vld [vmem:[%s23091_s18] ss:$0 sm:$0xff] }
0x10cc   :  { %v21277_v13 = vand.u32 4294901760, %v7572_v10  ;;  %v7571_v26 = vmul.f32 %v7567_v21, %v7467_v59  ;;  %v7570_v12 = vadd.f32 1.0, %v7566_v8 }
0x10cd   :  { %v7565_v15 = vmul.f32 %v7561_v62, %v7481_v3 }
0x10ce   :  { %v21282_v19 = vsub.f32 %v7572_v10, %v21277_v13  ;;  %v7574_v16 = vmul.f32 %v7570_v12, %v7470_v34  ;;  %v21284_v30 = vand.u32 4294901760, %v7571_v26 }
0x10cf   :  { %v7569_v0 = vadd.f32 1.0, %v7565_v15 }
0x10d0   :  { %v7691_v42 = vand.u32 4294901760, %v21282_v19  ;;  %18600 = vmatprep.mubr.f32.mxu1 %v21284_v30  ;;  %v21289_v29 = vand.u32 4294901760, %v7574_v16  ;;  %v7680_v48 = vsub.f32 %v7571_v26, %v21284_v30 }
0x10d1   :  { %v7573_v2 = vmul.f32 %v7569_v0, %v7469_v20  ;;  %18601 = vmatmul.mubr.f32.vlgmr.msra.gmra.mxu1 %v21277_v13 }
0x10d2   :  { %18645 = vmatpush3.msra.mxu1 %v21002_v32  ;;  %v7681_v14 = vand.u32 4294901760, %v7680_v48  ;;  %v21295_v52 = vsub.f32 %v7574_v16, %v21289_v29  ;;  %v7692_v45 = vsub.f32 %v21282_v19, %v7691_v42 }
0x10d3   :  { %18646 = vmatprep.subr.mxu1 %v21010_v35  ;;  %v21298_v4 = vand.u32 4294901760, %v7573_v2 }
0x10d4   :  { %18647 = vmatpush3.msra.mxu1 %v21010_v35  ;;  %v7682_v38 = vsub.f32 %v7680_v48, %v7681_v14  ;;  %v7711_v49 = vand.u32 4294901760, %v21295_v52  ;;  %v7693_v27 = vand.u32 4294901760, %v7692_v45 }
0x10d5   :  { %18603 = vmatprep.mubr.f32.mxu1 %v21298_v4  ;;  %18648 = vmatprep.subr.mxu1 %v21023_v44  ;;  %v21307_v39 = vsub.f32 %v7573_v2, %v21298_v4 }
0x10d6   :  { %18604 = vmatmul.mubr.f32.gmra.mxu1 %v21289_v29  ;;  %v7683_v9 = vand.u32 4294901760, %v7682_v38  ;;  %v7712_v50 = vsub.f32 %v21295_v52, %v7711_v49 }
0x10d7   :  { %18649 = vmatpush3.msra.mxu1 %v21023_v44  ;;  %18676 = vmatprep.mubr.f32.mxu1 %v7681_v14  ;;  %v7701_v41 = vand.u32 4294901760, %v21307_v39 }
0x10d8   :  { %18650 = vmatprep.subr.mxu1 %v21038_v58  ;;  %18562 = vmatprep.mubr.f32.mxu0 %v7683_v9  ;;  %v7713_v10 = vand.u32 4294901760, %v7712_v50 }
0x10d9   :  { %18651 = vmatpush3.msra.mxu1 %v21038_v58  ;;  %18563 = vmatmul.mubr.f32.vlgmr.msra.gmra.mxu0 %v7693_v27  ;;  %v7702_v17 = vsub.f32 %v21307_v39, %v7701_v41 }
0x10da   :  { %18652 = vmatprep.subr.mxu1 %v21054_v53  ;;  %18607 = vmatpush3.msra.mxu0 %v21008_v31  ;;  %v23252_v31 = vld [vmem:[#allocation21_spill] sm:$0xff] }
0x10db   :  { %18653 = vmatpush3.msra.mxu1 %v21054_v53  ;;  %18608 = vmatprep.subr.mxu0 %v21021_v43  ;;  %v7703_v25 = vand.u32 4294901760, %v7702_v17 }
0x10dc   :  { %18654 = vmatprep.subr.mxu1 %v21065_v46  ;;  %18609 = vmatpush3.msra.mxu0 %v21021_v43  ;;  %v23253_v43 = vld [vmem:[#allocation23_spill] sm:$0xff] }
0x10dd   :  { %18655 = vmatpush3.msra.mxu1 %v21065_v46  ;;  %18565 = vmatprep.mubr.f32.mxu0 %v7703_v25 }
0x10de   :  { %18610 = vmatprep.subr.mxu0 %v21036_v5  ;;  %18656 = vmatprep.subr.mxu1 %v21079_v61 }
0x10df   :  { %18566 = vmatmul.mubr.f32.gmra.mxu0 %v7713_v10  ;;  %18657 = vmatpush3.msra.mxu1 %v21079_v61 }
0x10e0   :  { %18611 = vmatpush3.msra.mxu0 %v21036_v5  ;;  %18638 = vmatprep.mubr.f32.mxu0 %v7680_v48  ;;  %v23254_v5 = vld [vmem:[#allocation25_spill] sm:$0xff] }
0x10e1   :  { %18612 = vmatprep.subr.mxu0 %v21051_v1  ;;  %18658 = vmatprep.subr.mxu1 %v21095_v23 }
0x10e2   :  { %18613 = vmatpush3.msra.mxu0 %v21051_v1  ;;  %18659 = vmatpush3.msra.mxu1 %v21095_v23  ;;  %v23259_v1 = vld [vmem:[#allocation12_spill] sm:$0xff] }
0x10e3   :  { %18614 = vmatprep.subr.mxu0 %v21068_v60  ;;  %18660 = vmatprep.subr.mxu1 %v21112_v28 }
0x10e4   :  { %18615 = vmatpush3.msra.mxu0 %v21068_v60  ;;  %18661 = vmatpush3.msra.mxu1 %v21112_v28  ;;  %v23262_v60 = vld [vmem:[#allocation15_spill] sm:$0xff] }
0x10e5   :  { %18616 = vmatprep.subr.mxu0 %v21077_v47  ;;  %18662 = vmatprep.subr.mxu1 %v21128_v40 }
0x10e6   :  { %18617 = vmatpush3.msra.mxu0 %v21077_v47  ;;  %18663 = vmatpush3.msra.mxu1 %v21128_v40  ;;  %v23263_v47 = vld [vmem:[#allocation16_spill] sm:$0xff] }
0x10e7   :  { %18618 = vmatprep.subr.mxu0 %v21093_v33  ;;  %18664 = vmatprep.subr.mxu1 %v21139_v55 }
0x10e8   :  { %18619 = vmatpush3.msra.mxu0 %v21093_v33  ;;  %18665 = vmatpush3.msra.mxu1 %v21139_v55  ;;  %v23265_v33 = vld [vmem:[#allocation18_spill] sm:$0xff] }
0x10e9   :  { %18620 = vmatprep.subr.mxu0 %v21110_v7  ;;  %18666 = vmatprep.subr.mxu1 %v21154_v36 }
0x10ea   :  { %18621 = vmatpush3.msra.mxu0 %v21110_v7  ;;  %18667 = vmatpush3.msra.mxu1 %v21154_v36  ;;  %v23267_v7 = vld [vmem:[#allocation20_spill] sm:$0xff] }
0x10eb   :  { %18622 = vmatprep.subr.mxu0 %v21125_v6  ;;  %18668 = vmatprep.subr.mxu1 %v21170_v57 }
0x10ec   :  { %18623 = vmatpush3.msra.mxu0 %v21125_v6  ;;  %18669 = vmatpush3.msra.mxu1 %v21170_v57  ;;  %v23269_v6 = vld [vmem:[#allocation24_spill] sm:$0xff] }
0x10ed   :  { %18624 = vmatprep.subr.mxu0 %v21143_v54  ;;  %18670 = vmatprep.subr.mxu1 %v21187_v51 }
0x10ee   :  { %18625 = vmatpush3.msra.mxu0 %v21143_v54  ;;  %18671 = vmatpush3.msra.mxu1 %v21187_v51 }
0x10ef   :  { %18626 = vmatprep.subr.mxu0 %v21152_v56  ;;  %18672 = vmatprep.subr.mxu1 %v21203_v37 }
0x10f0   :  { %18627 = vmatpush3.msra.mxu0 %v21152_v56  ;;  %18673 = vmatpush3.msra.mxu1 %v21203_v37 }
0x10f1   :  { %18628 = vmatprep.subr.mxu0 %v21168_v22  ;;  %18674 = vmatprep.subr.mxu1 %v21214_v63 }
0x10f2   :  { %18629 = vmatpush3.msra.mxu0 %v21168_v22  ;;  %18675 = vmatpush3.msra.mxu1 %v21214_v63 }
0x10f3   :  { %18630 = vmatprep.subr.mxu0 %v23252_v31  ;;  %18677 = vmatmul.mubr.f32.vlgmr.msra.gmra.mxu1 %v7691_v42 }
0x10f4   :  { %18720 = vmatprep.subr.mxu1 %v21002_v32  ;;  %18631 = vmatpush3.msra.mxu0 %v23252_v31 }
0x10f5   :  { %18679 = vmatprep.mubr.f32.mxu1 %v7701_v41  ;;  %18721 = vmatpush3.msra.mxu1 %v21002_v32  ;;  %v23255_v32 = vld [vmem:[#allocation26_spill] sm:$0xff] }
0x10f6   :  { %18632 = vmatprep.subr.mxu0 %v23253_v43  ;;  %18722 = vmatprep.subr.mxu1 %v21010_v35 }
0x10f7   :  { %18633 = vmatpush3.msra.mxu0 %v23253_v43  ;;  %18723 = vmatpush3.msra.mxu1 %v21010_v35  ;;  %v23256_v35 = vld [vmem:[#allocation9_spill] sm:$0xff] }
0x10f8   :  { %18634 = vmatprep.subr.mxu0 %v23254_v5  ;;  %18680 = vmatmul.mubr.f32.gmra.mxu1 %v7711_v49  ;;  %v23272_v43 = vld [vmem:[#allocation5_spill] sm:$0xff] }
0x10f9   :  { %18724 = vmatprep.subr.mxu1 %v21023_v44  ;;  %18635 = vmatpush3.msra.mxu0 %v23254_v5 }
0x10fa   :  { %18725 = vmatpush3.msra.mxu1 %v21023_v44  ;;  %18752 = vmatprep.mubr.f32.mxu1 %v21284_v30  ;;  %v23257_v44 = vld [vmem:[#allocation10_spill] sm:$0xff] }
0x10fb   :  { %18636 = vmatprep.subr.mxu0 %v23255_v32  ;;  %18726 = vmatprep.subr.mxu1 %v21038_v58 }
0x10fc   :  { %18637 = vmatpush3.msra.mxu0 %v23255_v32  ;;  %18727 = vmatpush3.msra.mxu1 %v21038_v58  ;;  %v23258_v58 = vld [vmem:[#allocation11_spill] sm:$0xff] }
0x10fd   :  { %18639 = vmatmul.mubr.f32.vlgmr.msra.gmra.mxu0 %v21282_v19  ;;  %18682 = vmatprep.subr.mxu0 %v23256_v35 }
0x10fe   :  { %18728 = vmatprep.subr.mxu1 %v21054_v53  ;;  %18641 = vmatprep.mubr.f32.mxu0 %v21307_v39 }
0x10ff   :  { %18683 = vmatpush3.msra.mxu0 %v23256_v35  ;;  %18729 = vmatpush3.msra.mxu1 %v21054_v53  ;;  %v23260_v53 = vld [vmem:[#allocation13_spill] sm:$0xff] }
0x1100   :  { %18684 = vmatprep.subr.mxu0 %v23257_v44  ;;  %18730 = vmatprep.subr.mxu1 %v21065_v46 }
0x1101   :  { %18685 = vmatpush3.msra.mxu0 %v23257_v44  ;;  %18731 = vmatpush3.msra.mxu1 %v21065_v46  ;;  %v23261_v46 = vld [vmem:[#allocation14_spill] sm:$0xff] }
0x1102   :  { %18642 = vmatmul.mubr.f32.gmra.mxu0 %v21295_v52  ;;  %18686 = vmatprep.subr.mxu0 %v23258_v58 }
0x1103   :  { %18732 = vmatprep.subr.mxu1 %v21079_v61  ;;  %18687 = vmatpush3.msra.mxu0 %v23258_v58 }
0x1104   :  { %18714 = vmatprep.mubr.f32.mxu0 %v21284_v30  ;;  %18733 = vmatpush3.msra.mxu1 %v21079_v61  ;;  %v23264_v61 = vld [vmem:[#allocation17_spill] sm:$0xff] }
0x1105   :  { %18688 = vmatprep.subr.mxu0 %v23259_v1  ;;  %18734 = vmatprep.subr.mxu1 %v21095_v23 }
0x1106   :  { %18689 = vmatpush3.msra.mxu0 %v23259_v1  ;;  %18735 = vmatpush3.msra.mxu1 %v21095_v23  ;;  %v23266_v23 = vld [vmem:[#allocation19_spill] sm:$0xff]  ;;  %v23273_v1 = vld [vmem:[#allocation6_spill] sm:$0xff] }
0x1107   :  { %18690 = vmatprep.subr.mxu0 %v23260_v53  ;;  %18736 = vmatprep.subr.mxu1 %v21112_v28 }
0x1108   :  { %18691 = vmatpush3.msra.mxu0 %v23260_v53  ;;  %18737 = vmatpush3.msra.mxu1 %v21112_v28  ;;  %v23268_v28 = vld [vmem:[#allocation22_spill] sm:$0xff] }
0x1109   :  { %18692 = vmatprep.subr.mxu0 %v23261_v46  ;;  %18738 = vmatprep.subr.mxu1 %v21128_v40 }
0x110a   :  { %18693 = vmatpush3.msra.mxu0 %v23261_v46  ;;  %18739 = vmatpush3.msra.mxu1 %v21128_v40  ;;  %v23270_v40 = vld [vmem:[#allocation27_spill] sm:$0xff] }
0x110b   :  { %18694 = vmatprep.subr.mxu0 %v23262_v60  ;;  %18740 = vmatprep.subr.mxu1 %v21139_v55 }
0x110c   :  { %18695 = vmatpush3.msra.mxu0 %v23262_v60  ;;  %18741 = vmatpush3.msra.mxu1 %v21139_v55  ;;  %v23271_v55 = vld [vmem:[#allocation28_spill] sm:$0xff] }
0x110d   :  { %18696 = vmatprep.subr.mxu0 %v23263_v47  ;;  %18742 = vmatprep.subr.mxu1 %v21154_v36 }
0x110e   :  { %18697 = vmatpush3.msra.mxu0 %v23263_v47  ;;  %18743 = vmatpush3.msra.mxu1 %v21154_v36 }
0x110f   :  { %18698 = vmatprep.subr.mxu0 %v23264_v61  ;;  %18744 = vmatprep.subr.mxu1 %v21170_v57 }
0x1110   :  { %18699 = vmatpush3.msra.mxu0 %v23264_v61  ;;  %18745 = vmatpush3.msra.mxu1 %v21170_v57  ;;  %v23274_v61 = vld [vmem:[#allocation8_spill] sm:$0xff] }
0x1111   :  { %18700 = vmatprep.subr.mxu0 %v23265_v33  ;;  %18746 = vmatprep.subr.mxu1 %v21187_v51 }
0x1112   :  { %18701 = vmatpush3.msra.mxu0 %v23265_v33  ;;  %18747 = vmatpush3.msra.mxu1 %v21187_v51 }
0x1113   :  { %18702 = vmatprep.subr.mxu0 %v23266_v23  ;;  %18748 = vmatprep.subr.mxu1 %v21203_v37 }
0x1114   :  { %18703 = vmatpush3.msra.mxu0 %v23266_v23  ;;  %18749 = vmatpush3.msra.mxu1 %v21203_v37 }
0x1115   :  { %18704 = vmatprep.subr.mxu0 %v23267_v7  ;;  %18750 = vmatprep.subr.mxu1 %v21214_v63 }
0x1116   :  { %18705 = vmatpush3.msra.mxu0 %v23267_v7  ;;  %18751 = vmatpush3.msra.mxu1 %v21214_v63  ;;  %v23275_v7 = vld [vmem:[#allocation7_spill] sm:$0xff] }
0x1117   :  { %18706 = vmatprep.subr.mxu0 %v23268_v28  ;;  %18753 = vmatmul.mubr.f32.vlgmr.msra.gmra.mxu1 %v21277_v13 }
0x1118   :  { %18707 = vmatpush3.msra.mxu0 %v23268_v28  ;;  %18755 = vmatprep.mubr.f32.mxu1 %v21298_v4 }
0x1119   :  { %18708 = vmatprep.subr.mxu0 %v23269_v6 }
0x111a   :  { %18709 = vmatpush3.msra.mxu0 %v23269_v6 }
0x111b   :  { %18710 = vmatprep.subr.mxu0 %v23270_v40  ;;  %18756 = vmatmul.mubr.f32.gmra.mxu1 %v21289_v29 }
0x111c   :  { %18711 = vmatpush3.msra.mxu0 %v23270_v40 }
0x111d   :  { %18712 = vmatprep.subr.mxu0 %v23271_v55 }
0x111e   :  { %18713 = vmatpush3.msra.mxu0 %v23271_v55 }
0x111f   :  { %18715 = vmatmul.mubr.f32.vlgmr.msra.gmra.mxu0 %v21277_v13 }
0x1120   :  { %18717 = vmatprep.mubr.f32.mxu0 %v21298_v4 }
0x1123   :  { %18718 = vmatmul.mubr.f32.gmra.mxu0 %v21289_v29 }
0x1191   :  { %v18602_v54 = vpop.f32.mrf.mxu1 }
0x1193   :  { %v7866_v56 = vpop.f32.mrf.mxu1 }
0x1196   :  { %v18605_v22 = vpop.f32.mrf.mxu1 }
0x1198   :  { %v7878_v51 = vpop.f32.mrf.mxu1 }
0x1199   :  { %v18564_v36 = vpop.f32.mrf.mxu0 }
0x119a   :  { %v7696_v8 = vadd.f32 %v18564_v36, %v16795_v18 }
0x119b   :  { %v7685_v57 = vpop.f32.mrf.mxu0 }
0x119c   :  { %v7686_v26 = vadd.f32 %v16795_v18, %v7685_v57  ;;  %v7873_v12 = vadd.f32 %v18602_v54, %v7696_v8 }
0x119e   :  { %v7867_v30 = vadd.f32 %v7866_v56, %v7686_v26 }
0x119f   :  { %v18567_v37 = vpop.f32.mrf.mxu0 }
0x11a0   :  { %v7716_v34 = vadd.f32 %v18567_v37, %v16795_v18 }
0x11a1   :  { %v7705_v24 = vpop.f32.mrf.mxu0 }
0x11a2   :  { %v7706_v15 = vadd.f32 %v16795_v18, %v7705_v24  ;;  %v7885_v0 = vadd.f32 %v18605_v22, %v7716_v34 }
0x11a4   :  { %v7879_v2 = vadd.f32 %v7878_v51, %v7706_v15  ;;  %v16800_v15 = vld [vmem:[%s23218_s1 + $0x30] sm:$0xff] }
0x11b3   :  { %v18678_v63 = vpop.f32.mrf.mxu1 }
0x11b5   :  { %v8098_v59 = vpop.f32.mrf.mxu1 }
0x11b8   :  { %v18681_v13 = vpop.f32.mrf.mxu1 }
0x11ba   :  { %v8114_v3 = vpop.f32.mrf.mxu1 }
0x11bd   :  { %v18640_v21 = vpop.f32.mrf.mxu0 }
0x11be   :  { %v7996_v16 = vadd.f32 %v18640_v21, %v7873_v12 }
0x11bf   :  { %v7988_v62 = vpop.f32.mrf.mxu0 }
0x11c0   :  { %v7989_v20 = vadd.f32 %v7988_v62, %v7867_v30  ;;  %v8107_v14 = vadd.f32 %v18678_v63, %v7996_v16  ;;  %v21495_v30 = vand.u32 4294901760, %v16800_v15 }
0x11c2   :  { %v18643_v19 = vpop.f32.mrf.mxu0  ;;  %v8099_v39 = vadd.f32 %v8098_v59, %v7989_v20 }
0x11c3   :  { %v8010_v48 = vadd.f32 %v18643_v19, %v7885_v0  ;;  %v21506_v0 = vsub.f32 %v16800_v15, %v21495_v30 }
0x11c4   :  { %v8002_v29 = vpop.f32.mrf.mxu0 }
0x11c5   :  { %v8003_v45 = vadd.f32 %v8002_v29, %v7879_v2  ;;  %v8123_v41 = vadd.f32 %v18681_v13, %v8010_v48  ;;  %v16798_v48 = vld [vmem:[%s23218_s1 + $0x20] sm:$0xff] }
0x11c7   :  { %v8115_v31 = vadd.f32 %v8114_v3, %v8003_v45  ;;  %v16801_v3 = vld [vmem:[%s23218_s1 + $0x38] sm:$0xff] }
0x11c8   :  { %v21487_v19 = vand.u32 4294901760, %v16801_v3 }
0x11ca   :  { %v21493_v16 = vsub.f32 %v16801_v3, %v21487_v19  ;;  %18758 = vmatprep.subr.mxu0 %v21487_v19 }
0x11cb   :  { %18759 = vmatpush3.msra.mxu0 %v21487_v19 }
0x11cc   :  { %v21503_v20 = vand.u32 4294901760, %v21493_v16  ;;  %18760 = vmatprep.subr.mxu0 %v21495_v30 }
0x11cd   :  { %18761 = vmatpush3.msra.mxu0 %v21495_v30 }
0x11ce   :  { %v8608_v2 = vsub.f32 %v21493_v16, %v21503_v20 }
0x11d0   :  { %v8609_v45 = vand.u32 4294901760, %v8608_v2 }
0x11d2   :  { %18772 = vmatprep.subr.mxu1 %v8609_v45 }
0x11d3   :  { %18773 = vmatpush3.msra.mxu1 %v8609_v45 }
0x11d7   :  { %v18754_v42 = vpop.f32.mrf.mxu1 }
0x11d9   :  { %v8346_v52 = vpop.f32.mrf.mxu1 }
0x11db   :  { %v18757_v17 = vpop.f32.mrf.mxu1 }
0x11dd   :  { %v8358_v46 = vpop.f32.mrf.mxu1 }
0x11df   :  { %v18716_v4 = vpop.f32.mrf.mxu0 }
0x11e0   :  { %v8248_v38 = vadd.f32 %v18716_v4, %v8107_v14  ;;  %v21518_v14 = vand.u32 4294901760, %v21506_v0  ;;  %v21523_v4 = vand.u32 4294901760, %v16798_v48 }
0x11e1   :  { %v8241_v49 = vpop.f32.mrf.mxu0 }
0x11e2   :  { %v8353_v9 = vadd.f32 %v18754_v42, %v8248_v38  ;;  %v8242_v27 = vadd.f32 %v8241_v49, %v8099_v39  ;;  %v16799_v42 = vld [vmem:[%s23218_s1 + $0x28] sm:$0xff]  ;;  %v8615_v38 = vsub.f32 %v21506_v0, %v21518_v14  ;;  %v21533_v49 = vsub.f32 %v16798_v48, %v21523_v4 }
0x11e3   :  { %v18719_v50 = vpop.f32.mrf.mxu0  ;;  %v21508_v29 = vand.u32 4294901760, %v16799_v42 }
0x11e4   :  { %v8347_v25 = vadd.f32 %v8346_v52, %v8242_v27  ;;  %v8260_v10 = vadd.f32 %v18719_v50, %v8123_v41  ;;  %v8369_v5 = vadd.f32 %v8353_v9, %v23272_v43  ;;  %v8616_v9 = vand.u32 4294901760, %v8615_v38 }
0x11e5   :  { %v8253_v32 = vpop.f32.mrf.mxu0  ;;  %v21521_v52 = vsub.f32 %v16799_v42, %v21508_v29  ;;  %18762 = vmatprep.subr.mxu0 %v21508_v29  ;;  %v21540_v41 = vand.u32 4294901760, %v21533_v49 }
0x11e6   :  { %v8365_v35 = vadd.f32 %v18757_v17, %v8260_v10  ;;  %v8254_v44 = vadd.f32 %v8253_v32, %v8115_v31  ;;  %v8377_v58 = vsel %vm1123_vm3, %v8369_v5, 0.0  ;;  %v8368_v53 = vadd.f32 %v8347_v25, %v23273_v1  ;;  %18763 = vmatpush3.msra.mxu0 %v21508_v29  ;;  %18774 = vmatprep.subr.mxu1 %v8616_v9 }
0x11e7   :  { %8378 = vadd.xlane.f32.xlu1 %v8377_v58  ;;  %v21530_v39 = vand.u32 4294901760, %v21521_v52  ;;  %18764 = vmatprep.subr.mxu0 %v21523_v4  ;;  %v8629_v50 = vsub.f32 %v21533_v49, %v21540_v41 }
0x11e8   :  { %v8359_v60 = vadd.f32 %v8358_v46, %v8254_v44  ;;  %v8374_v47 = vsel %vm1123_vm3, %v8368_v53, 0.0  ;;  %v8371_v33 = vadd.f32 %v8365_v35, %v23274_v61  ;;  %18765 = vmatpush3.msra.mxu0 %v21523_v4  ;;  %18775 = vmatpush3.msra.mxu1 %v8616_v9  ;;  %v16796_v61 = vld [vmem:[%s23092_s19] ss:$0 sm:$0xff] }
0x11e9   :  { %8375 = vadd.xlane.f32.xlu0 %v8374_v47  ;;  %v8622_v27 = vsub.f32 %v21521_v52, %v21530_v39  ;;  %18786 = vmatprep.subr.mxu0 %v21493_v16  ;;  %v8630_v25 = vand.u32 4294901760, %v8629_v50 }
0x11ea   :  { %v8383_v23 = vsel %vm1123_vm3, %v8371_v33, 0.0  ;;  %v8370_v28 = vadd.f32 %v8359_v60, %v23275_v7  ;;  %v16797_v7 = vld [vmem:[%s23093_s20] ss:$0 sm:$0xff] }
0x11eb   :  { %8384 = vadd.xlane.f32.xlu1 %v8383_v23  ;;  %v8623_v17 = vand.u32 4294901760, %v8622_v27 }
0x11ec   :  { %v8380_v6 = vsel %vm1123_vm3, %v8370_v28, 0.0 }
0x11ed   :  { %8381 = vadd.xlane.f32.xlu0 %v8380_v6  ;;  %18776 = vmatprep.subr.mxu1 %v8623_v17 }
0x11ee   :  { %18777 = vmatpush3.msra.mxu1 %v8623_v17 }
0x11ef   :  { %18778 = vmatprep.subr.mxu1 %v8630_v25 }
0x11f0   :  { %18779 = vmatpush3.msra.mxu1 %v8630_v25 }
0x11f1   :  { %18800 = vmatprep.subr.mxu1 %v21487_v19 }
0x1270   :  { %v8379_v40 = vpop.xlane.xlu1 %8378 }
0x1271   :  { %v8387_v55 = vmul.f32 0.03125, %v8379_v40 }
0x1272   :  { %v8376_v54 = vpop.xlane.xlu0 %8375 }
0x1273   :  { %v21464_v56 = vsub.f32 %v8369_v5, %v8387_v55  ;;  %v8386_v36 = vmul.f32 0.03125, %v8376_v54 }
0x1274   :  { %v8385_v22 = vpop.xlane.xlu1 %8384 }
0x1275   :  { %v21466_v57 = vsub.f32 %v8368_v53, %v8386_v36  ;;  %v8389_v51 = vmul.f32 0.03125, %v8385_v22  ;;  %v8395_v37 = vmul.f32 %v21464_v56, %v21464_v56 }
0x1276   :  { %v8382_v63 = vpop.xlane.xlu0 %8381 }
0x1277   :  { %v21470_v24 = vsub.f32 %v8371_v33, %v8389_v51  ;;  %v8388_v18 = vmul.f32 0.03125, %v8382_v63  ;;  %v8401_v59 = vsel %vm1123_vm3, %v8395_v37, 0.0  ;;  %v8394_v21 = vmul.f32 %v21466_v57, %v21466_v57 }
0x1278   :  { %8402 = vadd.xlane.f32.xlu1 %v8401_v59 }
0x1279   :  { %v21475_v8 = vsub.f32 %v8370_v28, %v8388_v18  ;;  %v8398_v13 = vsel %vm1123_vm3, %v8394_v21, 0.0  ;;  %v8397_v62 = vmul.f32 %v21470_v24, %v21470_v24 }
0x127a   :  { %8399 = vadd.xlane.f32.xlu0 %v8398_v13 }
0x127b   :  { %v8407_v26 = vsel %vm1123_vm3, %v8397_v62, 0.0  ;;  %v8396_v34 = vmul.f32 %v21475_v8, %v21475_v8 }
0x127c   :  { %8408 = vadd.xlane.f32.xlu1 %v8407_v26 }
0x127d   :  { %v8404_v12 = vsel %vm1123_vm3, %v8396_v34, 0.0 }
0x127e   :  { %8405 = vadd.xlane.f32.xlu0 %v8404_v12 }
0x1301   :  { %v8403_v10 = vpop.xlane.xlu1 %8402 }
0x1302   :  { %v8411_v31 = vmul.f32 0.03125, %v8403_v10 }
0x1303   :  { %v8400_v43 = vpop.xlane.xlu0 %8399 }
0x1304   :  { %v8415_v5 = vadd.f32 1e-05, %v8411_v31  ;;  %v8410_v32 = vmul.f32 0.03125, %v8400_v43 }
0x1305   :  { %v8409_v35 = vpop.xlane.xlu1 %8408 }
0x1306   :  { %19777 = vrsqrt.f32 %v8415_v5  ;;  %v8414_v44 = vadd.f32 1e-05, %v8410_v32  ;;  %v8413_v58 = vmul.f32 0.03125, %v8409_v35 }
0x1307   :  { %v8406_v1 = vpop.xlane.xlu0 %8405 }
0x1308   :  { %19779 = vrsqrt.f32 %v8414_v44  ;;  %v8417_v53 = vadd.f32 1e-05, %v8413_v58  ;;  %v8412_v46 = vmul.f32 0.03125, %v8406_v1 }
0x130a   :  { %19781 = vrsqrt.f32 %v8417_v53  ;;  %v8416_v60 = vadd.f32 1e-05, %v8412_v46 }
0x130c   :  { %19783 = vrsqrt.f32 %v8416_v60 }
0x1313   :  { %v19778_v47 = vpop.eup %19777 }
0x1314   :  { %v8423_v33 = vmul.f32 %v19778_v47, %v21464_v56 }
0x1315   :  { %v19780_v23 = vpop.eup %19779 }
0x1316   :  { %v8422_v28 = vmul.f32 %v19780_v23, %v21466_v57  ;;  %v8433_v6 = vmul.f32 %v16796_v61, %v8423_v33 }
0x1317   :  { %v19782_v40 = vpop.eup %19781 }
0x1318   :  { %v8432_v55 = vmul.f32 %v16796_v61, %v8422_v28  ;;  %v21554_v54 = vadd.f32 %v16797_v7, %v8433_v6  ;;  %v8425_v36 = vmul.f32 %v19782_v40, %v21470_v24 }
0x1319   :  { %v19784_v22 = vpop.eup %19783 }
0x131a   :  { %v21557_v51 = vadd.f32 %v16797_v7, %v8432_v55  ;;  %v8463_v56 = vsel %vm1123_vm3, %v21554_v54, 0  ;;  %v8424_v37 = vmul.f32 %v19784_v22, %v21475_v8  ;;  %v8435_v63 = vmul.f32 %v16796_v61, %v8425_v36 }
0x131b   :  { %v21562_v18 = vand.u32 4294901760, %v8463_v56 }
0x131c   :  { %v8460_v57 = vsel %vm1123_vm3, %v21557_v51, 0  ;;  %v8434_v59 = vmul.f32 %v16796_v61, %v8424_v37  ;;  %v21566_v21 = vadd.f32 %v16797_v7, %v8435_v63 }
0x131d   :  { %v21568_v13 = vand.u32 4294901760, %v8460_v57  ;;  %v8551_v24 = vsub.f32 %v8463_v56, %v21562_v18 }
0x131e   :  { %v21571_v62 = vadd.f32 %v16797_v7, %v8434_v59  ;;  %v8469_v26 = vsel %vm1123_vm3, %v21566_v21, 0 }
0x131f   :  { %18780 = vmatprep.mubr.f32.mxu1 %v21568_v13  ;;  %v21576_v8 = vand.u32 4294901760, %v8469_v26  ;;  %v8541_v34 = vsub.f32 %v8460_v57, %v21568_v13  ;;  %v8552_v12 = vand.u32 4294901760, %v8551_v24 }
0x1320   :  { %18781 = vmatmul.mubr.f32.vlgmr.msra.gmra.mxu1 %v21562_v18  ;;  %v8466_v3 = vsel %vm1123_vm3, %v21571_v62, 0 }
0x1321   :  { %18801 = vmatpush3.msra.mxu1 %v21487_v19  ;;  %v8560_v15 = vand.u32 4294901760, %v8466_v3  ;;  %v8542_v42 = vand.u32 4294901760, %v8541_v34  ;;  %v8571_v48 = vsub.f32 %v8469_v26, %v21576_v8  ;;  %v8553_v2 = vsub.f32 %v8551_v24, %v8552_v12 }
0x1322   :  { %18802 = vmatprep.subr.mxu1 %v21495_v30 }
0x1323   :  { %18783 = vmatprep.mubr.f32.mxu1 %v8560_v15  ;;  %18803 = vmatpush3.msra.mxu1 %v21495_v30  ;;  %v8543_v45 = vsub.f32 %v8541_v34, %v8542_v42  ;;  %v8561_v38 = vsub.f32 %v8466_v3, %v8560_v15  ;;  %v8572_v9 = vand.u32 4294901760, %v8571_v48  ;;  %v8554_v50 = vand.u32 4294901760, %v8553_v2 }
0x1324   :  { %18784 = vmatmul.mubr.f32.gmra.mxu1 %v21576_v8  ;;  %18804 = vmatprep.subr.mxu1 %v21508_v29 }
0x1325   :  { %18805 = vmatpush3.msra.mxu1 %v21508_v29  ;;  %18808 = vmatprep.mubr.f32.mxu1 %v8542_v42  ;;  %v8544_v27 = vand.u32 4294901760, %v8543_v45  ;;  %v8562_v17 = vand.u32 4294901760, %v8561_v38  ;;  %v8573_v10 = vsub.f32 %v8571_v48, %v8572_v9 }
0x1326   :  { %18806 = vmatprep.subr.mxu1 %v21523_v4 }
0x1327   :  { %18766 = vmatprep.mubr.f32.mxu0 %v8544_v27  ;;  %18807 = vmatpush3.msra.mxu1 %v21523_v4  ;;  %v8563_v25 = vsub.f32 %v8561_v38, %v8562_v17  ;;  %v8574_v43 = vand.u32 4294901760, %v8573_v10 }
0x1328   :  { %18767 = vmatmul.mubr.f32.vlgmr.msra.gmra.mxu0 %v8554_v50  ;;  %18809 = vmatmul.mubr.f32.vlgmr.msra.gmra.mxu1 %v8552_v12 }
0x1329   :  { %18828 = vmatprep.subr.mxu1 %v21487_v19  ;;  %18787 = vmatpush3.msra.mxu0 %v21493_v16  ;;  %v8564_v31 = vand.u32 4294901760, %v8563_v25 }
0x132a   :  { %18811 = vmatprep.mubr.f32.mxu1 %v8562_v17  ;;  %18829 = vmatpush3.msra.mxu1 %v21487_v19 }
0x132b   :  { %18788 = vmatprep.subr.mxu0 %v21506_v0  ;;  %18830 = vmatprep.subr.mxu1 %v21495_v30 }
0x132c   :  { %18769 = vmatprep.mubr.f32.mxu0 %v8564_v31  ;;  %18789 = vmatpush3.msra.mxu0 %v21506_v0 }
0x132d   :  { %18831 = vmatpush3.msra.mxu1 %v21495_v30  ;;  %18770 = vmatmul.mubr.f32.gmra.mxu0 %v8574_v43 }
0x132e   :  { %18790 = vmatprep.subr.mxu0 %v21521_v52  ;;  %18812 = vmatmul.mubr.f32.gmra.mxu1 %v8572_v9 }
0x132f   :  { %18832 = vmatprep.subr.mxu1 %v21508_v29  ;;  %18791 = vmatpush3.msra.mxu0 %v21521_v52  ;;  %v16803_v52 = vld [vmem:[%s23221_s9 + $0x1] ss:$0 sm:$0xff] }
0x1330   :  { %18794 = vmatprep.mubr.f32.mxu0 %v8541_v34  ;;  %18833 = vmatpush3.msra.mxu1 %v21508_v29 }
0x1331   :  { %18836 = vmatprep.mubr.f32.mxu1 %v21568_v13  ;;  %18792 = vmatprep.subr.mxu0 %v21533_v49 }
0x1332   :  { %18834 = vmatprep.subr.mxu1 %v21523_v4  ;;  %18793 = vmatpush3.msra.mxu0 %v21533_v49 }
0x1333   :  { %18835 = vmatpush3.msra.mxu1 %v21523_v4  ;;  %18795 = vmatmul.mubr.f32.vlgmr.msra.gmra.mxu0 %v8551_v24 }
0x1334   :  { %18814 = vmatprep.subr.mxu0 %v21503_v20  ;;  %18837 = vmatmul.mubr.f32.vlgmr.msra.gmra.mxu1 %v21562_v18 }
0x1335   :  { %18797 = vmatprep.mubr.f32.mxu0 %v8561_v38  ;;  %18815 = vmatpush3.msra.mxu0 %v21503_v20 }
0x1336   :  { %18839 = vmatprep.mubr.f32.mxu1 %v8560_v15  ;;  %18816 = vmatprep.subr.mxu0 %v21518_v14 }
0x1337   :  { %18817 = vmatpush3.msra.mxu0 %v21518_v14 }
0x1338   :  { %18798 = vmatmul.mubr.f32.gmra.mxu0 %v8571_v48  ;;  %18818 = vmatprep.subr.mxu0 %v21530_v39 }
0x1339   :  { %18840 = vmatmul.mubr.f32.gmra.mxu1 %v21576_v8  ;;  %18819 = vmatpush3.msra.mxu0 %v21530_v39 }
0x133a   :  { %18822 = vmatprep.mubr.f32.mxu0 %v21568_v13  ;;  %18820 = vmatprep.subr.mxu0 %v21540_v41 }
0x133b   :  { %18821 = vmatpush3.msra.mxu0 %v21540_v41 }
0x133c   :  { %18823 = vmatmul.mubr.f32.vlgmr.msra.gmra.mxu0 %v21562_v18 }
0x133d   :  { %18825 = vmatprep.mubr.f32.mxu0 %v8560_v15 }
0x1340   :  { %18826 = vmatmul.mubr.f32.gmra.mxu0 %v21576_v8 }
0x13e0   :  { %v18782_v19 = vpop.f32.mrf.mxu1 }
0x13e2   :  { %v8667_v16 = vpop.f32.mrf.mxu1 }
0x13e4   :  { %v18785_v30 = vpop.f32.mrf.mxu1 }
0x13e6   :  { %v8679_v20 = vpop.f32.mrf.mxu1 }
0x13e8   :  { %v18768_v0 = vpop.f32.mrf.mxu0  ;;  %v18810_v29 = vpop.f32.mrf.mxu1 }
0x13e9   :  { %v8557_v35 = vadd.f32 %v18768_v0, %v16803_v52 }
0x13ea   :  { %v8546_v14 = vpop.f32.mrf.mxu0  ;;  %v8863_v39 = vpop.f32.mrf.mxu1 }
0x13eb   :  { %v8547_v1 = vadd.f32 %v16803_v52, %v8546_v14  ;;  %v8674_v46 = vadd.f32 %v18782_v19, %v8557_v35 }
0x13ed   :  { %v18771_v4 = vpop.f32.mrf.mxu0  ;;  %v8668_v33 = vadd.f32 %v8667_v16, %v8547_v1 }
0x13ee   :  { %v8577_v49 = vadd.f32 %v18771_v4, %v16803_v52  ;;  %v18813_v44 = vpop.f32.mrf.mxu1 }
0x13ef   :  { %v8566_v41 = vpop.f32.mrf.mxu0 }
0x13f0   :  { %v8567_v5 = vadd.f32 %v16803_v52, %v8566_v41  ;;  %v8686_v32 = vadd.f32 %v18785_v30, %v8577_v49  ;;  %v8879_v47 = vpop.f32.mrf.mxu1 }
0x13f2   :  { %v8680_v58 = vadd.f32 %v8679_v20, %v8567_v5 }
0x13f3   :  { %v18796_v53 = vpop.f32.mrf.mxu0 }
0x13f4   :  { %v8773_v61 = vadd.f32 %v18796_v53, %v8674_v46  ;;  %v18838_v6 = vpop.f32.mrf.mxu1 }
0x13f5   :  { %v8765_v60 = vpop.f32.mrf.mxu0 }
0x13f6   :  { %v8766_v7 = vadd.f32 %v8765_v60, %v8668_v33  ;;  %v8872_v36 = vadd.f32 %v18810_v29, %v8773_v61  ;;  %v9063_v57 = vpop.f32.mrf.mxu1 }
0x13f8   :  { %v18799_v23 = vpop.f32.mrf.mxu0  ;;  %v8864_v63 = vadd.f32 %v8863_v39, %v8766_v7 }
0x13f9   :  { %v8787_v28 = vadd.f32 %v18799_v23, %v8686_v32  ;;  %v18841_v12 = vpop.f32.mrf.mxu1 }
0x13fa   :  { %v8779_v40 = vpop.f32.mrf.mxu0 }
0x13fb   :  { %v8780_v55 = vadd.f32 %v8779_v40, %v8680_v58  ;;  %v8888_v22 = vadd.f32 %v18813_v44, %v8787_v28  ;;  %v21641_v5 = vpop.f32.mrf.mxu1 }
0x13fc   :  { %v18824_v56 = vpop.f32.mrf.mxu0 }
0x13fd   :  { %v8977_v37 = vadd.f32 %v18824_v56, %v8872_v36  ;;  %v21623_v18 = vadd.f32 %v8879_v47, %v8780_v55 }
0x13fe   :  { %v8970_v59 = vpop.f32.mrf.mxu0 }
0x13ff   :  { %v21625_v13 = vadd.f32 %v18838_v6, %v8977_v37  ;;  %v8971_v24 = vadd.f32 %v8970_v59, %v8864_v63 }
0x1400   :  { %v18827_v26 = vpop.f32.mrf.mxu0 }
0x1401   :  { %v21627_v8 = vadd.f32 %v9063_v57, %v8971_v24  ;;  %v8989_v34 = vadd.f32 %v18827_v26, %v8888_v22  ;;  %9089 = vrot.lane.b32.xlu0 %v21625_v13, %s19849_s28  ;;  %v9093_v9 = vsel %vm1863_vm4, %v21625_v13, 0 }
0x1402   :  { %v9176_v27 = vand.u32 4294901760, %v9093_v9  ;;  %v21643_v32 = vpop.f32.mrf.mxu0 }
0x1403   :  { %v21631_v3 = vadd.f32 %v18841_v12, %v8989_v34  ;;  %9087 = vrot.lane.b32.xlu1 %v21627_v8, %s19849_s28  ;;  %v9091_v15 = vsel %vm1863_vm4, %v21627_v8, 0 }
0x1404   :  { %v9166_v42 = vand.u32 4294901760, %v9091_v15  ;;  %v9177_v17 = vsub.f32 %v9093_v9, %v9176_v27 }
0x1406   :  { %18853 = vmatprep.mubr.f32.mxu1 %v9166_v42  ;;  %v9167_v48 = vsub.f32 %v9091_v15, %v9166_v42  ;;  %v9178_v43 = vand.u32 4294901760, %v9177_v17 }
0x1408   :  { %v9168_v2 = vand.u32 4294901760, %v9167_v48  ;;  %v9179_v0 = vsub.f32 %v9177_v17, %v9178_v43 }
0x140a   :  { %v9169_v45 = vsub.f32 %v9167_v48, %v9168_v2  ;;  %v9180_v4 = vand.u32 4294901760, %v9179_v0 }
0x140c   :  { %v9170_v38 = vand.u32 4294901760, %v9169_v45 }
0x140e   :  { %18846 = vmatprep.mubr.f32.mxu0 %v9170_v38 }
0x1473   :  { %v9090_v50 = vpop.permute.xlu0 %9089 }
0x1474   :  { %v9097_v25 = vsel %vm1863_vm4, %v9090_v50, 0 }
0x1475   :  { %v9128_v10 = vand.u32 4294901760, %v9097_v25  ;;  %v9088_v31 = vpop.permute.xlu1 %9087 }
0x1476   :  { %v9095_v19 = vsel %vm1863_vm4, %v9088_v31, 0 }
0x1477   :  { %v9216_v16 = vsub.f32 %v9097_v25, %v9128_v10  ;;  %v9131_v30 = vand.u32 4294901760, %v9095_v19  ;;  %18842 = vmatprep.subr.mxu0 %v9128_v10 }
0x1478   :  { %18843 = vmatpush3.xpose.msra.mxu0 %v9128_v10 }
0x1479   :  { %v9223_v20 = vsub.f32 %v9095_v19, %v9131_v30  ;;  %18844 = vmatprep.subr.mxu0 %v9131_v30  ;;  %v9217_v29 = vand.u32 4294901760, %v9216_v16 }
0x147b   :  { %v9218_v14 = vsub.f32 %v9216_v16, %v9217_v29  ;;  %v9224_v52 = vand.u32 4294901760, %v9223_v20 }
0x147c   :  { %18845 = vmatpush3.xpose.msra.mxu0 %v9131_v30 }
0x147d   :  { %18856 = vmatprep.subr.mxu0 %v9216_v16  ;;  %v9219_v39 = vand.u32 4294901760, %v9218_v14  ;;  %v9225_v49 = vsub.f32 %v9223_v20, %v9224_v52 }
0x147f   :  { %18847 = vmatmul.mubr.f32.vlgmr.msra.gmra.mxu0 %v9180_v4  ;;  %18849 = vmatprep.subr.mxu1 %v9219_v39  ;;  %v9226_v41 = vand.u32 4294901760, %v9225_v49 }
0x1480   :  { %18850 = vmatpush3.xpose.msra.mxu1 %v9219_v39  ;;  %18857 = vmatpush3.xpose.msra.mxu0 %v9216_v16 }
0x1481   :  { %18860 = vmatprep.mubr.f32.mxu0 %v9167_v48  ;;  %18851 = vmatprep.subr.mxu1 %v9226_v41 }
0x1482   :  { %18858 = vmatprep.subr.mxu0 %v9223_v20 }
0x1484   :  { %18852 = vmatpush3.xpose.msra.mxu1 %v9226_v41  ;;  %18859 = vmatpush3.xpose.msra.mxu0 %v9223_v20 }
0x1485   :  { %18863 = vmatprep.subr.mxu1 %v9128_v10  ;;  %18870 = vmatprep.subr.mxu0 %v9217_v29 }
0x1487   :  { %18854 = vmatmul.mubr.f32.vlgmr.msra.gmra.mxu1 %v9176_v27  ;;  %18861 = vmatmul.mubr.f32.vlgmr.msra.gmra.mxu0 %v9177_v17 }
0x1488   :  { %18864 = vmatpush3.xpose.msra.mxu1 %v9128_v10  ;;  %18867 = vmatprep.mubr.f32.mxu1 %v9168_v2 }
0x1489   :  { %18871 = vmatpush3.xpose.msra.mxu0 %v9217_v29  ;;  %18874 = vmatprep.mubr.f32.mxu0 %v9166_v42 }
0x148a   :  { %18865 = vmatprep.subr.mxu1 %v9131_v30  ;;  %18872 = vmatprep.subr.mxu0 %v9224_v52 }
0x148c   :  { %18866 = vmatpush3.xpose.msra.mxu1 %v9131_v30 }
0x148d   :  { %18873 = vmatpush3.xpose.msra.mxu0 %v9224_v52  ;;  %18877 = vmatprep.subr.mxu1 %v9128_v10 }
0x148f   :  { %18868 = vmatmul.mubr.f32.vlgmr.msra.gmra.mxu1 %v9178_v43 }
0x1490   :  { %18875 = vmatmul.mubr.f32.vlgmr.msra.gmra.mxu0 %v9176_v27  ;;  %18878 = vmatpush3.xpose.msra.mxu1 %v9128_v10 }
0x1491   :  { %18881 = vmatprep.mubr.f32.mxu1 %v9166_v42  ;;  %18879 = vmatprep.subr.mxu1 %v9131_v30 }
0x1494   :  { %18880 = vmatpush3.xpose.msra.mxu1 %v9131_v30 }
0x1497   :  { %18882 = vmatmul.mubr.f32.vlgmr.msra.gmra.mxu1 %v9176_v27 }
0x153f   :  { %v18848_v35 = vpop.f32.mrf.mxu0 }
0x1541   :  { %v9172_v58 = vpop.f32.mrf.mxu0 }
0x1547   :  { %v18855_v44 = vpop.f32.mrf.mxu1  ;;  %v18862_v46 = vpop.f32.mrf.mxu0 }
0x1548   :  { %v9270_v53 = vadd.f32 %v18855_v44, %v18848_v35 }
0x1549   :  { %v9263_v1 = vpop.f32.mrf.mxu1  ;;  %v9345_v33 = vpop.f32.mrf.mxu0 }
0x154a   :  { %v9264_v60 = vadd.f32 %v9263_v1, %v9172_v58  ;;  %v9353_v61 = vadd.f32 %v18862_v46, %v9270_v53 }
0x154c   :  { %v9346_v7 = vadd.f32 %v9345_v33, %v9264_v60 }
0x154f   :  { %v18869_v47 = vpop.f32.mrf.mxu1 }
0x1550   :  { %v9436_v28 = vadd.f32 %v18869_v47, %v9353_v61  ;;  %v18876_v6 = vpop.f32.mrf.mxu0 }
0x1551   :  { %v9427_v23 = vpop.f32.mrf.mxu1 }
0x1552   :  { %v9428_v40 = vadd.f32 %v9427_v23, %v9346_v7  ;;  %v9519_v55 = vadd.f32 %v18876_v6, %v9436_v28  ;;  %v9512_v36 = vpop.f32.mrf.mxu0 }
0x1554   :  { %v9513_v56 = vadd.f32 %v9512_v36, %v9428_v40 }
0x1557   :  { %v18883_v22 = vpop.f32.mrf.mxu1 }
0x1558   :  { %v9598_v37 = vadd.f32 %v18883_v22, %v9519_v55 }
0x1559   :  { %v9591_v63 = vpop.f32.mrf.mxu1 }
0x155a   :  { %v9602_v57 = vmul.f32 0.25, %v9598_v37  ;;  %v9592_v59 = vadd.f32 %v9591_v63, %v9513_v56 }
0x155c   :  { %v9601_v24 = vmul.f32 0.25, %v9592_v59  ;;  %v9604_v34 = vsel %vm20275_vm6, %v9602_v57, -inf }
0x155d   :  { %v9608_v12 = vsel %vm1863_vm4, %v9604_v34, -inf }
0x155e   :  { %9609 = vmax.xlane.f32.xlu0 %v9608_v12  ;;  %v9603_v42 = vsel %vm20279_vm7, %v9601_v24, -inf }
0x155f   :  { %v9605_v48 = vsel %vm1863_vm4, %v9603_v42, -inf }
0x1560   :  { %9606 = vmax.xlane.f32.xlu1 %v9605_v48 }
0x15e7   :  { %v9610_v2 = vpop.xlane.xlu0 %9609 }
0x15e8   :  { %v9612_v45 = vsub.f32 %v9604_v34, %v9610_v2 }
0x15e9   :  { %v9607_v38 = vpop.xlane.xlu1 %9606 }
0x15ea   :  { %v9615_v9 = vmul.f32 1.442695, %v9612_v45  ;;  %v9611_v27 = vsub.f32 %v9603_v42, %v9607_v38 }
0x15ec   :  { %19785 = vpow2.f32 %v9615_v9  ;;  %v9613_v17 = vmul.f32 1.442695, %v9611_v27 }
0x15ee   :  { %19787 = vpow2.f32 %v9613_v17 }
0x15f9   :  { %v19786_v50 = vpop.eup %19785 }
0x15fa   :  { %v9620_v25 = vsel %vm1863_vm4, %v19786_v50, 0.0 }
0x15fb   :  { %v19788_v10 = vpop.eup %19787  ;;  %9621 = vadd.xlane.f32.xlu1 %v9620_v25 }
0x15fc   :  { %v9617_v31 = vsel %vm1863_vm4, %v19788_v10, 0.0 }
0x15fd   :  { %9618 = vadd.xlane.f32.xlu0 %v9617_v31 }
0x160c   :  { %9627 = vrot.lane.b32.xlu1 %v21627_v8, %s19850_s7 }
0x1610   :  { %10149 = vrot.lane.b32.xlu1 %v21625_v13, %s19851_s4 }
0x1613   :  { %9629 = vrot.lane.b32.xlu0 %v21625_v13, %s19850_s7 }
0x1614   :  { %10147 = vrot.lane.b32.xlu1 %v21627_v8, %s19851_s4 }
0x1617   :  { %10143 = vrot.lane.b32.xlu0 %v21627_v8, %s19852_s29 }
0x1618   :  { %10145 = vrot.lane.b32.xlu1 %v21625_v13, %s19852_s29 }
0x1684   :  { %v9622_v43 = vpop.xlane.xlu1 %9621 }
0x1685   :  { %19789 = vrcp.f32 %v9622_v43 }
0x1686   :  { %v9619_v19 = vpop.xlane.xlu0 %9618 }
0x1687   :  { %19791 = vrcp.f32 %v9619_v19 }
0x1688   :  { %v9628_v16 = vpop.permute.xlu1 %9627 }
0x1689   :  { %v21665_v30 = vand.u32 4294901760, %v9628_v16 }
0x168a   :  { %v9630_v20 = vpop.permute.xlu0 %9629 }
0x168b   :  { %v21668_v0 = vsub.f32 %v9628_v16, %v21665_v30  ;;  %v9668_v29 = vand.u32 4294901760, %v9630_v20 }
0x168c   :  { %v10150_v14 = vpop.permute.xlu1 %10149 }
0x168d   :  { %v21670_v52 = vsub.f32 %v9630_v20, %v9668_v29  ;;  %18884 = vmatprep.subr.mxu0 %v9668_v29  ;;  %v21673_v4 = vand.u32 4294901760, %v21668_v0  ;;  %v10157_v39 = vsel %vm1863_vm4, %v10150_v14, 0 }
0x168e   :  { %18885 = vmatpush3.msra.mxu0 %v9668_v29  ;;  %v21681_v35 = vand.u32 4294901760, %v10157_v39  ;;  %v10144_v40 = vpop.permute.xlu0 %10143 }
0x168f   :  { %18886 = vmatprep.subr.mxu0 %v21665_v30  ;;  %v21678_v49 = vand.u32 4294901760, %v21670_v52  ;;  %v9765_v1 = vsub.f32 %v21668_v0, %v21673_v4  ;;  %v10151_v63 = vsel %vm1863_vm4, %v10144_v40, 0 }
0x1690   :  { %18887 = vmatpush3.msra.mxu0 %v21665_v30  ;;  %v10148_v41 = vpop.permute.xlu1 %10147  ;;  %v21692_v33 = vsub.f32 %v10157_v39, %v21681_v35  ;;  %v21710_v12 = vand.u32 4294901760, %v10151_v63 }
0x1691   :  { %v10155_v44 = vsel %vm1863_vm4, %v10148_v41, 0  ;;  %18898 = vmatprep.subr.mxu0 %v21670_v52  ;;  %v9758_v58 = vsub.f32 %v21670_v52, %v21678_v49  ;;  %v9766_v23 = vand.u32 4294901760, %v9765_v1 }
0x1692   :  { %v19790_v53 = vpop.eup %19789  ;;  %v21689_v61 = vand.u32 4294901760, %v10155_v44  ;;  %v21703_v37 = vand.u32 4294901760, %v21692_v33  ;;  %v10227_v17 = vsub.f32 %v10151_v63, %v21710_v12 }
0x1693   :  { %v9626_v46 = vmul.f32 %v19790_v53, %v19786_v50  ;;  %v9759_v60 = vand.u32 4294901760, %v9758_v58 }
0x1694   :  { %v19792_v47 = vpop.eup %19791  ;;  %v21699_v36 = vsub.f32 %v10155_v44, %v21689_v61  ;;  %v10146_v42 = vpop.permute.xlu1 %10145  ;;  %v10278_v48 = vsub.f32 %v21692_v33, %v21703_v37  ;;  %v10228_v43 = vand.u32 4294901760, %v10227_v17 }
0x1695   :  { %18891 = vmatprep.subr.mxu1 %v9759_v60  ;;  %v9625_v7 = vmul.f32 %v19792_v47, %v19788_v10  ;;  %v9637_v28 = vsel %vm1863_vm4, %v9626_v46, 0  ;;  %v10153_v38 = vsel %vm1863_vm4, %v10146_v42, 0 }
0x1696   :  { %18892 = vmatpush3.msra.mxu1 %v9759_v60  ;;  %v21695_v6 = vand.u32 4294901760, %v9637_v28  ;;  %v21708_v34 = vand.u32 4294901760, %v21699_v36  ;;  %v10279_v50 = vand.u32 4294901760, %v10278_v48  ;;  %v10236_v10 = vand.u32 4294901760, %v10153_v38 }
0x1697   :  { %18893 = vmatprep.subr.mxu1 %v9766_v23  ;;  %v9634_v55 = vsel %vm1863_vm4, %v9625_v7, 0  ;;  %v10229_v16 = vsub.f32 %v10227_v17, %v10228_v43 }
0x1698   :  { %18894 = vmatpush3.msra.mxu1 %v9766_v23  ;;  %v9706_v22 = vand.u32 4294901760, %v9634_v55  ;;  %v9717_v56 = vsub.f32 %v9637_v28, %v21695_v6  ;;  %v10285_v27 = vsub.f32 %v21699_v36, %v21708_v34  ;;  %v10237_v19 = vsub.f32 %v10153_v38, %v10236_v10 }
0x1699   :  { %18905 = vmatprep.subr.mxu1 %v9668_v29  ;;  %v10230_v20 = vand.u32 4294901760, %v10229_v16 }
0x169a   :  { %18895 = vmatprep.mubr.f32.mxu1 %v9706_v22  ;;  %v9707_v57 = vsub.f32 %v9634_v55, %v9706_v22  ;;  %v9718_v59 = vand.u32 4294901760, %v9717_v56  ;;  %v10286_v31 = vand.u32 4294901760, %v10285_v27 }
0x169b   :  { %18896 = vmatmul.mubr.f32.vlgmr.msra.gmra.mxu1 %v21695_v6 }
0x169c   :  { %18906 = vmatpush3.msra.mxu1 %v9668_v29  ;;  %v9708_v24 = vand.u32 4294901760, %v9707_v57  ;;  %v9719_v2 = vsub.f32 %v9717_v56, %v9718_v59 }
0x169d   :  { %18907 = vmatprep.subr.mxu1 %v21665_v30 }
0x169e   :  { %18908 = vmatpush3.msra.mxu1 %v21665_v30  ;;  %18909 = vmatprep.mubr.f32.mxu1 %v9708_v24  ;;  %v9709_v45 = vsub.f32 %v9707_v57, %v9708_v24  ;;  %v9720_v25 = vand.u32 4294901760, %v9719_v2 }
0x169f   :  { %18919 = vmatprep.subr.mxu1 %v9668_v29  ;;  %18910 = vmatmul.mubr.f32.vlgmr.msra.gmra.mxu1 %v9718_v59 }
0x16a0   :  { %18920 = vmatpush3.msra.mxu1 %v9668_v29  ;;  %18923 = vmatprep.mubr.f32.mxu1 %v9706_v22  ;;  %v9710_v9 = vand.u32 4294901760, %v9709_v45 }
0x16a1   :  { %18921 = vmatprep.subr.mxu1 %v21665_v30 }
0x16a2   :  { %18922 = vmatpush3.msra.mxu1 %v21665_v30  ;;  %18888 = vmatprep.mubr.f32.mxu0 %v9710_v9  ;;  %v10238_v30 = vand.u32 4294901760, %v10237_v19 }
0x16a3   :  { %18933 = vmatprep.subr.mxu1 %v10279_v50  ;;  %18889 = vmatmul.mubr.f32.vlgmr.msra.gmra.mxu0 %v9720_v25 }
0x16a4   :  { %18899 = vmatpush3.msra.mxu0 %v21670_v52  ;;  %18924 = vmatmul.mubr.f32.vlgmr.msra.gmra.mxu1 %v21695_v6 }
0x16a5   :  { %18934 = vmatpush3.xpose.msra.mxu1 %v10279_v50  ;;  %18900 = vmatprep.subr.mxu0 %v21668_v0 }
0x16a6   :  { %18902 = vmatprep.mubr.f32.mxu0 %v9707_v57  ;;  %18935 = vmatprep.subr.mxu1 %v10286_v31 }
0x16a7   :  { %18937 = vmatprep.mubr.f32.mxu1 %v21710_v12  ;;  %18901 = vmatpush3.msra.mxu0 %v21668_v0  ;;  %v10239_v0 = vsub.f32 %v10237_v19, %v10238_v30 }
0x16a8   :  { %18912 = vmatprep.subr.mxu0 %v21678_v49  ;;  %18903 = vmatmul.mubr.f32.vlgmr.msra.gmra.mxu0 %v9717_v56 }
0x16a9   :  { %18913 = vmatpush3.msra.mxu0 %v21678_v49  ;;  %18936 = vmatpush3.xpose.msra.mxu1 %v10286_v31  ;;  %v10240_v29 = vand.u32 4294901760, %v10239_v0 }
0x16aa   :  { %18914 = vmatprep.subr.mxu0 %v21673_v4  ;;  %18916 = vmatprep.mubr.f32.mxu0 %v9706_v22 }
0x16ab   :  { %18947 = vmatprep.subr.mxu1 %v21681_v35  ;;  %18915 = vmatpush3.msra.mxu0 %v21673_v4 }
0x16ac   :  { %18926 = vmatprep.subr.mxu0 %v21681_v35  ;;  %18938 = vmatmul.mubr.f32.vlgmr.msra.gmra.mxu1 %v10236_v10 }
0x16ad   :  { %18917 = vmatmul.mubr.f32.vlgmr.msra.gmra.mxu0 %v21695_v6  ;;  %18948 = vmatpush3.xpose.msra.mxu1 %v21681_v35 }
0x16ae   :  { %18927 = vmatpush3.xpose.msra.mxu0 %v21681_v35  ;;  %18951 = vmatprep.mubr.f32.mxu1 %v10228_v43 }
0x16af   :  { %18928 = vmatprep.subr.mxu0 %v21689_v61  ;;  %18930 = vmatprep.mubr.f32.mxu0 %v10230_v20 }
0x16b0   :  { %18949 = vmatprep.subr.mxu1 %v21689_v61 }
0x16b1   :  { %18950 = vmatpush3.xpose.msra.mxu1 %v21689_v61 }
0x16b2   :  { %18929 = vmatpush3.xpose.msra.mxu0 %v21689_v61  ;;  %18961 = vmatprep.subr.mxu1 %v21681_v35 }
0x16b3   :  { %18940 = vmatprep.subr.mxu0 %v21692_v33 }
0x16b4   :  { %18952 = vmatmul.mubr.f32.vlgmr.msra.gmra.mxu1 %v10238_v30 }
0x16b5   :  { %18931 = vmatmul.mubr.f32.vlgmr.msra.gmra.mxu0 %v10240_v29  ;;  %18962 = vmatpush3.xpose.msra.mxu1 %v21681_v35  ;;  %v8983_v29 = vadd.f32 %v21643_v32, %v21623_v18 }
0x16b6   :  { %18941 = vmatpush3.xpose.msra.mxu0 %v21692_v33  ;;  %18944 = vmatprep.mubr.f32.mxu0 %v10227_v17 }
0x16b7   :  { %18965 = vmatprep.mubr.f32.mxu1 %v21710_v12  ;;  %18942 = vmatprep.subr.mxu0 %v21699_v36 }
0x16b8   :  { %18963 = vmatprep.subr.mxu1 %v21689_v61 }
0x16b9   :  { %18964 = vmatpush3.xpose.msra.mxu1 %v21689_v61 }
0x16ba   :  { %18943 = vmatpush3.xpose.msra.mxu0 %v21699_v36 }
0x16bb   :  { %18954 = vmatprep.subr.mxu0 %v21703_v37 }
0x16bc   :  { %18966 = vmatmul.mubr.f32.vlgmr.msra.gmra.mxu1 %v10236_v10 }
0x16bd   :  { %18945 = vmatmul.mubr.f32.vlgmr.msra.gmra.mxu0 %v10237_v19 }
0x16be   :  { %18955 = vmatpush3.xpose.msra.mxu0 %v21703_v37  ;;  %18958 = vmatprep.mubr.f32.mxu0 %v21710_v12 }
0x16bf   :  { %18956 = vmatprep.subr.mxu0 %v21708_v34 }
0x16c2   :  { %18957 = vmatpush3.xpose.msra.mxu0 %v21708_v34 }
0x16c5   :  { %18959 = vmatmul.mubr.f32.vlgmr.msra.gmra.mxu0 %v10236_v10 }
0x175b   :  { %v18897_v14 = vpop.f32.mrf.mxu1 }
0x175d   :  { %v9803_v52 = vpop.f32.mrf.mxu1 }
0x175f   :  { %v18911_v39 = vpop.f32.mrf.mxu1 }
0x1761   :  { %v9967_v44 = vpop.f32.mrf.mxu1 }
0x1763   :  { %v18890_v4 = vpop.f32.mrf.mxu0 }
0x1764   :  { %v9810_v41 = vadd.f32 %v18897_v14, %v18890_v4  ;;  %v18925_v47 = vpop.f32.mrf.mxu1  ;;  %v21769_v14 = vadd.f32 %v21641_v5, %v8983_v29 }
0x1765   :  { %v9712_v49 = vpop.f32.mrf.mxu0 }
0x1766   :  { %v9804_v58 = vadd.f32 %v9803_v52, %v9712_v49  ;;  %v10131_v40 = vpop.f32.mrf.mxu1 }
0x1768   :  { %v18904_v35 = vpop.f32.mrf.mxu0 }
0x1769   :  { %v9893_v1 = vadd.f32 %v18904_v35, %v9810_v41 }
0x176a   :  { %v9885_v53 = vpop.f32.mrf.mxu0 }
0x176b   :  { %v9886_v46 = vadd.f32 %v9885_v53, %v9804_v58  ;;  %v9976_v60 = vadd.f32 %v18911_v39, %v9893_v1 }
0x176c   :  { %v18939_v22 = vpop.f32.mrf.mxu1 }
0x176d   :  { %v18918_v61 = vpop.f32.mrf.mxu0  ;;  %v9968_v33 = vadd.f32 %v9967_v44, %v9886_v46 }
0x176e   :  { %v10059_v23 = vadd.f32 %v18918_v61, %v9976_v60  ;;  %v10323_v37 = vpop.f32.mrf.mxu1 }
0x176f   :  { %v10052_v7 = vpop.f32.mrf.mxu0 }
0x1770   :  { %v10138_v28 = vadd.f32 %v18925_v47, %v10059_v23  ;;  %v10053_v6 = vadd.f32 %v10052_v7, %v9968_v33 }
0x1772   :  { %10142 = vst.msk [vmem:[#allocation2 + $0x8] sm:$0xff] %vm1863_vm4, %v10138_v28  ;;  %v10132_v55 = vadd.f32 %v10131_v40, %v10053_v6 }
0x1774   :  { %10141 = vst.msk [vmem:[#allocation2] sm:$0xff] %vm1863_vm4, %v10132_v55  ;;  %v18953_v59 = vpop.f32.mrf.mxu1 }
0x1775   :  { %v18932_v36 = vpop.f32.mrf.mxu0 }
0x1776   :  { %v10330_v57 = vadd.f32 %v18939_v22, %v18932_v36  ;;  %v10487_v48 = vpop.f32.mrf.mxu1 }
0x1777   :  { %v10232_v56 = vpop.f32.mrf.mxu0 }
0x1778   :  { %v10324_v34 = vadd.f32 %v10323_v37, %v10232_v56 }
0x177c   :  { %v18967_v45 = vpop.f32.mrf.mxu1 }
0x177d   :  { %v18946_v63 = vpop.f32.mrf.mxu0 }
0x177e   :  { %v10413_v12 = vadd.f32 %v18946_v63, %v10330_v57  ;;  %v10651_v10 = vpop.f32.mrf.mxu1 }
0x177f   :  { %v10405_v24 = vpop.f32.mrf.mxu0 }
0x1780   :  { %v10406_v42 = vadd.f32 %v10405_v24, %v10324_v34  ;;  %v10496_v2 = vadd.f32 %v18953_v59, %v10413_v12 }
0x1782   :  { %v10488_v27 = vadd.f32 %v10487_v48, %v10406_v42 }
0x1785   :  { %v18960_v38 = vpop.f32.mrf.mxu0 }
0x1786   :  { %v10579_v9 = vadd.f32 %v18960_v38, %v10496_v2 }
0x1787   :  { %v10572_v17 = vpop.f32.mrf.mxu0 }
0x1788   :  { %v10658_v50 = vadd.f32 %v18967_v45, %v10579_v9  ;;  %v10573_v25 = vadd.f32 %v10572_v17, %v10488_v27 }
0x178a   :  { %v10662_v31 = vmul.f32 0.25, %v10658_v50  ;;  %v10652_v43 = vadd.f32 %v10651_v10, %v10573_v25  ;;  %v11217_v50 = vsel %vm1863_vm4, %v21769_v14, 0 }
0x178c   :  { %v10661_v19 = vmul.f32 0.25, %v10652_v43  ;;  %v10664_v16 = vsel %vm20275_vm6, %v10662_v31, -inf }
0x178d   :  { %v10668_v30 = vsel %vm1863_vm4, %v10664_v16, -inf }
0x178e   :  { %10669 = vmax.xlane.f32.xlu1 %v10668_v30  ;;  %v10663_v20 = vsel %vm20279_vm7, %v10661_v19, -inf  ;;  %v21826_v19 = vand.u32 4294901760, %v11217_v50 }
0x178f   :  { %v10665_v0 = vsel %vm1863_vm4, %v10663_v20, -inf }
0x1790   :  { %10666 = vmax.xlane.f32.xlu0 %v10665_v0  ;;  %v11219_v0 = vsel %vm1863_vm4, %v21631_v3, 0 }
0x179f   :  { %10687 = vrot.lane.b32.xlu1 %v21627_v8, %s19853_s3 }
0x17a3   :  { %11215 = vrot.lane.b32.xlu1 %v21631_v3, %s19849_s28 }
0x17a7   :  { %11213 = vrot.lane.b32.xlu1 %v21769_v14, %s19849_s28 }
0x1817   :  { %v10670_v52 = vpop.xlane.xlu1 %10669 }
0x1818   :  { %v10672_v4 = vsub.f32 %v10664_v16, %v10670_v52 }
0x1819   :  { %v10667_v39 = vpop.xlane.xlu0 %10666 }
0x181a   :  { %v10675_v49 = vmul.f32 1.442695, %v10672_v4  ;;  %v10671_v41 = vsub.f32 %v10663_v20, %v10667_v39  ;;  %v11293_v4 = vsub.f32 %v11217_v50, %v21826_v19  ;;  %v11302_v39 = vand.u32 4294901760, %v11219_v0 }
0x181b   :  { %v10688_v5 = vpop.permute.xlu1 %10687 }
0x181c   :  { %19793 = vpow2.f32 %v10675_v49  ;;  %v10673_v35 = vmul.f32 1.442695, %v10671_v41  ;;  %v21777_v1 = vand.u32 4294901760, %v10688_v5  ;;  %v11294_v41 = vand.u32 4294901760, %v11293_v4 }
0x181e   :  { %19795 = vpow2.f32 %v10673_v35  ;;  %v21780_v60 = vsub.f32 %v10688_v5, %v21777_v1  ;;  %v11303_v35 = vsub.f32 %v11219_v0, %v11302_v39 }
0x181f   :  { %v11216_v46 = vpop.permute.xlu1 %11215 }
0x1820   :  { %v11223_v33 = vsel %vm1863_vm4, %v11216_v46, 0 }
0x1821   :  { %v21792_v40 = vand.u32 4294901760, %v11223_v33 }
0x1823   :  { %v11214_v7 = vpop.permute.xlu1 %11213  ;;  %v21807_v34 = vsub.f32 %v11223_v33, %v21792_v40 }
0x1824   :  { %v11221_v55 = vsel %vm1863_vm4, %v11214_v7, 0 }
0x1825   :  { %v21802_v59 = vand.u32 4294901760, %v11221_v55  ;;  %v21815_v27 = vand.u32 4294901760, %v21807_v34 }
0x1827   :  { %v21812_v45 = vsub.f32 %v11221_v55, %v21802_v59  ;;  %v11344_v31 = vsub.f32 %v21807_v34, %v21815_v27 }
0x1829   :  { %v19794_v8 = vpop.eup %19793  ;;  %v21821_v10 = vand.u32 4294901760, %v21812_v45  ;;  %v11345_v29 = vand.u32 4294901760, %v11344_v31 }
0x182a   :  { %v10680_v18 = vsel %vm1863_vm4, %v19794_v8, 0.0 }
0x182b   :  { %v19796_v32 = vpop.eup %19795  ;;  %10681 = vadd.xlane.f32.xlu0 %v10680_v18  ;;  %v11351_v20 = vsub.f32 %v21812_v45, %v21821_v10  ;;  %v11304_v18 = vand.u32 4294901760, %v11303_v35 }
0x182c   :  { %v10677_v44 = vsel %vm1863_vm4, %v19796_v32, 0.0 }
0x182d   :  { %v11352_v49 = vand.u32 4294901760, %v11351_v20 }
0x182f   :  { %10678 = vadd.xlane.f32.xlu0 %v10677_v44  ;;  %v11305_v44 = vsub.f32 %v11303_v35, %v11304_v18 }
0x1831   :  { %v11306_v5 = vand.u32 4294901760, %v11305_v44 }
0x1845   :  { %10689 = vrot.lane.b32.xlu0 %v21625_v13, %s19853_s3  ;;  %v21786_v13 = vand.u32 4294901760, %v21780_v60 }
0x1847   :  { %v10825_v56 = vsub.f32 %v21780_v60, %v21786_v13 }
0x1849   :  { %v10826_v12 = vand.u32 4294901760, %v10825_v56 }
0x18b4   :  { %v10682_v58 = vpop.xlane.xlu0 %10681 }
0x18b5   :  { %19797 = vrcp.f32 %v10682_v58 }
0x18b8   :  { %v10679_v53 = vpop.xlane.xlu0 %10678 }
0x18b9   :  { %19799 = vrcp.f32 %v10679_v53 }
0x18bc   :  { %v10690_v47 = vpop.permute.xlu0 %10689 }
0x18bd   :  { %v10728_v61 = vand.u32 4294901760, %v10690_v47 }
0x18bf   :  { %v21783_v23 = vsub.f32 %v10690_v47, %v10728_v61  ;;  %18968 = vmatprep.subr.mxu0 %v10728_v61 }
0x18c0   :  { %18969 = vmatpush3.msra.mxu0 %v10728_v61 }
0x18c1   :  { %18970 = vmatprep.subr.mxu0 %v21777_v1  ;;  %v21790_v28 = vand.u32 4294901760, %v21783_v23 }
0x18c2   :  { %v19798_v6 = vpop.eup %19797  ;;  %18971 = vmatpush3.msra.mxu0 %v21777_v1 }
0x18c3   :  { %v10686_v36 = vmul.f32 %v19798_v6, %v19794_v8  ;;  %18982 = vmatprep.subr.mxu0 %v21783_v23  ;;  %v10818_v22 = vsub.f32 %v21783_v23, %v21790_v28  ;;  %v11295_v8 = vsub.f32 %v11293_v4, %v11294_v41 }
0x18c5   :  { %v10819_v37 = vand.u32 4294901760, %v10818_v22  ;;  %v10697_v63 = vsel %vm1863_vm4, %v10686_v36, 0 }
0x18c6   :  { %v19800_v57 = vpop.eup %19799  ;;  %v21804_v24 = vand.u32 4294901760, %v10697_v63 }
0x18c7   :  { %18975 = vmatprep.subr.mxu1 %v10819_v37  ;;  %v10685_v42 = vmul.f32 %v19800_v57, %v19796_v32  ;;  %v11296_v32 = vand.u32 4294901760, %v11295_v8 }
0x18c8   :  { %18976 = vmatpush3.msra.mxu1 %v10819_v37  ;;  %v10777_v48 = vsub.f32 %v10697_v63, %v21804_v24 }
0x18c9   :  { %18977 = vmatprep.subr.mxu1 %v10826_v12  ;;  %v10694_v2 = vsel %vm1863_vm4, %v10685_v42, 0 }
0x18ca   :  { %18978 = vmatpush3.msra.mxu1 %v10826_v12  ;;  %v10766_v38 = vand.u32 4294901760, %v10694_v2  ;;  %v10778_v9 = vand.u32 4294901760, %v10777_v48 }
0x18cb   :  { %18989 = vmatprep.subr.mxu1 %v10728_v61 }
0x18cc   :  { %18979 = vmatprep.mubr.f32.mxu1 %v10766_v38  ;;  %v10767_v17 = vsub.f32 %v10694_v2, %v10766_v38  ;;  %v10779_v43 = vsub.f32 %v10777_v48, %v10778_v9 }
0x18cd   :  { %18980 = vmatmul.mubr.f32.vlgmr.msra.gmra.mxu1 %v21804_v24 }
0x18ce   :  { %18990 = vmatpush3.msra.mxu1 %v10728_v61  ;;  %v10768_v25 = vand.u32 4294901760, %v10767_v17  ;;  %v10780_v52 = vand.u32 4294901760, %v10779_v43 }
0x18cf   :  { %18991 = vmatprep.subr.mxu1 %v21777_v1 }
0x18d0   :  { %18992 = vmatpush3.msra.mxu1 %v21777_v1  ;;  %18993 = vmatprep.mubr.f32.mxu1 %v10768_v25  ;;  %v10769_v16 = vsub.f32 %v10767_v17, %v10768_v25 }
0x18d1   :  { %19003 = vmatprep.subr.mxu1 %v10728_v61  ;;  %18994 = vmatmul.mubr.f32.vlgmr.msra.gmra.mxu1 %v10778_v9 }
0x18d2   :  { %19004 = vmatpush3.msra.mxu1 %v10728_v61  ;;  %19007 = vmatprep.mubr.f32.mxu1 %v10766_v38  ;;  %v10770_v30 = vand.u32 4294901760, %v10769_v16 }
0x18d3   :  { %19005 = vmatprep.subr.mxu1 %v21777_v1 }
0x18d4   :  { %19006 = vmatpush3.msra.mxu1 %v21777_v1  ;;  %18972 = vmatprep.mubr.f32.mxu0 %v10770_v30 }
0x18d5   :  { %19017 = vmatprep.subr.mxu1 %v11345_v29  ;;  %18973 = vmatmul.mubr.f32.vlgmr.msra.gmra.mxu0 %v10780_v52 }
0x18d6   :  { %18983 = vmatpush3.msra.mxu0 %v21783_v23  ;;  %19008 = vmatmul.mubr.f32.vlgmr.msra.gmra.mxu1 %v21804_v24 }
0x18d7   :  { %19018 = vmatpush3.xpose.msra.mxu1 %v11345_v29  ;;  %18984 = vmatprep.subr.mxu0 %v21780_v60 }
0x18d8   :  { %18986 = vmatprep.mubr.f32.mxu0 %v10767_v17  ;;  %19019 = vmatprep.subr.mxu1 %v11352_v49 }
0x18d9   :  { %19021 = vmatprep.mubr.f32.mxu1 %v21826_v19  ;;  %18985 = vmatpush3.msra.mxu0 %v21780_v60 }
0x18da   :  { %18996 = vmatprep.subr.mxu0 %v21790_v28  ;;  %18987 = vmatmul.mubr.f32.vlgmr.msra.gmra.mxu0 %v10777_v48 }
0x18db   :  { %18997 = vmatpush3.msra.mxu0 %v21790_v28  ;;  %19020 = vmatpush3.xpose.msra.mxu1 %v11352_v49 }
0x18dc   :  { %18998 = vmatprep.subr.mxu0 %v21786_v13  ;;  %19000 = vmatprep.mubr.f32.mxu0 %v10766_v38 }
0x18dd   :  { %19031 = vmatprep.subr.mxu1 %v21792_v40  ;;  %18999 = vmatpush3.msra.mxu0 %v21786_v13 }
0x18de   :  { %19010 = vmatprep.subr.mxu0 %v21792_v40  ;;  %19022 = vmatmul.mubr.f32.vlgmr.msra.gmra.mxu1 %v11302_v39 }
0x18df   :  { %19001 = vmatmul.mubr.f32.vlgmr.msra.gmra.mxu0 %v21804_v24  ;;  %19032 = vmatpush3.xpose.msra.mxu1 %v21792_v40 }
0x18e0   :  { %19011 = vmatpush3.xpose.msra.mxu0 %v21792_v40  ;;  %19035 = vmatprep.mubr.f32.mxu1 %v11294_v41 }
0x18e1   :  { %19012 = vmatprep.subr.mxu0 %v21802_v59  ;;  %19014 = vmatprep.mubr.f32.mxu0 %v11296_v32 }
0x18e2   :  { %19033 = vmatprep.subr.mxu1 %v21802_v59 }
0x18e3   :  { %19034 = vmatpush3.xpose.msra.mxu1 %v21802_v59 }
0x18e4   :  { %19013 = vmatpush3.xpose.msra.mxu0 %v21802_v59  ;;  %19045 = vmatprep.subr.mxu1 %v21792_v40 }
0x18e5   :  { %19024 = vmatprep.subr.mxu0 %v21807_v34 }
0x18e6   :  { %19036 = vmatmul.mubr.f32.vlgmr.msra.gmra.mxu1 %v11304_v18 }
0x18e7   :  { %19015 = vmatmul.mubr.f32.vlgmr.msra.gmra.mxu0 %v11306_v5  ;;  %19046 = vmatpush3.xpose.msra.mxu1 %v21792_v40 }
0x18e8   :  { %19025 = vmatpush3.xpose.msra.mxu0 %v21807_v34  ;;  %19028 = vmatprep.mubr.f32.mxu0 %v11293_v4 }
0x18e9   :  { %19049 = vmatprep.mubr.f32.mxu1 %v21826_v19  ;;  %19026 = vmatprep.subr.mxu0 %v21812_v45 }
0x18ea   :  { %19047 = vmatprep.subr.mxu1 %v21802_v59 }
0x18eb   :  { %19048 = vmatpush3.xpose.msra.mxu1 %v21802_v59 }
0x18ec   :  { %19027 = vmatpush3.xpose.msra.mxu0 %v21812_v45 }
0x18ed   :  { %19038 = vmatprep.subr.mxu0 %v21815_v27 }
0x18ee   :  { %19050 = vmatmul.mubr.f32.vlgmr.msra.gmra.mxu1 %v11302_v39 }
0x18ef   :  { %19029 = vmatmul.mubr.f32.vlgmr.msra.gmra.mxu0 %v11303_v35 }
0x18f0   :  { %19039 = vmatpush3.xpose.msra.mxu0 %v21815_v27  ;;  %19042 = vmatprep.mubr.f32.mxu0 %v21826_v19 }
0x18f1   :  { %19040 = vmatprep.subr.mxu0 %v21821_v10 }
0x18f4   :  { %19041 = vmatpush3.xpose.msra.mxu0 %v21821_v10 }
0x18f7   :  { %19043 = vmatmul.mubr.f32.vlgmr.msra.gmra.mxu0 %v11302_v39 }
0x198d   :  { %v18981_v58 = vpop.f32.mrf.mxu1 }
0x198f   :  { %v10863_v1 = vpop.f32.mrf.mxu1 }
0x1991   :  { %v18995_v60 = vpop.f32.mrf.mxu1 }
0x1993   :  { %v11027_v23 = vpop.f32.mrf.mxu1 }
0x1995   :  { %v18974_v53 = vpop.f32.mrf.mxu0 }
0x1996   :  { %v10870_v46 = vadd.f32 %v18981_v58, %v18974_v53  ;;  %v19009_v40 = vpop.f32.mrf.mxu1 }
0x1997   :  { %v10772_v47 = vpop.f32.mrf.mxu0 }
0x1998   :  { %v10864_v61 = vadd.f32 %v10863_v1, %v10772_v47  ;;  %v11191_v57 = vpop.f32.mrf.mxu1 }
0x199a   :  { %v18988_v33 = vpop.f32.mrf.mxu0 }
0x199b   :  { %v10953_v13 = vadd.f32 %v18988_v33, %v10870_v46 }
0x199c   :  { %v10945_v7 = vpop.f32.mrf.mxu0 }
0x199d   :  { %v10946_v28 = vadd.f32 %v10945_v7, %v10864_v61  ;;  %v11036_v6 = vadd.f32 %v18995_v60, %v10953_v13 }
0x199e   :  { %v19023_v34 = vpop.f32.mrf.mxu1 }
0x199f   :  { %v19002_v55 = vpop.f32.mrf.mxu0  ;;  %v11028_v36 = vadd.f32 %v11027_v23, %v10946_v28 }
0x19a0   :  { %v11119_v22 = vadd.f32 %v19002_v55, %v11036_v6  ;;  %v11389_v42 = vpop.f32.mrf.mxu1 }
0x19a1   :  { %v11112_v56 = vpop.f32.mrf.mxu0 }
0x19a2   :  { %v21868_v37 = vadd.f32 %v19009_v40, %v11119_v22  ;;  %v11113_v63 = vadd.f32 %v11112_v56, %v11028_v36 }
0x19a4   :  { %v21870_v59 = vadd.f32 %v11191_v57, %v11113_v63 }
0x19a6   :  { %v19037_v45 = vpop.f32.mrf.mxu1 }
0x19a7   :  { %v19016_v24 = vpop.f32.mrf.mxu0 }
0x19a8   :  { %v11396_v2 = vadd.f32 %v19023_v34, %v19016_v24  ;;  %v11553_v50 = vpop.f32.mrf.mxu1 }
0x19a9   :  { %v11298_v12 = vpop.f32.mrf.mxu0 }
0x19aa   :  { %v11390_v9 = vadd.f32 %v11389_v42, %v11298_v12 }
0x19ae   :  { %v19051_v10 = vpop.f32.mrf.mxu1 }
0x19af   :  { %v19030_v48 = vpop.f32.mrf.mxu0 }
0x19b0   :  { %v11479_v27 = vadd.f32 %v19030_v48, %v11396_v2  ;;  %v11717_v0 = vpop.f32.mrf.mxu1 }
0x19b1   :  { %v11471_v38 = vpop.f32.mrf.mxu0 }
0x19b2   :  { %v11472_v17 = vadd.f32 %v11471_v38, %v11390_v9  ;;  %v11562_v25 = vadd.f32 %v19037_v45, %v11479_v27 }
0x19b4   :  { %v11554_v19 = vadd.f32 %v11553_v50, %v11472_v17 }
0x19b7   :  { %v19044_v31 = vpop.f32.mrf.mxu0 }
0x19b8   :  { %v11645_v43 = vadd.f32 %v19044_v31, %v11562_v25 }
0x19b9   :  { %v11638_v16 = vpop.f32.mrf.mxu0 }
0x19ba   :  { %v11724_v30 = vadd.f32 %v19051_v10, %v11645_v43  ;;  %v11639_v20 = vadd.f32 %v11638_v16, %v11554_v19 }
0x19bc   :  { %v11728_v29 = vmul.f32 0.25, %v11724_v30  ;;  %v11718_v52 = vadd.f32 %v11717_v0, %v11639_v20 }
0x19be   :  { %v11727_v4 = vmul.f32 0.25, %v11718_v52  ;;  %v11730_v39 = vsel %vm20275_vm6, %v11728_v29, -inf }
0x19bf   :  { %v11734_v49 = vsel %vm1863_vm4, %v11730_v39, -inf }
0x19c0   :  { %11735 = vmax.xlane.f32.xlu1 %v11734_v49  ;;  %v11729_v41 = vsel %vm20279_vm7, %v11727_v4, -inf }
0x19c1   :  { %v11731_v35 = vsel %vm1863_vm4, %v11729_v41, -inf }
0x19c2   :  { %11732 = vmax.xlane.f32.xlu0 %v11731_v35 }
0x19d1   :  { %11753 = vrot.lane.b32.xlu1 %v21769_v14, %s19850_s7 }
0x19d5   :  { %12275 = vrot.lane.b32.xlu1 %v21631_v3, %s19851_s4 }
0x19d9   :  { %12273 = vrot.lane.b32.xlu1 %v21769_v14, %s19851_s4 }
0x19dd   :  { %12271 = vrot.lane.b32.xlu1 %v21631_v3, %s19852_s29 }
0x1a49   :  { %v11736_v8 = vpop.xlane.xlu1 %11735 }
0x1a4a   :  { %v11738_v18 = vsub.f32 %v11730_v39, %v11736_v8 }
0x1a4b   :  { %v11733_v32 = vpop.xlane.xlu0 %11732 }
0x1a4c   :  { %v11741_v44 = vmul.f32 1.442695, %v11738_v18  ;;  %v11737_v5 = vsub.f32 %v11729_v41, %v11733_v32 }
0x1a4d   :  { %v11754_v47 = vpop.permute.xlu1 %11753 }
0x1a4e   :  { %19801 = vpow2.f32 %v11741_v44  ;;  %v11739_v58 = vmul.f32 1.442695, %v11737_v5  ;;  %v21892_v33 = vand.u32 4294901760, %v11754_v47 }
0x1a50   :  { %19803 = vpow2.f32 %v11739_v58  ;;  %v21895_v7 = vsub.f32 %v11754_v47, %v21892_v33 }
0x1a51   :  { %v12276_v13 = vpop.permute.xlu1 %12275 }
0x1a52   :  { %v12283_v40 = vsel %vm1863_vm4, %v12276_v13, 0  ;;  %v21901_v36 = vand.u32 4294901760, %v21895_v7 }
0x1a53   :  { %v21907_v57 = vand.u32 4294901760, %v12283_v40 }
0x1a54   :  { %v11891_v42 = vsub.f32 %v21895_v7, %v21901_v36 }
0x1a55   :  { %v12274_v22 = vpop.permute.xlu1 %12273  ;;  %v21922_v27 = vsub.f32 %v12283_v40, %v21907_v57 }
0x1a56   :  { %v12281_v24 = vsel %vm1863_vm4, %v12274_v22, 0  ;;  %v11892_v17 = vand.u32 4294901760, %v11891_v42 }
0x1a57   :  { %v21917_v38 = vand.u32 4294901760, %v12281_v24  ;;  %v21930_v30 = vand.u32 4294901760, %v21922_v27 }
0x1a59   :  { %v21927_v43 = vsub.f32 %v12281_v24, %v21917_v38  ;;  %v12272_v4 = vpop.permute.xlu1 %12271  ;;  %v12404_v49 = vsub.f32 %v21922_v27, %v21930_v30 }
0x1a5a   :  { %v12279_v8 = vsel %vm1863_vm4, %v12272_v4, 0 }
0x1a5b   :  { %v19802_v1 = vpop.eup %19801  ;;  %v21935_v52 = vand.u32 4294901760, %v21927_v43  ;;  %v12405_v5 = vand.u32 4294901760, %v12404_v49 }
0x1a5c   :  { %v11746_v53 = vsel %vm1863_vm4, %v19802_v1, 0.0 }
0x1a5d   :  { %v19804_v46 = vpop.eup %19803  ;;  %11747 = vadd.xlane.f32.xlu0 %v11746_v53  ;;  %v12411_v32 = vsub.f32 %v21927_v43, %v21935_v52 }
0x1a5e   :  { %v11743_v60 = vsel %vm1863_vm4, %v19804_v46, 0.0 }
0x1a5f   :  { %v12412_v53 = vand.u32 4294901760, %v12411_v32 }
0x1a61   :  { %11744 = vadd.xlane.f32.xlu0 %v11743_v60 }
0x1a77   :  { %11755 = vrot.lane.b32.xlu0 %v21631_v3, %s19850_s7 }
0x1a7b   :  { %12269 = vrot.lane.b32.xlu0 %v21769_v14, %s19852_s29 }
0x1ae6   :  { %v11748_v61 = vpop.xlane.xlu0 %11747 }
0x1ae7   :  { %19805 = vrcp.f32 %v11748_v61 }
0x1aea   :  { %v11745_v23 = vpop.xlane.xlu0 %11744 }
0x1aeb   :  { %19807 = vrcp.f32 %v11745_v23 }
0x1aee   :  { %v11756_v28 = vpop.permute.xlu0 %11755 }
0x1aef   :  { %v11794_v6 = vand.u32 4294901760, %v11756_v28 }
0x1af1   :  { %v21898_v55 = vsub.f32 %v11756_v28, %v11794_v6  ;;  %19052 = vmatprep.subr.mxu0 %v11794_v6 }
0x1af2   :  { %19053 = vmatpush3.msra.mxu0 %v11794_v6  ;;  %v12270_v10 = vpop.permute.xlu0 %12269 }
0x1af3   :  { %19054 = vmatprep.subr.mxu0 %v21892_v33  ;;  %v21905_v56 = vand.u32 4294901760, %v21898_v55  ;;  %v12277_v20 = vsel %vm1863_vm4, %v12270_v10, 0 }
0x1af4   :  { %v19806_v63 = vpop.eup %19805  ;;  %19055 = vmatpush3.msra.mxu0 %v21892_v33  ;;  %v21937_v39 = vand.u32 4294901760, %v12277_v20 }
0x1af5   :  { %v11752_v34 = vmul.f32 %v19806_v63, %v19802_v1  ;;  %19066 = vmatprep.subr.mxu0 %v21898_v55  ;;  %v11884_v12 = vsub.f32 %v21898_v55, %v21905_v56  ;;  %v12362_v1 = vand.u32 4294901760, %v12279_v8 }
0x1af6   :  { %v12353_v44 = vsub.f32 %v12277_v20, %v21937_v39 }
0x1af7   :  { %v11885_v48 = vand.u32 4294901760, %v11884_v12  ;;  %v11763_v2 = vsel %vm1863_vm4, %v11752_v34, 0  ;;  %v12363_v60 = vsub.f32 %v12279_v8, %v12362_v1 }
0x1af8   :  { %v19808_v45 = vpop.eup %19807  ;;  %v21919_v9 = vand.u32 4294901760, %v11763_v2 }
0x1af9   :  { %19059 = vmatprep.subr.mxu1 %v11885_v48  ;;  %v11751_v50 = vmul.f32 %v19808_v45, %v19804_v46  ;;  %v12354_v46 = vand.u32 4294901760, %v12353_v44  ;;  %v12364_v61 = vand.u32 4294901760, %v12363_v60 }
0x1afa   :  { %19060 = vmatpush3.msra.mxu1 %v11885_v48  ;;  %v11843_v25 = vsub.f32 %v11763_v2, %v21919_v9 }
0x1afb   :  { %19061 = vmatprep.subr.mxu1 %v11892_v17  ;;  %v11760_v31 = vsel %vm1863_vm4, %v11751_v50, 0  ;;  %v12355_v47 = vsub.f32 %v12353_v44, %v12354_v46  ;;  %v12365_v23 = vsub.f32 %v12363_v60, %v12364_v61 }
0x1afc   :  { %19062 = vmatpush3.msra.mxu1 %v11892_v17  ;;  %v11832_v19 = vand.u32 4294901760, %v11760_v31  ;;  %v11844_v16 = vand.u32 4294901760, %v11843_v25 }
0x1afd   :  { %19073 = vmatprep.subr.mxu1 %v11794_v6  ;;  %v12366_v13 = vand.u32 4294901760, %v12365_v23 }
0x1afe   :  { %19063 = vmatprep.mubr.f32.mxu1 %v11832_v19  ;;  %v11833_v0 = vsub.f32 %v11760_v31, %v11832_v19  ;;  %v11845_v41 = vsub.f32 %v11843_v25, %v11844_v16 }
0x1aff   :  { %19064 = vmatmul.mubr.f32.vlgmr.msra.gmra.mxu1 %v21919_v9 }
0x1b00   :  { %19074 = vmatpush3.msra.mxu1 %v11794_v6  ;;  %v11834_v29 = vand.u32 4294901760, %v11833_v0  ;;  %v11846_v58 = vand.u32 4294901760, %v11845_v41 }
0x1b01   :  { %19075 = vmatprep.subr.mxu1 %v21892_v33 }
0x1b02   :  { %19076 = vmatpush3.msra.mxu1 %v21892_v33  ;;  %19077 = vmatprep.mubr.f32.mxu1 %v11834_v29  ;;  %v11835_v35 = vsub.f32 %v11833_v0, %v11834_v29 }
0x1b03   :  { %19087 = vmatprep.subr.mxu1 %v11794_v6  ;;  %19078 = vmatmul.mubr.f32.vlgmr.msra.gmra.mxu1 %v11844_v16 }
0x1b04   :  { %19088 = vmatpush3.msra.mxu1 %v11794_v6  ;;  %19091 = vmatprep.mubr.f32.mxu1 %v11832_v19  ;;  %v11836_v18 = vand.u32 4294901760, %v11835_v35 }
0x1b05   :  { %19089 = vmatprep.subr.mxu1 %v21892_v33 }
0x1b06   :  { %19090 = vmatpush3.msra.mxu1 %v21892_v33  ;;  %19056 = vmatprep.mubr.f32.mxu0 %v11836_v18  ;;  %v12356_v33 = vand.u32 4294901760, %v12355_v47 }
0x1b07   :  { %19101 = vmatprep.subr.mxu1 %v12405_v5  ;;  %19057 = vmatmul.mubr.f32.vlgmr.msra.gmra.mxu0 %v11846_v58 }
0x1b08   :  { %19067 = vmatpush3.msra.mxu0 %v21898_v55  ;;  %19092 = vmatmul.mubr.f32.vlgmr.msra.gmra.mxu1 %v21919_v9 }
0x1b09   :  { %19102 = vmatpush3.xpose.msra.mxu1 %v12405_v5  ;;  %19068 = vmatprep.subr.mxu0 %v21895_v7 }
0x1b0a   :  { %19070 = vmatprep.mubr.f32.mxu0 %v11833_v0  ;;  %19103 = vmatprep.subr.mxu1 %v12412_v53 }
0x1b0b   :  { %19105 = vmatprep.mubr.f32.mxu1 %v21937_v39  ;;  %19069 = vmatpush3.msra.mxu0 %v21895_v7 }
0x1b0c   :  { %19080 = vmatprep.subr.mxu0 %v21905_v56  ;;  %19071 = vmatmul.mubr.f32.vlgmr.msra.gmra.mxu0 %v11843_v25 }
0x1b0d   :  { %19081 = vmatpush3.msra.mxu0 %v21905_v56  ;;  %19104 = vmatpush3.xpose.msra.mxu1 %v12412_v53 }
0x1b0e   :  { %19082 = vmatprep.subr.mxu0 %v21901_v36  ;;  %19084 = vmatprep.mubr.f32.mxu0 %v11832_v19 }
0x1b0f   :  { %19115 = vmatprep.subr.mxu1 %v21907_v57  ;;  %19083 = vmatpush3.msra.mxu0 %v21901_v36 }
0x1b10   :  { %19094 = vmatprep.subr.mxu0 %v21907_v57  ;;  %19106 = vmatmul.mubr.f32.vlgmr.msra.gmra.mxu1 %v12362_v1 }
0x1b11   :  { %19085 = vmatmul.mubr.f32.vlgmr.msra.gmra.mxu0 %v21919_v9  ;;  %19116 = vmatpush3.xpose.msra.mxu1 %v21907_v57 }
0x1b12   :  { %19095 = vmatpush3.xpose.msra.mxu0 %v21907_v57  ;;  %19119 = vmatprep.mubr.f32.mxu1 %v12354_v46 }
0x1b13   :  { %19096 = vmatprep.subr.mxu0 %v21917_v38  ;;  %19098 = vmatprep.mubr.f32.mxu0 %v12356_v33 }
0x1b14   :  { %19117 = vmatprep.subr.mxu1 %v21917_v38 }
0x1b15   :  { %19118 = vmatpush3.xpose.msra.mxu1 %v21917_v38 }
0x1b16   :  { %19097 = vmatpush3.xpose.msra.mxu0 %v21917_v38  ;;  %19129 = vmatprep.subr.mxu1 %v21907_v57 }
0x1b17   :  { %19108 = vmatprep.subr.mxu0 %v21922_v27 }
0x1b18   :  { %19120 = vmatmul.mubr.f32.vlgmr.msra.gmra.mxu1 %v12364_v61 }
0x1b19   :  { %19099 = vmatmul.mubr.f32.vlgmr.msra.gmra.mxu0 %v12366_v13  ;;  %19130 = vmatpush3.xpose.msra.mxu1 %v21907_v57 }
0x1b1a   :  { %19109 = vmatpush3.xpose.msra.mxu0 %v21922_v27  ;;  %19112 = vmatprep.mubr.f32.mxu0 %v12353_v44 }
0x1b1b   :  { %19133 = vmatprep.mubr.f32.mxu1 %v21937_v39  ;;  %19110 = vmatprep.subr.mxu0 %v21927_v43 }
0x1b1c   :  { %19131 = vmatprep.subr.mxu1 %v21917_v38 }
0x1b1d   :  { %19132 = vmatpush3.xpose.msra.mxu1 %v21917_v38 }
0x1b1e   :  { %19111 = vmatpush3.xpose.msra.mxu0 %v21927_v43 }
0x1b1f   :  { %19122 = vmatprep.subr.mxu0 %v21930_v30 }
0x1b20   :  { %19134 = vmatmul.mubr.f32.vlgmr.msra.gmra.mxu1 %v12362_v1 }
0x1b21   :  { %19113 = vmatmul.mubr.f32.vlgmr.msra.gmra.mxu0 %v12363_v60 }
0x1b22   :  { %19123 = vmatpush3.xpose.msra.mxu0 %v21930_v30  ;;  %19126 = vmatprep.mubr.f32.mxu0 %v21937_v39 }
0x1b23   :  { %19124 = vmatprep.subr.mxu0 %v21935_v52 }
0x1b26   :  { %19125 = vmatpush3.xpose.msra.mxu0 %v21935_v52 }
0x1b29   :  { %19127 = vmatmul.mubr.f32.vlgmr.msra.gmra.mxu0 %v12362_v1 }
0x1bbf   :  { %v19065_v7 = vpop.f32.mrf.mxu1 }
0x1bc1   :  { %v11929_v28 = vpop.f32.mrf.mxu1 }
0x1bc3   :  { %v19079_v40 = vpop.f32.mrf.mxu1 }
0x1bc5   :  { %v12093_v56 = vpop.f32.mrf.mxu1 }
0x1bc7   :  { %v19058_v6 = vpop.f32.mrf.mxu0 }
0x1bc8   :  { %v11936_v36 = vadd.f32 %v19065_v7, %v19058_v6  ;;  %v19093_v42 = vpop.f32.mrf.mxu1 }
0x1bc9   :  { %v11838_v55 = vpop.f32.mrf.mxu0 }
0x1bca   :  { %v11930_v63 = vadd.f32 %v11929_v28, %v11838_v55  ;;  %v12257_v17 = vpop.f32.mrf.mxu1 }
0x1bcc   :  { %v19072_v22 = vpop.f32.mrf.mxu0 }
0x1bcd   :  { %v12019_v57 = vadd.f32 %v19072_v22, %v11936_v36 }
0x1bce   :  { %v12011_v24 = vpop.f32.mrf.mxu0 }
0x1bcf   :  { %v12012_v34 = vadd.f32 %v12011_v24, %v11930_v63  ;;  %v12102_v12 = vadd.f32 %v19079_v40, %v12019_v57 }
0x1bd0   :  { %v19107_v10 = vpop.f32.mrf.mxu1 }
0x1bd1   :  { %v19086_v48 = vpop.f32.mrf.mxu0  ;;  %v12094_v2 = vadd.f32 %v12093_v56, %v12012_v34  ;;  %v16807_v34 = vld [vmem:[%s23084_s11 + $0x38] sm:$0xff] }
0x1bd2   :  { %v12185_v45 = vadd.f32 %v19086_v48, %v12102_v12  ;;  %v12449_v43 = vpop.f32.mrf.mxu1  ;;  %v22018_v48 = vand.u32 4294901760, %v16807_v34 }
0x1bd3   :  { %v12178_v38 = vpop.f32.mrf.mxu0 }
0x1bd4   :  { %v12264_v9 = vadd.f32 %v19093_v42, %v12185_v45  ;;  %v12179_v27 = vadd.f32 %v12178_v38, %v12094_v2  ;;  %v16806_v2 = vld [vmem:[%s23084_s11 + $0x30] sm:$0xff] }
0x1bd6   :  { %12268 = vst.msk [vmem:[#allocation2 + $0x18] sm:$0xff] %vm1863_vm4, %v12264_v9  ;;  %v12258_v50 = vadd.f32 %v12257_v17, %v12179_v27  ;;  %v22029_v17 = vand.u32 4294901760, %v16806_v2 }
0x1bd8   :  { %12267 = vst.msk [vmem:[#allocation2 + $0x10] sm:$0xff] %vm1863_vm4, %v12258_v50  ;;  %v19121_v30 = vpop.f32.mrf.mxu1  ;;  %v16805_v50 = vld [vmem:[%s23084_s11 + $0x28] sm:$0xff] }
0x1bd9   :  { %v19100_v25 = vpop.f32.mrf.mxu0 }
0x1bda   :  { %v12456_v16 = vadd.f32 %v19107_v10, %v19100_v25  ;;  %v12613_v4 = vpop.f32.mrf.mxu1 }
0x1bdb   :  { %v12358_v31 = vpop.f32.mrf.mxu0 }
0x1bdc   :  { %v12450_v0 = vadd.f32 %v12449_v43, %v12358_v31  ;;  %v22036_v31 = vsub.f32 %v16807_v34, %v22018_v48 }
0x1be0   :  { %v19135_v49 = vpop.f32.mrf.mxu1 }
0x1be1   :  { %v19114_v19 = vpop.f32.mrf.mxu0 }
0x1be2   :  { %v12539_v29 = vadd.f32 %v19114_v19, %v12456_v16  ;;  %v12777_v5 = vpop.f32.mrf.mxu1 }
0x1be3   :  { %v12531_v20 = vpop.f32.mrf.mxu0 }
0x1be4   :  { %v12532_v52 = vadd.f32 %v12531_v20, %v12450_v0  ;;  %v12622_v39 = vadd.f32 %v19121_v30, %v12539_v29  ;;  %v22040_v20 = vand.u32 4294901760, %v16805_v50  ;;  %v16804_v0 = vld [vmem:[%s23084_s11 + $0x20] sm:$0xff] }
0x1be6   :  { %v12614_v8 = vadd.f32 %v12613_v4, %v12532_v52  ;;  %v22049_v52 = vsub.f32 %v16806_v2, %v22029_v17 }
0x1be9   :  { %v19128_v41 = vpop.f32.mrf.mxu0 }
0x1bea   :  { %v12705_v35 = vadd.f32 %v19128_v41, %v12622_v39  ;;  %v22053_v39 = vand.u32 4294901760, %v22036_v31 }
0x1beb   :  { %v12698_v18 = vpop.f32.mrf.mxu0 }
0x1bec   :  { %v12784_v32 = vadd.f32 %v19135_v49, %v12705_v35  ;;  %v12699_v44 = vadd.f32 %v12698_v18, %v12614_v8  ;;  %v22055_v35 = vand.u32 4294901760, %v16804_v0  ;;  %v22059_v18 = vsub.f32 %v16805_v50, %v22040_v20 }
0x1bee   :  { %v12788_v58 = vmul.f32 0.25, %v12784_v32  ;;  %v12778_v1 = vadd.f32 %v12777_v5, %v12699_v44  ;;  %v22062_v44 = vand.u32 4294901760, %v22049_v52 }
0x1bf0   :  { %v12787_v53 = vmul.f32 0.25, %v12778_v1  ;;  %v12790_v46 = vsel %vm20275_vm6, %v12788_v58, -inf  ;;  %v13503_v58 = vsub.f32 %v22036_v31, %v22053_v39 }
0x1bf1   :  { %v12794_v60 = vsel %vm1863_vm4, %v12790_v46, -inf }
0x1bf2   :  { %12795 = vmax.xlane.f32.xlu1 %v12794_v60  ;;  %v12789_v47 = vsel %vm20279_vm7, %v12787_v53, -inf  ;;  %v22069_v53 = vsub.f32 %v16804_v0, %v22055_v35 }
0x1bf3   :  { %v12791_v61 = vsel %vm1863_vm4, %v12789_v47, -inf }
0x1bf4   :  { %12792 = vmax.xlane.f32.xlu0 %v12791_v61 }
0x1c03   :  { %12813 = vrot.lane.b32.xlu1 %v21769_v14, %s19853_s3 }
0x1c07   :  { %11203 = vrot.lane.b32.xlu1 %v21870_v59, %s19854_s8 }
0x1c0b   :  { %11205 = vrot.lane.b32.xlu1 %v21868_v37, %s19854_s8 }
0x1c7b   :  { %v12796_v26 = vpop.xlane.xlu1 %12795 }
0x1c7c   :  { %v12798_v33 = vsub.f32 %v12790_v46, %v12796_v26  ;;  %v13510_v26 = vsub.f32 %v22049_v52, %v22062_v44 }
0x1c7d   :  { %v12793_v23 = vpop.xlane.xlu0 %12792 }
0x1c7e   :  { %v12801_v13 = vmul.f32 1.442695, %v12798_v33  ;;  %v12797_v7 = vsub.f32 %v12789_v47, %v12793_v23  ;;  %v22076_v47 = vand.u32 4294901760, %v22059_v18  ;;  %v13504_v23 = vand.u32 4294901760, %v13503_v58 }
0x1c7f   :  { %v12814_v28 = vpop.permute.xlu1 %12813 }
0x1c80   :  { %19809 = vpow2.f32 %v12801_v13  ;;  %v12799_v15 = vmul.f32 1.442695, %v12797_v7  ;;  %v22001_v22 = vand.u32 4294901760, %v12814_v28  ;;  %v22082_v7 = vand.u32 4294901760, %v22069_v53 }
0x1c82   :  { %19811 = vpow2.f32 %v12799_v15  ;;  %v22004_v63 = vsub.f32 %v12814_v28, %v22001_v22  ;;  %v13517_v15 = vsub.f32 %v22059_v18, %v22076_v47 }
0x1c83   :  { %v11204_v6 = vpop.permute.xlu1 %11203 }
0x1c84   :  { %11209 = vst.msk [vmem:[#allocation2] sm:$0xff] %vm3982_vm8, %v11204_v6 }
0x1c87   :  { %v11206_v40 = vpop.permute.xlu1 %11205 }
0x1c88   :  { %11210 = vst.msk [vmem:[#allocation2 + $0x8] sm:$0xff] %vm3982_vm8, %v11206_v40 }
0x1c8b   :  { %v13337_v49 = vld [vmem:[#allocation2] sm:$0xff] }
0x1c8c   :  { %v13355_v5 = vsel %vm1123_vm3, %v13337_v49, 0 }
0x1c8d   :  { %v19810_v14 = vpop.eup %19809  ;;  %v22073_v60 = vand.u32 4294901760, %v13355_v5 }
0x1c8e   :  { %v12806_v59 = vsel %vm1863_vm4, %v19810_v14, 0.0 }
0x1c8f   :  { %v19812_v55 = vpop.eup %19811  ;;  %12807 = vadd.xlane.f32.xlu0 %v12806_v59  ;;  %v13338_v33 = vld [vmem:[#allocation2 + $0x8] sm:$0xff]  ;;  %v22089_v40 = vsub.f32 %v13355_v5, %v22073_v60  ;;  %v13524_v59 = vsub.f32 %v22069_v53, %v22082_v7 }
0x1c90   :  { %v12803_v37 = vsel %vm1863_vm4, %v19812_v55, 0.0  ;;  %v13358_v6 = vsel %vm1123_vm3, %v13338_v33, 0 }
0x1c93   :  { %12804 = vadd.xlane.f32.xlu0 %v12803_v37  ;;  %v13518_v37 = vand.u32 4294901760, %v13517_v15 }
0x1ca9   :  { %12815 = vrot.lane.b32.xlu0 %v21631_v3, %s19853_s3  ;;  %v22012_v3 = vand.u32 4294901760, %v22004_v63 }
0x1cab   :  { %v12951_v27 = vsub.f32 %v22004_v63, %v22012_v3 }
0x1cad   :  { %v12952_v16 = vand.u32 4294901760, %v12951_v27 }
0x1d18   :  { %v12808_v36 = vpop.xlane.xlu0 %12807 }
0x1d19   :  { %19813 = vrcp.f32 %v12808_v36  ;;  %v13437_v36 = vand.u32 4294901760, %v22089_v40 }
0x1d1c   :  { %v12805_v56 = vpop.xlane.xlu0 %12804 }
0x1d1d   :  { %19815 = vrcp.f32 %v12805_v56 }
0x1d20   :  { %v12816_v57 = vpop.permute.xlu0 %12815 }
0x1d21   :  { %v12854_v24 = vand.u32 4294901760, %v12816_v57 }
0x1d23   :  { %v22009_v12 = vsub.f32 %v12816_v57, %v12854_v24  ;;  %19136 = vmatprep.subr.mxu0 %v12854_v24  ;;  %v13438_v57 = vsub.f32 %v22089_v40, %v13437_v36 }
0x1d24   :  { %19137 = vmatpush3.msra.mxu0 %v12854_v24 }
0x1d25   :  { %19138 = vmatprep.subr.mxu0 %v22001_v22  ;;  %v22016_v42 = vand.u32 4294901760, %v22009_v12 }
0x1d26   :  { %v19814_v45 = vpop.eup %19813  ;;  %19139 = vmatpush3.msra.mxu0 %v22001_v22 }
0x1d27   :  { %v12812_v38 = vmul.f32 %v19814_v45, %v19810_v14  ;;  %19150 = vmatprep.subr.mxu0 %v22009_v12  ;;  %v12944_v9 = vsub.f32 %v22009_v12, %v22016_v42  ;;  %v13511_v14 = vand.u32 4294901760, %v13510_v26 }
0x1d29   :  { %v12945_v25 = vand.u32 4294901760, %v12944_v9  ;;  %v12823_v10 = vsel %vm1863_vm4, %v12812_v38, 0 }
0x1d2a   :  { %v19816_v43 = vpop.eup %19815  ;;  %v22038_v19 = vand.u32 4294901760, %v12823_v10 }
0x1d2b   :  { %19143 = vmatprep.subr.mxu1 %v12945_v25  ;;  %v12811_v30 = vmul.f32 %v19816_v43, %v19812_v55  ;;  %v22096_v55 = vand.u32 4294901760, %v13358_v6 }
0x1d2c   :  { %19144 = vmatpush3.msra.mxu1 %v12945_v25  ;;  %v22046_v29 = vsub.f32 %v12823_v10, %v22038_v19 }
0x1d2d   :  { %19145 = vmatprep.subr.mxu1 %v12952_v16  ;;  %v12820_v4 = vsel %vm1863_vm4, %v12811_v30, 0  ;;  %v22104_v56 = vsub.f32 %v13358_v6, %v22096_v55 }
0x1d2e   :  { %19146 = vmatpush3.msra.mxu1 %v12952_v16  ;;  %v12892_v41 = vand.u32 4294901760, %v12820_v4  ;;  %v12904_v8 = vand.u32 4294901760, %v22046_v29 }
0x1d2f   :  { %19157 = vmatprep.subr.mxu1 %v12854_v24 }
0x1d30   :  { %19147 = vmatprep.mubr.f32.mxu1 %v12892_v41  ;;  %v12893_v32 = vsub.f32 %v12820_v4, %v12892_v41  ;;  %v12905_v46 = vsub.f32 %v22046_v29, %v12904_v8 }
0x1d31   :  { %19148 = vmatmul.mubr.f32.vlgmr.msra.gmra.mxu1 %v22038_v19 }
0x1d32   :  { %19158 = vmatpush3.msra.mxu1 %v12854_v24  ;;  %v12894_v1 = vand.u32 4294901760, %v12893_v32  ;;  %v12906_v28 = vand.u32 4294901760, %v12905_v46 }
0x1d33   :  { %19159 = vmatprep.subr.mxu1 %v22001_v22 }
0x1d34   :  { %19160 = vmatpush3.msra.mxu1 %v22001_v22  ;;  %19161 = vmatprep.mubr.f32.mxu1 %v12894_v1  ;;  %v12895_v61 = vsub.f32 %v12893_v32, %v12894_v1 }
0x1d35   :  { %19171 = vmatprep.subr.mxu1 %v12854_v24  ;;  %19162 = vmatmul.mubr.f32.vlgmr.msra.gmra.mxu1 %v12904_v8 }
0x1d36   :  { %19172 = vmatpush3.msra.mxu1 %v12854_v24  ;;  %19175 = vmatprep.mubr.f32.mxu1 %v12892_v41  ;;  %v12896_v13 = vand.u32 4294901760, %v12895_v61  ;;  %v13439_v24 = vand.u32 4294901760, %v13438_v57 }
0x1d37   :  { %19173 = vmatprep.subr.mxu1 %v22001_v22 }
0x1d38   :  { %19174 = vmatpush3.msra.mxu1 %v22001_v22  ;;  %19140 = vmatprep.mubr.f32.mxu0 %v12896_v13  ;;  %v13525_v22 = vand.u32 4294901760, %v13524_v59 }
0x1d39   :  { %19192 = vmatprep.subr.mxu1 %v13504_v23  ;;  %19141 = vmatmul.mubr.f32.vlgmr.msra.gmra.mxu0 %v12906_v28 }
0x1d3a   :  { %19151 = vmatpush3.msra.mxu0 %v22009_v12  ;;  %19176 = vmatmul.mubr.f32.vlgmr.msra.gmra.mxu1 %v22038_v19 }
0x1d3b   :  { %19193 = vmatpush3.msra.mxu1 %v13504_v23  ;;  %19152 = vmatprep.subr.mxu0 %v22004_v63 }
0x1d3c   :  { %19154 = vmatprep.mubr.f32.mxu0 %v12893_v32  ;;  %19194 = vmatprep.subr.mxu1 %v13511_v14 }
0x1d3d   :  { %19200 = vmatprep.mubr.f32.mxu1 %v22073_v60  ;;  %19153 = vmatpush3.msra.mxu0 %v22004_v63  ;;  %v13447_v63 = vand.u32 4294901760, %v22104_v56 }
0x1d3e   :  { %19195 = vmatpush3.msra.mxu1 %v13511_v14  ;;  %19164 = vmatprep.subr.mxu0 %v22016_v42 }
0x1d3f   :  { %19196 = vmatprep.subr.mxu1 %v13518_v37  ;;  %19155 = vmatmul.mubr.f32.vlgmr.msra.gmra.mxu0 %v22046_v29  ;;  %v13448_v34 = vsub.f32 %v22104_v56, %v13447_v63 }
0x1d40   :  { %19165 = vmatpush3.msra.mxu0 %v22016_v42  ;;  %19197 = vmatpush3.msra.mxu1 %v13518_v37 }
0x1d41   :  { %19166 = vmatprep.subr.mxu0 %v22012_v3  ;;  %19168 = vmatprep.mubr.f32.mxu0 %v12892_v41  ;;  %v13449_v12 = vand.u32 4294901760, %v13448_v34 }
0x1d42   :  { %19198 = vmatprep.subr.mxu1 %v13525_v22  ;;  %19167 = vmatpush3.msra.mxu0 %v22012_v3 }
0x1d43   :  { %19199 = vmatpush3.msra.mxu1 %v13525_v22  ;;  %19178 = vmatprep.subr.mxu0 %v22018_v48 }
0x1d44   :  { %19201 = vmatmul.mubr.f32.vlgmr.msra.gmra.mxu1 %v22096_v55  ;;  %19169 = vmatmul.mubr.f32.vlgmr.msra.gmra.mxu0 %v22038_v19 }
0x1d45   :  { %19179 = vmatpush3.msra.mxu0 %v22018_v48  ;;  %19186 = vmatprep.mubr.f32.mxu0 %v13439_v24 }
0x1d46   :  { %19180 = vmatprep.subr.mxu0 %v22029_v17  ;;  %19220 = vmatprep.subr.mxu1 %v22018_v48 }
0x1d47   :  { %19181 = vmatpush3.msra.mxu0 %v22029_v17  ;;  %19221 = vmatpush3.msra.mxu1 %v22018_v48 }
0x1d48   :  { %19182 = vmatprep.subr.mxu0 %v22040_v20  ;;  %19222 = vmatprep.subr.mxu1 %v22029_v17 }
0x1d49   :  { %19183 = vmatpush3.msra.mxu0 %v22040_v20  ;;  %19223 = vmatpush3.msra.mxu1 %v22029_v17 }
0x1d4a   :  { %19184 = vmatprep.subr.mxu0 %v22055_v35  ;;  %19224 = vmatprep.subr.mxu1 %v22040_v20 }
0x1d4b   :  { %19185 = vmatpush3.msra.mxu0 %v22055_v35  ;;  %19225 = vmatpush3.msra.mxu1 %v22040_v20 }
0x1d4c   :  { %19187 = vmatmul.mubr.f32.vlgmr.msra.gmra.mxu0 %v13449_v12  ;;  %19226 = vmatprep.subr.mxu1 %v22055_v35 }
0x1d4d   :  { %19227 = vmatpush3.msra.mxu1 %v22055_v35  ;;  %19206 = vmatprep.subr.mxu0 %v22036_v31 }
0x1d4e   :  { %19248 = vmatprep.subr.mxu1 %v22018_v48  ;;  %19207 = vmatpush3.msra.mxu0 %v22036_v31 }
0x1d4f   :  { %19208 = vmatprep.subr.mxu0 %v22049_v52 }
0x1d50   :  { %19209 = vmatpush3.msra.mxu0 %v22049_v52 }
0x1d51   :  { %19210 = vmatprep.subr.mxu0 %v22059_v18 }
0x1d52   :  { %19211 = vmatpush3.msra.mxu0 %v22059_v18 }
0x1d53   :  { %19212 = vmatprep.subr.mxu0 %v22069_v53 }
0x1d54   :  { %19213 = vmatpush3.msra.mxu0 %v22069_v53 }
0x1d55   :  { %19234 = vmatprep.subr.mxu0 %v22053_v39 }
0x1df1   :  { %v19149_v3 = vpop.f32.mrf.mxu1 }
0x1df3   :  { %v12989_v42 = vpop.f32.mrf.mxu1 }
0x1df5   :  { %v19163_v38 = vpop.f32.mrf.mxu1 }
0x1df7   :  { %v13153_v50 = vpop.f32.mrf.mxu1 }
0x1df9   :  { %v19142_v2 = vpop.f32.mrf.mxu0 }
0x1dfa   :  { %v12996_v9 = vadd.f32 %v19149_v3, %v19142_v2  ;;  %v19177_v16 = vpop.f32.mrf.mxu1 }
0x1dfb   :  { %v12898_v45 = vpop.f32.mrf.mxu0 }
0x1dfc   :  { %v12990_v25 = vadd.f32 %v12989_v42, %v12898_v45  ;;  %v13317_v41 = vpop.f32.mrf.mxu1 }
0x1dff   :  { %v19156_v27 = vpop.f32.mrf.mxu0 }
0x1e00   :  { %v13079_v10 = vadd.f32 %v19156_v27, %v12996_v9 }
0x1e01   :  { %v13071_v31 = vpop.f32.mrf.mxu0 }
0x1e02   :  { %v13072_v43 = vadd.f32 %v13071_v31, %v12990_v25  ;;  %v13162_v19 = vadd.f32 %v19163_v38, %v13079_v10 }
0x1e04   :  { %v19170_v30 = vpop.f32.mrf.mxu0  ;;  %v13154_v0 = vadd.f32 %v13153_v50, %v13072_v43 }
0x1e05   :  { %v13245_v29 = vadd.f32 %v19170_v30, %v13162_v19 }
0x1e06   :  { %v13238_v52 = vpop.f32.mrf.mxu0 }
0x1e07   :  { %v13324_v4 = vadd.f32 %v19177_v16, %v13245_v29  ;;  %v13239_v49 = vadd.f32 %v13238_v52, %v13154_v0 }
0x1e09   :  { %v13318_v8 = vadd.f32 %v13317_v41, %v13239_v49  ;;  %13331 = vrot.lane.b32.xlu1 %v13324_v4, %s19854_s8 }
0x1e0b   :  { %13329 = vrot.lane.b32.xlu0 %v13318_v8, %s19854_s8 }
0x1e7b   :  { %v13332_v18 = vpop.permute.xlu1 %13331 }
0x1e7c   :  { %13336 = vst.msk [vmem:[#allocation2 + $0x18] sm:$0xff] %vm3982_vm8, %v13332_v18 }
0x1e7d   :  { %v13330_v32 = vpop.permute.xlu0 %13329 }
0x1e7e   :  { %13335 = vst.msk [vmem:[#allocation2 + $0x10] sm:$0xff] %vm3982_vm8, %v13330_v32 }
0x1e83   :  { %v13340_v5 = vld [vmem:[#allocation2 + $0x18] sm:$0xff] }
0x1e84   :  { %v13364_v58 = vsel %vm1123_vm3, %v13340_v5, 0 }
0x1e85   :  { %v13339_v1 = vld [vmem:[#allocation2 + $0x10] sm:$0xff]  ;;  %v13465_v53 = vand.u32 4294901760, %v13364_v58 }
0x1e86   :  { %v13361_v46 = vsel %vm1123_vm3, %v13339_v1, 0 }
0x1e87   :  { %v13455_v61 = vand.u32 4294901760, %v13361_v46  ;;  %v13466_v26 = vsub.f32 %v13364_v58, %v13465_v53 }
0x1e89   :  { %19203 = vmatprep.mubr.f32.mxu1 %v13455_v61  ;;  %v13456_v33 = vsub.f32 %v13361_v46, %v13455_v61  ;;  %v13467_v23 = vand.u32 4294901760, %v13466_v26 }
0x1e8a   :  { %19204 = vmatmul.mubr.f32.gmra.mxu1 %v13465_v53 }
0x1e8b   :  { %19228 = vmatprep.mubr.f32.mxu1 %v13437_v36  ;;  %v13457_v13 = vand.u32 4294901760, %v13456_v33  ;;  %v13468_v28 = vsub.f32 %v13466_v26, %v13467_v23 }
0x1e8d   :  { %v13458_v15 = vsub.f32 %v13456_v33, %v13457_v13  ;;  %v13469_v14 = vand.u32 4294901760, %v13468_v28 }
0x1e8e   :  { %19229 = vmatmul.mubr.f32.vlgmr.msra.gmra.mxu1 %v13447_v63 }
0x1e8f   :  { %19231 = vmatprep.mubr.f32.mxu1 %v13457_v13  ;;  %19249 = vmatpush3.msra.mxu1 %v22018_v48  ;;  %v13459_v6 = vand.u32 4294901760, %v13458_v15  ;;  %v19202_v48 = vpop.f32.mrf.mxu1 }
0x1e90   :  { %19250 = vmatprep.subr.mxu1 %v22029_v17 }
0x1e91   :  { %19189 = vmatprep.mubr.f32.mxu0 %v13459_v6  ;;  %19251 = vmatpush3.msra.mxu1 %v22029_v17  ;;  %v13562_v17 = vpop.f32.mrf.mxu1 }
0x1e92   :  { %19190 = vmatmul.mubr.f32.gmra.mxu0 %v13469_v14  ;;  %19232 = vmatmul.mubr.f32.gmra.mxu1 %v13467_v23 }
0x1e93   :  { %19252 = vmatprep.subr.mxu1 %v22040_v20  ;;  %19214 = vmatprep.mubr.f32.mxu0 %v22089_v40 }
0x1e94   :  { %19253 = vmatpush3.msra.mxu1 %v22040_v20  ;;  %19256 = vmatprep.mubr.f32.mxu1 %v22073_v60 }
0x1e95   :  { %19254 = vmatprep.subr.mxu1 %v22055_v35 }
0x1e96   :  { %19255 = vmatpush3.msra.mxu1 %v22055_v35  ;;  %19215 = vmatmul.mubr.f32.vlgmr.msra.gmra.mxu0 %v22104_v56 }
0x1e97   :  { %19257 = vmatmul.mubr.f32.vlgmr.msra.gmra.mxu1 %v22096_v55  ;;  %19217 = vmatprep.mubr.f32.mxu0 %v13456_v33 }
0x1e98   :  { %19235 = vmatpush3.msra.mxu0 %v22053_v39  ;;  %19259 = vmatprep.mubr.f32.mxu1 %v13455_v61  ;;  %v19188_v39 = vpop.f32.mrf.mxu0 }
0x1e99   :  { %19236 = vmatprep.subr.mxu0 %v22062_v44 }
0x1e9a   :  { %19237 = vmatpush3.msra.mxu0 %v22062_v44  ;;  %v13441_v40 = vpop.f32.mrf.mxu0 }
0x1e9b   :  { %19218 = vmatmul.mubr.f32.gmra.mxu0 %v13466_v26  ;;  %19238 = vmatprep.subr.mxu0 %v22076_v47 }
0x1e9c   :  { %19260 = vmatmul.mubr.f32.gmra.mxu1 %v13465_v53  ;;  %19239 = vmatpush3.msra.mxu0 %v22076_v47 }
0x1e9d   :  { %19242 = vmatprep.mubr.f32.mxu0 %v22073_v60  ;;  %19240 = vmatprep.subr.mxu0 %v22082_v7  ;;  %v16809_v60 = vld [vmem:[%s23085_s12 + $0x1] ss:$0 sm:$0xff] }
0x1e9e   :  { %19241 = vmatpush3.msra.mxu0 %v22082_v7  ;;  %v13452_v36 = vadd.f32 %v19188_v39, %v16809_v60  ;;  %v13442_v22 = vadd.f32 %v16809_v60, %v13441_v40 }
0x1e9f   :  { %19243 = vmatmul.mubr.f32.vlgmr.msra.gmra.mxu0 %v22096_v55 }
0x1ea0   :  { %19245 = vmatprep.mubr.f32.mxu0 %v13455_v61  ;;  %v13569_v63 = vadd.f32 %v19202_v48, %v13452_v36  ;;  %v13563_v3 = vadd.f32 %v13562_v17, %v13442_v22 }
0x1ea3   :  { %19246 = vmatmul.mubr.f32.gmra.mxu0 %v13465_v53 }
0x1f4a   :  { %v19205_v20 = vpop.f32.mrf.mxu1 }
0x1f4c   :  { %v13574_v35 = vpop.f32.mrf.mxu1 }
0x1f4e   :  { %v19230_v44 = vpop.f32.mrf.mxu1 }
0x1f50   :  { %v13758_v59 = vpop.f32.mrf.mxu1 }
0x1f52   :  { %v19191_v47 = vpop.f32.mrf.mxu0  ;;  %v19233_v37 = vpop.f32.mrf.mxu1 }
0x1f53   :  { %v13472_v57 = vadd.f32 %v19191_v47, %v16809_v60 }
0x1f54   :  { %v13461_v7 = vpop.f32.mrf.mxu0  ;;  %v13774_v56 = vpop.f32.mrf.mxu1 }
0x1f55   :  { %v13462_v34 = vadd.f32 %v16809_v60, %v13461_v7  ;;  %v13581_v38 = vadd.f32 %v19205_v20, %v13472_v57  ;;  %v16816_v57 = vld [vmem:[%s23086_s15 + $0x30] sm:$0xff] }
0x1f56   :  { %v19216_v55 = vpop.f32.mrf.mxu0 }
0x1f57   :  { %v13668_v12 = vadd.f32 %v19216_v55, %v13569_v63  ;;  %v19258_v42 = vpop.f32.mrf.mxu1  ;;  %v13575_v50 = vadd.f32 %v13574_v35, %v13462_v34  ;;  %v16817_v55 = vld [vmem:[%s23086_s15 + $0x38] sm:$0xff]  ;;  %v16815_v34 = vld [vmem:[%s23086_s15 + $0x28] sm:$0xff] }
0x1f58   :  { %v13660_v24 = vpop.f32.mrf.mxu0 }
0x1f59   :  { %v13661_v45 = vadd.f32 %v13660_v24, %v13563_v3  ;;  %v13767_v25 = vadd.f32 %v19230_v44, %v13668_v12  ;;  %v13958_v10 = vpop.f32.mrf.mxu1  ;;  %v22217_v24 = vand.u32 4294901760, %v16816_v57 }
0x1f5b   :  { %v19219_v2 = vpop.f32.mrf.mxu0  ;;  %v13759_v16 = vadd.f32 %v13758_v59, %v13661_v45  ;;  %v22228_v3 = vsub.f32 %v16816_v57, %v22217_v24 }
0x1f5c   :  { %v13682_v27 = vadd.f32 %v19219_v2, %v13581_v38  ;;  %v19261_v4 = vpop.f32.mrf.mxu1  ;;  %v16814_v2 = vld [vmem:[%s23086_s15 + $0x20] sm:$0xff] }
0x1f5d   :  { %v13674_v9 = vpop.f32.mrf.mxu0  ;;  %v22240_v38 = vand.u32 4294901760, %v22228_v3 }
0x1f5e   :  { %v13675_v43 = vadd.f32 %v13674_v9, %v13575_v50  ;;  %v13783_v52 = vadd.f32 %v19233_v37, %v13682_v27  ;;  %v13970_v46 = vpop.f32.mrf.mxu1  ;;  %v22245_v27 = vand.u32 4294901760, %v16814_v2 }
0x1f5f   :  { %v19244_v31 = vpop.f32.mrf.mxu0 }
0x1f60   :  { %v13872_v19 = vadd.f32 %v19244_v31, %v13767_v25  ;;  %v13775_v18 = vadd.f32 %v13774_v56, %v13675_v43  ;;  %v22209_v56 = vand.u32 4294901760, %v16817_v55  ;;  %v14229_v25 = vsub.f32 %v22228_v3, %v22240_v38 }
0x1f61   :  { %v13865_v30 = vpop.f32.mrf.mxu0  ;;  %v22255_v31 = vsub.f32 %v16814_v2, %v22245_v27 }
0x1f62   :  { %v13965_v0 = vadd.f32 %v19258_v42, %v13872_v19  ;;  %v13866_v29 = vadd.f32 %v13865_v30, %v13759_v16  ;;  %v22215_v63 = vsub.f32 %v16817_v55, %v22209_v56  ;;  %19262 = vmatprep.subr.mxu0 %v22209_v56  ;;  %v22230_v42 = vand.u32 4294901760, %v16815_v34 }
0x1f63   :  { %v19247_v49 = vpop.f32.mrf.mxu0  ;;  %19263 = vmatpush3.msra.mxu0 %v22209_v56  ;;  %v14230_v43 = vand.u32 4294901760, %v14229_v25  ;;  %v22262_v16 = vand.u32 4294901760, %v22255_v31 }
0x1f64   :  { %v13959_v41 = vadd.f32 %v13958_v10, %v13866_v29  ;;  %v13884_v8 = vadd.f32 %v19247_v49, %v13783_v52  ;;  %v13981_v32 = vadd.f32 %v13965_v0, %v21554_v54  ;;  %v22225_v12 = vand.u32 4294901760, %v22215_v63  ;;  %19264 = vmatprep.subr.mxu0 %v22217_v24 }
0x1f65   :  { %v13877_v5 = vpop.f32.mrf.mxu0  ;;  %19265 = vmatpush3.msra.mxu0 %v22217_v24  ;;  %v22243_v9 = vsub.f32 %v16815_v34, %v22230_v42  ;;  %v14243_v0 = vsub.f32 %v22255_v31, %v22262_v16 }
0x1f66   :  { %v13878_v58 = vadd.f32 %v13877_v5, %v13775_v18  ;;  %v13991_v1 = vsel %vm1123_vm3, %v13981_v32, 0.0  ;;  %v13980_v53 = vadd.f32 %v13959_v41, %v21557_v51  ;;  %v13977_v61 = vadd.f32 %v19261_v4, %v13884_v8  ;;  %19266 = vmatprep.subr.mxu0 %v22230_v42 }
0x1f67   :  { %13992 = vadd.xlane.f32.xlu1 %v13991_v1  ;;  %v14222_v45 = vsub.f32 %v22215_v63, %v22225_v12  ;;  %19267 = vmatpush3.msra.mxu0 %v22230_v42  ;;  %v22252_v10 = vand.u32 4294901760, %v22243_v9  ;;  %v14244_v29 = vand.u32 4294901760, %v14243_v0 }
0x1f68   :  { %v13971_v26 = vadd.f32 %v13970_v46, %v13878_v58  ;;  %v13988_v33 = vsel %vm1123_vm3, %v13980_v53, 0.0  ;;  %v13983_v28 = vadd.f32 %v13977_v61, %v21566_v21  ;;  %19268 = vmatprep.subr.mxu0 %v22245_v27 }
0x1f69   :  { %13989 = vadd.xlane.f32.xlu0 %v13988_v33  ;;  %v14223_v50 = vand.u32 4294901760, %v14222_v45  ;;  %19269 = vmatpush3.msra.mxu0 %v22245_v27  ;;  %v14236_v19 = vsub.f32 %v22243_v9, %v22252_v10 }
0x1f6a   :  { %v13982_v23 = vadd.f32 %v13971_v26, %v21571_v62  ;;  %v13997_v54 = vsel %vm1123_vm3, %v13983_v28, 0.0  ;;  %19290 = vmatprep.subr.mxu0 %v22215_v63  ;;  %v16812_v26 = vld [vmem:[%s23087_s13 + $0x1] ss:$0 sm:$0xff] }
0x1f6b   :  { %19276 = vmatprep.subr.mxu1 %v14223_v50  ;;  %v14237_v30 = vand.u32 4294901760, %v14236_v19 }
0x1f6c   :  { %v13994_v13 = vsel %vm1123_vm3, %v13982_v23, 0.0  ;;  %19277 = vmatpush3.msra.mxu1 %v14223_v50 }
0x1f6d   :  { %13995 = vadd.xlane.f32.xlu0 %v13994_v13  ;;  %19278 = vmatprep.subr.mxu1 %v14230_v43  ;;  %v16813_v13 = vld [vmem:[%s23088_s14 + $0x1] ss:$0 sm:$0xff] }
0x1f6e   :  { %19279 = vmatpush3.msra.mxu1 %v14230_v43 }
0x1f6f   :  { %19280 = vmatprep.subr.mxu1 %v14237_v30 }
0x1f70   :  { %19281 = vmatpush3.msra.mxu1 %v14237_v30 }
0x1f71   :  { %13998 = vadd.xlane.f32.xlu0 %v13997_v54  ;;  %19282 = vmatprep.subr.mxu1 %v14244_v29 }
0x1f72   :  { %19283 = vmatpush3.msra.mxu1 %v14244_v29 }
0x1f73   :  { %19304 = vmatprep.subr.mxu1 %v22209_v56 }
0x1ff0   :  { %v13993_v15 = vpop.xlane.xlu1 %13992 }
0x1ff1   :  { %v14001_v6 = vmul.f32 0.03125, %v13993_v15 }
0x1ff2   :  { %v13990_v51 = vpop.xlane.xlu0 %13989 }
0x1ff3   :  { %v22186_v14 = vsub.f32 %v13981_v32, %v14001_v6  ;;  %v14000_v48 = vmul.f32 0.03125, %v13990_v51 }
0x1ff5   :  { %v22188_v17 = vsub.f32 %v13980_v53, %v14000_v48  ;;  %v14009_v20 = vmul.f32 %v22186_v14, %v22186_v14 }
0x1ff6   :  { %v13996_v62 = vpop.xlane.xlu0 %13995 }
0x1ff7   :  { %v14002_v39 = vmul.f32 0.03125, %v13996_v62  ;;  %v14015_v35 = vsel %vm1123_vm3, %v14009_v20, 0.0  ;;  %v14008_v21 = vmul.f32 %v22188_v17, %v22188_v17 }
0x1ff8   :  { %14016 = vadd.xlane.f32.xlu1 %v14015_v35 }
0x1ff9   :  { %v22195_v44 = vsub.f32 %v13982_v23, %v14002_v39  ;;  %v14012_v40 = vsel %vm1123_vm3, %v14008_v21, 0.0 }
0x1ffa   :  { %14013 = vadd.xlane.f32.xlu0 %v14012_v40  ;;  %v13999_v59 = vpop.xlane.xlu0 %13998 }
0x1ffb   :  { %v14003_v60 = vmul.f32 0.03125, %v13999_v59  ;;  %v14010_v47 = vmul.f32 %v22195_v44, %v22195_v44 }
0x1ffd   :  { %v22200_v37 = vsub.f32 %v13983_v28, %v14003_v60  ;;  %v14018_v36 = vsel %vm1123_vm3, %v14010_v47, 0.0 }
0x1ffe   :  { %14019 = vadd.xlane.f32.xlu0 %v14018_v36 }
0x1fff   :  { %v14011_v7 = vmul.f32 %v22200_v37, %v22200_v37 }
0x2001   :  { %v14021_v22 = vsel %vm1123_vm3, %v14011_v7, 0.0 }
0x2002   :  { %14022 = vadd.xlane.f32.xlu1 %v14021_v22 }
0x2081   :  { %v14017_v52 = vpop.xlane.xlu1 %14016 }
0x2082   :  { %v14025_v4 = vmul.f32 0.03125, %v14017_v52 }
0x2083   :  { %v14014_v49 = vpop.xlane.xlu0 %14013 }
0x2084   :  { %v14029_v41 = vadd.f32 1e-05, %v14025_v4  ;;  %v14024_v8 = vmul.f32 0.03125, %v14014_v49 }
0x2086   :  { %19817 = vrsqrt.f32 %v14029_v41  ;;  %v14028_v18 = vadd.f32 1e-05, %v14024_v8 }
0x2087   :  { %v14020_v32 = vpop.xlane.xlu0 %14019 }
0x2088   :  { %19819 = vrsqrt.f32 %v14028_v18  ;;  %v14026_v5 = vmul.f32 0.03125, %v14020_v32  ;;  %v16831_v18 = vld [vmem:[%s23089_s17 + $0xd8] sm:$0xff] }
0x208a   :  { %v14030_v58 = vadd.f32 1e-05, %v14026_v5 }
0x208b   :  { %v14023_v1 = vpop.xlane.xlu1 %14022 }
0x208c   :  { %19821 = vrsqrt.f32 %v14030_v58  ;;  %v14027_v53 = vmul.f32 0.03125, %v14023_v1 }
0x208e   :  { %v14031_v46 = vadd.f32 1e-05, %v14027_v53  ;;  %v22397_v53 = vand.u32 4294901760, %v16831_v18 }
0x2090   :  { %19823 = vrsqrt.f32 %v14031_v46  ;;  %v16830_v46 = vld [vmem:[%s23089_s17 + $0xd0] sm:$0xff] }
0x2093   :  { %v19818_v61 = vpop.eup %19817 }
0x2094   :  { %v14037_v33 = vmul.f32 %v19818_v61, %v22186_v14 }
0x2095   :  { %v19820_v23 = vpop.eup %19819 }
0x2096   :  { %v14036_v28 = vmul.f32 %v19820_v23, %v22188_v17  ;;  %v14047_v54 = vmul.f32 %v16812_v26, %v14037_v33  ;;  %v22408_v23 = vand.u32 4294901760, %v16830_v46 }
0x2098   :  { %v14046_v15 = vmul.f32 %v16812_v26, %v14036_v28  ;;  %v22276_v6 = vadd.f32 %v16813_v13, %v14047_v54  ;;  %v16829_v28 = vld [vmem:[%s23089_s17 + $0xc8] sm:$0xff] }
0x2099   :  { %v19822_v51 = vpop.eup %19821 }
0x209a   :  { %23278 = vst [vmem:[#allocation21_spill] sm:$0xff] %v22276_v6  ;;  %v22278_v48 = vadd.f32 %v16813_v13, %v14046_v15  ;;  %v14077_v20 = vsel %vm1123_vm3, %v22276_v6, 0  ;;  %v14038_v62 = vmul.f32 %v19822_v51, %v22195_v44  ;;  %v22420_v51 = vsub.f32 %v16830_v46, %v22408_v23 }
0x209b   :  { %v22283_v14 = vand.u32 4294901760, %v14077_v20 }
0x209c   :  { %23279 = vst [vmem:[#allocation23_spill] sm:$0xff] %v22278_v48  ;;  %v14074_v39 = vsel %vm1123_vm3, %v22278_v48, 0  ;;  %v14048_v35 = vmul.f32 %v16812_v26, %v14038_v62 }
0x209d   :  { %v19824_v21 = vpop.eup %19823  ;;  %v22287_v17 = vand.u32 4294901760, %v14074_v39  ;;  %v14165_v40 = vsub.f32 %v14077_v20, %v22283_v14  ;;  %v22422_v20 = vand.u32 4294901760, %v16829_v28 }
0x209e   :  { %v22290_v59 = vadd.f32 %v16813_v13, %v14048_v35  ;;  %v14039_v60 = vmul.f32 %v19824_v21, %v22200_v37  ;;  %v22433_v35 = vand.u32 4294901760, %v22420_v51 }
0x209f   :  { %19284 = vmatprep.mubr.f32.mxu1 %v22287_v17  ;;  %v14155_v47 = vsub.f32 %v14074_v39, %v22287_v17  ;;  %v14166_v44 = vand.u32 4294901760, %v14165_v40  ;;  %v22436_v21 = vsub.f32 %v16829_v28, %v22422_v20 }
0x20a0   :  { %23280 = vst [vmem:[#allocation25_spill] sm:$0xff] %v22290_v59  ;;  %19285 = vmatmul.mubr.f32.vlgmr.msra.gmra.mxu1 %v22283_v14  ;;  %v14080_v36 = vsel %vm1123_vm3, %v22290_v59, 0  ;;  %v14049_v7 = vmul.f32 %v16812_v26, %v14039_v60  ;;  %23287 = vst [vmem:[#allocation14_spill] sm:$0xff] %v22433_v35  ;;  %v16827_v60 = vld [vmem:[%s23089_s17 + $0xb8] sm:$0xff] }
0x20a1   :  { %v22298_v22 = vand.u32 4294901760, %v14080_v36  ;;  %19305 = vmatpush3.msra.mxu1 %v22209_v56  ;;  %v14156_v55 = vand.u32 4294901760, %v14155_v47  ;;  %v14167_v37 = vsub.f32 %v14165_v40, %v14166_v44 }
0x20a2   :  { %19306 = vmatprep.subr.mxu1 %v22217_v24  ;;  %v22302_v57 = vadd.f32 %v16813_v13, %v14049_v7  ;;  %v22411_v13 = vsub.f32 %v16831_v18, %v22397_v53  ;;  %v22455_v7 = vand.u32 4294901760, %v16827_v60 }
0x20a3   :  { %19287 = vmatprep.mubr.f32.mxu1 %v22298_v22  ;;  %19307 = vmatpush3.msra.mxu1 %v22217_v24  ;;  %v14157_v34 = vsub.f32 %v14155_v47, %v14156_v55  ;;  %v14175_v2 = vsub.f32 %v14080_v36, %v22298_v22  ;;  %v14168_v19 = vand.u32 4294901760, %v14167_v37 }
0x20a4   :  { %23281 = vst [vmem:[#allocation26_spill] sm:$0xff] %v22302_v57  ;;  %v14083_v45 = vsel %vm1123_vm3, %v22302_v57, 0  ;;  %19308 = vmatprep.subr.mxu1 %v22230_v42  ;;  %v22426_v62 = vand.u32 4294901760, %v22411_v13 }
0x20a5   :  { %v14158_v50 = vand.u32 4294901760, %v14157_v34  ;;  %v14184_v25 = vand.u32 4294901760, %v14083_v45  ;;  %19309 = vmatpush3.msra.mxu1 %v22230_v42  ;;  %v14176_v43 = vand.u32 4294901760, %v14175_v2 }
0x20a6   :  { %19310 = vmatprep.subr.mxu1 %v22245_v27  ;;  %23286 = vst [vmem:[#allocation13_spill] sm:$0xff] %v22426_v62 }
0x20a7   :  { %19270 = vmatprep.mubr.f32.mxu0 %v14158_v50  ;;  %v14185_v30 = vsub.f32 %v14083_v45, %v14184_v25  ;;  %19288 = vmatmul.mubr.f32.gmra.mxu1 %v14184_v25  ;;  %v14177_v0 = vsub.f32 %v14175_v2, %v14176_v43  ;;  %v22468_v45 = vsub.f32 %v16827_v60, %v22455_v7 }
0x20a8   :  { %19271 = vmatmul.mubr.f32.vlgmr.msra.gmra.mxu0 %v14168_v19  ;;  %19312 = vmatprep.mubr.f32.mxu1 %v14156_v55  ;;  %v16826_v55 = vld [vmem:[%s23089_s17 + $0xb0] sm:$0xff] }
0x20a9   :  { %19311 = vmatpush3.msra.mxu1 %v22245_v27  ;;  %v14178_v29 = vand.u32 4294901760, %v14177_v0  ;;  %19291 = vmatpush3.msra.mxu0 %v22215_v63  ;;  %v14186_v52 = vand.u32 4294901760, %v14185_v30  ;;  %v22471_v50 = vand.u32 4294901760, %v16826_v55 }
0x20aa   :  { %19332 = vmatprep.subr.mxu1 %v22209_v56  ;;  %19292 = vmatprep.subr.mxu0 %v22228_v3 }
0x20ab   :  { %19273 = vmatprep.mubr.f32.mxu0 %v14178_v29  ;;  %19313 = vmatmul.mubr.f32.vlgmr.msra.gmra.mxu1 %v14166_v44  ;;  %v14187_v4 = vsub.f32 %v14185_v30, %v14186_v52  ;;  %v22450_v44 = vand.u32 4294901760, %v22436_v21  ;;  %v22486_v29 = vsub.f32 %v16826_v55, %v22471_v50 }
0x20ac   :  { %19315 = vmatprep.mubr.f32.mxu1 %v14176_v43  ;;  %19333 = vmatpush3.msra.mxu1 %v22209_v56  ;;  %v16835_v56 = vld [vmem:[%s23089_s17 + $0xf8] sm:$0xff] }
0x20ad   :  { %19334 = vmatprep.subr.mxu1 %v22217_v24  ;;  %19293 = vmatpush3.msra.mxu0 %v22228_v3  ;;  %v14188_v49 = vand.u32 4294901760, %v14187_v4  ;;  %v22345_v63 = vand.u32 4294901760, %v16835_v56  ;;  %23288 = vst [vmem:[#allocation15_spill] sm:$0xff] %v22450_v44  ;;  %v14999_v34 = vsub.f32 %v22436_v21, %v22450_v44 }
0x20ae   :  { %19335 = vmatpush3.msra.mxu1 %v22217_v24  ;;  %19294 = vmatprep.subr.mxu0 %v22243_v9  ;;  %v16834_v24 = vld [vmem:[%s23089_s17 + $0xf0] sm:$0xff] }
0x20af   :  { %19274 = vmatmul.mubr.f32.gmra.mxu0 %v14188_v49  ;;  %19316 = vmatmul.mubr.f32.gmra.mxu1 %v14186_v52  ;;  %v22353_v3 = vand.u32 4294901760, %v16834_v24  ;;  %v15000_v43 = vand.u32 4294901760, %v14999_v34  ;;  %v16824_v52 = vld [vmem:[%s23089_s17 + $0xa0] sm:$0xff] }
0x20b0   :  { %19336 = vmatprep.subr.mxu1 %v22230_v42  ;;  %19295 = vmatpush3.msra.mxu0 %v22243_v9 }
0x20b1   :  { %19298 = vmatprep.mubr.f32.mxu0 %v14155_v47  ;;  %19337 = vmatpush3.msra.mxu1 %v22230_v42  ;;  %v16833_v42 = vld [vmem:[%s23089_s17 + $0xe8] sm:$0xff]  ;;  %v22364_v9 = vsub.f32 %v16834_v24, %v22353_v3  ;;  %v14992_v47 = vsub.f32 %v22420_v51, %v22433_v35  ;;  %v22497_v24 = vand.u32 4294901760, %v16824_v52 }
0x20b2   :  { %19340 = vmatprep.mubr.f32.mxu1 %v22287_v17  ;;  %19296 = vmatprep.subr.mxu0 %v22255_v31 }
0x20b3   :  { %19338 = vmatprep.subr.mxu1 %v22245_v27  ;;  %19297 = vmatpush3.msra.mxu0 %v22255_v31  ;;  %v14993_v37 = vand.u32 4294901760, %v14992_v47 }
0x20b4   :  { %19339 = vmatpush3.msra.mxu1 %v22245_v27  ;;  %19299 = vmatmul.mubr.f32.vlgmr.msra.gmra.mxu0 %v14165_v40  ;;  %v22366_v27 = vand.u32 4294901760, %v16833_v42  ;;  %v14985_v40 = vsub.f32 %v22411_v13, %v22426_v62 }
0x20b5   :  { %19318 = vmatprep.subr.mxu0 %v22225_v12  ;;  %19341 = vmatmul.mubr.f32.vlgmr.msra.gmra.mxu1 %v22283_v14 }
0x20b6   :  { %19301 = vmatprep.mubr.f32.mxu0 %v14175_v2  ;;  %19319 = vmatpush3.msra.mxu0 %v22225_v12  ;;  %v22351_v12 = vsub.f32 %v16835_v56, %v22345_v63  ;;  %v22379_v41 = vsub.f32 %v16833_v42, %v22366_v27  ;;  %v22501_v42 = vand.u32 4294901760, %v22486_v29 }
0x20b7   :  { %19343 = vmatprep.mubr.f32.mxu1 %v22298_v22  ;;  %19320 = vmatprep.subr.mxu0 %v22240_v38 }
0x20b8   :  { %19321 = vmatpush3.msra.mxu0 %v22240_v38  ;;  %v22361_v38 = vand.u32 4294901760, %v22351_v12  ;;  %v22391_v58 = vand.u32 4294901760, %v22379_v41  ;;  %23291 = vst [vmem:[#allocation18_spill] sm:$0xff] %v22501_v42  ;;  %v15020_v46 = vsub.f32 %v22486_v29, %v22501_v42 }
0x20b9   :  { %19302 = vmatmul.mubr.f32.gmra.mxu0 %v14185_v30  ;;  %19322 = vmatprep.subr.mxu0 %v22252_v10  ;;  %v22480_v30 = vand.u32 4294901760, %v22468_v45 }
0x20ba   :  { %19344 = vmatmul.mubr.f32.gmra.mxu1 %v14184_v25  ;;  %19323 = vmatpush3.msra.mxu0 %v22252_v10  ;;  %23282 = vst [vmem:[#allocation9_spill] sm:$0xff] %v22361_v38  ;;  %v16832_v10 = vld [vmem:[%s23089_s17 + $0xe0] sm:$0xff]  ;;  %v14957_v31 = vsub.f32 %v22351_v12, %v22361_v38  ;;  %23284 = vst [vmem:[#allocation11_spill] sm:$0xff] %v22391_v58  ;;  %v14971_v26 = vsub.f32 %v22379_v41, %v22391_v58 }
0x20bb   :  { %19326 = vmatprep.mubr.f32.mxu0 %v22287_v17  ;;  %19324 = vmatprep.subr.mxu0 %v22262_v16  ;;  %v22381_v8 = vand.u32 4294901760, %v16832_v10  ;;  %23290 = vst [vmem:[#allocation17_spill] sm:$0xff] %v22480_v30  ;;  %v15013_v49 = vsub.f32 %v22468_v45, %v22480_v30 }
0x20bc   :  { %19325 = vmatpush3.msra.mxu0 %v22262_v16  ;;  %v22376_v16 = vand.u32 4294901760, %v22364_v9  ;;  %v14958_v32 = vand.u32 4294901760, %v14957_v31  ;;  %v14972_v54 = vand.u32 4294901760, %v14971_v26 }
0x20bd   :  { %19327 = vmatmul.mubr.f32.vlgmr.msra.gmra.mxu0 %v22283_v14  ;;  %19346 = vmatprep.subr.mxu0 %v22345_v63  ;;  %v22394_v1 = vsub.f32 %v16832_v10, %v22381_v8  ;;  %v16828_v14 = vld [vmem:[%s23089_s17 + $0xc0] sm:$0xff]  ;;  %v16823_v10 = vld [vmem:[%s23089_s17 + $0x98] sm:$0xff]  ;;  %v15014_v31 = vand.u32 4294901760, %v15013_v49 }
0x20be   :  { %19329 = vmatprep.mubr.f32.mxu0 %v22298_v22  ;;  %19347 = vmatpush3.msra.mxu0 %v22345_v63  ;;  %23283 = vst [vmem:[#allocation10_spill] sm:$0xff] %v22376_v16  ;;  %v14964_v5 = vsub.f32 %v22364_v9, %v22376_v16  ;;  %v22438_v17 = vand.u32 4294901760, %v16828_v14  ;;  %v14986_v22 = vand.u32 4294901760, %v14985_v40 }
0x20bf   :  { %19348 = vmatprep.subr.mxu0 %v22353_v3  ;;  %19384 = vmatprep.subr.mxu1 %v14958_v32  ;;  %v22406_v33 = vand.u32 4294901760, %v22394_v1 }
0x20c0   :  { %19349 = vmatpush3.msra.mxu0 %v22353_v3  ;;  %v14965_v61 = vand.u32 4294901760, %v14964_v5  ;;  %19385 = vmatpush3.msra.mxu1 %v14958_v32  ;;  %v22453_v36 = vsub.f32 %v16828_v14, %v22438_v17  ;;  %v22511_v32 = vsub.f32 %v16824_v52, %v22497_v24  ;;  %v22513_v5 = vand.u32 4294901760, %v16823_v10 }
0x20c1   :  { %19330 = vmatmul.mubr.f32.gmra.mxu0 %v14184_v25  ;;  %19350 = vmatprep.subr.mxu0 %v22366_v27  ;;  %23285 = vst [vmem:[#allocation12_spill] sm:$0xff] %v22406_v33  ;;  %v14978_v15 = vsub.f32 %v22394_v1, %v22406_v33  ;;  %v16825_v25 = vld [vmem:[%s23089_s17 + $0xa8] sm:$0xff]  ;;  %v15021_v14 = vand.u32 4294901760, %v15020_v46 }
0x20c2   :  { %19351 = vmatpush3.msra.mxu0 %v22366_v27  ;;  %19386 = vmatprep.subr.mxu1 %v14965_v61  ;;  %v22465_v2 = vand.u32 4294901760, %v22453_v36  ;;  %v22482_v0 = vand.u32 4294901760, %v16825_v25  ;;  %v22525_v28 = vand.u32 4294901760, %v22511_v32 }
0x20c3   :  { %19352 = vmatprep.subr.mxu0 %v22381_v8  ;;  %19387 = vmatpush3.msra.mxu1 %v14965_v61  ;;  %v14979_v39 = vand.u32 4294901760, %v14978_v15  ;;  %v16822_v61 = vld [vmem:[%s23089_s17 + $0x90] sm:$0xff] }
0x20c4   :  { %19353 = vmatpush3.msra.mxu0 %v22381_v8  ;;  %19388 = vmatprep.subr.mxu1 %v14972_v54  ;;  %23289 = vst [vmem:[#allocation16_spill] sm:$0xff] %v22465_v2  ;;  %v15006_v19 = vsub.f32 %v22453_v36, %v22465_v2  ;;  %v22495_v56 = vsub.f32 %v16825_v25, %v22482_v0  ;;  %23293 = vst [vmem:[#allocation20_spill] sm:$0xff] %v22525_v28  ;;  %v22530_v15 = vand.u32 4294901760, %v16822_v61 }
0x20c5   :  { %19354 = vmatprep.subr.mxu0 %v22397_v53  ;;  %19389 = vmatpush3.msra.mxu1 %v14972_v54  ;;  %v22528_v54 = vsub.f32 %v16823_v10, %v22513_v5  ;;  %v15034_v60 = vsub.f32 %v22511_v32, %v22525_v28 }
0x20c6   :  { %19355 = vmatpush3.msra.mxu0 %v22397_v53  ;;  %19390 = vmatprep.subr.mxu1 %v14979_v39  ;;  %v15007_v4 = vand.u32 4294901760, %v15006_v19  ;;  %v22508_v18 = vand.u32 4294901760, %v22495_v56 }
0x20c7   :  { %19356 = vmatprep.subr.mxu0 %v22408_v23  ;;  %19391 = vmatpush3.msra.mxu1 %v14979_v39  ;;  %23294 = vst [vmem:[#allocation22_spill] sm:$0xff] %v22528_v54  ;;  %v16821_v39 = vld [vmem:[%s23089_s17 + $0x88] sm:$0xff]  ;;  %v22540_v47 = vand.u32 4294901760, %v22528_v54  ;;  %v15035_v34 = vand.u32 4294901760, %v15034_v60 }
0x20c8   :  { %19357 = vmatpush3.msra.mxu0 %v22408_v23  ;;  %19392 = vmatprep.subr.mxu1 %v14986_v22  ;;  %23292 = vst [vmem:[#allocation19_spill] sm:$0xff] %v22508_v18  ;;  %v15027_v26 = vsub.f32 %v22495_v56, %v22508_v18  ;;  %v22546_v55 = vand.u32 4294901760, %v16821_v39 }
0x20c9   :  { %19358 = vmatprep.subr.mxu0 %v22422_v20  ;;  %19393 = vmatpush3.msra.mxu1 %v14986_v22  ;;  %23295 = vst [vmem:[#allocation24_spill] sm:$0xff] %v22540_v47  ;;  %v22543_v22 = vsub.f32 %v16822_v61, %v22530_v15  ;;  %v15041_v25 = vsub.f32 %v22528_v54, %v22540_v47 }
0x20ca   :  { %19359 = vmatpush3.msra.mxu0 %v22422_v20  ;;  %19394 = vmatprep.subr.mxu1 %v14993_v37  ;;  %v15028_v40 = vand.u32 4294901760, %v15027_v26  ;;  %v22561_v52 = vsub.f32 %v16821_v39, %v22546_v55 }
0x20cb   :  { %19360 = vmatprep.subr.mxu0 %v22438_v17  ;;  %19395 = vmatpush3.msra.mxu1 %v14993_v37  ;;  %23296 = vst [vmem:[#allocation27_spill] sm:$0xff] %v22543_v22  ;;  %v16820_v37 = vld [vmem:[%s23089_s17 + $0x80] sm:$0xff] }
0x20cc   :  { %19361 = vmatpush3.msra.mxu0 %v22438_v17  ;;  %19396 = vmatprep.subr.mxu1 %v15000_v43  ;;  %v22557_v19 = vand.u32 4294901760, %v16820_v37  ;;  %23298 = vst [vmem:[#allocation5_spill] sm:$0xff] %v22561_v52 }
0x20cd   :  { %19362 = vmatprep.subr.mxu0 %v22455_v7  ;;  %19397 = vmatpush3.msra.mxu1 %v15000_v43  ;;  %v22555_v43 = vand.u32 4294901760, %v22543_v22 }
0x20ce   :  { %19363 = vmatpush3.msra.mxu0 %v22455_v7  ;;  %19398 = vmatprep.subr.mxu1 %v15007_v4  ;;  %v22567_v10 = vsub.f32 %v16820_v37, %v22557_v19 }
0x20cf   :  { %19364 = vmatprep.subr.mxu0 %v22471_v50  ;;  %19399 = vmatpush3.msra.mxu1 %v15007_v4  ;;  %23297 = vst [vmem:[#allocation28_spill] sm:$0xff] %v22555_v43  ;;  %v15042_v4 = vand.u32 4294901760, %v15041_v25  ;;  %v15048_v49 = vsub.f32 %v22543_v22, %v22555_v43 }
0x20d0   :  { %19365 = vmatpush3.msra.mxu0 %v22471_v50  ;;  %19400 = vmatprep.subr.mxu1 %v15014_v31  ;;  %23299 = vst [vmem:[#allocation6_spill] sm:$0xff] %v22567_v10  ;;  %v22575_v61 = vand.u32 4294901760, %v22567_v10 }
0x20d1   :  { %19366 = vmatprep.subr.mxu0 %v22482_v0  ;;  %19401 = vmatpush3.msra.mxu1 %v15014_v31  ;;  %v22571_v31 = vand.u32 4294901760, %v22561_v52  ;;  %v15049_v46 = vand.u32 4294901760, %v15048_v49 }
0x20d2   :  { %19367 = vmatpush3.msra.mxu0 %v22482_v0  ;;  %19402 = vmatprep.subr.mxu1 %v15021_v14  ;;  %23301 = vst [vmem:[#allocation7_spill] sm:$0xff] %v22575_v61 }
0x20d3   :  { %19368 = vmatprep.subr.mxu0 %v22497_v24  ;;  %19403 = vmatpush3.msra.mxu1 %v15021_v14  ;;  %23300 = vst [vmem:[#allocation8_spill] sm:$0xff] %v22571_v31  ;;  %v15055_v26 = vsub.f32 %v22561_v52, %v22571_v31  ;;  %v15062_v14 = vsub.f32 %v22567_v10, %v22575_v61 }
0x20d4   :  { %19369 = vmatpush3.msra.mxu0 %v22497_v24  ;;  %19404 = vmatprep.subr.mxu1 %v15028_v40 }
0x20d5   :  { %19370 = vmatprep.subr.mxu0 %v22513_v5  ;;  %19405 = vmatpush3.msra.mxu1 %v15028_v40  ;;  %v15056_v39 = vand.u32 4294901760, %v15055_v26  ;;  %v15063_v40 = vand.u32 4294901760, %v15062_v14  ;;  %v16819_v26 = vld [vmem:[%s23090_s16 + $0x1] ss:$0 sm:$0xff] }
0x20d6   :  { %19371 = vmatpush3.msra.mxu0 %v22513_v5  ;;  %19406 = vmatprep.subr.mxu1 %v15035_v34 }
0x20d7   :  { %19372 = vmatprep.subr.mxu0 %v22530_v15  ;;  %19407 = vmatpush3.msra.mxu1 %v15035_v34 }
0x20d8   :  { %19373 = vmatpush3.msra.mxu0 %v22530_v15  ;;  %19408 = vmatprep.subr.mxu1 %v15042_v4 }
0x20d9   :  { %19374 = vmatprep.subr.mxu0 %v22546_v55  ;;  %19409 = vmatpush3.msra.mxu1 %v15042_v4 }
0x20da   :  { %19375 = vmatpush3.msra.mxu0 %v22546_v55  ;;  %19410 = vmatprep.subr.mxu1 %v15049_v46 }
0x20db   :  { %19376 = vmatprep.subr.mxu0 %v22557_v19  ;;  %19411 = vmatpush3.msra.mxu1 %v15049_v46 }
0x20dc   :  { %19377 = vmatpush3.msra.mxu0 %v22557_v19  ;;  %19412 = vmatprep.subr.mxu1 %v15056_v39 }
0x20dd   :  { %19422 = vmatprep.subr.mxu0 %v22351_v12  ;;  %19413 = vmatpush3.msra.mxu1 %v15056_v39 }
0x20de   :  { %19414 = vmatprep.subr.mxu1 %v15063_v40 }
0x20df   :  { %19415 = vmatpush3.msra.mxu1 %v15063_v40 }
0x20e0   :  { %19460 = vmatprep.subr.mxu1 %v22345_v63 }
0x2160   :  { %v19286_v60 = vpop.f32.mrf.mxu1 }
0x2162   :  { %v14281_v37 = vpop.f32.mrf.mxu1 }
0x2167   :  { %v19289_v34 = vpop.f32.mrf.mxu1 }
0x2168   :  { %v19272_v25 = vpop.f32.mrf.mxu0 }
0x2169   :  { %v14293_v49 = vpop.f32.mrf.mxu1  ;;  %v14171_v57 = vadd.f32 %v19272_v25, %v16819_v26 }
0x216a   :  { %v14160_v4 = vpop.f32.mrf.mxu0 }
0x216b   :  { %v19314_v11 = vpop.f32.mrf.mxu1  ;;  %v14161_v48 = vadd.f32 %v16819_v26, %v14160_v4  ;;  %v14288_v31 = vadd.f32 %v19286_v60, %v14171_v57 }
0x216d   :  { %v14477_v59 = vpop.f32.mrf.mxu1  ;;  %v14282_v28 = vadd.f32 %v14281_v37, %v14161_v48 }
0x216f   :  { %v19275_v46 = vpop.f32.mrf.mxu0  ;;  %v19317_v39 = vpop.f32.mrf.mxu1 }
0x2170   :  { %v14191_v6 = vadd.f32 %v19275_v46, %v16819_v26 }
0x2171   :  { %v14180_v14 = vpop.f32.mrf.mxu0  ;;  %v14493_v61 = vpop.f32.mrf.mxu1 }
0x2172   :  { %v14181_v18 = vadd.f32 %v16819_v26, %v14180_v14  ;;  %v14300_v44 = vadd.f32 %v19289_v34, %v14191_v6 }
0x2174   :  { %v19300_v40 = vpop.f32.mrf.mxu0  ;;  %v14294_v58 = vadd.f32 %v14293_v49, %v14181_v18 }
0x2175   :  { %v14387_v47 = vadd.f32 %v19300_v40, %v14288_v31  ;;  %v19342_v30 = vpop.f32.mrf.mxu1 }
0x2176   :  { %v14379_v43 = vpop.f32.mrf.mxu0 }
0x2177   :  { %v14380_v2 = vadd.f32 %v14379_v43, %v14282_v28  ;;  %v14486_v33 = vadd.f32 %v19314_v11, %v14387_v47  ;;  %v14677_v25 = vpop.f32.mrf.mxu1 }
0x2179   :  { %v19303_v42 = vpop.f32.mrf.mxu0  ;;  %v14478_v4 = vadd.f32 %v14477_v59, %v14380_v2 }
0x217a   :  { %v14401_v62 = vadd.f32 %v19303_v42, %v14300_v44  ;;  %v19345_v60 = vpop.f32.mrf.mxu1 }
0x217b   :  { %v14393_v35 = vpop.f32.mrf.mxu0 }
0x217c   :  { %v14394_v10 = vadd.f32 %v14393_v35, %v14294_v58  ;;  %v14502_v31 = vadd.f32 %v19317_v39, %v14401_v62  ;;  %v14689_v58 = vpop.f32.mrf.mxu1 }
0x217d   :  { %v19328_v16 = vpop.f32.mrf.mxu0 }
0x217e   :  { %v14591_v38 = vadd.f32 %v19328_v16, %v14486_v33  ;;  %v14494_v11 = vadd.f32 %v14493_v61, %v14394_v10 }
0x217f   :  { %v14584_v46 = vpop.f32.mrf.mxu0 }
0x2180   :  { %v22587_v52 = vadd.f32 %v19342_v30, %v14591_v38  ;;  %v14585_v57 = vadd.f32 %v14584_v46, %v14478_v4 }
0x2181   :  { %v19331_v48 = vpop.f32.mrf.mxu0 }
0x2182   :  { %v22590_v37 = vmul.f32 0.70710677, %v22587_v52  ;;  %v22592_v6 = vadd.f32 %v14677_v25, %v14585_v57  ;;  %v14603_v44 = vadd.f32 %v19331_v48, %v14502_v31 }
0x2183   :  { %v14596_v42 = vpop.f32.mrf.mxu0 }
0x2184   :  { %v14716_v18 = vand.u32 2147483647, %v22590_v37  ;;  %v22596_v59 = vmul.f32 0.70710677, %v22592_v6  ;;  %v22598_v16 = vadd.f32 %v19345_v60, %v14603_v44  ;;  %v14597_v38 = vadd.f32 %v14596_v42, %v14494_v11 }
0x2185   :  { %vm14708_vm13 = vcmp.ge.f32.partialorder %v22590_v37, 0.0 }
0x2186   :  { %v14720_v33 = vmul.f32 0.3275911, %v14716_v18  ;;  %v14715_v62 = vand.u32 2147483647, %v22596_v59  ;;  %v22602_v35 = vmul.f32 0.70710677, %v22598_v16  ;;  %v22604_v2 = vadd.f32 %v14689_v58, %v14597_v38 }
0x2187   :  { %v14772_v14 = vsub.f32 0.0, %v14716_v18  ;;  %vm14707_vm14 = vcmp.ge.f32.partialorder %v22596_v59, 0.0 }
0x2188   :  { %v14724_v30 = vadd.f32 1.0, %v14720_v33  ;;  %v14719_v28 = vmul.f32 0.3275911, %v14715_v62  ;;  %v14718_v47 = vand.u32 2147483647, %v22602_v35  ;;  %v14771_v40 = vsub.f32 0.0, %v14715_v62 }
0x2189   :  { %v22608_v43 = vmul.f32 0.70710677, %v22604_v2  ;;  %v14776_v25 = vmul.f32 %v14772_v14, %v14716_v18  ;;  %vm14710_vm15 = vcmp.ge.f32.partialorder %v22602_v35, 0.0 }
0x218a   :  { %19825 = vrcp.f32 %v14724_v30  ;;  %v14723_v10 = vadd.f32 1.0, %v14719_v28  ;;  %v14722_v61 = vmul.f32 0.3275911, %v14718_v47  ;;  %v14774_v4 = vsub.f32 0.0, %v14718_v47 }
0x218b   :  { %v14717_v34 = vand.u32 2147483647, %v22608_v43  ;;  %v14775_v57 = vmul.f32 %v14771_v40, %v14715_v62  ;;  %v14781_v48 = vmul.f32 1.442695, %v14776_v25  ;;  %vm14709_vm0 = vcmp.ge.f32.partialorder %v22608_v43, 0.0 }
0x218c   :  { %19827 = vrcp.f32 %v14723_v10  ;;  %v14726_v49 = vadd.f32 1.0, %v14722_v61  ;;  %v14778_v44 = vmul.f32 %v14774_v4, %v14718_v47 }
0x218d   :  { %v14721_v26 = vmul.f32 0.3275911, %v14717_v34  ;;  %v14773_v60 = vsub.f32 0.0, %v14717_v34  ;;  %v14779_v58 = vmul.f32 1.442695, %v14775_v57 }
0x218e   :  { %19829 = vrcp.f32 %v14726_v49  ;;  %v14785_v49 = vmul.f32 1.442695, %v14778_v44 }
0x218f   :  { %v14725_v39 = vadd.f32 1.0, %v14721_v26  ;;  %v14777_v28 = vmul.f32 %v14773_v60, %v14717_v34 }
0x2191   :  { %19831 = vrcp.f32 %v14725_v39  ;;  %v14783_v25 = vmul.f32 1.442695, %v14777_v28 }
0x2192   :  { %19833 = vpow2.f32 %v14781_v48 }
0x2193   :  { %19835 = vpow2.f32 %v14779_v58 }
0x2194   :  { %19837 = vpow2.f32 %v14785_v49 }
0x2195   :  { %19839 = vpow2.f32 %v14783_v25 }
0x2197   :  { %v19826_v46 = vpop.eup %19825 }
0x2198   :  { %v14736_v31 = vmul.f32 1.0614054, %v19826_v46 }
0x2199   :  { %v19828_v11 = vpop.eup %19827 }
0x219a   :  { %v14740_v42 = vadd.f32 -1.4531521, %v14736_v31  ;;  %v14735_v38 = vmul.f32 1.0614054, %v19828_v11 }
0x219b   :  { %v19830_v33 = vpop.eup %19829 }
0x219c   :  { %v14744_v30 = vmul.f32 %v19826_v46, %v14740_v42  ;;  %v14739_v10 = vadd.f32 -1.4531521, %v14735_v38  ;;  %v14738_v61 = vmul.f32 1.0614054, %v19830_v33 }
0x219e   :  { %v14748_v26 = vadd.f32 1.4214138, %v14744_v30  ;;  %v19832_v18 = vpop.eup %19831  ;;  %v14743_v14 = vmul.f32 %v19828_v11, %v14739_v10  ;;  %v14742_v62 = vadd.f32 -1.4531521, %v14738_v61 }
0x219f   :  { %v14737_v40 = vmul.f32 1.0614054, %v19832_v18  ;;  %v19834_v54 = vpop.eup %19833 }
0x21a0   :  { %v14752_v39 = vmul.f32 %v19826_v46, %v14748_v26  ;;  %v14747_v47 = vadd.f32 1.4214138, %v14743_v14  ;;  %v14746_v4 = vmul.f32 %v19830_v33, %v14742_v62 }
0x21a1   :  { %v14741_v57 = vadd.f32 -1.4531521, %v14737_v40 }
0x21a2   :  { %v14756_v31 = vadd.f32 -0.28449672, %v14752_v39  ;;  %v14751_v22 = vmul.f32 %v19828_v11, %v14747_v47  ;;  %v14750_v42 = vadd.f32 1.4214138, %v14746_v4  ;;  %v19836_v47 = vpop.eup %19835 }
0x21a3   :  { %v14745_v34 = vmul.f32 %v19832_v18, %v14741_v57 }
0x21a4   :  { %v14760_v48 = vmul.f32 %v19826_v46, %v14756_v31  ;;  %v14755_v60 = vadd.f32 -0.28449672, %v14751_v22  ;;  %v14754_v44 = vmul.f32 %v19830_v33, %v14750_v42  ;;  %v23302_v22 = vmov -1.0  }
0x21a5   :  { %v14749_v30 = vadd.f32 1.4214138, %v14745_v34  ;;  %v14712_v31 = vsel %vm14708_vm13, 1.0, %v23302_v22  ;;  %v14714_v59 = vsel %vm14710_vm15, 1.0, %v23302_v22 }
0x21a6   :  { %v14764_v38 = vadd.f32 0.2548296, %v14760_v48  ;;  %v14759_v10 = vmul.f32 %v19828_v11, %v14755_v60  ;;  %v14758_v58 = vadd.f32 -0.28449672, %v14754_v44  ;;  %v14711_v44 = vsel %vm14707_vm14, 1.0, %v23302_v22 }
0x21a7   :  { %v14753_v26 = vmul.f32 %v19832_v18, %v14749_v30 }
0x21a8   :  { %v14768_v61 = vmul.f32 %v19826_v46, %v14764_v38  ;;  %v14763_v28 = vadd.f32 0.2548296, %v14759_v10  ;;  %v14762_v14 = vmul.f32 %v19830_v33, %v14758_v58  ;;  %v19838_v46 = vpop.eup %19837 }
0x21a9   :  { %v14757_v62 = vadd.f32 -0.28449672, %v14753_v26  ;;  %v19840_v30 = vpop.eup %19839  ;;  %v14699_v26 = vmul.f32 0.5, %v22592_v6 }
0x21aa   :  { %v14788_v49 = vmul.f32 %v19834_v54, %v14768_v61  ;;  %v14767_v39 = vmul.f32 %v19828_v11, %v14763_v28  ;;  %v14766_v40 = vadd.f32 0.2548296, %v14762_v14  ;;  %v14700_v54 = vmul.f32 0.5, %v22587_v52 }
0x21ab   :  { %v14761_v25 = vmul.f32 %v19832_v18, %v14757_v62  ;;  %v14702_v62 = vmul.f32 0.5, %v22598_v16 }
0x21ac   :  { %v14792_v4 = vsub.f32 1.0, %v14788_v49  ;;  %v14787_v57 = vmul.f32 %v19836_v47, %v14767_v39  ;;  %v14770_v42 = vmul.f32 %v19830_v33, %v14766_v40  ;;  %v14713_v39 = vsel %vm14709_vm0, 1.0, %v23302_v22 }
0x21ad   :  { %v14765_v34 = vadd.f32 0.2548296, %v14761_v25  ;;  %v14701_v25 = vmul.f32 0.5, %v22604_v2 }
0x21ae   :  { %v14796_v48 = vmul.f32 %v14792_v4, %v14712_v31  ;;  %v14791_v60 = vsub.f32 1.0, %v14787_v57  ;;  %v14790_v37 = vmul.f32 %v19838_v46, %v14770_v42 }
0x21af   :  { %v14769_v38 = vmul.f32 %v19832_v18, %v14765_v34 }
0x21b0   :  { %v14800_v11 = vadd.f32 1.0, %v14796_v48  ;;  %v14795_v10 = vmul.f32 %v14791_v60, %v14711_v44  ;;  %v14794_v58 = vsub.f32 1.0, %v14790_v37 }
0x21b1   :  { %v14789_v33 = vmul.f32 %v19840_v30, %v14769_v38 }
0x21b2   :  { %v14804_v61 = vmul.f32 %v14800_v11, %v14700_v54  ;;  %v14799_v28 = vadd.f32 1.0, %v14795_v10  ;;  %v14798_v35 = vmul.f32 %v14794_v58, %v14714_v59  ;;  %v16837_v59 = vld [vmem:[%s23091_s18 + $0x1] ss:$0 sm:$0xff] }
0x21b3   :  { %v14793_v52 = vsub.f32 1.0, %v14789_v33 }
0x21b4   :  { %v22620_v14 = vand.u32 4294901760, %v14804_v61  ;;  %v14803_v49 = vmul.f32 %v14799_v28, %v14699_v26  ;;  %v14802_v18 = vadd.f32 1.0, %v14798_v35 }
0x21b5   :  { %v14797_v47 = vmul.f32 %v14793_v52, %v14713_v39 }
0x21b6   :  { %v22625_v40 = vsub.f32 %v14804_v61, %v22620_v14  ;;  %v14806_v4 = vmul.f32 %v14802_v18, %v14702_v62  ;;  %v22627_v43 = vand.u32 4294901760, %v14803_v49 }
0x21b7   :  { %v14801_v31 = vadd.f32 1.0, %v14797_v47 }
0x21b8   :  { %v14925_v6 = vand.u32 4294901760, %v22625_v40  ;;  %19416 = vmatprep.mubr.f32.mxu1 %v22627_v43  ;;  %v22632_v57 = vand.u32 4294901760, %v14806_v4  ;;  %v14914_v16 = vsub.f32 %v14803_v49, %v22627_v43 }
0x21b9   :  { %v14805_v42 = vmul.f32 %v14801_v31, %v14701_v25  ;;  %19417 = vmatmul.mubr.f32.vlgmr.msra.gmra.mxu1 %v22620_v14 }
0x21ba   :  { %19461 = vmatpush3.msra.mxu1 %v22345_v63  ;;  %v14915_v22 = vand.u32 4294901760, %v14914_v16  ;;  %v22638_v46 = vsub.f32 %v14806_v4, %v22632_v57  ;;  %v14926_v2 = vsub.f32 %v22625_v40, %v14925_v6 }
0x21bb   :  { %19462 = vmatprep.subr.mxu1 %v22353_v3  ;;  %v22644_v48 = vand.u32 4294901760, %v14805_v42 }
0x21bc   :  { %19463 = vmatpush3.msra.mxu1 %v22353_v3  ;;  %v14916_v34 = vsub.f32 %v14914_v16, %v14915_v22  ;;  %v14945_v37 = vand.u32 4294901760, %v22638_v46  ;;  %v14927_v11 = vand.u32 4294901760, %v14926_v2 }
0x21bd   :  { %19419 = vmatprep.mubr.f32.mxu1 %v22644_v48  ;;  %19464 = vmatprep.subr.mxu1 %v22366_v27  ;;  %v22650_v60 = vsub.f32 %v14805_v42, %v22644_v48 }
0x21be   :  { %19420 = vmatmul.mubr.f32.gmra.mxu1 %v22632_v57  ;;  %v14917_v54 = vand.u32 4294901760, %v14916_v34  ;;  %v14946_v30 = vsub.f32 %v22638_v46, %v14945_v37 }
0x21bf   :  { %19465 = vmatpush3.msra.mxu1 %v22366_v27  ;;  %19492 = vmatprep.mubr.f32.mxu1 %v14915_v22  ;;  %v14935_v44 = vand.u32 4294901760, %v22650_v60 }
0x21c0   :  { %19466 = vmatprep.subr.mxu1 %v22381_v8  ;;  %19378 = vmatprep.mubr.f32.mxu0 %v14917_v54  ;;  %v14947_v58 = vand.u32 4294901760, %v14946_v30 }
0x21c1   :  { %19467 = vmatpush3.msra.mxu1 %v22381_v8  ;;  %19379 = vmatmul.mubr.f32.vlgmr.msra.gmra.mxu0 %v14927_v11  ;;  %v14936_v38 = vsub.f32 %v22650_v60, %v14935_v44 }
0x21c2   :  { %19468 = vmatprep.subr.mxu1 %v22397_v53  ;;  %19423 = vmatpush3.msra.mxu0 %v22351_v12  ;;  %v23303_v12 = vld [vmem:[#allocation22_spill] sm:$0xff] }
0x21c3   :  { %19469 = vmatpush3.msra.mxu1 %v22397_v53  ;;  %19424 = vmatprep.subr.mxu0 %v22364_v9  ;;  %v14937_v10 = vand.u32 4294901760, %v14936_v38 }
0x21c4   :  { %19470 = vmatprep.subr.mxu1 %v22408_v23  ;;  %19425 = vmatpush3.msra.mxu0 %v22364_v9  ;;  %v23304_v9 = vld [vmem:[#allocation27_spill] sm:$0xff] }
0x21c5   :  { %19471 = vmatpush3.msra.mxu1 %v22408_v23  ;;  %19381 = vmatprep.mubr.f32.mxu0 %v14937_v10 }
0x21c6   :  { %19426 = vmatprep.subr.mxu0 %v22379_v41  ;;  %19472 = vmatprep.subr.mxu1 %v22422_v20 }
0x21c7   :  { %19382 = vmatmul.mubr.f32.gmra.mxu0 %v14947_v58  ;;  %19473 = vmatpush3.msra.mxu1 %v22422_v20 }
0x21c8   :  { %19427 = vmatpush3.msra.mxu0 %v22379_v41  ;;  %19454 = vmatprep.mubr.f32.mxu0 %v14914_v16  ;;  %v23305_v41 = vld [vmem:[#allocation5_spill] sm:$0xff] }
0x21c9   :  { %19428 = vmatprep.subr.mxu0 %v22394_v1  ;;  %19474 = vmatprep.subr.mxu1 %v22438_v17 }
0x21ca   :  { %19429 = vmatpush3.msra.mxu0 %v22394_v1  ;;  %19475 = vmatpush3.msra.mxu1 %v22438_v17  ;;  %v23310_v1 = vld [vmem:[#allocation12_spill] sm:$0xff] }
0x21cb   :  { %19430 = vmatprep.subr.mxu0 %v22411_v13  ;;  %19476 = vmatprep.subr.mxu1 %v22455_v7 }
0x21cc   :  { %19431 = vmatpush3.msra.mxu0 %v22411_v13  ;;  %19477 = vmatpush3.msra.mxu1 %v22455_v7  ;;  %v23313_v13 = vld [vmem:[#allocation15_spill] sm:$0xff] }
0x21cd   :  { %19432 = vmatprep.subr.mxu0 %v22420_v51  ;;  %19478 = vmatprep.subr.mxu1 %v22471_v50 }
0x21ce   :  { %19433 = vmatpush3.msra.mxu0 %v22420_v51  ;;  %19479 = vmatpush3.msra.mxu1 %v22471_v50  ;;  %v23314_v51 = vld [vmem:[#allocation16_spill] sm:$0xff] }
0x21cf   :  { %19434 = vmatprep.subr.mxu0 %v22436_v21  ;;  %19480 = vmatprep.subr.mxu1 %v22482_v0 }
0x21d0   :  { %19435 = vmatpush3.msra.mxu0 %v22436_v21  ;;  %19481 = vmatpush3.msra.mxu1 %v22482_v0  ;;  %v23316_v21 = vld [vmem:[#allocation18_spill] sm:$0xff] }
0x21d1   :  { %19436 = vmatprep.subr.mxu0 %v22453_v36  ;;  %19482 = vmatprep.subr.mxu1 %v22497_v24 }
0x21d2   :  { %19437 = vmatpush3.msra.mxu0 %v22453_v36  ;;  %19483 = vmatpush3.msra.mxu1 %v22497_v24  ;;  %v23318_v36 = vld [vmem:[#allocation20_spill] sm:$0xff] }
0x21d3   :  { %19438 = vmatprep.subr.mxu0 %v22468_v45  ;;  %19484 = vmatprep.subr.mxu1 %v22513_v5 }
0x21d4   :  { %19439 = vmatpush3.msra.mxu0 %v22468_v45  ;;  %19485 = vmatpush3.msra.mxu1 %v22513_v5  ;;  %v23320_v45 = vld [vmem:[#allocation28_spill] sm:$0xff] }
0x21d5   :  { %19440 = vmatprep.subr.mxu0 %v22486_v29  ;;  %19486 = vmatprep.subr.mxu1 %v22530_v15 }
0x21d6   :  { %19441 = vmatpush3.msra.mxu0 %v22486_v29  ;;  %19487 = vmatpush3.msra.mxu1 %v22530_v15 }
0x21d7   :  { %19442 = vmatprep.subr.mxu0 %v22495_v56  ;;  %19488 = vmatprep.subr.mxu1 %v22546_v55 }
0x21d8   :  { %19443 = vmatpush3.msra.mxu0 %v22495_v56  ;;  %19489 = vmatpush3.msra.mxu1 %v22546_v55 }
0x21d9   :  { %19444 = vmatprep.subr.mxu0 %v22511_v32  ;;  %19490 = vmatprep.subr.mxu1 %v22557_v19 }
0x21da   :  { %19445 = vmatpush3.msra.mxu0 %v22511_v32  ;;  %19491 = vmatpush3.msra.mxu1 %v22557_v19 }
0x21db   :  { %19446 = vmatprep.subr.mxu0 %v23303_v12  ;;  %19493 = vmatmul.mubr.f32.vlgmr.msra.gmra.mxu1 %v14925_v6 }
0x21dc   :  { %19536 = vmatprep.subr.mxu1 %v22345_v63  ;;  %19447 = vmatpush3.msra.mxu0 %v23303_v12  ;;  %v23323_v12 = vld [vmem:[#allocation21_spill] sm:$0xff] }
0x21dd   :  { %19495 = vmatprep.mubr.f32.mxu1 %v14935_v44  ;;  %19537 = vmatpush3.msra.mxu1 %v22345_v63  ;;  %v23306_v63 = vld [vmem:[#allocation6_spill] sm:$0xff] }
0x21de   :  { %19448 = vmatprep.subr.mxu0 %v23304_v9  ;;  %19538 = vmatprep.subr.mxu1 %v22353_v3 }
0x21df   :  { %19449 = vmatpush3.msra.mxu0 %v23304_v9  ;;  %19539 = vmatpush3.msra.mxu1 %v22353_v3  ;;  %v23307_v3 = vld [vmem:[#allocation9_spill] sm:$0xff] }
0x21e0   :  { %19450 = vmatprep.subr.mxu0 %v23305_v41  ;;  %19496 = vmatmul.mubr.f32.gmra.mxu1 %v14945_v37 }
0x21e1   :  { %19540 = vmatprep.subr.mxu1 %v22366_v27  ;;  %19451 = vmatpush3.msra.mxu0 %v23305_v41 }
0x21e2   :  { %19541 = vmatpush3.msra.mxu1 %v22366_v27  ;;  %19568 = vmatprep.mubr.f32.mxu1 %v22627_v43  ;;  %v23308_v27 = vld [vmem:[#allocation10_spill] sm:$0xff] }
0x21e3   :  { %19452 = vmatprep.subr.mxu0 %v23306_v63  ;;  %19542 = vmatprep.subr.mxu1 %v22381_v8 }
0x21e4   :  { %19453 = vmatpush3.msra.mxu0 %v23306_v63  ;;  %19543 = vmatpush3.msra.mxu1 %v22381_v8  ;;  %v23309_v8 = vld [vmem:[#allocation11_spill] sm:$0xff] }
0x21e5   :  { %19455 = vmatmul.mubr.f32.vlgmr.msra.gmra.mxu0 %v22625_v40  ;;  %19498 = vmatprep.subr.mxu0 %v23307_v3 }
0x21e6   :  { %19544 = vmatprep.subr.mxu1 %v22397_v53  ;;  %19457 = vmatprep.mubr.f32.mxu0 %v22650_v60 }
0x21e7   :  { %19499 = vmatpush3.msra.mxu0 %v23307_v3  ;;  %19545 = vmatpush3.msra.mxu1 %v22397_v53  ;;  %v23311_v53 = vld [vmem:[#allocation13_spill] sm:$0xff] }
0x21e8   :  { %19500 = vmatprep.subr.mxu0 %v23308_v27  ;;  %19546 = vmatprep.subr.mxu1 %v22408_v23 }
0x21e9   :  { %19501 = vmatpush3.msra.mxu0 %v23308_v27  ;;  %19547 = vmatpush3.msra.mxu1 %v22408_v23  ;;  %v23312_v23 = vld [vmem:[#allocation14_spill] sm:$0xff] }
0x21ea   :  { %19458 = vmatmul.mubr.f32.gmra.mxu0 %v22638_v46  ;;  %19502 = vmatprep.subr.mxu0 %v23309_v8 }
0x21eb   :  { %19548 = vmatprep.subr.mxu1 %v22422_v20  ;;  %19503 = vmatpush3.msra.mxu0 %v23309_v8  ;;  %v23324_v8 = vld [vmem:[#allocation23_spill] sm:$0xff] }
0x21ec   :  { %19530 = vmatprep.mubr.f32.mxu0 %v22627_v43  ;;  %19549 = vmatpush3.msra.mxu1 %v22422_v20  ;;  %v23315_v20 = vld [vmem:[#allocation17_spill] sm:$0xff] }
0x21ed   :  { %19504 = vmatprep.subr.mxu0 %v23310_v1  ;;  %19550 = vmatprep.subr.mxu1 %v22438_v17 }
0x21ee   :  { %19505 = vmatpush3.msra.mxu0 %v23310_v1  ;;  %19551 = vmatpush3.msra.mxu1 %v22438_v17  ;;  %v23317_v17 = vld [vmem:[#allocation19_spill] sm:$0xff] }
0x21ef   :  { %19506 = vmatprep.subr.mxu0 %v23311_v53  ;;  %19552 = vmatprep.subr.mxu1 %v22455_v7 }
0x21f0   :  { %19507 = vmatpush3.msra.mxu0 %v23311_v53  ;;  %19553 = vmatpush3.msra.mxu1 %v22455_v7  ;;  %v23319_v7 = vld [vmem:[#allocation24_spill] sm:$0xff] }
0x21f1   :  { %19508 = vmatprep.subr.mxu0 %v23312_v23  ;;  %19554 = vmatprep.subr.mxu1 %v22471_v50 }
0x21f2   :  { %19509 = vmatpush3.msra.mxu0 %v23312_v23  ;;  %19555 = vmatpush3.msra.mxu1 %v22471_v50  ;;  %v23321_v50 = vld [vmem:[#allocation8_spill] sm:$0xff] }
0x21f3   :  { %19510 = vmatprep.subr.mxu0 %v23313_v13  ;;  %19556 = vmatprep.subr.mxu1 %v22482_v0 }
0x21f4   :  { %19511 = vmatpush3.msra.mxu0 %v23313_v13  ;;  %19557 = vmatpush3.msra.mxu1 %v22482_v0  ;;  %v23322_v0 = vld [vmem:[#allocation7_spill] sm:$0xff]  ;;  %v23325_v13 = vld [vmem:[#allocation26_spill] sm:$0xff] }
0x21f5   :  { %19512 = vmatprep.subr.mxu0 %v23314_v51  ;;  %19558 = vmatprep.subr.mxu1 %v22497_v24 }
0x21f6   :  { %19513 = vmatpush3.msra.mxu0 %v23314_v51  ;;  %19559 = vmatpush3.msra.mxu1 %v22497_v24 }
0x21f7   :  { %19514 = vmatprep.subr.mxu0 %v23315_v20  ;;  %19560 = vmatprep.subr.mxu1 %v22513_v5 }
0x21f8   :  { %19515 = vmatpush3.msra.mxu0 %v23315_v20  ;;  %19561 = vmatpush3.msra.mxu1 %v22513_v5 }
0x21f9   :  { %19516 = vmatprep.subr.mxu0 %v23316_v21  ;;  %19562 = vmatprep.subr.mxu1 %v22530_v15 }
0x21fa   :  { %19517 = vmatpush3.msra.mxu0 %v23316_v21  ;;  %19563 = vmatpush3.msra.mxu1 %v22530_v15 }
0x21fb   :  { %19518 = vmatprep.subr.mxu0 %v23317_v17  ;;  %19564 = vmatprep.subr.mxu1 %v22546_v55 }
0x21fc   :  { %19519 = vmatpush3.msra.mxu0 %v23317_v17  ;;  %19565 = vmatpush3.msra.mxu1 %v22546_v55  ;;  %v23326_v17 = vld [vmem:[#allocation25_spill] sm:$0xff] }
0x21fd   :  { %19520 = vmatprep.subr.mxu0 %v23318_v36  ;;  %19566 = vmatprep.subr.mxu1 %v22557_v19 }
0x21fe   :  { %19521 = vmatpush3.msra.mxu0 %v23318_v36  ;;  %19567 = vmatpush3.msra.mxu1 %v22557_v19 }
0x21ff   :  { %19522 = vmatprep.subr.mxu0 %v23319_v7  ;;  %19569 = vmatmul.mubr.f32.vlgmr.msra.gmra.mxu1 %v22620_v14 }
0x2200   :  { %19523 = vmatpush3.msra.mxu0 %v23319_v7  ;;  %19571 = vmatprep.mubr.f32.mxu1 %v22644_v48 }
0x2201   :  { %19524 = vmatprep.subr.mxu0 %v23320_v45 }
0x2202   :  { %19525 = vmatpush3.msra.mxu0 %v23320_v45 }
0x2203   :  { %19526 = vmatprep.subr.mxu0 %v23321_v50  ;;  %19572 = vmatmul.mubr.f32.gmra.mxu1 %v22632_v57 }
0x2204   :  { %19527 = vmatpush3.msra.mxu0 %v23321_v50 }
0x2205   :  { %19528 = vmatprep.subr.mxu0 %v23322_v0 }
0x2206   :  { %19529 = vmatpush3.msra.mxu0 %v23322_v0 }
0x2207   :  { %19531 = vmatmul.mubr.f32.vlgmr.msra.gmra.mxu0 %v22620_v14 }
0x2208   :  { %19533 = vmatprep.mubr.f32.mxu0 %v22644_v48 }
0x220b   :  { %19534 = vmatmul.mubr.f32.gmra.mxu0 %v22632_v57 }
0x2279   :  { %v19418_v29 = vpop.f32.mrf.mxu1 }
0x227b   :  { %v15100_v56 = vpop.f32.mrf.mxu1 }
0x227e   :  { %v19421_v32 = vpop.f32.mrf.mxu1 }
0x2280   :  { %v15112_v15 = vpop.f32.mrf.mxu1 }
0x2281   :  { %v19380_v24 = vpop.f32.mrf.mxu0 }
0x2282   :  { %v14930_v28 = vadd.f32 %v19380_v24, %v16837_v59 }
0x2283   :  { %v14919_v5 = vpop.f32.mrf.mxu0 }
0x2284   :  { %v14920_v52 = vadd.f32 %v16837_v59, %v14919_v5  ;;  %v15107_v62 = vadd.f32 %v19418_v29, %v14930_v28 }
0x2286   :  { %v15101_v4 = vadd.f32 %v15100_v56, %v14920_v52 }
0x2287   :  { %v19383_v55 = vpop.f32.mrf.mxu0 }
0x2288   :  { %v14950_v49 = vadd.f32 %v19383_v55, %v16837_v59 }
0x2289   :  { %v14939_v61 = vpop.f32.mrf.mxu0 }
0x228a   :  { %v14940_v40 = vadd.f32 %v16837_v59, %v14939_v61  ;;  %v15119_v25 = vadd.f32 %v19421_v32, %v14950_v49 }
0x228c   :  { %v15113_v16 = vadd.f32 %v15112_v15, %v14940_v40 }
0x229b   :  { %v19494_v19 = vpop.f32.mrf.mxu1 }
0x229d   :  { %v15332_v33 = vpop.f32.mrf.mxu1 }
0x22a0   :  { %v19497_v35 = vpop.f32.mrf.mxu1 }
0x22a2   :  { %v15348_v18 = vpop.f32.mrf.mxu1 }
0x22a5   :  { %v19456_v26 = vpop.f32.mrf.mxu0 }
0x22a6   :  { %v15230_v47 = vadd.f32 %v19456_v26, %v15107_v62  ;;  %v15685_v62 = vld [vmem:[%s23094_s21 + $0x18] sm:$0xff] }
0x22a7   :  { %v15222_v14 = vpop.f32.mrf.mxu0 }
0x22a8   :  { %v15223_v6 = vadd.f32 %v15222_v14, %v15101_v4  ;;  %v15341_v42 = vadd.f32 %v19494_v19, %v15230_v47  ;;  %v15683_v4 = vld [vmem:[%s23094_s21 + $0x8] sm:$0xff] }
0x22aa   :  { %v19459_v39 = vpop.f32.mrf.mxu0  ;;  %v15333_v34 = vadd.f32 %v15332_v33, %v15223_v6 }
0x22ab   :  { %v15244_v57 = vadd.f32 %v19459_v39, %v15119_v25  ;;  %v15684_v39 = vld [vmem:[%s23094_s21 + $0x10] sm:$0xff]  ;;  %v22851_v25 = vand.u32 4294901760, %v15683_v4 }
0x22ac   :  { %v15236_v31 = vpop.f32.mrf.mxu0  ;;  %v22838_v47 = vand.u32 4294901760, %v15684_v39 }
0x22ad   :  { %v15237_v2 = vadd.f32 %v15236_v31, %v15113_v16  ;;  %v15357_v11 = vadd.f32 %v19497_v35, %v15244_v57  ;;  %v15682_v31 = vld [vmem:[%s23094_s21] sm:$0xff] }
0x22ae   :  { %v22849_v6 = vsub.f32 %v15684_v39, %v22838_v47 }
0x22af   :  { %v15349_v58 = vadd.f32 %v15348_v18, %v15237_v2  ;;  %v22830_v18 = vand.u32 4294901760, %v15685_v62 }
0x22b0   :  { %v22861_v16 = vand.u32 4294901760, %v22849_v6 }
0x22b1   :  { %v22836_v40 = vsub.f32 %v15685_v62, %v22830_v18  ;;  %19574 = vmatprep.subr.mxu0 %v22830_v18 }
0x22b2   :  { %19575 = vmatpush3.msra.mxu0 %v22830_v18  ;;  %v15823_v2 = vsub.f32 %v22849_v6, %v22861_v16 }
0x22b3   :  { %19576 = vmatprep.subr.mxu0 %v22838_v47 }
0x22b4   :  { %19577 = vmatpush3.msra.mxu0 %v22838_v47 }
0x22b5   :  { %19578 = vmatprep.subr.mxu0 %v22851_v25 }
0x22b6   :  { %19579 = vmatpush3.msra.mxu0 %v22851_v25 }
0x22bf   :  { %v19570_v43 = vpop.f32.mrf.mxu1 }
0x22c1   :  { %v15580_v22 = vpop.f32.mrf.mxu1 }
0x22c3   :  { %v19573_v44 = vpop.f32.mrf.mxu1 }
0x22c5   :  { %v15592_v53 = vpop.f32.mrf.mxu1 }
0x22c7   :  { %v19532_v46 = vpop.f32.mrf.mxu0 }
0x22c8   :  { %v15482_v48 = vadd.f32 %v19532_v46, %v15341_v42  ;;  %v22864_v42 = vsub.f32 %v15683_v4, %v22851_v25 }
0x22c9   :  { %v15475_v60 = vpop.f32.mrf.mxu0 }
0x22ca   :  { %v15587_v37 = vadd.f32 %v19570_v43, %v15482_v48  ;;  %v15476_v54 = vadd.f32 %v15475_v60, %v15333_v34  ;;  %v22846_v43 = vand.u32 4294901760, %v22836_v40  ;;  %v22873_v48 = vand.u32 4294901760, %v22864_v42 }
0x22cb   :  { %v19535_v38 = vpop.f32.mrf.mxu0  ;;  %v15824_v60 = vand.u32 4294901760, %v15823_v2 }
0x22cc   :  { %v15581_v30 = vadd.f32 %v15580_v22, %v15476_v54  ;;  %v15494_v10 = vadd.f32 %v19535_v38, %v15357_v11  ;;  %v15603_v9 = vadd.f32 %v15587_v37, %v23323_v12  ;;  %v15816_v57 = vsub.f32 %v22836_v40, %v22846_v43 }
0x22cd   :  { %v15487_v41 = vpop.f32.mrf.mxu0  ;;  %v22866_v22 = vand.u32 4294901760, %v15682_v31  ;;  %v15830_v37 = vsub.f32 %v22864_v42, %v22873_v48 }
0x22ce   :  { %v15599_v63 = vadd.f32 %v19573_v44, %v15494_v10  ;;  %v15488_v3 = vadd.f32 %v15487_v41, %v15349_v58  ;;  %v15613_v27 = vsel %vm1123_vm3, %v15603_v9, 0.0  ;;  %v15602_v1 = vadd.f32 %v15581_v30, %v23324_v8 }
0x22cf   :  { %15614 = vadd.xlane.f32.xlu0 %v15613_v27  ;;  %v15817_v46 = vand.u32 4294901760, %v15816_v57  ;;  %v22876_v34 = vsub.f32 %v15682_v31, %v22866_v22  ;;  %19580 = vmatprep.subr.mxu0 %v22866_v22  ;;  %v15831_v11 = vand.u32 4294901760, %v15830_v37  ;;  %v16229_v31 = vld [vmem:[%s23095_s23] sm:$0xff] }
0x22d0   :  { %v15593_v23 = vadd.f32 %v15592_v53, %v15488_v3  ;;  %v15605_v51 = vadd.f32 %v15599_v63, %v23325_v13  ;;  %v15610_v21 = vsel %vm1123_vm3, %v15602_v1, 0.0  ;;  %19581 = vmatpush3.msra.mxu0 %v22866_v22  ;;  %v16840_v13 = vld [vmem:[%s23092_s19 + $0x1] ss:$0 sm:$0xff] }
0x22d1   :  { %19585 = vmatprep.subr.mxu1 %v15817_v46  ;;  %v22883_v54 = vand.u32 4294901760, %v22876_v34  ;;  %19596 = vmatprep.subr.mxu0 %v22836_v40 }
0x22d2   :  { %v15619_v20 = vsel %vm1123_vm3, %v15605_v51, 0.0  ;;  %v15604_v36 = vadd.f32 %v15593_v23, %v23326_v17  ;;  %19586 = vmatpush3.msra.mxu1 %v15817_v46 }
0x22d3   :  { %15620 = vadd.xlane.f32.xlu1 %v15619_v20  ;;  %15611 = vadd.xlane.f32.xlu0 %v15610_v21  ;;  %v15837_v44 = vsub.f32 %v22876_v34, %v22883_v54  ;;  %v22896_v20 = vld [vmem:[%s23093_s20 + $0x1] ss:$0 sm:$0xff] }
0x22d4   :  { %v15616_v7 = vsel %vm1123_vm3, %v15604_v36, 0.0  ;;  %19587 = vmatprep.subr.mxu1 %v15824_v60 }
0x22d5   :  { %19588 = vmatpush3.msra.mxu1 %v15824_v60  ;;  %v15838_v38 = vand.u32 4294901760, %v15837_v44  ;;  %v22944_v44 = vand.u32 4294901760, %v16229_v31 }
0x22d6   :  { %19589 = vmatprep.subr.mxu1 %v15831_v11 }
0x22d7   :  { %15617 = vadd.xlane.f32.xlu1 %v15616_v7  ;;  %19590 = vmatpush3.msra.mxu1 %v15831_v11 }
0x22d8   :  { %19591 = vmatprep.subr.mxu1 %v15838_v38 }
0x22d9   :  { %19592 = vmatpush3.msra.mxu1 %v15838_v38 }
0x22da   :  { %19607 = vmatprep.subr.mxu1 %v22830_v18 }
0x2358   :  { %v15615_v45 = vpop.xlane.xlu0 %15614 }
0x2359   :  { %v15623_v50 = vmul.f32 0.03125, %v15615_v45 }
0x235b   :  { %v22807_v0 = vsub.f32 %v15603_v9, %v15623_v50 }
0x235c   :  { %v15621_v29 = vpop.xlane.xlu1 %15620  ;;  %v15612_v56 = vpop.xlane.xlu0 %15611 }
0x235d   :  { %v15625_v24 = vmul.f32 0.03125, %v15621_v29  ;;  %v15622_v32 = vmul.f32 0.03125, %v15612_v56  ;;  %v15631_v5 = vmul.f32 %v22807_v0, %v22807_v0 }
0x235f   :  { %v22811_v15 = vsub.f32 %v15605_v51, %v15625_v24  ;;  %v22813_v55 = vsub.f32 %v15602_v1, %v15622_v32  ;;  %v15637_v19 = vsel %vm1123_vm3, %v15631_v5, 0.0  ;;  %v16232_v32 = vld [vmem:[%s23095_s23 + $0x18] sm:$0xff] }
0x2360   :  { %15638 = vadd.xlane.f32.xlu0 %v15637_v19  ;;  %v15618_v61 = vpop.xlane.xlu1 %15617 }
0x2361   :  { %v15624_v59 = vmul.f32 0.03125, %v15618_v61  ;;  %v15630_v33 = vmul.f32 %v22813_v55, %v22813_v55  ;;  %v15633_v26 = vmul.f32 %v22811_v15, %v22811_v15 }
0x2363   :  { %v22820_v28 = vsub.f32 %v15604_v36, %v15624_v59  ;;  %v15634_v35 = vsel %vm1123_vm3, %v15630_v33, 0.0  ;;  %v15643_v14 = vsel %vm1123_vm3, %v15633_v26, 0.0  ;;  %v22913_v33 = vand.u32 4294901760, %v16232_v32  ;;  %v16231_v26 = vld [vmem:[%s23095_s23 + $0x10] sm:$0xff] }
0x2364   :  { %15635 = vadd.xlane.f32.xlu0 %v15634_v35  ;;  %15644 = vadd.xlane.f32.xlu1 %v15643_v14  ;;  %v22925_v39 = vand.u32 4294901760, %v16231_v26 }
0x2365   :  { %v15632_v52 = vmul.f32 %v22820_v28, %v22820_v28  ;;  %v22929_v4 = vsub.f32 %v16232_v32, %v22913_v33 }
0x2366   :  { %v22942_v11 = vsub.f32 %v16231_v26, %v22925_v39 }
0x2367   :  { %v15640_v49 = vsel %vm1123_vm3, %v15632_v52, 0.0 }
0x2368   :  { %15641 = vadd.xlane.f32.xlu1 %v15640_v49 }
0x23e9   :  { %v15639_v30 = vpop.xlane.xlu0 %15638 }
0x23ea   :  { %v15647_v10 = vmul.f32 0.03125, %v15639_v30 }
0x23ec   :  { %v15651_v58 = vadd.f32 1e-05, %v15647_v10 }
0x23ed   :  { %v15636_v12 = vpop.xlane.xlu0 %15635  ;;  %v15645_v9 = vpop.xlane.xlu1 %15644 }
0x23ee   :  { %19841 = vrsqrt.f32 %v15651_v58  ;;  %v15649_v41 = vmul.f32 0.03125, %v15645_v9  ;;  %v15646_v63 = vmul.f32 0.03125, %v15636_v12  ;;  %v22959_v58 = vand.u32 4294901760, %v22942_v11 }
0x23ef   :  { %v22962_v12 = vsub.f32 %v16229_v31, %v22944_v44 }
0x23f0   :  { %v15653_v3 = vadd.f32 1e-05, %v15649_v41  ;;  %v15650_v27 = vadd.f32 1e-05, %v15646_v63  ;;  %v16370_v63 = vsub.f32 %v22942_v11, %v22959_v58 }
0x23f1   :  { %v15642_v8 = vpop.xlane.xlu1 %15641 }
0x23f2   :  { %19843 = vrsqrt.f32 %v15653_v3  ;;  %v15648_v1 = vmul.f32 0.03125, %v15642_v8 }
0x23f3   :  { %19845 = vrsqrt.f32 %v15650_v27 }
0x23f4   :  { %v15652_v53 = vadd.f32 1e-05, %v15648_v1 }
0x23f6   :  { %19847 = vrsqrt.f32 %v15652_v53 }
0x23fb   :  { %v19842_v23 = vpop.eup %19841 }
0x23fc   :  { %v15659_v51 = vmul.f32 %v19842_v23, %v22807_v0 }
0x23fe   :  { %v15669_v21 = vmul.f32 %v16840_v13, %v15659_v51 }
0x23ff   :  { %v19844_v17 = vpop.eup %19843 }
0x2400   :  { %v15679_v36 = vadd.f32 %v22896_v20, %v15669_v21  ;;  %v15661_v7 = vmul.f32 %v19844_v17, %v22811_v15  ;;  %v19846_v56 = vpop.eup %19845 }
0x2401   :  { %v15658_v15 = vmul.f32 %v19846_v56, %v22813_v55  ;;  %v16230_v55 = vld [vmem:[%s23095_s23 + $0x8] sm:$0xff] }
0x2402   :  { %v15694_v45 = vsel %vm1123_vm3, %v15679_v36, 0  ;;  %v15671_v50 = vmul.f32 %v16840_v13, %v15661_v7  ;;  %v22936_v2 = vand.u32 4294901760, %v16230_v55 }
0x2403   :  { %v22901_v29 = vand.u32 4294901760, %v15694_v45  ;;  %v19848_v14 = vpop.eup %19847  ;;  %v15668_v49 = vmul.f32 %v16840_v13, %v15658_v15 }
0x2404   :  { %v15681_v0 = vadd.f32 %v22896_v20, %v15671_v50  ;;  %v15660_v57 = vmul.f32 %v19848_v14, %v22820_v28  ;;  %v22948_v28 = vand.u32 4294901760, %v22929_v4  ;;  %v22952_v38 = vsub.f32 %v16230_v55, %v22936_v2 }
0x2405   :  { %19593 = vmatprep.mubr.f32.mxu1 %v22901_v29  ;;  %v15769_v24 = vsub.f32 %v15694_v45, %v22901_v29  ;;  %v15678_v60 = vadd.f32 %v22896_v20, %v15668_v49 }
0x2406   :  { %v15697_v5 = vsel %vm1123_vm3, %v15681_v0, 0  ;;  %v15670_v30 = vmul.f32 %v16840_v13, %v15660_v57  ;;  %v16363_v9 = vsub.f32 %v22929_v4, %v22948_v28 }
0x2407   :  { %v15770_v19 = vand.u32 4294901760, %v15769_v24  ;;  %v22911_v61 = vand.u32 4294901760, %v15697_v5  ;;  %v16241_v10 = vsel %vm1123_vm3, %v15678_v60, 0 }
0x2408   :  { %v15680_v41 = vadd.f32 %v22896_v20, %v15670_v30  ;;  %v16364_v3 = vand.u32 4294901760, %v16363_v9  ;;  %v16842_v20 = vld [vmem:[%s23096_s22] ss:$0 sm:$0xff] }
0x2409   :  { %v15771_v59 = vsub.f32 %v15769_v24, %v15770_v19  ;;  %19594 = vmatmul.mubr.f32.vlgmr.msra.gmra.mxu1 %v22911_v61  ;;  %v15779_v35 = vsub.f32 %v15697_v5, %v22911_v61 }
0x240a   :  { %19608 = vmatpush3.msra.mxu1 %v22830_v18  ;;  %19615 = vmatprep.mubr.f32.mxu1 %v15770_v19 }
0x240b   :  { %v15772_v52 = vand.u32 4294901760, %v15771_v59  ;;  %19609 = vmatprep.subr.mxu1 %v22838_v47  ;;  %v15780_v62 = vand.u32 4294901760, %v15779_v35 }
0x240c   :  { %19610 = vmatpush3.msra.mxu1 %v22838_v47 }
0x240d   :  { %19582 = vmatprep.mubr.f32.mxu0 %v15772_v52  ;;  %19611 = vmatprep.subr.mxu1 %v22851_v25  ;;  %v15781_v46 = vsub.f32 %v15779_v35, %v15780_v62 }
0x240e   :  { %19612 = vmatpush3.msra.mxu1 %v22851_v25 }
0x240f   :  { %19613 = vmatprep.subr.mxu1 %v22866_v22  ;;  %v15782_v37 = vand.u32 4294901760, %v15781_v46 }
0x2410   :  { %19614 = vmatpush3.msra.mxu1 %v22866_v22 }
0x2411   :  { %19616 = vmatmul.mubr.f32.vlgmr.msra.gmra.mxu1 %v15780_v62  ;;  %19629 = vmatprep.subr.mxu1 %v22830_v18 }
0x2412   :  { %19583 = vmatmul.mubr.f32.vlgmr.msra.gmra.mxu0 %v15782_v37  ;;  %19630 = vmatpush3.msra.mxu1 %v22830_v18  ;;  %v22969_v18 = vand.u32 4294901760, %v16241_v10 }
0x2413   :  { %19597 = vmatpush3.msra.mxu0 %v22836_v40  ;;  %19637 = vmatprep.mubr.f32.mxu1 %v22901_v29  ;;  %v22972_v40 = vand.u32 4294901760, %v22952_v38 }
0x2414   :  { %19598 = vmatprep.subr.mxu0 %v22849_v6  ;;  %19604 = vmatprep.mubr.f32.mxu0 %v15769_v24  ;;  %v16316_v27 = vsub.f32 %v16241_v10, %v22969_v18 }
0x2415   :  { %19631 = vmatprep.subr.mxu1 %v22838_v47  ;;  %19599 = vmatpush3.msra.mxu0 %v22849_v6  ;;  %v22982_v6 = vand.u32 4294901760, %v22962_v12 }
0x2416   :  { %19632 = vmatpush3.msra.mxu1 %v22838_v47  ;;  %19600 = vmatprep.subr.mxu0 %v22864_v42  ;;  %v16377_v47 = vsub.f32 %v22952_v38, %v22972_v40  ;;  %v16317_v53 = vand.u32 4294901760, %v16316_v27 }
0x2417   :  { %19633 = vmatprep.subr.mxu1 %v22851_v25  ;;  %19601 = vmatpush3.msra.mxu0 %v22864_v42  ;;  %v16244_v42 = vsel %vm1123_vm3, %v15680_v41, 0  ;;  %v16384_v8 = vsub.f32 %v22962_v12, %v22982_v6 }
0x2418   :  { %19634 = vmatpush3.msra.mxu1 %v22851_v25  ;;  %19602 = vmatprep.subr.mxu0 %v22876_v34  ;;  %v16371_v25 = vand.u32 4294901760, %v16370_v63  ;;  %v16378_v1 = vand.u32 4294901760, %v16377_v47  ;;  %v16318_v23 = vsub.f32 %v16316_v27, %v16317_v53 }
0x2419   :  { %19635 = vmatprep.subr.mxu1 %v22866_v22  ;;  %19603 = vmatpush3.msra.mxu0 %v22876_v34  ;;  %v22998_v34 = vand.u32 4294901760, %v16244_v42 }
0x241a   :  { %19636 = vmatpush3.msra.mxu1 %v22866_v22  ;;  %19605 = vmatmul.mubr.f32.vlgmr.msra.gmra.mxu0 %v15779_v35  ;;  %v16385_v22 = vand.u32 4294901760, %v16384_v8  ;;  %v16319_v13 = vand.u32 4294901760, %v16318_v23 }
0x241b   :  { %19618 = vmatprep.subr.mxu0 %v22846_v43  ;;  %19638 = vmatmul.mubr.f32.vlgmr.msra.gmra.mxu1 %v22911_v61 }
0x241c   :  { %19651 = vmatprep.subr.mxu1 %v16364_v3  ;;  %19619 = vmatpush3.msra.mxu0 %v22846_v43  ;;  %v16326_v43 = vsub.f32 %v16244_v42, %v22998_v34 }
0x241d   :  { %19626 = vmatprep.mubr.f32.mxu0 %v22901_v29  ;;  %19652 = vmatpush3.msra.mxu1 %v16364_v3 }
0x241e   :  { %19659 = vmatprep.mubr.f32.mxu1 %v22969_v18  ;;  %19620 = vmatprep.subr.mxu0 %v22861_v16 }
0x241f   :  { %19653 = vmatprep.subr.mxu1 %v16371_v25  ;;  %19621 = vmatpush3.msra.mxu0 %v22861_v16  ;;  %v16327_v16 = vand.u32 4294901760, %v16326_v43 }
0x2420   :  { %19654 = vmatpush3.msra.mxu1 %v16371_v25  ;;  %19622 = vmatprep.subr.mxu0 %v22873_v48 }
0x2421   :  { %19655 = vmatprep.subr.mxu1 %v16378_v1  ;;  %19623 = vmatpush3.msra.mxu0 %v22873_v48  ;;  %v16328_v48 = vsub.f32 %v16326_v43, %v16327_v16 }
0x2422   :  { %19656 = vmatpush3.msra.mxu1 %v16378_v1  ;;  %19624 = vmatprep.subr.mxu0 %v22883_v54 }
0x2423   :  { %19657 = vmatprep.subr.mxu1 %v16385_v22  ;;  %19625 = vmatpush3.msra.mxu0 %v22883_v54  ;;  %v16329_v54 = vand.u32 4294901760, %v16328_v48 }
0x2424   :  { %19658 = vmatpush3.msra.mxu1 %v16385_v22  ;;  %19627 = vmatmul.mubr.f32.vlgmr.msra.gmra.mxu0 %v22911_v61 }
0x2425   :  { %19640 = vmatprep.subr.mxu0 %v22913_v33  ;;  %19660 = vmatmul.mubr.f32.vlgmr.msra.gmra.mxu1 %v22998_v34 }
0x2426   :  { %19673 = vmatprep.subr.mxu1 %v22913_v33  ;;  %19641 = vmatpush3.msra.mxu0 %v22913_v33 }
0x2427   :  { %19648 = vmatprep.mubr.f32.mxu0 %v16319_v13  ;;  %19674 = vmatpush3.msra.mxu1 %v22913_v33 }
0x2428   :  { %19681 = vmatprep.mubr.f32.mxu1 %v16317_v53  ;;  %19642 = vmatprep.subr.mxu0 %v22925_v39 }
0x2429   :  { %19675 = vmatprep.subr.mxu1 %v22925_v39  ;;  %19643 = vmatpush3.msra.mxu0 %v22925_v39 }
0x242a   :  { %19676 = vmatpush3.msra.mxu1 %v22925_v39  ;;  %19644 = vmatprep.subr.mxu0 %v22936_v2 }
0x242b   :  { %19677 = vmatprep.subr.mxu1 %v22936_v2  ;;  %19645 = vmatpush3.msra.mxu0 %v22936_v2 }
0x242c   :  { %19678 = vmatpush3.msra.mxu1 %v22936_v2  ;;  %19646 = vmatprep.subr.mxu0 %v22944_v44 }
0x242d   :  { %19679 = vmatprep.subr.mxu1 %v22944_v44  ;;  %19647 = vmatpush3.msra.mxu0 %v22944_v44 }
0x242e   :  { %19680 = vmatpush3.msra.mxu1 %v22944_v44  ;;  %19649 = vmatmul.mubr.f32.vlgmr.msra.gmra.mxu0 %v16329_v54 }
0x242f   :  { %19662 = vmatprep.subr.mxu0 %v22929_v4  ;;  %19682 = vmatmul.mubr.f32.vlgmr.msra.gmra.mxu1 %v16327_v16 }
0x2430   :  { %19695 = vmatprep.subr.mxu1 %v22913_v33  ;;  %19663 = vmatpush3.msra.mxu0 %v22929_v4 }
0x2431   :  { %19670 = vmatprep.mubr.f32.mxu0 %v16316_v27  ;;  %19696 = vmatpush3.msra.mxu1 %v22913_v33 }
0x2432   :  { %19703 = vmatprep.mubr.f32.mxu1 %v22969_v18  ;;  %19664 = vmatprep.subr.mxu0 %v22942_v11 }
0x2433   :  { %19697 = vmatprep.subr.mxu1 %v22925_v39  ;;  %19665 = vmatpush3.msra.mxu0 %v22942_v11 }
0x2434   :  { %19698 = vmatpush3.msra.mxu1 %v22925_v39  ;;  %19666 = vmatprep.subr.mxu0 %v22952_v38  ;;  %v16843_v39 = vld [vmem:[%s23098_s24] ss:$0 sm:$0xff] }
0x2435   :  { %19699 = vmatprep.subr.mxu1 %v22936_v2  ;;  %19667 = vmatpush3.msra.mxu0 %v22952_v38 }
0x2436   :  { %19700 = vmatpush3.msra.mxu1 %v22936_v2  ;;  %19668 = vmatprep.subr.mxu0 %v22962_v12 }
0x2437   :  { %19701 = vmatprep.subr.mxu1 %v22944_v44  ;;  %19669 = vmatpush3.msra.mxu0 %v22962_v12 }
0x2438   :  { %19702 = vmatpush3.msra.mxu1 %v22944_v44  ;;  %19671 = vmatmul.mubr.f32.vlgmr.msra.gmra.mxu0 %v16326_v43 }
0x2439   :  { %19684 = vmatprep.subr.mxu0 %v22948_v28  ;;  %19704 = vmatmul.mubr.f32.vlgmr.msra.gmra.mxu1 %v22998_v34 }
0x243a   :  { %19685 = vmatpush3.msra.mxu0 %v22948_v28  ;;  %19692 = vmatprep.mubr.f32.mxu0 %v22969_v18 }
0x243b   :  { %19686 = vmatprep.subr.mxu0 %v22959_v58 }
0x243c   :  { %19687 = vmatpush3.msra.mxu0 %v22959_v58 }
0x243d   :  { %19688 = vmatprep.subr.mxu0 %v22972_v40 }
0x243e   :  { %19689 = vmatpush3.msra.mxu0 %v22972_v40 }
0x243f   :  { %19690 = vmatprep.subr.mxu0 %v22982_v6 }
0x2440   :  { %19691 = vmatpush3.msra.mxu0 %v22982_v6 }
0x2441   :  { %19693 = vmatmul.mubr.f32.vlgmr.msra.gmra.mxu0 %v22998_v34 }
0x24c9   :  { %v19595_v21 = vpop.f32.mrf.mxu1 }
0x24cb   :  { %v15875_v50 = vpop.f32.mrf.mxu1 }
0x24d1   :  { %v19617_v56 = vpop.f32.mrf.mxu1 }
0x24d2   :  { %v19584_v51 = vpop.f32.mrf.mxu0 }
0x24d3   :  { %v15785_v36 = vadd.f32 %v19584_v51, %v16842_v20  ;;  %v16045_v19 = vpop.f32.mrf.mxu1 }
0x24d4   :  { %v15774_v17 = vpop.f32.mrf.mxu0 }
0x24d5   :  { %v15775_v45 = vadd.f32 %v16842_v20, %v15774_v17  ;;  %v15882_v29 = vadd.f32 %v19595_v21, %v15785_v36 }
0x24d7   :  { %v15876_v32 = vadd.f32 %v15875_v50, %v15775_v45 }
0x24da   :  { %v19606_v7 = vpop.f32.mrf.mxu0 }
0x24db   :  { %v15969_v24 = vadd.f32 %v19606_v7, %v15882_v29  ;;  %v19639_v61 = vpop.f32.mrf.mxu1 }
0x24dc   :  { %v15961_v0 = vpop.f32.mrf.mxu0 }
0x24dd   :  { %v15962_v5 = vadd.f32 %v15961_v0, %v15876_v32  ;;  %v16054_v15 = vadd.f32 %v19617_v56, %v15969_v24  ;;  %v16217_v49 = vpop.f32.mrf.mxu1 }
0x24df   :  { %v16046_v26 = vadd.f32 %v16045_v19, %v15962_v5 }
0x24e4   :  { %v19628_v59 = vpop.f32.mrf.mxu0 }
0x24e5   :  { %v16143_v33 = vadd.f32 %v19628_v59, %v16054_v15  ;;  %v19661_v4 = vpop.f32.mrf.mxu1 }
0x24e6   :  { %v16136_v35 = vpop.f32.mrf.mxu0 }
0x24e7   :  { %v16224_v14 = vadd.f32 %v19639_v61, %v16143_v33  ;;  %v16137_v52 = vadd.f32 %v16136_v35, %v16046_v26  ;;  %v16422_v60 = vpop.f32.mrf.mxu1 }
0x24e9   :  { %16228 = vst [vmem:[%s23097_s25 + $0x8] sm:$0xff] %v16224_v14  ;;  %v16218_v55 = vadd.f32 %v16217_v49, %v16137_v52 }
0x24eb   :  { %16227 = vst [vmem:[%s23097_s25] sm:$0xff] %v16218_v55 }
0x24ee   :  { %v19650_v62 = vpop.f32.mrf.mxu0 }
0x24ef   :  { %v16332_v57 = vadd.f32 %v19650_v62, %v16843_v39  ;;  %v19683_v11 = vpop.f32.mrf.mxu1 }
0x24f0   :  { %v16321_v31 = vpop.f32.mrf.mxu0 }
0x24f1   :  { %v16322_v46 = vadd.f32 %v16843_v39, %v16321_v31  ;;  %v16429_v37 = vadd.f32 %v19661_v4, %v16332_v57  ;;  %v16592_v10 = vpop.f32.mrf.mxu1 }
0x24f3   :  { %v16423_v38 = vadd.f32 %v16422_v60, %v16322_v46 }
0x24f8   :  { %v19672_v2 = vpop.f32.mrf.mxu0 }
0x24f9   :  { %v16516_v28 = vadd.f32 %v19672_v2, %v16429_v37  ;;  %v19705_v12 = vpop.f32.mrf.mxu1 }
0x24fa   :  { %v16508_v44 = vpop.f32.mrf.mxu0 }
0x24fb   :  { %v16509_v30 = vadd.f32 %v16508_v44, %v16423_v38  ;;  %v16601_v58 = vadd.f32 %v19683_v11, %v16516_v28  ;;  %v16764_v3 = vpop.f32.mrf.mxu1 }
0x24fd   :  { %v16593_v40 = vadd.f32 %v16592_v10, %v16509_v30 }
0x2501   :  { %v19694_v9 = vpop.f32.mrf.mxu0 }
0x2502   :  { %v16690_v18 = vadd.f32 %v19694_v9, %v16601_v58 }
0x2503   :  { %v16683_v41 = vpop.f32.mrf.mxu0 }
0x2504   :  { %v16771_v63 = vadd.f32 %v19705_v12, %v16690_v18  ;;  %v16684_v6 = vadd.f32 %v16683_v41, %v16593_v40 }
0x2506   :  { %16775 = vst [vmem:[%s23099_s26 + $0x8] sm:$0xff] %v16771_v63  ;;  %v16765_v47 = vadd.f32 %v16764_v3, %v16684_v6 }
0x2508   :  { %16774 = vst [vmem:[%s23099_s26] sm:$0xff] %v16765_v47 }

</bundles_post_ra>
